<compile_context>
chip_gen: v5e
topology: v5e:2x2
jax: 0.10.0
libtpu: 0.0.40
codegen_flags: <defaults>
</compile_context>

<pallas_src>
import functools
import math

import jax
import jax.numpy as jnp
from jax.experimental import pallas as pl
from jax.experimental.pallas import tpu as pltpu


# ----------------------------------------------------------------------------
# Constants / hardware-aware budgets
# ----------------------------------------------------------------------------
LN_EPS = 1e-5
# TODO(synk): custom_layers.PositionalEncoding is not provided; a NeRF-style PE with
# 6 encoding functions (include_input=True) is used, matching the declared dim formula.
NUM_ENC_FNS = 6

try:
    _VMEM_CAP = int(pltpu.get_tpu_info().vmem_capacity_bytes)
except Exception:  # off-device / older API: assume the smallest (v7x) capacity
    _VMEM_CAP = 64 * 1024 * 1024
_VMEM_LIMIT = max(32 * 1024 * 1024, min(_VMEM_CAP // 2, 64 * 1024 * 1024))
_BLOCK_BUDGET = _VMEM_LIMIT // 3          # live blocks (incl. double-buffering) per call
_MIN_STEPS = 4 if _VMEM_CAP <= 64 * 1024 * 1024 else 2   # v7x: 2 TCs x >=2 steps each
_XLA_FALLBACK_ROWS = 256                  # below this, Pallas launch overhead dominates


def _round_up(x, m):
    return ((x + m - 1) // m) * m


def _gelu(x):
    # NOTE: tanh-approx GELU (PyTorch nn.GELU default is erf-exact; |diff| < ~1e-3).
    return 0.5 * x * (1.0 + jnp.tanh(0.7978845608028654 * (x + 0.044715 * x * x * x)))


def _pick_tm(M, per_row_bytes, fixed_bytes):
    """Largest row tile dividing the (8-padded) M that fits the VMEM block budget
    (double-buffering and in-kernel f32 temporaries folded into per_row_bytes) and
    leaves >= _MIN_STEPS grid steps when M allows it."""
    Mp = _round_up(M, 8)
    budget = max(_BLOCK_BUDGET - fixed_bytes, 2 * 1024 * 1024)
    cands = [t for t in (2048, 1024, 512, 256, 128, 64, 32, 16, 8)
             if Mp % t == 0 and t * per_row_bytes <= budget]
    if not cands:
        return 8, Mp
    for t in cands:
        if Mp // t >= _MIN_STEPS:
            return t, Mp
    return cands[0], Mp


def layer_norm(x, g, b):
    mu = jnp.mean(x, axis=-1, keepdims=True)
    var = jnp.mean((x - mu) ** 2, axis=-1, keepdims=True)
    return (x - mu) * jax.lax.rsqrt(var + LN_EPS) * g + b


# ----------------------------------------------------------------------------
# Fused linear kernel:  [LN] -> [GELU] -> x @ W + b -> [GELU] -> [+ residual]
#   x/residual/out bf16 in HBM, LN stats + accumulation in f32.
# ----------------------------------------------------------------------------
def _make_linear_kernel(pre_ln, pre_act, act, has_res):
    def kernel(*refs):
        idx = 0
        x_ref = refs[idx]; idx += 1
        w_ref = refs[idx]; idx += 1
        b_ref = refs[idx]; idx += 1
        if pre_ln:
            g_ref = refs[idx]; idx += 1
            be_ref = refs[idx]; idx += 1
        if has_res:
            r_ref = refs[idx]; idx += 1
        o_ref = refs[idx]

        x = x_ref[...].astype(jnp.float32)
        if pre_ln:
            mu = jnp.mean(x, axis=-1, keepdims=True)
            var = jnp.mean((x - mu) ** 2, axis=-1, keepdims=True)
            x = (x - mu) * jax.lax.rsqrt(var + LN_EPS) * g_ref[...] + be_ref[...]
        if pre_act:
            x = _gelu(x)
        y = jnp.dot(x.astype(jnp.bfloat16), w_ref[...],
                    preferred_element_type=jnp.float32)
        y = y + b_ref[...]
        if act:
            y = _gelu(y)
        if has_res:
            y = y + r_ref[...].astype(jnp.float32)
        o_ref[...] = y.astype(o_ref.dtype)

    return kernel


@functools.lru_cache(maxsize=None)
def _linear_call(Mp, K, N, tm, pre_ln, pre_act, act, has_res):
    in_specs = [
        pl.BlockSpec((tm, K), lambda i: (i, 0)),
        pl.BlockSpec((K, N), lambda i: (0, 0)),
        pl.BlockSpec((1, N), lambda i: (0, 0)),
    ]
    if pre_ln:
        in_specs += [pl.BlockSpec((1, K), lambda i: (0, 0)),
                     pl.BlockSpec((1, K), lambda i: (0, 0))]
    if has_res:
        in_specs += [pl.BlockSpec((tm, N), lambda i: (i, 0))]
    fn = pl.pallas_call(
        _make_linear_kernel(pre_ln, pre_act, act, has_res),
        out_shape=jax.ShapeDtypeStruct((Mp, N), jnp.bfloat16),
        grid=(Mp // tm,),
        in_specs=in_specs,
        out_specs=pl.BlockSpec((tm, N), lambda i: (i, 0)),
        compiler_params=pltpu.CompilerParams(
            dimension_semantics=("parallel",),
            vmem_limit_bytes=_VMEM_LIMIT),
    )
    return jax.jit(fn)


def _linear_ref(x, w, b, act, pre_act, ln, residual):
    """Plain-XLA fallback for tiny shapes; numerics match the kernel (bf16 matmul)."""
    xf = x.astype(jnp.float32)
    if ln is not None:
        g, be = ln
        xf = layer_norm(xf, g.astype(jnp.float32), be.astype(jnp.float32))
    if pre_act:
        xf = _gelu(xf)
    y = jnp.dot(xf.astype(jnp.bfloat16), w.astype(jnp.bfloat16),
                preferred_element_type=jnp.float32)
    if b is not None:
        y = y + b.reshape(1, -1).astype(jnp.float32)
    if act:
        y = _gelu(y)
    if residual is not None:
        y = y + residual.astype(jnp.float32)
    return y.astype(jnp.bfloat16)


def pallas_linear(x, w, b=None, act=False, pre_act=False, ln=None, residual=None):
    """y = [gelu]([LN](x)) @ w + b, optional gelu(y), optional + residual (bf16 out)."""
    M, K = x.shape
    N = w.shape[1]
    if M < _XLA_FALLBACK_ROWS or N < 128 or K < 8:
        return _linear_ref(x, w, b, act, pre_act, ln, residual)
    if b is None:
        b = jnp.zeros((1, N), jnp.float32)
    else:
        b = b.reshape(1, N).astype(jnp.float32)
    x = x.astype(jnp.bfloat16)
    w = w.astype(jnp.bfloat16)
    # per-row bytes: bf16 x/out(/res) double-buffered + f32 in-kernel temporaries
    per_row = 4 * (K + N * (2 if residual is not None else 1)) + 4 * (K + N)
    fixed = 4 * K * N + 16 * (K + N)
    tm, Mp = _pick_tm(M, per_row, fixed)
    if Mp != M:
        x = jnp.pad(x, ((0, Mp - M), (0, 0)))
    args = [x, w, b]
    if ln is not None:
        g, beta = ln
        args += [g.reshape(1, K).astype(jnp.float32),
                 beta.reshape(1, K).astype(jnp.float32)]
    if residual is not None:
        r = residual.astype(jnp.bfloat16)
        if Mp != M:
            r = jnp.pad(r, ((0, Mp - M), (0, 0)))
        args.append(r)
    out = _linear_call(Mp, K, N, tm, ln is not None, bool(pre_act), bool(act),
                       residual is not None)(*args)
    return out[:M] if Mp != M else out


# ----------------------------------------------------------------------------
# Fused transformer MLP block: out = x + GELU(LN(x) @ W1 + b1) @ W2 + b2
# ----------------------------------------------------------------------------
def _mlp_kernel(x_ref, w1_ref, b1_ref, w2_ref, b2_ref, g_ref, be_ref, o_ref):
    x = x_ref[...].astype(jnp.float32)
    mu = jnp.mean(x, axis=-1, keepdims=True)
    var = jnp.mean((x - mu) ** 2, axis=-1, keepdims=True)
    xn = (x - mu) * jax.lax.rsqrt(var + LN_EPS) * g_ref[...] + be_ref[...]
    h = jnp.dot(xn.astype(jnp.bfloat16), w1_ref[...],
                preferred_element_type=jnp.float32) + b1_ref[...]
    # bf16 GELU: its result feeds a bf16 matmul anyway (2x VALU throughput on v6e/v7x).
    h = _gelu(h.astype(jnp.bfloat16))
    y = jnp.dot(h, w2_ref[...], preferred_element_type=jnp.float32) + b2_ref[...]
    o_ref[...] = (y + x).astype(o_ref.dtype)


@functools.lru_cache(maxsize=None)
def _mlp_call(Mp, C, H, tm):
    fn = pl.pallas_call(
        _mlp_kernel,
        out_shape=jax.ShapeDtypeStruct((Mp, C), jnp.bfloat16),
        grid=(Mp // tm,),
        in_specs=[
            pl.BlockSpec((tm, C), lambda i: (i, 0)),
            pl.BlockSpec((C, H), lambda i: (0, 0)),
            pl.BlockSpec((1, H), lambda i: (0, 0)),
            pl.BlockSpec((H, C), lambda i: (0, 0)),
            pl.BlockSpec((1, C), lambda i: (0, 0)),
            pl.BlockSpec((1, C), lambda i: (0, 0)),
            pl.BlockSpec((1, C), lambda i: (0, 0)),
        ],
        out_specs=pl.BlockSpec((tm, C), lambda i: (i, 0)),
        compiler_params=pltpu.CompilerParams(
            dimension_semantics=("parallel",),
            vmem_limit_bytes=_VMEM_LIMIT),
    )
    return jax.jit(fn)


def _mlp_ref(x, w1, b1, w2, b2, g, beta):
    xf = x.astype(jnp.float32)
    xn = layer_norm(xf, g.reshape(1, -1).astype(jnp.float32),
                    beta.reshape(1, -1).astype(jnp.float32))
    h = jnp.dot(xn.astype(jnp.bfloat16), w1.astype(jnp.bfloat16),
                preferred_element_type=jnp.float32) + b1.reshape(1, -1).astype(jnp.float32)
    h = _gelu(h)
    y = jnp.dot(h.astype(jnp.bfloat16), w2.astype(jnp.bfloat16),
                preferred_element_type=jnp.float32) + b2.reshape(1, -1).astype(jnp.float32)
    return (y + xf).astype(jnp.bfloat16)


def pallas_mlp_block(x, w1, b1, w2, b2, g, beta):
    M, C = x.shape
    H = w1.shape[1]
    if M < _XLA_FALLBACK_ROWS or C < 128:
        return _mlp_ref(x, w1, b1, w2, b2, g, beta)
    x = x.astype(jnp.bfloat16)
    per_row = 4 * (C + C) + 4 * (2 * C + H) + 2 * H
    fixed = 8 * C * H + 16 * (C + H)
    tm, Mp = _pick_tm(M, per_row, fixed)
    if Mp != M:
        x = jnp.pad(x, ((0, Mp - M), (0, 0)))
    out = _mlp_call(Mp, C, H, tm)(
        x, w1.astype(jnp.bfloat16), b1.reshape(1, H).astype(jnp.float32),
        w2.astype(jnp.bfloat16), b2.reshape(1, C).astype(jnp.float32),
        g.reshape(1, C).astype(jnp.float32), beta.reshape(1, C).astype(jnp.float32))
    return out[:M] if Mp != M else out


# ----------------------------------------------------------------------------
# Head-merged softmax attention:
#   q: (B, J, nh*hd), k/v: (B, K, nh*hd) -> (B, J, nh*hd), all bf16 in HBM.
#   One grid step processes all heads of `tb` windows and writes one lane-dense
#   (tb, J, nh*hd) block (no masked vst.msk, no head split/merge HBM transposes).
# ----------------------------------------------------------------------------
def _attn_kernel(q_ref, k_ref, v_ref, o_ref, *, nh, hd, scale):
    q = q_ref[...] * scale                     # fold softmax scale into the bf16 load
    k = k_ref[...]
    v = v_ref[...]
    outs = []
    for h in range(nh):                        # static unroll: nh matmul pairs in flight
        sl = slice(h * hd, (h + 1) * hd)
        s = jnp.einsum("bjd,bkd->bjk", q[..., sl], k[..., sl],
                       preferred_element_type=jnp.float32)
        s = s - jnp.max(s, axis=-1, keepdims=True)
        p = jnp.exp(s)
        denom = jnp.sum(p, axis=-1, keepdims=True)
        o = jnp.einsum("bjk,bkd->bjd", p.astype(jnp.bfloat16), v[..., sl],
                       preferred_element_type=jnp.float32)
        outs.append(o * pl.reciprocal(denom, approx=True))
    o_ref[...] = jnp.concatenate(outs, axis=-1).astype(o_ref.dtype)


@functools.lru_cache(maxsize=None)
def _attn_call(B, J, Kc, HD, nh, hd, scale, tb):
    fn = pl.pallas_call(
        functools.partial(_attn_kernel, nh=nh, hd=hd, scale=scale),
        out_shape=jax.ShapeDtypeStruct((B, J, HD), jnp.bfloat16),
        grid=(B // tb,),
        in_specs=[
            pl.BlockSpec((tb, J, HD), lambda i: (i, 0, 0)),
            pl.BlockSpec((tb, Kc, HD), lambda i: (i, 0, 0)),
            pl.BlockSpec((tb, Kc, HD), lambda i: (i, 0, 0)),
        ],
        out_specs=pl.BlockSpec((tb, J, HD), lambda i: (i, 0, 0)),
        compiler_params=pltpu.CompilerParams(
            dimension_semantics=("parallel",),
            vmem_limit_bytes=_VMEM_LIMIT),
    )
    return jax.jit(fn)


def _pick_tb(B, J, Kc, HD, nh, hd):
    blk = 2 * 2 * (J * HD + 2 * Kc * HD + J * HD)            # bf16 blocks, double-buffered
    tmp = 2 * nh * (J * Kc * 4 + J * Kc * 2 + J * hd * 4)    # per-head f32/bf16 temporaries
    per = blk + tmp
    cands = [t for t in (256, 128, 64, 32, 16, 8, 4, 2, 1)
             if B % t == 0 and t * per <= _BLOCK_BUDGET]
    if not cands:
        return 1
    for t in cands:
        if B // t >= _MIN_STEPS:
            return t
    return cands[0]


def _attention_ref(q, k, v, nh, scale):
    B, J, HD = q.shape
    hd = HD // nh
    qh = q.reshape(B, J, nh, hd).astype(jnp.float32)
    kh = k.reshape(B, -1, nh, hd).astype(jnp.float32)
    vh = v.reshape(B, -1, nh, hd).astype(jnp.float32)
    s = jnp.einsum("bjhd,bkhd->bhjk", qh, kh) * scale
    p = jax.nn.softmax(s, axis=-1)
    o = jnp.einsum("bhjk,bkhd->bjhd", p, vh)
    return o.reshape(B, J, HD).astype(jnp.bfloat16)


def pallas_attention(q, k, v, nh, scale):
    """softmax(q k^T * scale) v with heads merged along the last dim (bf16 I/O)."""
    B, J, HD = q.shape
    Kc = k.shape[1]
    hd = HD // nh
    if B * J < 128:            # tiny late-stage layers: launch overhead dominates
        return _attention_ref(q, k, v, nh, scale)
    tb = _pick_tb(B, J, Kc, HD, nh, hd)
    return _attn_call(B, J, Kc, HD, nh, hd, float(scale), tb)(
        q.astype(jnp.bfloat16), k.astype(jnp.bfloat16), v.astype(jnp.bfloat16))


# ----------------------------------------------------------------------------
# Plain-JAX glue (layernorm, unfolds, positional encoding, reshapes)
# ----------------------------------------------------------------------------
def positional_encoding(x):
    outs = [x]
    for i in range(NUM_ENC_FNS):
        outs.append(jnp.sin((2.0 ** i) * x))
        outs.append(jnp.cos((2.0 ** i) * x))
    return jnp.concatenate(outs, axis=-1)


def unfold_non_overlapping(x, ks):
    # 'b c (h p1) (w p2) -> b (h w) (p1 p2) c'
    b, c, H, W = x.shape
    hh, ww = H // ks, W // ks
    x = x.reshape(b, c, hh, ks, ww, ks)
    x = jnp.transpose(x, (0, 2, 4, 3, 5, 1))
    return x.reshape(b, hh * ww, ks * ks, c)


def fold_non_overlapping(x, hh, ww, ks):
    # 'b (h w) (p1 p2) c -> b c (h p1) (w p2)'
    b, _, _, c = x.shape
    x = x.reshape(b, hh, ww, ks, ks, c)
    x = jnp.transpose(x, (0, 5, 1, 3, 2, 4))
    return x.reshape(b, c, hh * ks, ww * ks)


def unfold_halo(x, ks, halo):
    # F.unfold(kernel=ks+2*halo, stride=ks, padding=halo) then 'b (c k) i -> b i k c'
    b, c, H, W = x.shape
    Kw = ks + 2 * halo
    xp = jnp.pad(x, ((0, 0), (0, 0), (halo, halo), (halo, halo)))
    hh, ww = H // ks, W // ks
    ri = (jnp.arange(hh) * ks)[:, None] + jnp.arange(Kw)[None, :]
    ci = (jnp.arange(ww) * ks)[:, None] + jnp.arange(Kw)[None, :]
    p = xp[:, :, ri]                  # (b, c, hh, Kw, W+2*halo)
    p = p[:, :, :, :, ci]             # (b, c, hh, Kw, ww, Kw)
    p = jnp.transpose(p, (0, 2, 4, 3, 5, 1))   # (b, hh, ww, Kw_row, Kw_col, c)
    return p.reshape(b, hh * ww, Kw * Kw, c)


def tokens_to_image(t, h, w):
    b, _, c = t.shape
    return jnp.transpose(t, (0, 2, 1)).reshape(b, c, h, w)


def image_to_tokens(x):
    b, c, h, w = x.shape
    return jnp.transpose(x.reshape(b, c, h * w), (0, 2, 1))


def linear_nd(x, w, b=None, act=False, pre_act=False, ln=None, residual=None):
    shp = x.shape
    x2 = x.reshape(-1, shp[-1])
    r2 = residual.reshape(-1, w.shape[1]) if residual is not None else None
    y = pallas_linear(x2, w, b, act=act, pre_act=pre_act, ln=ln, residual=r2)
    return y.reshape(shp[:-1] + (w.shape[1],))


def mlp_block_nd(x, p):
    shp = x.shape
    y = pallas_mlp_block(x.reshape(-1, shp[-1]), p["mlp_w1"], p["mlp_b1"],
                         p["mlp_w2"], p["mlp_b2"], p["ln2_g"], p["ln2_b"])
    return y.reshape(shp)


# ----------------------------------------------------------------------------
# Deterministic parameter init (xavier-uniform weights, zero biases, LN=(1,0)).
# Weights are stored in bf16 and biases/LN params pre-shaped (1, N) once here so
# the forward pass issues no per-layer conversions/reshapes.
# ----------------------------------------------------------------------------
def _xavier_uniform(key, fin, fout, dtype=jnp.bfloat16):
    lim = math.sqrt(6.0 / (fin + fout))
    return jax.random.uniform(key, (fin, fout), jnp.float32, -lim, lim).astype(dtype)


def init_psa(key, ch, *, ns, nh, hd=64, halo=None, coordinates=False,
             shift_equi=True, pos_enc=True, down=False, coord_dim=2):
    pe_dim = (NUM_ENC_FNS * 2 * coord_dim + coord_dim) if pos_enc else coord_dim
    in_ch = ch + (pe_dim if coordinates else 0)
    ks = jax.random.split(key, 6)
    p = dict(
        to_kv_w=_xavier_uniform(ks[0], in_ch, nh * hd * 2),
        q_w=_xavier_uniform(ks[1], in_ch, nh * hd),
        mo_w=_xavier_uniform(ks[2], nh * hd, ch), mo_b=jnp.zeros((1, ch), jnp.float32),
        mlp_w1=_xavier_uniform(ks[3], ch, 4 * ch), mlp_b1=jnp.zeros((1, 4 * ch), jnp.float32),
        mlp_w2=_xavier_uniform(ks[4], 4 * ch, ch), mlp_b2=jnp.zeros((1, ch), jnp.float32),
        ln1_g=jnp.ones((1, ch), jnp.float32), ln1_b=jnp.zeros((1, ch), jnp.float32),
        ln2_g=jnp.ones((1, ch), jnp.float32), ln2_b=jnp.zeros((1, ch), jnp.float32),
    )
    if down:
        # kaiming_normal_(a=0, relu, fan_in = nh*hd)
        p["down_token"] = (jax.random.normal(ks[5], (1, 1, 1, nh * hd))
                           * math.sqrt(2.0 / (nh * hd))).astype(jnp.float32)
    cfg = dict(ch=ch, ks=ns, nh=nh, hd=hd, halo=halo, coordinates=coordinates,
               shift_equi=shift_equi, pos_enc=pos_enc, down=down)
    return ("psa", cfg, p)


def init_ga(key, ch, *, heads=8, dim_head=64):
    inner = heads * dim_head
    ks = jax.random.split(key, 5)
    to_q_w = _xavier_uniform(ks[0], ch, inner)
    to_kv_w = _xavier_uniform(ks[1], ch, inner * 2)
    p = dict(
        qkv_w=jnp.concatenate([to_q_w, to_kv_w], axis=1),     # fused QKV projection
        proj_w=_xavier_uniform(ks[2], inner, ch), proj_b=jnp.zeros((1, ch), jnp.float32),
        mlp_w1=_xavier_uniform(ks[3], ch, 4 * ch), mlp_b1=jnp.zeros((1, 4 * ch), jnp.float32),
        mlp_w2=_xavier_uniform(ks[4], 4 * ch, ch), mlp_b2=jnp.zeros((1, ch), jnp.float32),
        ln1_g=jnp.ones((1, ch), jnp.float32), ln1_b=jnp.zeros((1, ch), jnp.float32),
        ln2_g=jnp.ones((1, ch), jnp.float32), ln2_b=jnp.zeros((1, ch), jnp.float32),
    )
    cfg = dict(ch=ch, heads=heads, dim_head=dim_head)
    return ("ga", cfg, p)


def init_encoder(key, sidelength, in_channels, mid_ch):
    keys = iter(jax.random.split(key, 64))
    params = dict(
        in_embed_w=_xavier_uniform(next(keys), in_channels, mid_ch),
        in_embed_b=jnp.zeros((1, mid_ch), jnp.float32),
    )
    layers = []
    for i in range(int(math.log2(sidelength)) - 5):
        layers.append(init_psa(next(keys), mid_ch, ns=4, nh=8, halo=1,
                               coordinates=(i == 0), shift_equi=False, pos_enc=True))
        layers.append(init_psa(next(keys), mid_ch, ns=4, nh=8, halo=1))
        layers.append(init_psa(next(keys), mid_ch, ns=4, nh=8, halo=1))
        layers.append(init_psa(next(keys), mid_ch, ns=2, nh=4, halo=None, down=True))
    layers += [
        init_psa(next(keys), mid_ch, ns=4, nh=8, halo=1),
        init_psa(next(keys), mid_ch, ns=4, nh=8, halo=1),
        init_psa(next(keys), mid_ch, ns=4, nh=8, halo=1),
        init_psa(next(keys), mid_ch, ns=2, nh=4, halo=None, down=True),
        init_ga(next(keys), mid_ch), init_ga(next(keys), mid_ch), init_ga(next(keys), mid_ch),
        init_psa(next(keys), mid_ch, ns=4, nh=8, halo=None, down=True),
        init_ga(next(keys), mid_ch), init_ga(next(keys), mid_ch), init_ga(next(keys), mid_ch),
        init_psa(next(keys), mid_ch, ns=2, nh=8, halo=None, down=True),
        init_ga(next(keys), mid_ch), init_ga(next(keys), mid_ch), init_ga(next(keys), mid_ch),
        init_psa(next(keys), mid_ch, ns=2, nh=8, halo=None, down=True),
    ]
    params["layers"] = layers
    return params


def init_transformer_light_field(key, latent_ch=128, sidelength=64, in_channels=3):
    k_enc, k_rgb = jax.random.split(key)
    return dict(
        encoder=init_encoder(k_enc, sidelength, in_channels, latent_ch),
        rgb_w=_xavier_uniform(k_rgb, latent_ch, 3, dtype=jnp.float32),
        rgb_b=jnp.zeros((3,), jnp.float32),
    )


# ----------------------------------------------------------------------------
# Forward passes
# ----------------------------------------------------------------------------
def psa_forward(cfg, p, inp, coords):
    b, ch, H, W = inp.shape
    ks, nh, hd, halo = cfg["ks"], cfg["nh"], cfg["hd"], cfg["halo"]
    ln1 = (p["ln1_g"], p["ln1_b"])
    inp_unf_van = unfold_non_overlapping(inp, ks)                # (b, m, ks^2, ch) bf16
    coords_unf = unfold_non_overlapping(coords, ks)              # f32
    coords_out = coords

    # Q input (LN fused into the projection when no coordinate concat is involved).
    if cfg["coordinates"]:
        inp_ln = layer_norm(inp_unf_van.astype(jnp.float32),
                            p["ln1_g"], p["ln1_b"]).astype(jnp.bfloat16)
        cu = coords_unf
        if cfg["shift_equi"]:
            cu = cu - jnp.mean(cu, axis=-2, keepdims=True)
        cu_pe = positional_encoding(cu) if cfg["pos_enc"] else cu
        q_in, q_ln = jnp.concatenate([cu_pe.astype(jnp.bfloat16), inp_ln], axis=-1), None
    else:
        q_in, q_ln = inp_unf_van, ln1

    # K/V projection.
    if halo is not None:
        kv_inp = unfold_halo(inp, ks, halo)                      # raw inp (no LN), per reference
        if cfg["coordinates"]:
            ckv = unfold_halo(coords, ks, halo)
            if cfg["shift_equi"]:
                ckv = ckv - jnp.mean(ckv, axis=-2, keepdims=True)
            ckv = positional_encoding(ckv) if cfg["pos_enc"] else ckv
            kv_inp = jnp.concatenate([kv_inp, ckv.astype(jnp.bfloat16)], axis=-1)
        kv = linear_nd(kv_inp, p["to_kv_w"])
    else:
        # In this encoder halo=None only occurs for down=True, coordinates=False:
        # kv input is LN(inp_unf_van), so the LN is fused into the projection.
        kv = linear_nd(inp_unf_van, p["to_kv_w"], ln=ln1)
    k, v = jnp.split(kv, 2, axis=-1)

    if cfg["down"]:   # down_mode == 'token': query is the broadcast down_token (J=1)
        inp_res = jnp.mean(inp_unf_van.astype(jnp.float32), axis=-2,
                           keepdims=True).astype(jnp.bfloat16)          # (b, m, 1, ch)
        coords_out = jnp.mean(coords_unf, axis=-2)                      # (b, m, cd)
        bb, m, kk, _ = k.shape
        tok = p["down_token"].reshape(nh, hd)
        # Block-diagonal score formulation: per-head dot with the fixed query token,
        # then a single contraction (no hd-times repeat / HBM expansion).
        k4 = k.reshape(bb, m, kk, nh, hd).astype(jnp.float32)
        v4 = v.reshape(bb, m, kk, nh, hd).astype(jnp.float32)
        sim = jnp.einsum("bmkhd,hd->bmkh", k4, tok)
        attn = jax.nn.softmax(sim / math.sqrt(hd), axis=2)
        out = jnp.einsum("bmkh,bmkhd->bmhd", attn, v4).reshape(bb, m, 1, nh * hd)
        out = linear_nd(out.astype(jnp.bfloat16), p["mo_w"], p["mo_b"], residual=inp_res)
        out = mlp_block_nd(out, p)
        out = tokens_to_image(out[..., 0, :], H // ks, W // ks)
        coords_out = tokens_to_image(coords_out, H // ks, W // ks)
        return out, coords_out

    # Non-down (halo) path: head-merged attention per window (no head transposes).
    q = linear_nd(q_in, p["q_w"], ln=q_ln)                       # (b, m, j, nh*hd)
    bb, m, j, HD = q.shape
    kk = k.shape[2]
    out = pallas_attention(q.reshape(bb * m, j, HD),
                           k.reshape(bb * m, kk, HD),
                           v.reshape(bb * m, kk, HD),
                           nh, 1.0 / math.sqrt(hd))
    out = out.reshape(bb, m, j, HD)
    out = linear_nd(out, p["mo_w"], p["mo_b"], residual=inp_unf_van[..., :ch])
    out = mlp_block_nd(out, p)
    out = fold_non_overlapping(out, H // ks, W // ks, ks)
    return out, coords_out


def ga_forward(cfg, p, x_img, coords):
    b, ch, H, W = x_img.shape
    heads, dh = cfg["heads"], cfg["dim_head"]
    inner = heads * dh
    x = image_to_tokens(x_img)                                   # (b, n, ch) bf16
    qkv = linear_nd(x, p["qkv_w"], ln=(p["ln1_g"], p["ln1_b"]))  # fused LN + QKV
    q = qkv[..., :inner]
    k = qkv[..., inner:2 * inner]
    v = qkv[..., 2 * inner:]
    out = pallas_attention(q, k, v, heads, dh ** -0.5)           # head-merged, lane-dense
    out = linear_nd(out, p["proj_w"], p["proj_b"], residual=x)
    out = mlp_block_nd(out, p)
    out = tokens_to_image(out, H, W)
    # NOTE: reference GlobalAttention returns only `out`; coords are passed through so
    # the encoder's `x, c = layer(x, c)` unpacking stays well-defined.
    return out, coords


def encoder_forward(params, x_tokens, c_tokens):
    b, n, _ = x_tokens.shape
    h = int(math.isqrt(n))
    c = tokens_to_image(c_tokens, h, h)
    # 1x1 conv (NCHW) == per-pixel linear over channels
    xt = linear_nd(x_tokens, params["in_embed_w"], params["in_embed_b"])
    x = tokens_to_image(xt, h, h)
    feats, crds = [], []
    for kind, cfg, p in params["layers"]:
        if kind == "psa":
            x, c = psa_forward(cfg, p, x, c)
        else:
            x, c = ga_forward(cfg, p, x, c)
        feats.append(x)
        crds.append(c)
    return feats, crds


def transformer_light_field_forward(params, input_dict):
    context = input_dict["context"]
    rgb = context["rgb"][:, 0]           # (b, n, 3)
    uv = context["uv"][:, 0]             # (b, n, 2)
    ms_feats, ms_coords = encoder_forward(params["encoder"], rgb, uv / 64.0 - 1.0)
    # TODO(synk): self.intermediate_encode, self.ray_decode and geometry.plucker_embedding are
    # not defined in the reference source; the coarsest multiscale features stand in for ray_feats.
    ray_feats = image_to_tokens(ms_feats[-1])                    # (b, n_last, latent_ch)
    # rgb head (GELU -> Linear) stays in plain XLA: tiny M and N=3 output.
    rgb_pred = jnp.dot(_gelu(ray_feats.astype(jnp.float32)), params["rgb_w"]) + params["rgb_b"]
    return {"rgb": rgb_pred[:, None]}


# ----------------------------------------------------------------------------
if __name__ == "__main__":
    key = jax.random.PRNGKey(0)
    k_param, k_rgb = jax.random.split(key, 2)

    B = 1
    SIDE = 64      # minimum spatial size compatible with the encoder's downsampling chain
    LATENT = 128   # production latent_ch (lane-dense channel dims in every kernel)
    N = SIDE * SIDE

    params = init_transformer_light_field(k_param, latent_ch=LATENT, sidelength=SIDE)

    rgb_ctx = jax.random.normal(k_rgb, (B, 1, N, 3), jnp.float32)
    ii, jj = jnp.meshgrid(jnp.arange(SIDE, dtype=jnp.float32),
                          jnp.arange(SIDE, dtype=jnp.float32), indexing="ij")
    uv = jnp.stack([jj, ii], axis=-1).reshape(1, 1, N, 2)
    uv = jnp.broadcast_to(uv, (B, 1, N, 2))

    input_dict = {
        "context": {"rgb": rgb_ctx, "uv": uv},
        "query": {  # unused by the implemented portion (see TODO in forward)
            "cam2world": jnp.eye(4, dtype=jnp.float32)[None, None],
            "intrinsics": jnp.eye(3, dtype=jnp.float32)[None, None],
            "uv": uv,
        },
    }

    out = transformer_light_field_forward(params, input_dict)
    jax.block_until_ready(out["rgb"])
    assert out["rgb"].shape == (B, 1, 1, 3), out["rgb"].shape
    assert bool(jnp.all(jnp.isfinite(out["rgb"])))
    print("KERNEL_OK")
</pallas_src>

<mosaic_0001>
module attributes {stable_mosaic.version = 11 : i64} {
  func.func @kernel(%arg0: i32, %arg1: memref<1024x154xbf16, #tpu.memory_space<vmem>>, %arg2: memref<154x1024xbf16, #tpu.memory_space<vmem>>, %arg3: memref<1x1024xf32, #tpu.memory_space<vmem>>, %arg4: memref<1024x1024xbf16, #tpu.memory_space<vmem>>) attributes {dimension_semantics = [#tpu.dimension_semantics<parallel>], iteration_bounds = array<i64: 9>, scalar_prefetch = 0 : i64, scratch_operands = 0 : i64, tpu.core_type = #tpu.core_type<tc>, window_params = [{transform_indices = @transform_0, window_bounds = array<i64: 1024, 154>}, {pipeline_mode = #tpu.pipeline_mode<synchronous>, transform_indices = @transform_1, window_bounds = array<i64: 154, 1024>}, {pipeline_mode = #tpu.pipeline_mode<synchronous>, transform_indices = @transform_2, window_bounds = array<i64: 1, 1024>}, {transform_indices = @transform_3, window_bounds = array<i64: 1024, 1024>}]} {
    %c0 = arith.constant 0 : index
    %c0_0 = arith.constant 0 : index
    %0 = vector.load %arg1[%c0, %c0_0] : memref<1024x154xbf16, #tpu.memory_space<vmem>>, vector<1024x154xbf16>
    %1 = arith.extf %0 : vector<1024x154xbf16> to vector<1024x154xf32>
    %2 = arith.truncf %1 : vector<1024x154xf32> to vector<1024x154xbf16>
    %c0_1 = arith.constant 0 : index
    %c0_2 = arith.constant 0 : index
    %3 = vector.load %arg2[%c0_1, %c0_2] : memref<154x1024xbf16, #tpu.memory_space<vmem>>, vector<154x1024xbf16>
    %cst = arith.constant dense<0.000000e+00> : vector<1024x1024xf32>
    %4 = tpu.matmul %2, %3, %cst {dimension_numbers = #tpu.dot_dimension_numbers<[1], [0], [0], [1], [0, 0, 1, 1], [], []>} : vector<1024x154xbf16>, vector<154x1024xbf16>, vector<1024x1024xf32> -> vector<1024x1024xf32>
    %c0_3 = arith.constant 0 : index
    %c0_4 = arith.constant 0 : index
    %5 = vector.load %arg3[%c0_3, %c0_4] : memref<1x1024xf32, #tpu.memory_space<vmem>>, vector<1x1024xf32>
    %6 = vector.broadcast %5 : vector<1x1024xf32> to vector<1024x1024xf32>
    %7 = arith.addf %4, %6 : vector<1024x1024xf32>
    %8 = arith.truncf %7 : vector<1024x1024xf32> to vector<1024x1024xbf16>
    %c0_5 = arith.constant 0 : index
    %c0_6 = arith.constant 0 : index
    %9 = vector.load %arg4[%c0_5, %c0_6] : memref<1024x1024xbf16, #tpu.memory_space<vmem>>, vector<1024x1024xbf16>
    tpu.vector_store %arg4[%c0_5, %c0_6], %8 {strides = array<i32>} : memref<1024x1024xbf16, #tpu.memory_space<vmem>>, vector<1024x1024xbf16>,
    return
  }
  func.func @transform_0(%arg0: i32) -> (i32, i32) {
    %c0_i32 = arith.constant 0 : i32
    %c0_i32_0 = arith.constant 0 : i32
    return %arg0, %c0_i32 : i32, i32
  }
  func.func @transform_1(%arg0: i32) -> (i32, i32) {
    %c0_i32 = arith.constant 0 : i32
    %c0_i32_0 = arith.constant 0 : i32
    %c0_i32_1 = arith.constant 0 : i32
    return %c0_i32, %c0_i32_0 : i32, i32
  }
  func.func @transform_2(%arg0: i32) -> (i32, i32) {
    %c0_i32 = arith.constant 0 : i32
    %c0_i32_0 = arith.constant 0 : i32
    %c0_i32_1 = arith.constant 0 : i32
    return %c0_i32, %c0_i32_0 : i32, i32
  }
  func.func @transform_3(%arg0: i32) -> (i32, i32) {
    %c0_i32 = arith.constant 0 : i32
    %c0_i32_0 = arith.constant 0 : i32
    return %arg0, %c0_i32 : i32, i32
  }
}

</mosaic_0001>

<bundles_post_ra>
// kernel: tpu_custom_call.1
= control target key start
LH: loop header
LB: loop body
LE: loop exit
PB: predicated region body
PF: predicated region fallthrough
CT: control target
= control target key end

     0   :  { %8 = vsyncpa [#allocation3], 0  ;;  %s13847_s0 = inlined_call_operand.vmem [shape: bf16[9216,154], index: 0, kind: input, shape index: {}]   ;;  %s13848_s1 = inlined_call_operand.vmem [shape: bf16[154,1024], index: 1, kind: input, shape index: {}]   ;;  %s13849_s2 = inlined_call_operand.vmem [shape: f32[1,1024], index: 2, kind: input, shape index: {}]   ;;  %s13850_s3 = inlined_call_operand.hbm [shape: bf16[9216,1024], index: 3, kind: output, shape index: {}]  }
   0x1   :  { %10 = vsyncpa [#allocation3 + $0x1], 0  ;;  %s9654_s12 = smov 0   ;;  %s9656_s13 = smov 0  }
   0x2   :  { %s9658_s14 = smov 0   ;;  %s9660_s15 = smov 0  }
   0x3 LB: > { %s9675_s16 = sadd.s32 4294967295, %s9630_s15   ;;  %s7955_s17 = sadd.s32 4294967294, %s9630_s15   ;;  %s9630_s15 = sphi %s9660_s15, %s14566_s15   ;;  %s9626_s14 = sphi %s9658_s14, %s14565_s14   ;;  %s9622_s13 = sphi %s9656_s13, %s14564_s13   ;;  %s9618_s12 = sphi %s9654_s12, %s14563_s12  }
   0x4   : > { %s9679_s18 = sadd.s32 1, %s9630_s15   ;;  %s91_s19 = sadd.s32 1, %s9626_s14 }
   0x5   : > { %s88_s20 = ssub.s32 %s9630_s15, %s9679_s18  ;;  %p101_p0 = scmp.ne.s32.totalorder %s9626_s14, %s9622_s13 }
   0x6   : > { %p89_p1 = scmp.eq.s32.totalorder %s88_s20, 0  ;;  %p102_p2 = scmp.eq.s32.totalorder %s9675_s16, 8 }
   0x7   : > { %p107_p3 = scmp.ne.s32.totalorder %s9622_s13, %s9618_s12  ;;  %p108_p4 = scmp.eq.s32.totalorder %s7955_s17, 8 }
   0x8   : > { %s9690_s21 = scalar_select %p89_p1, %s9626_s14, %s91_s19  }
   0x9   : > { %p9692_p5 = por %p102_p2, %p101_p0  ;;  %p9696_p6 = por %p108_p4, %p107_p3 }
   0xa   : > { %p7958_p7 = scmp.ge.s32.totalorder %s9630_s15, 1  ;;  %p142_p8 = scmp.lt.s32.totalorder %s9630_s15, 10 }
   0xc   : > { %p143_p9 = pnand %p7958_p7, %p142_p8 }
   0xe   : > { %146 = sbr.rel (%p143_p9) target bundleno = 4282 (0x10ba), region = 32 }
  0x13   : > { %v8701_v0 = vld [vmem:[%s13848_s1 + $0x1c0] sm:$0xf]  ;;  %v9498_v2 = vld [vmem:[%s13848_s1 + $0x1c4] sm:$0xf]  ;;  %vm1563_vm0 = vcmask 1044480   ;;  %s7960_s9 = sshll.u32 %s9675_s16, 7 }
  0x14   : > { %v9502_v1 = vld [vmem:[%s13848_s1 + $0x1dc] sm:$0xf0]  ;;  %v8703_v4 = vld [vmem:[%s13848_s1 + $0x1e0] sm:$0xf0]  ;;  %p168_p10 = scmp.lt.s32.totalorder %s7960_s9, 1151  ;;  %vm1370_vm1 = vcmask 211968  }
  0x15   : > { %v8702_v3 = vor.u32 %v9502_v1, %v8701_v0  ;;  %v8669_v5 = vld [vmem:[%s13848_s1 + $0x180] sm:$0xf]  ;;  %v8706_v7 = vor.u32 %v9498_v2, %v8703_v4  ;;  %v9490_v8 = vld [vmem:[%s13848_s1 + $0x184] sm:$0xf]  ;;  %v8773_v45 = vld [vmem:[%s13848_s1 + $0x248] sm:$0xf] }
  0x16   : > { %v9494_v6 = vld [vmem:[%s13848_s1 + $0x19c] sm:$0xf0]  ;;  %v8671_v9 = vld [vmem:[%s13848_s1 + $0x1a0] sm:$0xf0]  ;;  %s14568_s9 = smov (!%p168_p10, %s7960_s9), 1151  ;;  %s9523_s10 = sshll.u32 %s9675_s16, 12 }
  0x17   : > { %1588 = vmatpush.bf16.msra.mxu0 %v8702_v3  ;;  %v8670_v10 = vor.u32 %v9494_v6, %v8669_v5  ;;  %2246 = vmatpush.bf16.msra.mxu2 %v8706_v7  ;;  %v8674_v11 = vor.u32 %v9490_v8, %v8671_v9  ;;  %v8637_v12 = vld [vmem:[%s13848_s1 + $0x140] sm:$0xf]  ;;  %v9482_v14 = vld [vmem:[%s13848_s1 + $0x144] sm:$0xf]  ;;  %s9313_s30 = sshll.u32 %s14568_s9, 3  ;;  %s7889_s9 = scalar_lea.hbm %s13850_s3, %s9523_s10 }
  0x18   : > { %v9486_v13 = vld [vmem:[%s13848_s1 + $0x15c] sm:$0xf0]  ;;  %v8639_v15 = vld [vmem:[%s13848_s1 + $0x160] sm:$0xf0]  ;;  %s9798_s8 = scalar_lea.vmem %s13847_s0, %s9313_s30  ;;  %v9519_v46 = vld [vmem:[%s13848_s1 + $0x264] sm:$0x10] }
  0x19   : > { %v9514_v16 = vld [vmem:[%s13848_s1 + $0x244] sm:$0xf]  ;;  %v8638_v17 = vor.u32 %v9486_v13, %v8637_v12  ;;  %v8605_v18 = vld [vmem:[%s13848_s1 + $0x100] sm:$0xf]  ;;  %v8642_v20 = vor.u32 %v9482_v14, %v8639_v15  ;;  %v7967_v49 = vld [vmem:[%s9798_s8 + $0x8] sm:$0xf0]  ;;  %v8774_v50 = vor.u32 %v9519_v46, %v8773_v45 }
  0x1a   : > { %v8767_v19 = vld [vmem:[%s13848_s1 + $0x260] sm:$0x10]  ;;  %v9478_v21 = vld [vmem:[%s13848_s1 + $0x11c] sm:$0xf0]  ;;  %v8709_v55 = vld [vmem:[%s13848_s1 + $0x1c8] sm:$0xf] }
  0x1b   : > { %1589 = vmatpush.bf16.msra.mxu0 %v8670_v10  ;;  %2247 = vmatpush.bf16.msra.mxu2 %v8674_v11  ;;  %v8770_v22 = vor.u32 %v9514_v16, %v8767_v19  ;;  %v8765_v23 = vld [vmem:[%s13848_s1 + $0x240] sm:$0xf]  ;;  %v9474_v25 = vld [vmem:[%s13848_s1 + $0x104] sm:$0xf]  ;;  %v8606_v31 = vor.u32 %v9478_v21, %v8605_v18  ;;  %v1571_v54 = vsel %vm1563_vm0, %v8774_v50, 0  ;;  %s164_s30 = sand.u32 1, %s9622_s13  }
  0x1c   : > { %v9518_v24 = vld [vmem:[%s13848_s1 + $0x25c] sm:$0x10]  ;;  %v8607_v26 = vld [vmem:[%s13848_s1 + $0x120] sm:$0xf0]  ;;  %v9503_v56 = vld [vmem:[%s13848_s1 + $0x1e4] sm:$0xf0] }
  0x1d   : > { %v8766_v27 = vor.u32 %v9518_v24, %v8765_v23  ;;  %v9506_v28 = vld [vmem:[%s13848_s1 + $0x204] sm:$0xf]  ;;  %v1568_v29 = vsel %vm1563_vm0, %v8770_v22, 0  ;;  %v8573_v32 = vld [vmem:[%s13848_s1 + $0xc0] sm:$0xf]  ;;  %v8610_v36 = vor.u32 %v9474_v25, %v8607_v26  ;;  %v8710_v58 = vor.u32 %v9503_v56, %v8709_v55  ;;  %s7959_s4 = sshll.u32 %s164_s30, 12 }
  0x1e   : > { %v8735_v30 = vld [vmem:[%s13848_s1 + $0x220] sm:$0xf0]  ;;  %v9470_v33 = vld [vmem:[%s13848_s1 + $0xdc] sm:$0xf0]  ;;  %2581 = vmatpush.bf16.msra.mxu3 %v1568_v29  ;;  %v9515_v1 = vld [vmem:[%s13848_s1 + $0x24c] sm:$0xf] }
  0x1f   : > { %1590 = vmatpush.bf16.msra.mxu0 %v8638_v17  ;;  %v1565_v34 = vsel %vm1563_vm0, %v8766_v27, 0  ;;  %v8738_v35 = vor.u32 %v9506_v28, %v8735_v30  ;;  %2248 = vmatpush.bf16.msra.mxu2 %v8642_v20  ;;  %v8733_v37 = vld [vmem:[%s13848_s1 + $0x200] sm:$0xf]  ;;  %v9466_v39 = vld [vmem:[%s13848_s1 + $0xc4] sm:$0xf]  ;;  %v8574_v43 = vor.u32 %v9470_v33, %v8573_v32  ;;  %s10018_s5 = scalar_lea.vmem [#allocation2], %s7959_s4 }
  0x20   : > { %1923 = vmatpush.bf16.msra.mxu1 %v1565_v34  ;;  %v9510_v38 = vld [vmem:[%s13848_s1 + $0x21c] sm:$0xf0]  ;;  %v8575_v40 = vld [vmem:[%s13848_s1 + $0xe0] sm:$0xf0]  ;;  %v8775_v2 = vld [vmem:[%s13848_s1 + $0x268] sm:$0x10] }
  0x21   : > { %v8734_v41 = vor.u32 %v9510_v38, %v8733_v37  ;;  %v8541_v42 = vld [vmem:[%s13848_s1 + $0x80] sm:$0xf]  ;;  %v8578_v47 = vor.u32 %v9466_v39, %v8575_v40  ;;  %v9314_v48 = vld [vmem:[%s9798_s8 + $0x4] sm:$0xf]  ;;  %v9499_v8 = vld [vmem:[%s13848_s1 + $0x1cc] sm:$0xf]  ;;  %v8778_v10 = vor.u32 %v9515_v1, %v8775_v2 }
  0x22   : > { %v9462_v44 = vld [vmem:[%s13848_s1 + $0x9c] sm:$0xf0]  ;;  %2582 = vmatpush.bf16.msra.mxu3 %v8738_v35  ;;  %v9458_v51 = vld [vmem:[%s13848_s1 + $0x84] sm:$0xf]  ;;  %v9814_v53 = vor.u32 %v9314_v48, %v7967_v49  ;;  %v8711_v9 = vld [vmem:[%s13848_s1 + $0x1e8] sm:$0xf0] }
  0x23   : > { %1591 = vmatpush.bf16.msra.mxu0 %v8606_v31  ;;  %2249 = vmatpush.bf16.msra.mxu2 %v8610_v36  ;;  %v8543_v52 = vld [vmem:[%s13848_s1 + $0xa0] sm:$0xf0]  ;;  %v8542_v57 = vor.u32 %v9462_v44, %v8541_v42  ;;  %v8509_v60 = vld [vmem:[%s13848_s1 + $0x40] sm:$0xf]  ;;  %v9315_v13 = vld [vmem:[%s9798_s8 + $0x4] sm:$0xf0]  ;;  %v8714_v15 = vor.u32 %v9499_v8, %v8711_v9 }
  0x24   : > { %1924 = vmatpush.bf16.msra.mxu1 %v8734_v41  ;;  %v8546_v59 = vor.u32 %v9458_v51, %v8543_v52  ;;  %v9454_v61 = vld [vmem:[%s13848_s1 + $0x5c] sm:$0xf0]  ;;  %v9450_v62 = vld [vmem:[%s13848_s1 + $0x44] sm:$0xf]  ;;  %v9316_v16 = vld [vmem:[%s9798_s8 + $0x14] sm:$0xf] }
  0x25   : > { %8859 = vmatmul.msk.bf16.vlgmr.msra.gmra.mxu3 %vm1370_vm1, %v9814_v53  ;;  %v8511_v63 = vld [vmem:[%s13848_s1 + $0x60] sm:$0xf0]  ;;  %v8510_v0 = vor.u32 %v9454_v61, %v8509_v60  ;;  %v8477_v4 = vld [vmem:[%s13848_s1] sm:$0xf]  ;;  %v7975_v17 = vld [vmem:[%s9798_s8 + $0x18] sm:$0xf0] }
  0x26   : > { %3239 = vmatpush.bf16.msrb.mxu3 %v1571_v54  ;;  %v8514_v3 = vor.u32 %v9450_v62, %v8511_v63  ;;  %v9446_v5 = vld [vmem:[%s13848_s1 + $0x1c] sm:$0xf0]  ;;  %v9442_v6 = vld [vmem:[%s13848_s1 + $0x4] sm:$0xf]  ;;  %v1574_v19 = vsel %vm1563_vm0, %v8778_v10, 0  ;;  %v9870_v20 = vor.u32 %v9316_v16, %v7975_v17  ;;  %s7890_s19 = sshll.u32 %s10018_s5, 4  ;;  %s7891_s19 = int_to_ptr.vmem [resolvable:$true] %s7890_s19 }
  0x27   : > { %1592 = vmatpush.bf16.msra.mxu0 %v8574_v43  ;;  %2250 = vmatpush.bf16.msra.mxu2 %v8578_v47  ;;  %v8479_v7 = vld [vmem:[%s13848_s1 + $0x20] sm:$0xf0]  ;;  %v8478_v11 = vor.u32 %v9446_v5, %v8477_v4  ;;  %v7965_v12 = vld [vmem:[%s9798_s8] sm:$0xf]  ;;  %v7973_v21 = vld [vmem:[%s9798_s8 + $0x10] sm:$0xf] }
  0x28   : > { %8795 = vmatmul.msk.bf16.vlgmr.msra.gmra.mxu1 %vm1370_vm1, %v9814_v53  ;;  %v8482_v14 = vor.u32 %v9442_v6, %v8479_v7  ;;  %v9867_v18 = vor.u32 %v9315_v13, %v7965_v12  ;;  %v9317_v22 = vld [vmem:[%s9798_s8 + $0x14] sm:$0xf0]  ;;  %v9318_v23 = vld [vmem:[%s9798_s8 + $0x24] sm:$0xf]  ;;  %v7983_v24 = vld [vmem:[%s9798_s8 + $0x28] sm:$0xf0] }
  0x29   : > { %2904 = vmatpush.bf16.msrb.mxu1 %v8710_v58  ;;  %v9882_v25 = vor.u32 %v9317_v22, %v7973_v21  ;;  %v9884_v26 = vor.u32 %v9318_v23, %v7983_v24  ;;  %v7981_v27 = vld [vmem:[%s9798_s8 + $0x20] sm:$0xf]  ;;  %v9319_v28 = vld [vmem:[%s9798_s8 + $0x24] sm:$0xf0]  ;;  %v9320_v29 = vld [vmem:[%s9798_s8 + $0x34] sm:$0xf] }
  0x2a   : > { %v7991_v30 = vld [vmem:[%s9798_s8 + $0x38] sm:$0xf0]  ;;  %v9896_v31 = vor.u32 %v9319_v28, %v7981_v27  ;;  %v7989_v33 = vld [vmem:[%s9798_s8 + $0x30] sm:$0xf]  ;;  %v9321_v34 = vld [vmem:[%s9798_s8 + $0x34] sm:$0xf0] }
  0x2b   : > { %1593 = vmatpush.bf16.msra.mxu0 %v8542_v57  ;;  %2251 = vmatpush.bf16.msra.mxu2 %v8546_v59  ;;  %v9898_v32 = vor.u32 %v9320_v29, %v7991_v30  ;;  %v9322_v35 = vld [vmem:[%s9798_s8 + $0x44] sm:$0xf]  ;;  %v7999_v36 = vld [vmem:[%s9798_s8 + $0x48] sm:$0xf0]  ;;  %v9910_v37 = vor.u32 %v9321_v34, %v7989_v33  ;;  %v7997_v39 = vld [vmem:[%s9798_s8 + $0x40] sm:$0xf] }
  0x2c   : > { %v9912_v38 = vor.u32 %v9322_v35, %v7999_v36  ;;  %v9323_v40 = vld [vmem:[%s9798_s8 + $0x44] sm:$0xf0]  ;;  %v9324_v41 = vld [vmem:[%s9798_s8 + $0x54] sm:$0xf]  ;;  %v8007_v42 = vld [vmem:[%s9798_s8 + $0x58] sm:$0xf0] }
  0x2d   : > { %v9924_v43 = vor.u32 %v9323_v40, %v7997_v39  ;;  %v9926_v44 = vor.u32 %v9324_v41, %v8007_v42  ;;  %v8005_v45 = vld [vmem:[%s9798_s8 + $0x50] sm:$0xf]  ;;  %v9325_v46 = vld [vmem:[%s9798_s8 + $0x54] sm:$0xf0]  ;;  %v9326_v47 = vld [vmem:[%s9798_s8 + $0x64] sm:$0xf] }
  0x2e   : > { %v8015_v48 = vld [vmem:[%s9798_s8 + $0x68] sm:$0xf0]  ;;  %v9938_v49 = vor.u32 %v9325_v46, %v8005_v45  ;;  %v8013_v51 = vld [vmem:[%s9798_s8 + $0x60] sm:$0xf]  ;;  %v9327_v52 = vld [vmem:[%s9798_s8 + $0x64] sm:$0xf0] }
  0x2f   : > { %1594 = vmatpush.bf16.msra.mxu0 %v8510_v0  ;;  %2252 = vmatpush.bf16.msra.mxu2 %v8514_v3  ;;  %v9940_v50 = vor.u32 %v9326_v47, %v8015_v48  ;;  %v9328_v54 = vld [vmem:[%s9798_s8 + $0x74] sm:$0xf]  ;;  %v8023_v55 = vld [vmem:[%s9798_s8 + $0x78] sm:$0xf0]  ;;  %v9952_v56 = vor.u32 %v9327_v52, %v8013_v51  ;;  %v8021_v58 = vld [vmem:[%s9798_s8 + $0x70] sm:$0xf] }
  0x30   : > { %v9954_v57 = vor.u32 %v9328_v54, %v8023_v55  ;;  %v9329_v59 = vld [vmem:[%s9798_s8 + $0x74] sm:$0xf0]  ;;  %v9330_v60 = vld [vmem:[%s9798_s8 + $0x84] sm:$0xf]  ;;  %v8031_v61 = vld [vmem:[%s9798_s8 + $0x88] sm:$0xf0] }
  0x31   : > { %v8677_v62 = vld [vmem:[%s13848_s1 + $0x188] sm:$0xf]  ;;  %v9491_v0 = vld [vmem:[%s13848_s1 + $0x18c] sm:$0xf]  ;;  %v9975_v1 = vor.u32 %v9329_v59, %v8021_v58  ;;  %v9980_v4 = vor.u32 %v9330_v60, %v8031_v61  ;;  %v8029_v9 = vld [vmem:[%s9798_s8 + $0x80] sm:$0xf] }
  0x32   : > { %v9495_v63 = vld [vmem:[%s13848_s1 + $0x1a4] sm:$0xf0]  ;;  %v8679_v3 = vld [vmem:[%s13848_s1 + $0x1a8] sm:$0xf0]  ;;  %v8039_v12 = vld [vmem:[%s9798_s8 + $0x98] sm:$0xf0] }
  0x33   : > { %1595 = vmatpush.bf16.msra.mxu0 %v8478_v11  ;;  %2253 = vmatpush.bf16.msra.mxu2 %v8482_v14  ;;  %v8678_v2 = vor.u32 %v9495_v63, %v8677_v62  ;;  %v8682_v5 = vor.u32 %v9491_v0, %v8679_v3  ;;  %v9331_v10 = vld [vmem:[%s9798_s8 + $0x84] sm:$0xf0]  ;;  %v9332_v11 = vld [vmem:[%s9798_s8 + $0x94] sm:$0xf]  ;;  %v384_v13 = vld [vmem:[%s13849_s2] sm:$0xff]  ;;  %s7892_s20 = sshll.u32 %s7889_s9, 4  ;;  %s7893_s20 = int_to_ptr.hbm [resolvable:$true] %s7892_s20 }
  0x34   : > { %v9995_v14 = vor.u32 %v9331_v10, %v8029_v9  ;;  %v9997_v17 = vor.u32 %v9332_v11, %v8039_v12  ;;  %v10003_v22 = vperm.slane %v384_v13, 1  ;;  %v8037_v36 = vld [vmem:[%s9798_s8 + $0x90] sm:$0xf]  ;;  %v9333_v39 = vld [vmem:[%s9798_s8 + $0x94] sm:$0xf0]  ;;  %s7877_s16 = scalar_lea.sflag [#allocation3], %s164_s30 }
  0x35   : > { %8860 = vmatmul.msk.bf16.gmra.mxu3 %vm1370_vm1, %v9870_v20  ;;  %2905 = vmatpush.bf16.msrb.mxu1 %v8678_v2  ;;  %v9334_v40 = vld [vmem:[%s9798_s8 + $0xa4] sm:$0xf]  ;;  %v8047_v41 = vld [vmem:[%s9798_s8 + $0xa8] sm:$0xf0]  ;;  %v10022_v46 = vor.u32 %v9333_v39, %v8037_v36  ;;  %v9336_v9 = vld [vmem:[%s9798_s8 + $0xb4] sm:$0xf] }
  0x36   : > { %1596 = vmatmul.bf16.vlgmr.msra.gmra.mxu0 %v9867_v18  ;;  %2254 = vmatmul.bf16.vlgmr.msra.gmra.mxu2 %v9867_v18  ;;  %v10025_v52 = vor.u32 %v9334_v40, %v8047_v41  ;;  %v8055_v10 = vld [vmem:[%s9798_s8 + $0xb8] sm:$0xf0]  ;;  %s9582_s24 = sshra.s32 %s7893_s20, 4  ;;  %s9588_s27 = scalar_lea.hbm %s13850_s3, 36864  ;;  %s9583_s24 = int_to_ptr.hbm [resolvable:$true] %s9582_s24 }
  0x37   : > { %3562 = vmatpush.bf16.msrb.mxu0 %v8714_v15  ;;  %3897 = vmatpush.bf16.msrb.mxu2 %v1574_v19  ;;  %v9999_v19 = vperm.slane %v384_v13, 0  ;;  %s9584_s25 = scalar_lea.hbm %s9583_s24, 4096  ;;  %p9589_p0 = scmp.lt.s32.totalorder %s9583_s24, %s13850_s3 }
  0x38   : > { %8796 = vmatmul.msk.bf16.gmra.mxu1 %vm1370_vm1, %v9870_v20  ;;  %p9585_p11 = scmp.ne.s32.totalorder %s9583_s24, %s9584_s25  ;;  %p9590_p1 = scmp.lt.s32.totalorder %s9588_s27, %s9584_s25 }
  0x3a   : > { %p9586_p12 = pnand %p9585_p11, %p9692_p5  ;;  %p9591_p2 = por %p9590_p1, %p9589_p0 }
  0x3b   : > { %3563 = vmatpush.bf16.msrb.mxu0 %v8682_v5 }
  0x3c   : > { %p9587_p13 = pneg %p9586_p12 }
  0x3e   : > { %p9592_p3 = pnand %p9591_p2, %p9587_p13 }
  0x45   : > { %8861 = vmatmul.msk.bf16.gmra.mxu3 %vm1370_vm1, %v9884_v26 }
  0x46   : > { %1601 = vmatmul.bf16.gmra.mxu0 %v9882_v25  ;;  %2259 = vmatmul.bf16.gmra.mxu2 %v9882_v25 }
  0x48   : > { %8797 = vmatmul.msk.bf16.gmra.mxu1 %vm1370_vm1, %v9884_v26 }
  0x55   : > { %8862 = vmatmul.msk.bf16.gmra.mxu3 %vm1370_vm1, %v9898_v32 }
  0x56   : > { %1606 = vmatmul.bf16.gmra.mxu0 %v9896_v31  ;;  %2264 = vmatmul.bf16.gmra.mxu2 %v9896_v31 }
  0x58   : > { %8798 = vmatmul.msk.bf16.gmra.mxu1 %vm1370_vm1, %v9898_v32 }
  0x65   : > { %8863 = vmatmul.msk.bf16.gmra.mxu3 %vm1370_vm1, %v9912_v38 }
  0x66   : > { %1611 = vmatmul.bf16.gmra.mxu0 %v9910_v37  ;;  %2269 = vmatmul.bf16.gmra.mxu2 %v9910_v37 }
  0x68   : > { %8799 = vmatmul.msk.bf16.gmra.mxu1 %vm1370_vm1, %v9912_v38 }
  0x75   : > { %8864 = vmatmul.msk.bf16.gmra.mxu3 %vm1370_vm1, %v9926_v44 }
  0x76   : > { %1616 = vmatmul.bf16.gmra.mxu0 %v9924_v43  ;;  %2274 = vmatmul.bf16.gmra.mxu2 %v9924_v43 }
  0x78   : > { %8800 = vmatmul.msk.bf16.gmra.mxu1 %vm1370_vm1, %v9926_v44 }
  0x85   : > { %8865 = vmatmul.msk.bf16.gmra.mxu3 %vm1370_vm1, %v9940_v50 }
  0x86   : > { %1621 = vmatmul.bf16.gmra.mxu0 %v9938_v49  ;;  %2279 = vmatmul.bf16.gmra.mxu2 %v9938_v49 }
  0x88   : > { %8801 = vmatmul.msk.bf16.gmra.mxu1 %vm1370_vm1, %v9940_v50 }
  0x95   : > { %8866 = vmatmul.msk.bf16.gmra.mxu3 %vm1370_vm1, %v9954_v57 }
  0x96   : > { %1626 = vmatmul.bf16.gmra.mxu0 %v9952_v56  ;;  %2284 = vmatmul.bf16.gmra.mxu2 %v9952_v56 }
  0x98   : > { %8802 = vmatmul.msk.bf16.gmra.mxu1 %vm1370_vm1, %v9954_v57 }
  0xa5   : > { %v1926_v6 = vpop.f32.mrf.mxu1  ;;  %8867 = vmatmul.msk.bf16.gmra.mxu3 %vm1370_vm1, %v9980_v4 }
  0xa6   : > { %1631 = vmatmul.bf16.gmra.mxu0 %v9975_v1  ;;  %2289 = vmatmul.bf16.gmra.mxu2 %v9975_v1 }
  0xa8   : > { %8803 = vmatmul.msk.bf16.gmra.mxu1 %vm1370_vm1, %v9980_v4  ;;  %v2584_v7 = vpop.f32.mrf.mxu3 }
  0xad   : > { %v1928_v8 = vpop.f32.mrf.mxu1 }
  0xb0   : > { %v2586_v15 = vpop.f32.mrf.mxu3 }
  0xb3   : > { %v1597_v16 = vpop.f32.mrf.mxu0 }
  0xb4   : > { %v1598_v23 = vadd.f32 %v1597_v16, %v9999_v19 }
  0xb5   : > { %v1931_v21 = vpop.f32.mrf.mxu1  ;;  %8868 = vmatmul.msk.bf16.gmra.mxu3 %vm1370_vm1, %v9997_v17 }
  0xb6   : > { %1636 = vmatmul.bf16.gmra.mxu0 %v9995_v14  ;;  %2294 = vmatmul.bf16.gmra.mxu2 %v9995_v14  ;;  %v1927_v30 = vadd.f32 %v1926_v6, %v1598_v23 }
  0xb8   : > { %8804 = vmatmul.msk.bf16.gmra.mxu1 %vm1370_vm1, %v9997_v17  ;;  %v2589_v27 = vpop.f32.mrf.mxu3 }
  0xb9   : > { %v2255_v24 = vpop.f32.mrf.mxu2 }
  0xba   : > { %v2256_v28 = vadd.f32 %v2255_v24, %v10003_v22  ;;  %v10045_v24 = vor.u32 %v9336_v9, %v8055_v10 }
  0xbb   : > { %v1599_v29 = vpop.f32.mrf.mxu0 }
  0xbc   : > { %v2585_v33 = vadd.f32 %v2584_v7, %v2256_v28  ;;  %v1600_v42 = vadd.f32 %v1599_v29, %v9999_v19  ;;  %v8045_v7 = vld [vmem:[%s9798_s8 + $0xa0] sm:$0xf] }
  0xbd   : > { %v1933_v34 = vpop.f32.mrf.mxu1 }
  0xbe   : > { %v6852_v35 = vpack.c.bf16 %v2585_v33, %v1927_v30  ;;  %v1929_v54 = vadd.f32 %v1928_v8, %v1600_v42  ;;  %v9335_v8 = vld [vmem:[%s9798_s8 + $0xa4] sm:$0xf0] }
  0xbf   : > { %v10042_v13 = vor.u32 %v9335_v8, %v8045_v7 }
  0xc0   : > { %7364 = vst [vmem:[%s10018_s5] sm:$0xff] %v6852_v35  ;;  %v2591_v47 = vpop.f32.mrf.mxu3 }
  0xc1   : > { %v2257_v45 = vpop.f32.mrf.mxu2 }
  0xc2   : > { %v2258_v48 = vadd.f32 %v2257_v45, %v10003_v22  ;;  %v8053_v45 = vld [vmem:[%s9798_s8 + $0xb0] sm:$0xf] }
  0xc3   : > { %v1602_v51 = vpop.f32.mrf.mxu0 }
  0xc4   : > { %v2587_v55 = vadd.f32 %v2586_v15, %v2258_v48  ;;  %v1603_v60 = vadd.f32 %v1602_v51, %v9999_v19  ;;  %v9338_v48 = vld [vmem:[%s9798_s8 + $0xc4] sm:$0xf]  ;;  %v8063_v51 = vld [vmem:[%s9798_s8 + $0xc8] sm:$0xf0] }
  0xc5   : > { %v1936_v58 = vpop.f32.mrf.mxu1  ;;  %8869 = vmatmul.msk.bf16.gmra.mxu3 %vm1370_vm1, %v10025_v52 }
  0xc6   : > { %1641 = vmatmul.bf16.gmra.mxu0 %v10022_v46  ;;  %v6856_v59 = vpack.c.bf16 %v2587_v55, %v1929_v54  ;;  %2299 = vmatmul.bf16.gmra.mxu2 %v10022_v46  ;;  %v1932_v2 = vadd.f32 %v1931_v21, %v1603_v60 }
  0xc8   : > { %8805 = vmatmul.msk.bf16.gmra.mxu1 %vm1370_vm1, %v10025_v52  ;;  %7368 = vst [vmem:[%s10018_s5 + $0x20] sm:$0xff] %v6856_v59  ;;  %v2594_v62 = vpop.f32.mrf.mxu3 }
  0xc9   : > { %v2260_v61 = vpop.f32.mrf.mxu2 }
  0xca   : > { %v2261_v63 = vadd.f32 %v2260_v61, %v10003_v22 }
  0xcb   : > { %v1604_v0 = vpop.f32.mrf.mxu0 }
  0xcc   : > { %v2590_v3 = vadd.f32 %v2589_v27, %v2261_v63  ;;  %v1605_v11 = vadd.f32 %v1604_v0, %v9999_v19  ;;  %v10065_v0 = vor.u32 %v9338_v48, %v8063_v51 }
  0xcd   : > { %v1938_v5 = vpop.f32.mrf.mxu1 }
  0xce   : > { %v6860_v6 = vpack.c.bf16 %v2590_v3, %v1932_v2  ;;  %v1934_v21 = vadd.f32 %v1933_v34, %v1605_v11 }
  0xd0   : > { %7372 = vst [vmem:[%s10018_s5 + $0x40] sm:$0xff] %v6860_v6  ;;  %v2596_v15 = vpop.f32.mrf.mxu3 }
  0xd1   : > { %v2262_v12 = vpop.f32.mrf.mxu2 }
  0xd2   : > { %v2263_v16 = vadd.f32 %v2262_v12, %v10003_v22 }
  0xd3   : > { %v1607_v23 = vpop.f32.mrf.mxu0 }
  0xd4   : > { %v2592_v27 = vadd.f32 %v2591_v47, %v2263_v16  ;;  %v1608_v30 = vadd.f32 %v1607_v23, %v9999_v19  ;;  %v9337_v47 = vld [vmem:[%s9798_s8 + $0xb4] sm:$0xf0]  ;;  %v8061_v16 = vld [vmem:[%s9798_s8 + $0xc0] sm:$0xf]  ;;  %v9339_v23 = vld [vmem:[%s9798_s8 + $0xc4] sm:$0xf0] }
  0xd5   : > { %v1941_v28 = vpop.f32.mrf.mxu1  ;;  %8870 = vmatmul.msk.bf16.gmra.mxu3 %vm1370_vm1, %v10045_v24  ;;  %v10062_v59 = vor.u32 %v9337_v47, %v8053_v45 }
  0xd6   : > { %1646 = vmatmul.bf16.gmra.mxu0 %v10042_v13  ;;  %v6864_v29 = vpack.c.bf16 %v2592_v27, %v1934_v21  ;;  %2304 = vmatmul.bf16.gmra.mxu2 %v10042_v13  ;;  %v1937_v39 = vadd.f32 %v1936_v58, %v1608_v30  ;;  %v9340_v21 = vld [vmem:[%s9798_s8 + $0xd4] sm:$0xf]  ;;  %v8071_v27 = vld [vmem:[%s9798_s8 + $0xd8] sm:$0xf0] }
  0xd8   : > { %8806 = vmatmul.msk.bf16.gmra.mxu1 %vm1370_vm1, %v10045_v24  ;;  %7376 = vst [vmem:[%s10018_s5 + $0x60] sm:$0xff] %v6864_v29  ;;  %v2599_v34 = vpop.f32.mrf.mxu3 }
  0xd9   : > { %v2265_v33 = vpop.f32.mrf.mxu2 }
  0xda   : > { %v2266_v35 = vadd.f32 %v2265_v33, %v10003_v22  ;;  %v10082_v33 = vor.u32 %v9339_v23, %v8061_v16 }
  0xdb   : > { %v1609_v36 = vpop.f32.mrf.mxu0 }
  0xdc   : > { %v2595_v40 = vadd.f32 %v2594_v62, %v2266_v35  ;;  %v1610_v54 = vadd.f32 %v1609_v36, %v9999_v19 }
  0xdd   : > { %v1943_v41 = vpop.f32.mrf.mxu1 }
  0xde   : > { %v6868_v42 = vpack.c.bf16 %v2595_v40, %v1937_v39  ;;  %v1939_v58 = vadd.f32 %v1938_v5, %v1610_v54  ;;  %v10085_v40 = vor.u32 %v9340_v21, %v8071_v27 }
  0xe0   : > { %7380 = vst [vmem:[%s10018_s5 + $0x80] sm:$0xff] %v6868_v42  ;;  %v2601_v60 = vpop.f32.mrf.mxu3 }
  0xe1   : > { %v2267_v55 = vpop.f32.mrf.mxu2 }
  0xe2   : > { %v2268_v61 = vadd.f32 %v2267_v55, %v10003_v22 }
  0xe3   : > { %v1612_v63 = vpop.f32.mrf.mxu0 }
  0xe4   : > { %v2597_v62 = vadd.f32 %v2596_v15, %v2268_v61  ;;  %v1613_v5 = vadd.f32 %v1612_v63, %v9999_v19 }
  0xe5   : > { %v1946_v2 = vpop.f32.mrf.mxu1  ;;  %8871 = vmatmul.msk.bf16.gmra.mxu3 %vm1370_vm1, %v10065_v0 }
  0xe6   : > { %1651 = vmatmul.bf16.gmra.mxu0 %v10062_v59  ;;  %v6872_v3 = vpack.c.bf16 %v2597_v62, %v1939_v58  ;;  %2309 = vmatmul.bf16.gmra.mxu2 %v10062_v59  ;;  %v1942_v10 = vadd.f32 %v1941_v28, %v1613_v5  ;;  %v8069_v58 = vld [vmem:[%s9798_s8 + $0xd0] sm:$0xf]  ;;  %v9341_v62 = vld [vmem:[%s9798_s8 + $0xd4] sm:$0xf0]  ;;  %v8079_v5 = vld [vmem:[%s9798_s8 + $0xe8] sm:$0xf0] }
  0xe8   : > { %8807 = vmatmul.msk.bf16.gmra.mxu1 %vm1370_vm1, %v10065_v0  ;;  %7384 = vst [vmem:[%s10018_s5 + $0xa0] sm:$0xff] %v6872_v3  ;;  %v2604_v7 = vpop.f32.mrf.mxu3  ;;  %v9342_v3 = vld [vmem:[%s9798_s8 + $0xe4] sm:$0xf] }
  0xe9   : > { %v2270_v6 = vpop.f32.mrf.mxu2  ;;  %v10105_v16 = vor.u32 %v9342_v3, %v8079_v5 }
  0xea   : > { %v2271_v8 = vadd.f32 %v2270_v6, %v10003_v22 }
  0xeb   : > { %v1614_v9 = vpop.f32.mrf.mxu0 }
  0xec   : > { %v2600_v11 = vadd.f32 %v2599_v34, %v2271_v8  ;;  %v1615_v29 = vadd.f32 %v1614_v9, %v9999_v19  ;;  %v10102_v9 = vor.u32 %v9341_v62, %v8069_v58 }
  0xed   : > { %v1948_v12 = vpop.f32.mrf.mxu1 }
  0xee   : > { %v6876_v15 = vpack.c.bf16 %v2600_v11, %v1942_v10  ;;  %v1944_v28 = vadd.f32 %v1943_v41, %v1615_v29 }
  0xf0   : > { %7388 = vst [vmem:[%s10018_s5 + $0xc0] sm:$0xff] %v6876_v15  ;;  %v2606_v35 = vpop.f32.mrf.mxu3 }
  0xf1   : > { %v2272_v30 = vpop.f32.mrf.mxu2 }
  0xf2   : > { %v2273_v36 = vadd.f32 %v2272_v30, %v10003_v22 }
  0xf3   : > { %v1617_v39 = vpop.f32.mrf.mxu0 }
  0xf4   : > { %v2602_v34 = vadd.f32 %v2601_v60, %v2273_v36  ;;  %v1618_v41 = vadd.f32 %v1617_v39, %v9999_v19 }
  0xf5   : > { %v1951_v42 = vpop.f32.mrf.mxu1  ;;  %8872 = vmatmul.msk.bf16.gmra.mxu3 %vm1370_vm1, %v10085_v40 }
  0xf6   : > { %1656 = vmatmul.bf16.gmra.mxu0 %v10082_v33  ;;  %v6880_v45 = vpack.c.bf16 %v2602_v34, %v1944_v28  ;;  %2314 = vmatmul.bf16.gmra.mxu2 %v10082_v33  ;;  %v1947_v55 = vadd.f32 %v1946_v2, %v1618_v41  ;;  %v9343_v41 = vld [vmem:[%s9798_s8 + $0xe4] sm:$0xf0] }
  0xf8   : > { %8808 = vmatmul.msk.bf16.gmra.mxu1 %vm1370_vm1, %v10085_v40  ;;  %7392 = vst [vmem:[%s10018_s5 + $0xe0] sm:$0xff] %v6880_v45  ;;  %v2609_v48 = vpop.f32.mrf.mxu3  ;;  %v8077_v45 = vld [vmem:[%s9798_s8 + $0xe0] sm:$0xf] }
  0xf9   : > { %v2275_v47 = vpop.f32.mrf.mxu2 }
  0xfa   : > { %v2276_v51 = vadd.f32 %v2275_v47, %v10003_v22  ;;  %v9344_v47 = vld [vmem:[%s9798_s8 + $0xf4] sm:$0xf] }
  0xfb   : > { %v1619_v54 = vpop.f32.mrf.mxu0 }
  0xfc   : > { %v2605_v60 = vadd.f32 %v2604_v7, %v2276_v51  ;;  %v1620_v6 = vadd.f32 %v1619_v54, %v9999_v19  ;;  %v8087_v51 = vld [vmem:[%s9798_s8 + $0xf8] sm:$0xf0] }
  0xfd   : > { %v1953_v61 = vpop.f32.mrf.mxu1  ;;  %v10125_v3 = vor.u32 %v9344_v47, %v8087_v51  ;;  %v9483_v51 = vld [vmem:[%s13848_s1 + $0x14c] sm:$0xf] }
  0xfe   : > { %v6884_v63 = vpack.c.bf16 %v2605_v60, %v1947_v55  ;;  %v1949_v2 = vadd.f32 %v1948_v12, %v1620_v6  ;;  %v10122_v60 = vor.u32 %v9343_v41, %v8077_v45  ;;  %v9487_v45 = vld [vmem:[%s13848_s1 + $0x164] sm:$0xf0] }
 0x100   : > { %7396 = vst [vmem:[%s10018_s5 + $0x100] sm:$0xff] %v6884_v63  ;;  %v2611_v10 = vpop.f32.mrf.mxu3 }
 0x101   : > { %v2277_v8 = vpop.f32.mrf.mxu2 }
 0x102   : > { %v2278_v11 = vadd.f32 %v2277_v8, %v10003_v22 }
 0x103   : > { %v1622_v15 = vpop.f32.mrf.mxu0 }
 0x104   : > { %v2607_v7 = vadd.f32 %v2606_v35, %v2278_v11  ;;  %v1623_v12 = vadd.f32 %v1622_v15, %v9999_v19 }
 0x105   : > { %v1956_v23 = vpop.f32.mrf.mxu1  ;;  %8873 = vmatmul.msk.bf16.gmra.mxu3 %vm1370_vm1, %v10105_v16 }
 0x106   : > { %1661 = vmatmul.bf16.gmra.mxu0 %v10102_v9  ;;  %v6888_v21 = vpack.c.bf16 %v2607_v7, %v1949_v2  ;;  %2319 = vmatmul.bf16.gmra.mxu2 %v10102_v9  ;;  %v1952_v36 = vadd.f32 %v1951_v42, %v1623_v12 }
 0x108   : > { %8809 = vmatmul.msk.bf16.gmra.mxu1 %vm1370_vm1, %v10105_v16  ;;  %7400 = vst [vmem:[%s10018_s5 + $0x120] sm:$0xff] %v6888_v21  ;;  %v2614_v29 = vpop.f32.mrf.mxu3 }
 0x109   : > { %v2280_v27 = vpop.f32.mrf.mxu2 }
 0x10a   : > { %v2281_v30 = vadd.f32 %v2280_v27, %v10003_v22  ;;  %v8085_v27 = vld [vmem:[%s9798_s8 + $0xf0] sm:$0xf] }
 0x10b   : > { %v1624_v35 = vpop.f32.mrf.mxu0 }
 0x10c   : > { %v2610_v39 = vadd.f32 %v2609_v48, %v2281_v30  ;;  %v1625_v54 = vadd.f32 %v1624_v35, %v9999_v19  ;;  %v9345_v30 = vld [vmem:[%s9798_s8 + $0xf4] sm:$0xf0]  ;;  %v9346_v35 = vld [vmem:[%s9798_s8 + $0x104] sm:$0xf] }
 0x10d   : > { %v1958_v28 = vpop.f32.mrf.mxu1 }
 0x10e   : > { %v6892_v34 = vpack.c.bf16 %v2610_v39, %v1952_v36  ;;  %v1954_v42 = vadd.f32 %v1953_v61, %v1625_v54  ;;  %v8095_v36 = vld [vmem:[%s9798_s8 + $0x108] sm:$0xf0] }
 0x10f   : > { %v8647_v54 = vld [vmem:[%s13848_s1 + $0x168] sm:$0xf0] }
 0x110   : > { %7404 = vst [vmem:[%s10018_s5 + $0x140] sm:$0xff] %v6892_v34  ;;  %v2616_v63 = vpop.f32.mrf.mxu3  ;;  %v8645_v34 = vld [vmem:[%s13848_s1 + $0x148] sm:$0xf] }
 0x111   : > { %v2282_v55 = vpop.f32.mrf.mxu2  ;;  %v8646_v47 = vor.u32 %v9487_v45, %v8645_v34  ;;  %v8103_v34 = vld [vmem:[%s9798_s8 + $0x118] sm:$0xf0] }
 0x112   : > { %v2283_v58 = vadd.f32 %v2282_v55, %v10003_v22 }
 0x113   : > { %v1627_v62 = vpop.f32.mrf.mxu0  ;;  %2906 = vmatpush.bf16.msrb.mxu1 %v8646_v47 }
 0x114   : > { %v2612_v48 = vadd.f32 %v2611_v10, %v2283_v58  ;;  %v1628_v61 = vadd.f32 %v1627_v62, %v9999_v19  ;;  %v10157_v62 = vor.u32 %v9346_v35, %v8095_v36  ;;  %v8093_v35 = vld [vmem:[%s9798_s8 + $0x100] sm:$0xf]  ;;  %v9347_v36 = vld [vmem:[%s9798_s8 + $0x104] sm:$0xf0] }
 0x115   : > { %v1961_v5 = vpop.f32.mrf.mxu1  ;;  %8874 = vmatmul.msk.bf16.gmra.mxu3 %vm1370_vm1, %v10125_v3  ;;  %v10174_v47 = vor.u32 %v9347_v36, %v8093_v35  ;;  %v9350_v35 = vld [vmem:[%s9798_s8 + $0x124] sm:$0xf]  ;;  %v8111_v36 = vld [vmem:[%s9798_s8 + $0x128] sm:$0xf0] }
 0x116   : > { %1666 = vmatmul.bf16.gmra.mxu0 %v10122_v60  ;;  %v6896_v6 = vpack.c.bf16 %v2612_v48, %v1954_v42  ;;  %2324 = vmatmul.bf16.gmra.mxu2 %v10122_v60  ;;  %v1957_v2 = vadd.f32 %v1956_v23, %v1628_v61  ;;  %v10148_v23 = vor.u32 %v9345_v30, %v8085_v27 }
 0x117   : > { %v8650_v42 = vor.u32 %v9483_v51, %v8647_v54 }
 0x118   : > { %8810 = vmatmul.msk.bf16.gmra.mxu1 %vm1370_vm1, %v10125_v3  ;;  %7408 = vst [vmem:[%s10018_s5 + $0x160] sm:$0xff] %v6896_v6  ;;  %v2619_v10 = vpop.f32.mrf.mxu3 }
 0x119   : > { %v2285_v8 = vpop.f32.mrf.mxu2  ;;  %3564 = vmatpush.bf16.msrb.mxu0 %v8650_v42 }
 0x11a   : > { %v2286_v11 = vadd.f32 %v2285_v8, %v10003_v22 }
 0x11b   : > { %v1629_v15 = vpop.f32.mrf.mxu0 }
 0x11c   : > { %v2615_v7 = vadd.f32 %v2614_v29, %v2286_v11  ;;  %v1630_v39 = vadd.f32 %v1629_v15, %v9999_v19 }
 0x11d   : > { %v1963_v21 = vpop.f32.mrf.mxu1 }
 0x11e   : > { %v6900_v12 = vpack.c.bf16 %v2615_v7, %v1957_v2  ;;  %v1959_v48 = vadd.f32 %v1958_v28, %v1630_v39  ;;  %v9348_v39 = vld [vmem:[%s9798_s8 + $0x114] sm:$0xf] }
 0x120   : > { %7412 = vst [vmem:[%s10018_s5 + $0x180] sm:$0xff] %v6900_v12  ;;  %v2621_v29 = vpop.f32.mrf.mxu3 }
 0x121   : > { %v2287_v41 = vpop.f32.mrf.mxu2 }
 0x122   : > { %v2288_v55 = vadd.f32 %v2287_v41, %v10003_v22 }
 0x123   : > { %v1632_v58 = vpop.f32.mrf.mxu0 }
 0x124   : > { %v2617_v6 = vadd.f32 %v2616_v63, %v2288_v55  ;;  %v1633_v28 = vadd.f32 %v1632_v58, %v9999_v19  ;;  %v10177_v58 = vor.u32 %v9348_v39, %v8103_v34 }
 0x125   : > { %v1966_v61 = vpop.f32.mrf.mxu1  ;;  %8875 = vmatmul.msk.bf16.gmra.mxu3 %vm1370_vm1, %v10157_v62 }
 0x126   : > { %1671 = vmatmul.bf16.gmra.mxu0 %v10148_v23  ;;  %v6904_v8 = vpack.c.bf16 %v2617_v6, %v1959_v48  ;;  %2329 = vmatmul.bf16.gmra.mxu2 %v10148_v23  ;;  %v1962_v7 = vadd.f32 %v1961_v5, %v1633_v28 }
 0x128   : > { %8811 = vmatmul.msk.bf16.gmra.mxu1 %vm1370_vm1, %v10157_v62  ;;  %7416 = vst [vmem:[%s10018_s5 + $0x1a0] sm:$0xff] %v6904_v8  ;;  %v2624_v11 = vpop.f32.mrf.mxu3 }
 0x129   : > { %v2290_v63 = vpop.f32.mrf.mxu2 }
 0x12a   : > { %v2291_v15 = vadd.f32 %v2290_v63, %v10003_v22 }
 0x12b   : > { %v1634_v2 = vpop.f32.mrf.mxu0 }
 0x12c   : > { %v2620_v12 = vadd.f32 %v2619_v10, %v2291_v15  ;;  %v1635_v45 = vadd.f32 %v1634_v2, %v9999_v19 }
 0x12d   : > { %v1968_v27 = vpop.f32.mrf.mxu1 }
 0x12e   : > { %v6908_v30 = vpack.c.bf16 %v2620_v12, %v1962_v7  ;;  %v1964_v5 = vadd.f32 %v1963_v21, %v1635_v45  ;;  %v8101_v12 = vld [vmem:[%s9798_s8 + $0x110] sm:$0xf] }
 0x130   : > { %7420 = vst [vmem:[%s10018_s5 + $0x1c0] sm:$0xff] %v6908_v30  ;;  %v2626_v51 = vpop.f32.mrf.mxu3  ;;  %v9349_v30 = vld [vmem:[%s9798_s8 + $0x114] sm:$0xf0] }
 0x131   : > { %v2292_v41 = vpop.f32.mrf.mxu2  ;;  %v10194_v45 = vor.u32 %v9349_v30, %v8101_v12  ;;  %v8109_v12 = vld [vmem:[%s9798_s8 + $0x120] sm:$0xf]  ;;  %v9351_v30 = vld [vmem:[%s9798_s8 + $0x124] sm:$0xf0] }
 0x132   : > { %v2293_v54 = vadd.f32 %v2292_v41, %v10003_v22 }
 0x133   : > { %v1637_v55 = vpop.f32.mrf.mxu0  ;;  %14208 = vst [vmem:[#allocation5_spill] sm:$0xff] %v10194_v45 }
 0x134   : > { %v2622_v10 = vadd.f32 %v2621_v29, %v2293_v54  ;;  %v1638_v21 = vadd.f32 %v1637_v55, %v9999_v19 }
 0x135   : > { %v1971_v42 = vpop.f32.mrf.mxu1  ;;  %8876 = vmatmul.msk.bf16.gmra.mxu3 %vm1370_vm1, %v10177_v58 }
 0x136   : > { %1676 = vmatmul.bf16.gmra.mxu0 %v10174_v47  ;;  %v6912_v48 = vpack.c.bf16 %v2622_v10, %v1964_v5  ;;  %2334 = vmatmul.bf16.gmra.mxu2 %v10174_v47  ;;  %v1967_v63 = vadd.f32 %v1966_v61, %v1638_v21  ;;  %v10197_v5 = vor.u32 %v9350_v35, %v8111_v36  ;;  %v9352_v35 = vld [vmem:[%s9798_s8 + $0x134] sm:$0xf]  ;;  %v8119_v36 = vld [vmem:[%s9798_s8 + $0x138] sm:$0xf0] }
 0x138   : > { %8812 = vmatmul.msk.bf16.gmra.mxu1 %vm1370_vm1, %v10177_v58  ;;  %7424 = vst [vmem:[%s10018_s5 + $0x1e0] sm:$0xff] %v6912_v48  ;;  %v2629_v6 = vpop.f32.mrf.mxu3 }
 0x139   : > { %v2295_v29 = vpop.f32.mrf.mxu2  ;;  %14209 = vst [vmem:[#allocation6_spill] sm:$0xff] %v10197_v5 }
 0x13a   : > { %v2296_v8 = vadd.f32 %v2295_v29, %v10003_v22 }
 0x13b   : > { %v1639_v28 = vpop.f32.mrf.mxu0 }
 0x13c   : > { %v2625_v15 = vadd.f32 %v2624_v11, %v2296_v8  ;;  %v1640_v39 = vadd.f32 %v1639_v28, %v9999_v19 }
 0x13d   : > { %v1973_v2 = vpop.f32.mrf.mxu1 }
 0x13e   : > { %v6916_v7 = vpack.c.bf16 %v2625_v15, %v1967_v63  ;;  %v1969_v61 = vadd.f32 %v1968_v27, %v1640_v39 }
 0x140   : > { %7428 = vst [vmem:[%s10018_s5 + $0x200] sm:$0xff] %v6916_v7  ;;  %v2631_v41 = vpop.f32.mrf.mxu3 }
 0x141   : > { %v2297_v34 = vpop.f32.mrf.mxu2 }
 0x142   : > { %v2298_v54 = vadd.f32 %v2297_v34, %v10003_v22 }
 0x143   : > { %v1642_v55 = vpop.f32.mrf.mxu0 }
 0x144   : > { %v2627_v11 = vadd.f32 %v2626_v51, %v2298_v54  ;;  %v1643_v27 = vadd.f32 %v1642_v55, %v9999_v19  ;;  %v10214_v54 = vor.u32 %v9351_v30, %v8109_v12 }
 0x145   : > { %v1976_v10 = vpop.f32.mrf.mxu1  ;;  %8877 = vmatmul.msk.bf16.gmra.mxu3 %vm1370_vm1, %v10197_v5 }
 0x146   : > { %1681 = vmatmul.bf16.gmra.mxu0 %v10194_v45  ;;  %v6920_v48 = vpack.c.bf16 %v2627_v11, %v1969_v61  ;;  %2339 = vmatmul.bf16.gmra.mxu2 %v10194_v45  ;;  %v1972_v28 = vadd.f32 %v1971_v42, %v1643_v27  ;;  %14210 = vst [vmem:[#allocation7_spill] sm:$0xff] %v10214_v54 }
 0x148   : > { %8813 = vmatmul.msk.bf16.gmra.mxu1 %vm1370_vm1, %v10197_v5  ;;  %7432 = vst [vmem:[%s10018_s5 + $0x220] sm:$0xff] %v6920_v48  ;;  %v2634_v21 = vpop.f32.mrf.mxu3  ;;  %v10217_v48 = vor.u32 %v9352_v35, %v8119_v36  ;;  %v8117_v35 = vld [vmem:[%s9798_s8 + $0x130] sm:$0xf]  ;;  %v9353_v36 = vld [vmem:[%s9798_s8 + $0x134] sm:$0xf0] }
 0x149   : > { %v2300_v51 = vpop.f32.mrf.mxu2 }
 0x14a   : > { %v2301_v29 = vadd.f32 %v2300_v51, %v10003_v22  ;;  %14211 = vst [vmem:[#allocation8_spill] sm:$0xff] %v10217_v48 }
 0x14b   : > { %v1644_v8 = vpop.f32.mrf.mxu0 }
 0x14c   : > { %v2630_v63 = vadd.f32 %v2629_v6, %v2301_v29  ;;  %v1645_v39 = vadd.f32 %v1644_v8, %v9999_v19 }
 0x14d   : > { %v1978_v15 = vpop.f32.mrf.mxu1 }
 0x14e   : > { %v6924_v7 = vpack.c.bf16 %v2630_v63, %v1972_v28  ;;  %v1974_v42 = vadd.f32 %v1973_v2, %v1645_v39  ;;  %v9354_v39 = vld [vmem:[%s9798_s8 + $0x144] sm:$0xf] }
 0x150   : > { %7436 = vst [vmem:[%s10018_s5 + $0x240] sm:$0xff] %v6924_v7  ;;  %v2636_v55 = vpop.f32.mrf.mxu3 }
 0x151   : > { %v2302_v34 = vpop.f32.mrf.mxu2 }
 0x152   : > { %v2303_v61 = vadd.f32 %v2302_v34, %v10003_v22  ;;  %v8127_v34 = vld [vmem:[%s9798_s8 + $0x148] sm:$0xf0] }
 0x153   : > { %v1647_v11 = vpop.f32.mrf.mxu0 }
 0x154   : > { %v2632_v6 = vadd.f32 %v2631_v41, %v2303_v61  ;;  %v1648_v2 = vadd.f32 %v1647_v11, %v9999_v19 }
 0x155   : > { %v1981_v27 = vpop.f32.mrf.mxu1  ;;  %8878 = vmatmul.msk.bf16.gmra.mxu3 %vm1370_vm1, %v10217_v48 }
 0x156   : > { %1686 = vmatmul.bf16.gmra.mxu0 %v10214_v54  ;;  %v6928_v51 = vpack.c.bf16 %v2632_v6, %v1974_v42  ;;  %2344 = vmatmul.bf16.gmra.mxu2 %v10214_v54  ;;  %v1977_v63 = vadd.f32 %v1976_v10, %v1648_v2  ;;  %v10234_v6 = vor.u32 %v9353_v36, %v8117_v35 }
 0x158   : > { %8814 = vmatmul.msk.bf16.gmra.mxu1 %vm1370_vm1, %v10217_v48  ;;  %7440 = vst [vmem:[%s10018_s5 + $0x260] sm:$0xff] %v6928_v51  ;;  %v2639_v29 = vpop.f32.mrf.mxu3  ;;  %v10237_v48 = vor.u32 %v9354_v39, %v8127_v34  ;;  %v8125_v34 = vld [vmem:[%s9798_s8 + $0x140] sm:$0xf] }
 0x159   : > { %v2305_v41 = vpop.f32.mrf.mxu2  ;;  %14212 = vst [vmem:[#allocation9_spill] sm:$0xff] %v10234_v6 }
 0x15a   : > { %v2306_v8 = vadd.f32 %v2305_v41, %v10003_v22  ;;  %14213 = vst [vmem:[#allocation10_spill] sm:$0xff] %v10237_v48 }
 0x15b   : > { %v1649_v28 = vpop.f32.mrf.mxu0 }
 0x15c   : > { %v2635_v7 = vadd.f32 %v2634_v21, %v2306_v8  ;;  %v1650_v61 = vadd.f32 %v1649_v28, %v9999_v19 }
 0x15d   : > { %v1983_v12 = vpop.f32.mrf.mxu1 }
 0x15e   : > { %v6932_v30 = vpack.c.bf16 %v2635_v7, %v1977_v63  ;;  %v1979_v10 = vadd.f32 %v1978_v15, %v1650_v61  ;;  %v9355_v61 = vld [vmem:[%s9798_s8 + $0x144] sm:$0xf0] }
 0x160   : > { %7444 = vst [vmem:[%s10018_s5 + $0x280] sm:$0xff] %v6932_v30  ;;  %v2641_v11 = vpop.f32.mrf.mxu3 }
 0x161   : > { %v2307_v42 = vpop.f32.mrf.mxu2 }
 0x162   : > { %v2308_v51 = vadd.f32 %v2307_v42, %v10003_v22  ;;  %v9356_v42 = vld [vmem:[%s9798_s8 + $0x154] sm:$0xf] }
 0x163   : > { %v1652_v41 = vpop.f32.mrf.mxu0 }
 0x164   : > { %v2637_v21 = vadd.f32 %v2636_v55, %v2308_v51  ;;  %v1653_v15 = vadd.f32 %v1652_v41, %v9999_v19  ;;  %v8135_v51 = vld [vmem:[%s9798_s8 + $0x158] sm:$0xf0] }
 0x165   : > { %v1986_v2 = vpop.f32.mrf.mxu1  ;;  %8879 = vmatmul.msk.bf16.gmra.mxu3 %vm1370_vm1, %v10237_v48 }
 0x166   : > { %1691 = vmatmul.bf16.gmra.mxu0 %v10234_v6  ;;  %v6936_v8 = vpack.c.bf16 %v2637_v21, %v1979_v10  ;;  %2349 = vmatmul.bf16.gmra.mxu2 %v10234_v6  ;;  %v1982_v30 = vadd.f32 %v1981_v27, %v1653_v15  ;;  %v10257_v6 = vor.u32 %v9356_v42, %v8135_v51  ;;  %v8133_v42 = vld [vmem:[%s9798_s8 + $0x150] sm:$0xf]  ;;  %v9357_v51 = vld [vmem:[%s9798_s8 + $0x154] sm:$0xf0] }
 0x168   : > { %8815 = vmatmul.msk.bf16.gmra.mxu1 %vm1370_vm1, %v10237_v48  ;;  %7448 = vst [vmem:[%s10018_s5 + $0x2a0] sm:$0xff] %v6936_v8  ;;  %v2644_v28 = vpop.f32.mrf.mxu3  ;;  %v10254_v8 = vor.u32 %v9355_v61, %v8125_v34 }
 0x169   : > { %v2310_v55 = vpop.f32.mrf.mxu2  ;;  %14215 = vst [vmem:[#allocation12_spill] sm:$0xff] %v10257_v6 }
 0x16a   : > { %v2311_v63 = vadd.f32 %v2310_v55, %v10003_v22  ;;  %14214 = vst [vmem:[#allocation11_spill] sm:$0xff] %v10254_v8 }
 0x16b   : > { %v1654_v7 = vpop.f32.mrf.mxu0 }
 0x16c   : > { %v2640_v35 = vadd.f32 %v2639_v29, %v2311_v63  ;;  %v1655_v10 = vadd.f32 %v1654_v7, %v9999_v19 }
 0x16d   : > { %v1988_v36 = vpop.f32.mrf.mxu1 }
 0x16e   : > { %v6940_v39 = vpack.c.bf16 %v2640_v35, %v1982_v30  ;;  %v1984_v27 = vadd.f32 %v1983_v12, %v1655_v10  ;;  %v9358_v10 = vld [vmem:[%s9798_s8 + $0x164] sm:$0xf] }
 0x170   : > { %7452 = vst [vmem:[%s10018_s5 + $0x2c0] sm:$0xff] %v6940_v39  ;;  %v2646_v41 = vpop.f32.mrf.mxu3 }
 0x171   : > { %v2312_v21 = vpop.f32.mrf.mxu2 }
 0x172   : > { %v2313_v48 = vadd.f32 %v2312_v21, %v10003_v22  ;;  %v8143_v21 = vld [vmem:[%s9798_s8 + $0x168] sm:$0xf0] }
 0x173   : > { %v1657_v55 = vpop.f32.mrf.mxu0 }
 0x174   : > { %v2642_v29 = vadd.f32 %v2641_v11, %v2313_v48  ;;  %v1658_v48 = vadd.f32 %v1657_v55, %v9999_v19 }
 0x175   : > { %v1991_v15 = vpop.f32.mrf.mxu1  ;;  %8880 = vmatmul.msk.bf16.gmra.mxu3 %vm1370_vm1, %v10257_v6 }
 0x176   : > { %1696 = vmatmul.bf16.gmra.mxu0 %v10254_v8  ;;  %v6944_v63 = vpack.c.bf16 %v2642_v29, %v1984_v27  ;;  %2354 = vmatmul.bf16.gmra.mxu2 %v10254_v8  ;;  %v1987_v35 = vadd.f32 %v1986_v2, %v1658_v48  ;;  %v10277_v8 = vor.u32 %v9358_v10, %v8143_v21  ;;  %v8141_v10 = vld [vmem:[%s9798_s8 + $0x160] sm:$0xf]  ;;  %v9359_v21 = vld [vmem:[%s9798_s8 + $0x164] sm:$0xf0] }
 0x178   : > { %8816 = vmatmul.msk.bf16.gmra.mxu1 %vm1370_vm1, %v10257_v6  ;;  %7456 = vst [vmem:[%s10018_s5 + $0x2e0] sm:$0xff] %v6944_v63  ;;  %v2649_v11 = vpop.f32.mrf.mxu3  ;;  %v10274_v63 = vor.u32 %v9357_v51, %v8133_v42 }
 0x179   : > { %v2315_v12 = vpop.f32.mrf.mxu2  ;;  %14217 = vst [vmem:[#allocation14_spill] sm:$0xff] %v10277_v8 }
 0x17a   : > { %v2316_v7 = vadd.f32 %v2315_v12, %v10003_v22  ;;  %14216 = vst [vmem:[#allocation13_spill] sm:$0xff] %v10274_v63 }
 0x17b   : > { %v1659_v30 = vpop.f32.mrf.mxu0 }
 0x17c   : > { %v2645_v39 = vadd.f32 %v2644_v28, %v2316_v7  ;;  %v1660_v27 = vadd.f32 %v1659_v30, %v9999_v19 }
 0x17d   : > { %v1993_v34 = vpop.f32.mrf.mxu1 }
 0x17e   : > { %v6948_v61 = vpack.c.bf16 %v2645_v39, %v1987_v35  ;;  %v1989_v2 = vadd.f32 %v1988_v36, %v1660_v27  ;;  %v9360_v27 = vld [vmem:[%s9798_s8 + $0x174] sm:$0xf] }
 0x180   : > { %7460 = vst [vmem:[%s10018_s5 + $0x300] sm:$0xff] %v6948_v61  ;;  %v2651_v55 = vpop.f32.mrf.mxu3 }
 0x181   : > { %v2317_v29 = vpop.f32.mrf.mxu2 }
 0x182   : > { %v2318_v6 = vadd.f32 %v2317_v29, %v10003_v22  ;;  %v8151_v29 = vld [vmem:[%s9798_s8 + $0x178] sm:$0xf0] }
 0x183   : > { %v1662_v12 = vpop.f32.mrf.mxu0 }
 0x184   : > { %v2647_v28 = vadd.f32 %v2646_v41, %v2318_v6  ;;  %v1663_v6 = vadd.f32 %v1662_v12, %v9999_v19 }
 0x185   : > { %v1996_v48 = vpop.f32.mrf.mxu1  ;;  %8881 = vmatmul.msk.bf16.gmra.mxu3 %vm1370_vm1, %v10277_v8 }
 0x186   : > { %1701 = vmatmul.bf16.gmra.mxu0 %v10274_v63  ;;  %v6952_v7 = vpack.c.bf16 %v2647_v28, %v1989_v2  ;;  %2359 = vmatmul.bf16.gmra.mxu2 %v10274_v63  ;;  %v1992_v39 = vadd.f32 %v1991_v15, %v1663_v6  ;;  %v10297_v63 = vor.u32 %v9360_v27, %v8151_v29  ;;  %v8149_v27 = vld [vmem:[%s9798_s8 + $0x170] sm:$0xf]  ;;  %v9361_v29 = vld [vmem:[%s9798_s8 + $0x174] sm:$0xf0] }
 0x188   : > { %8817 = vmatmul.msk.bf16.gmra.mxu1 %vm1370_vm1, %v10277_v8  ;;  %7464 = vst [vmem:[%s10018_s5 + $0x320] sm:$0xff] %v6952_v7  ;;  %v2654_v41 = vpop.f32.mrf.mxu3  ;;  %v10294_v7 = vor.u32 %v9359_v21, %v8141_v10 }
 0x189   : > { %v2320_v36 = vpop.f32.mrf.mxu2  ;;  %14219 = vst [vmem:[#allocation16_spill] sm:$0xff] %v10297_v63 }
 0x18a   : > { %v2321_v30 = vadd.f32 %v2320_v36, %v10003_v22  ;;  %14218 = vst [vmem:[#allocation15_spill] sm:$0xff] %v10294_v7 }
 0x18b   : > { %v1664_v35 = vpop.f32.mrf.mxu0 }
 0x18c   : > { %v2650_v61 = vadd.f32 %v2649_v11, %v2321_v30  ;;  %v1665_v2 = vadd.f32 %v1664_v35, %v9999_v19 }
 0x18d   : > { %v1998_v42 = vpop.f32.mrf.mxu1 }
 0x18e   : > { %v6956_v51 = vpack.c.bf16 %v2650_v61, %v1992_v39  ;;  %v1994_v15 = vadd.f32 %v1993_v34, %v1665_v2  ;;  %v9362_v2 = vld [vmem:[%s9798_s8 + $0x184] sm:$0xf] }
 0x190   : > { %7468 = vst [vmem:[%s10018_s5 + $0x340] sm:$0xff] %v6956_v51  ;;  %v2656_v12 = vpop.f32.mrf.mxu3 }
 0x191   : > { %v2322_v28 = vpop.f32.mrf.mxu2 }
 0x192   : > { %v2323_v8 = vadd.f32 %v2322_v28, %v10003_v22  ;;  %v8159_v28 = vld [vmem:[%s9798_s8 + $0x188] sm:$0xf0] }
 0x193   : > { %v1667_v36 = vpop.f32.mrf.mxu0 }
 0x194   : > { %v2652_v11 = vadd.f32 %v2651_v55, %v2323_v8  ;;  %v1668_v8 = vadd.f32 %v1667_v36, %v9999_v19  ;;  %v8613_v36 = vld [vmem:[%s13848_s1 + $0x108] sm:$0xf] }
 0x195   : > { %v2001_v6 = vpop.f32.mrf.mxu1  ;;  %8882 = vmatmul.msk.bf16.gmra.mxu3 %vm1370_vm1, %v10297_v63 }
 0x196   : > { %1706 = vmatmul.bf16.gmra.mxu0 %v10294_v7  ;;  %v6960_v30 = vpack.c.bf16 %v2652_v11, %v1994_v15  ;;  %2364 = vmatmul.bf16.gmra.mxu2 %v10294_v7  ;;  %v1997_v61 = vadd.f32 %v1996_v48, %v1668_v8  ;;  %v9479_v11 = vld [vmem:[%s13848_s1 + $0x124] sm:$0xf0]  ;;  %v10320_v48 = vor.u32 %v9361_v29, %v8149_v27 }
 0x197   : > { %v8614_v8 = vor.u32 %v9479_v11, %v8613_v36 }
 0x198   : > { %8818 = vmatmul.msk.bf16.gmra.mxu1 %vm1370_vm1, %v10297_v63  ;;  %7472 = vst [vmem:[%s10018_s5 + $0x360] sm:$0xff] %v6960_v30  ;;  %v2659_v55 = vpop.f32.mrf.mxu3 }
 0x199   : > { %v2325_v34 = vpop.f32.mrf.mxu2  ;;  %14220 = vst [vmem:[#allocation17_spill] sm:$0xff] %v10320_v48  ;;  %2907 = vmatpush.bf16.msrb.mxu1 %v8614_v8 }
 0x19a   : > { %v2326_v35 = vadd.f32 %v2325_v34, %v10003_v22  ;;  %v9475_v34 = vld [vmem:[%s13848_s1 + $0x10c] sm:$0xf] }
 0x19b   : > { %v1669_v39 = vpop.f32.mrf.mxu0 }
 0x19c   : > { %v2655_v51 = vadd.f32 %v2654_v41, %v2326_v35  ;;  %v1670_v15 = vadd.f32 %v1669_v39, %v9999_v19  ;;  %v8615_v35 = vld [vmem:[%s13848_s1 + $0x128] sm:$0xf0] }
 0x19d   : > { %v2003_v10 = vpop.f32.mrf.mxu1 }
 0x19e   : > { %v6964_v21 = vpack.c.bf16 %v2655_v51, %v1997_v61  ;;  %v10329_v51 = vor.u32 %v9362_v2, %v8159_v28  ;;  %v1999_v27 = vadd.f32 %v1998_v42, %v1670_v15 }
 0x1a0   : > { %7476 = vst [vmem:[%s10018_s5 + $0x380] sm:$0xff] %v6964_v21  ;;  %v2661_v41 = vpop.f32.mrf.mxu3  ;;  %v8618_v21 = vor.u32 %v9475_v34, %v8615_v35  ;;  %v8157_v35 = vld [vmem:[%s9798_s8 + $0x180] sm:$0xf] }
 0x1a1   : > { %v2327_v30 = vpop.f32.mrf.mxu2  ;;  %14221 = vst [vmem:[#allocation18_spill] sm:$0xff] %v10329_v51 }
 0x1a2   : > { %v2328_v39 = vadd.f32 %v2327_v30, %v10003_v22  ;;  %3565 = vmatpush.bf16.msrb.mxu0 %v8618_v21  ;;  %v9364_v21 = vld [vmem:[%s9798_s8 + $0x194] sm:$0xf] }
 0x1a3   : > { %v1672_v61 = vpop.f32.mrf.mxu0 }
 0x1a4   : > { %v2657_v29 = vadd.f32 %v2656_v12, %v2328_v39  ;;  %v1673_v42 = vadd.f32 %v1672_v61, %v9999_v19  ;;  %v9363_v39 = vld [vmem:[%s9798_s8 + $0x184] sm:$0xf0] }
 0x1a5   : > { %v2006_v63 = vpop.f32.mrf.mxu1  ;;  %8883 = vmatmul.msk.bf16.gmra.mxu3 %vm1370_vm1, %v10329_v51 }
 0x1a6   : > { %1711 = vmatmul.bf16.gmra.mxu0 %v10320_v48  ;;  %v6968_v36 = vpack.c.bf16 %v2657_v29, %v1999_v27  ;;  %2369 = vmatmul.bf16.gmra.mxu2 %v10320_v48  ;;  %v2002_v11 = vadd.f32 %v2001_v6, %v1673_v42  ;;  %v8167_v27 = vld [vmem:[%s9798_s8 + $0x198] sm:$0xf0] }
 0x1a7   : > { %v10349_v7 = vor.u32 %v9364_v21, %v8167_v27  ;;  %v8165_v21 = vld [vmem:[%s9798_s8 + $0x190] sm:$0xf]  ;;  %v9365_v27 = vld [vmem:[%s9798_s8 + $0x194] sm:$0xf0] }
 0x1a8   : > { %8819 = vmatmul.msk.bf16.gmra.mxu1 %vm1370_vm1, %v10329_v51  ;;  %7480 = vst [vmem:[%s10018_s5 + $0x3a0] sm:$0xff] %v6968_v36  ;;  %v2664_v2 = vpop.f32.mrf.mxu3  ;;  %v10346_v51 = vor.u32 %v9363_v39, %v8157_v35 }
 0x1a9   : > { %v2330_v12 = vpop.f32.mrf.mxu2  ;;  %14223 = vst [vmem:[#allocation20_spill] sm:$0xff] %v10349_v7 }
 0x1aa   : > { %v2331_v28 = vadd.f32 %v2330_v12, %v10003_v22  ;;  %14222 = vst [vmem:[#allocation19_spill] sm:$0xff] %v10346_v51 }
 0x1ab   : > { %v1674_v15 = vpop.f32.mrf.mxu0 }
 0x1ac   : > { %v2660_v30 = vadd.f32 %v2659_v55, %v2331_v28  ;;  %v1675_v29 = vadd.f32 %v1674_v15, %v9999_v19 }
 0x1ad   : > { %v2008_v8 = vpop.f32.mrf.mxu1 }
 0x1ae   : > { %v6972_v34 = vpack.c.bf16 %v2660_v30, %v2002_v11  ;;  %v2004_v6 = vadd.f32 %v2003_v10, %v1675_v29  ;;  %v9366_v29 = vld [vmem:[%s9798_s8 + $0x1a4] sm:$0xf] }
 0x1b0   : > { %7484 = vst [vmem:[%s10018_s5 + $0x3c0] sm:$0xff] %v6972_v34  ;;  %v2666_v61 = vpop.f32.mrf.mxu3 }
 0x1b1   : > { %v2332_v36 = vpop.f32.mrf.mxu2 }
 0x1b2   : > { %v2333_v48 = vadd.f32 %v2332_v36, %v10003_v22  ;;  %v8175_v36 = vld [vmem:[%s9798_s8 + $0x1a8] sm:$0xf0] }
 0x1b3   : > { %v1677_v12 = vpop.f32.mrf.mxu0 }
 0x1b4   : > { %v2662_v55 = vadd.f32 %v2661_v41, %v2333_v48  ;;  %v1678_v10 = vadd.f32 %v1677_v12, %v9999_v19 }
 0x1b5   : > { %v2011_v42 = vpop.f32.mrf.mxu1  ;;  %8884 = vmatmul.msk.bf16.gmra.mxu3 %vm1370_vm1, %v10349_v7 }
 0x1b6   : > { %1716 = vmatmul.bf16.gmra.mxu0 %v10346_v51  ;;  %v6976_v28 = vpack.c.bf16 %v2662_v55, %v2004_v6  ;;  %2374 = vmatmul.bf16.gmra.mxu2 %v10346_v51  ;;  %v2007_v30 = vadd.f32 %v2006_v63, %v1678_v10  ;;  %v10369_v51 = vor.u32 %v9366_v29, %v8175_v36  ;;  %v8173_v29 = vld [vmem:[%s9798_s8 + $0x1a0] sm:$0xf]  ;;  %v9367_v36 = vld [vmem:[%s9798_s8 + $0x1a4] sm:$0xf0] }
 0x1b8   : > { %8820 = vmatmul.msk.bf16.gmra.mxu1 %vm1370_vm1, %v10349_v7  ;;  %7488 = vst [vmem:[%s10018_s5 + $0x3e0] sm:$0xff] %v6976_v28  ;;  %v2669_v41 = vpop.f32.mrf.mxu3  ;;  %v10366_v28 = vor.u32 %v9365_v27, %v8165_v21 }
 0x1b9   : > { %v2335_v48 = vpop.f32.mrf.mxu2  ;;  %14225 = vst [vmem:[#allocation22_spill] sm:$0xff] %v10369_v51 }
 0x1ba   : > { %v2336_v15 = vadd.f32 %v2335_v48, %v10003_v22  ;;  %14224 = vst [vmem:[#allocation21_spill] sm:$0xff] %v10366_v28 }
 0x1bb   : > { %v1679_v11 = vpop.f32.mrf.mxu0 }
 0x1bc   : > { %v2665_v34 = vadd.f32 %v2664_v2, %v2336_v15  ;;  %v1680_v6 = vadd.f32 %v1679_v11, %v9999_v19 }
 0x1bd   : > { %v2013_v35 = vpop.f32.mrf.mxu1 }
 0x1be   : > { %v6980_v39 = vpack.c.bf16 %v2665_v34, %v2007_v30  ;;  %v2009_v63 = vadd.f32 %v2008_v8, %v1680_v6  ;;  %v9368_v6 = vld [vmem:[%s9798_s8 + $0x1b4] sm:$0xf] }
 0x1c0   : > { %7492 = vst [vmem:[%s10018_s5 + $0x400] sm:$0xff] %v6980_v39  ;;  %v2671_v12 = vpop.f32.mrf.mxu3 }
 0x1c1   : > { %v2337_v55 = vpop.f32.mrf.mxu2 }
 0x1c2   : > { %v2338_v7 = vadd.f32 %v2337_v55, %v10003_v22  ;;  %v8183_v55 = vld [vmem:[%s9798_s8 + $0x1b8] sm:$0xf0] }
 0x1c3   : > { %v1682_v48 = vpop.f32.mrf.mxu0 }
 0x1c4   : > { %v2667_v2 = vadd.f32 %v2666_v61, %v2338_v7  ;;  %v1683_v7 = vadd.f32 %v1682_v48, %v9999_v19 }
 0x1c5   : > { %v2016_v10 = vpop.f32.mrf.mxu1  ;;  %8885 = vmatmul.msk.bf16.gmra.mxu3 %vm1370_vm1, %v10369_v51 }
 0x1c6   : > { %1721 = vmatmul.bf16.gmra.mxu0 %v10366_v28  ;;  %v6984_v15 = vpack.c.bf16 %v2667_v2, %v2009_v63  ;;  %2379 = vmatmul.bf16.gmra.mxu2 %v10366_v28  ;;  %v2012_v34 = vadd.f32 %v2011_v42, %v1683_v7  ;;  %v10389_v28 = vor.u32 %v9368_v6, %v8183_v55  ;;  %v8181_v6 = vld [vmem:[%s9798_s8 + $0x1b0] sm:$0xf]  ;;  %v9369_v55 = vld [vmem:[%s9798_s8 + $0x1b4] sm:$0xf0] }
 0x1c8   : > { %8821 = vmatmul.msk.bf16.gmra.mxu1 %vm1370_vm1, %v10369_v51  ;;  %7496 = vst [vmem:[%s10018_s5 + $0x420] sm:$0xff] %v6984_v15  ;;  %v2674_v61 = vpop.f32.mrf.mxu3  ;;  %v10386_v15 = vor.u32 %v9367_v36, %v8173_v29 }
 0x1c9   : > { %v2340_v8 = vpop.f32.mrf.mxu2  ;;  %14227 = vst [vmem:[#allocation24_spill] sm:$0xff] %v10389_v28 }
 0x1ca   : > { %v2341_v11 = vadd.f32 %v2340_v8, %v10003_v22  ;;  %14226 = vst [vmem:[#allocation23_spill] sm:$0xff] %v10386_v15 }
 0x1cb   : > { %v1684_v30 = vpop.f32.mrf.mxu0 }
 0x1cc   : > { %v2670_v39 = vadd.f32 %v2669_v41, %v2341_v11  ;;  %v1685_v63 = vadd.f32 %v1684_v30, %v9999_v19 }
 0x1cd   : > { %v2018_v21 = vpop.f32.mrf.mxu1 }
 0x1ce   : > { %v6988_v27 = vpack.c.bf16 %v2670_v39, %v2012_v34  ;;  %v2014_v42 = vadd.f32 %v2013_v35, %v1685_v63  ;;  %v9370_v63 = vld [vmem:[%s9798_s8 + $0x1c4] sm:$0xf] }
 0x1d0   : > { %7500 = vst [vmem:[%s10018_s5 + $0x440] sm:$0xff] %v6988_v27  ;;  %v2676_v48 = vpop.f32.mrf.mxu3 }
 0x1d1   : > { %v2342_v2 = vpop.f32.mrf.mxu2 }
 0x1d2   : > { %v2343_v51 = vadd.f32 %v2342_v2, %v10003_v22  ;;  %v8191_v2 = vld [vmem:[%s9798_s8 + $0x1c8] sm:$0xf0] }
 0x1d3   : > { %v1687_v8 = vpop.f32.mrf.mxu0 }
 0x1d4   : > { %v2672_v41 = vadd.f32 %v2671_v12, %v2343_v51  ;;  %v1688_v51 = vadd.f32 %v1687_v8, %v9999_v19 }
 0x1d5   : > { %v2021_v7 = vpop.f32.mrf.mxu1  ;;  %8886 = vmatmul.msk.bf16.gmra.mxu3 %vm1370_vm1, %v10389_v28 }
 0x1d6   : > { %1726 = vmatmul.bf16.gmra.mxu0 %v10386_v15  ;;  %v6992_v11 = vpack.c.bf16 %v2672_v41, %v2014_v42  ;;  %2384 = vmatmul.bf16.gmra.mxu2 %v10386_v15  ;;  %v2017_v39 = vadd.f32 %v2016_v10, %v1688_v51  ;;  %v10409_v15 = vor.u32 %v9370_v63, %v8191_v2  ;;  %v8189_v63 = vld [vmem:[%s9798_s8 + $0x1c0] sm:$0xf]  ;;  %v9371_v2 = vld [vmem:[%s9798_s8 + $0x1c4] sm:$0xf0] }
 0x1d8   : > { %8822 = vmatmul.msk.bf16.gmra.mxu1 %vm1370_vm1, %v10389_v28  ;;  %7504 = vst [vmem:[%s10018_s5 + $0x460] sm:$0xff] %v6992_v11  ;;  %v2679_v12 = vpop.f32.mrf.mxu3  ;;  %v10406_v11 = vor.u32 %v9369_v55, %v8181_v6 }
 0x1d9   : > { %v2345_v35 = vpop.f32.mrf.mxu2  ;;  %14229 = vst [vmem:[#allocation26_spill] sm:$0xff] %v10409_v15 }
 0x1da   : > { %v2346_v30 = vadd.f32 %v2345_v35, %v10003_v22  ;;  %14228 = vst [vmem:[#allocation25_spill] sm:$0xff] %v10406_v11 }
 0x1db   : > { %v1689_v34 = vpop.f32.mrf.mxu0 }
 0x1dc   : > { %v2675_v27 = vadd.f32 %v2674_v61, %v2346_v30  ;;  %v1690_v42 = vadd.f32 %v1689_v34, %v9999_v19 }
 0x1dd   : > { %v2023_v29 = vpop.f32.mrf.mxu1 }
 0x1de   : > { %v6996_v36 = vpack.c.bf16 %v2675_v27, %v2017_v39  ;;  %v2019_v10 = vadd.f32 %v2018_v21, %v1690_v42  ;;  %v9372_v42 = vld [vmem:[%s9798_s8 + $0x1d4] sm:$0xf] }
 0x1e0   : > { %7508 = vst [vmem:[%s10018_s5 + $0x480] sm:$0xff] %v6996_v36  ;;  %v2681_v8 = vpop.f32.mrf.mxu3 }
 0x1e1   : > { %v2347_v41 = vpop.f32.mrf.mxu2 }
 0x1e2   : > { %v2348_v28 = vadd.f32 %v2347_v41, %v10003_v22  ;;  %v8199_v41 = vld [vmem:[%s9798_s8 + $0x1d8] sm:$0xf0] }
 0x1e3   : > { %v1692_v35 = vpop.f32.mrf.mxu0 }
 0x1e4   : > { %v2677_v61 = vadd.f32 %v2676_v48, %v2348_v28  ;;  %v1693_v28 = vadd.f32 %v1692_v35, %v9999_v19 }
 0x1e5   : > { %v2026_v51 = vpop.f32.mrf.mxu1  ;;  %8887 = vmatmul.msk.bf16.gmra.mxu3 %vm1370_vm1, %v10409_v15 }
 0x1e6   : > { %1731 = vmatmul.bf16.gmra.mxu0 %v10406_v11  ;;  %v7000_v30 = vpack.c.bf16 %v2677_v61, %v2019_v10  ;;  %2389 = vmatmul.bf16.gmra.mxu2 %v10406_v11  ;;  %v2022_v27 = vadd.f32 %v2021_v7, %v1693_v28  ;;  %v10429_v11 = vor.u32 %v9372_v42, %v8199_v41  ;;  %v8197_v42 = vld [vmem:[%s9798_s8 + $0x1d0] sm:$0xf]  ;;  %v9373_v41 = vld [vmem:[%s9798_s8 + $0x1d4] sm:$0xf0] }
 0x1e8   : > { %8823 = vmatmul.msk.bf16.gmra.mxu1 %vm1370_vm1, %v10409_v15  ;;  %7512 = vst [vmem:[%s10018_s5 + $0x4a0] sm:$0xff] %v7000_v30  ;;  %v2684_v48 = vpop.f32.mrf.mxu3  ;;  %v10426_v30 = vor.u32 %v9371_v2, %v8189_v63 }
 0x1e9   : > { %v2350_v21 = vpop.f32.mrf.mxu2  ;;  %14231 = vst [vmem:[#allocation28_spill] sm:$0xff] %v10429_v11 }
 0x1ea   : > { %v2351_v34 = vadd.f32 %v2350_v21, %v10003_v22  ;;  %14230 = vst [vmem:[#allocation27_spill] sm:$0xff] %v10426_v30 }
 0x1eb   : > { %v1694_v39 = vpop.f32.mrf.mxu0 }
 0x1ec   : > { %v2680_v36 = vadd.f32 %v2679_v12, %v2351_v34  ;;  %v1695_v10 = vadd.f32 %v1694_v39, %v9999_v19 }
 0x1ed   : > { %v2028_v6 = vpop.f32.mrf.mxu1 }
 0x1ee   : > { %v7004_v55 = vpack.c.bf16 %v2680_v36, %v2022_v27  ;;  %v2024_v7 = vadd.f32 %v2023_v29, %v1695_v10  ;;  %v9374_v10 = vld [vmem:[%s9798_s8 + $0x1e4] sm:$0xf] }
 0x1f0   : > { %7516 = vst [vmem:[%s10018_s5 + $0x4c0] sm:$0xff] %v7004_v55  ;;  %v2686_v35 = vpop.f32.mrf.mxu3 }
 0x1f1   : > { %v2352_v61 = vpop.f32.mrf.mxu2 }
 0x1f2   : > { %v2353_v15 = vadd.f32 %v2352_v61, %v10003_v22  ;;  %v8207_v61 = vld [vmem:[%s9798_s8 + $0x1e8] sm:$0xf0] }
 0x1f3   : > { %v1697_v21 = vpop.f32.mrf.mxu0 }
 0x1f4   : > { %v2682_v12 = vadd.f32 %v2681_v8, %v2353_v15  ;;  %v1698_v15 = vadd.f32 %v1697_v21, %v9999_v19 }
 0x1f5   : > { %v2031_v28 = vpop.f32.mrf.mxu1  ;;  %8888 = vmatmul.msk.bf16.gmra.mxu3 %vm1370_vm1, %v10429_v11 }
 0x1f6   : > { %1736 = vmatmul.bf16.gmra.mxu0 %v10426_v30  ;;  %v7008_v34 = vpack.c.bf16 %v2682_v12, %v2024_v7  ;;  %2394 = vmatmul.bf16.gmra.mxu2 %v10426_v30  ;;  %v2027_v36 = vadd.f32 %v2026_v51, %v1698_v15  ;;  %v10449_v30 = vor.u32 %v9374_v10, %v8207_v61  ;;  %v8205_v10 = vld [vmem:[%s9798_s8 + $0x1e0] sm:$0xf]  ;;  %v9375_v61 = vld [vmem:[%s9798_s8 + $0x1e4] sm:$0xf0] }
 0x1f8   : > { %8824 = vmatmul.msk.bf16.gmra.mxu1 %vm1370_vm1, %v10429_v11  ;;  %7520 = vst [vmem:[%s10018_s5 + $0x4e0] sm:$0xff] %v7008_v34  ;;  %v2689_v8 = vpop.f32.mrf.mxu3  ;;  %v10446_v34 = vor.u32 %v9373_v41, %v8197_v42 }
 0x1f9   : > { %v2355_v29 = vpop.f32.mrf.mxu2  ;;  %14233 = vst [vmem:[#allocation30_spill] sm:$0xff] %v10449_v30 }
 0x1fa   : > { %v2356_v39 = vadd.f32 %v2355_v29, %v10003_v22  ;;  %14232 = vst [vmem:[#allocation29_spill] sm:$0xff] %v10446_v34 }
 0x1fb   : > { %v1699_v27 = vpop.f32.mrf.mxu0 }
 0x1fc   : > { %v2685_v55 = vadd.f32 %v2684_v48, %v2356_v39  ;;  %v1700_v7 = vadd.f32 %v1699_v27, %v9999_v19 }
 0x1fd   : > { %v2033_v63 = vpop.f32.mrf.mxu1 }
 0x1fe   : > { %v7012_v2 = vpack.c.bf16 %v2685_v55, %v2027_v36  ;;  %v2029_v51 = vadd.f32 %v2028_v6, %v1700_v7  ;;  %v9376_v7 = vld [vmem:[%s9798_s8 + $0x1f4] sm:$0xf] }
 0x200   : > { %7524 = vst [vmem:[%s10018_s5 + $0x500] sm:$0xff] %v7012_v2  ;;  %v2691_v21 = vpop.f32.mrf.mxu3 }
 0x201   : > { %v2357_v12 = vpop.f32.mrf.mxu2 }
 0x202   : > { %v2358_v11 = vadd.f32 %v2357_v12, %v10003_v22  ;;  %v8215_v12 = vld [vmem:[%s9798_s8 + $0x1f8] sm:$0xf0] }
 0x203   : > { %v1702_v29 = vpop.f32.mrf.mxu0 }
 0x204   : > { %v2687_v48 = vadd.f32 %v2686_v35, %v2358_v11  ;;  %v1703_v11 = vadd.f32 %v1702_v29, %v9999_v19 }
 0x205   : > { %v2036_v15 = vpop.f32.mrf.mxu1  ;;  %8889 = vmatmul.msk.bf16.gmra.mxu3 %vm1370_vm1, %v10449_v30 }
 0x206   : > { %1741 = vmatmul.bf16.gmra.mxu0 %v10446_v34  ;;  %v7016_v39 = vpack.c.bf16 %v2687_v48, %v2029_v51  ;;  %2399 = vmatmul.bf16.gmra.mxu2 %v10446_v34  ;;  %v2032_v55 = vadd.f32 %v2031_v28, %v1703_v11  ;;  %v10469_v34 = vor.u32 %v9376_v7, %v8215_v12 }
 0x208   : > { %8825 = vmatmul.msk.bf16.gmra.mxu1 %vm1370_vm1, %v10449_v30  ;;  %7528 = vst [vmem:[%s10018_s5 + $0x520] sm:$0xff] %v7016_v39  ;;  %v2694_v35 = vpop.f32.mrf.mxu3  ;;  %v10466_v39 = vor.u32 %v9375_v61, %v8205_v10  ;;  %v8743_v10 = vld [vmem:[%s13848_s1 + $0x228] sm:$0xf0] }
 0x209   : > { %v2360_v6 = vpop.f32.mrf.mxu2  ;;  %14235 = vst [vmem:[#allocation32_spill] sm:$0xff] %v10469_v34 }
 0x20a   : > { %v2361_v27 = vadd.f32 %v2360_v6, %v10003_v22  ;;  %14234 = vst [vmem:[#allocation31_spill] sm:$0xff] %v10466_v39 }
 0x20b   : > { %v1704_v36 = vpop.f32.mrf.mxu0 }
 0x20c   : > { %v2690_v2 = vadd.f32 %v2689_v8, %v2361_v27  ;;  %v1705_v51 = vadd.f32 %v1704_v36, %v9999_v19 }
 0x20d   : > { %v2038_v42 = vpop.f32.mrf.mxu1 }
 0x20e   : > { %v7020_v41 = vpack.c.bf16 %v2690_v2, %v2032_v55  ;;  %v2034_v28 = vadd.f32 %v2033_v63, %v1705_v51  ;;  %v8741_v63 = vld [vmem:[%s13848_s1 + $0x208] sm:$0xf] }
 0x210   : > { %7532 = vst [vmem:[%s10018_s5 + $0x540] sm:$0xff] %v7020_v41  ;;  %v2696_v29 = vpop.f32.mrf.mxu3  ;;  %v9507_v41 = vld [vmem:[%s13848_s1 + $0x20c] sm:$0xf] }
 0x211   : > { %v2362_v48 = vpop.f32.mrf.mxu2  ;;  %v8746_v12 = vor.u32 %v9507_v41, %v8743_v10  ;;  %v9467_v41 = vld [vmem:[%s13848_s1 + $0xcc] sm:$0xf] }
 0x212   : > { %v2363_v30 = vadd.f32 %v2362_v48, %v10003_v22  ;;  %v8583_v10 = vld [vmem:[%s13848_s1 + $0xe8] sm:$0xf0] }
 0x213   : > { %v1707_v6 = vpop.f32.mrf.mxu0  ;;  %3898 = vmatpush.bf16.msrb.mxu2 %v8746_v12 }
 0x214   : > { %v2692_v8 = vadd.f32 %v2691_v21, %v2363_v30  ;;  %v1708_v36 = vadd.f32 %v1707_v6, %v9999_v19  ;;  %v9511_v30 = vld [vmem:[%s13848_s1 + $0x224] sm:$0xf0] }
 0x215   : > { %v2041_v11 = vpop.f32.mrf.mxu1  ;;  %8890 = vmatmul.msk.bf16.gmra.mxu3 %vm1370_vm1, %v10469_v34  ;;  %v8742_v2 = vor.u32 %v9511_v30, %v8741_v63  ;;  %v9378_v63 = vld [vmem:[%s9798_s8 + $0x204] sm:$0xf]  ;;  %v8223_v30 = vld [vmem:[%s9798_s8 + $0x208] sm:$0xf0] }
 0x216   : > { %1746 = vmatmul.bf16.gmra.mxu0 %v10466_v39  ;;  %v7024_v27 = vpack.c.bf16 %v2692_v8, %v2034_v28  ;;  %2404 = vmatmul.bf16.gmra.mxu2 %v10466_v39  ;;  %v2037_v51 = vadd.f32 %v2036_v15, %v1708_v36  ;;  %v8213_v8 = vld [vmem:[%s9798_s8 + $0x1f0] sm:$0xf]  ;;  %v8581_v39 = vld [vmem:[%s13848_s1 + $0xc8] sm:$0xf]  ;;  %v10513_v12 = vor.u32 %v9378_v63, %v8223_v30 }
 0x217   : > { %3240 = vmatpush.bf16.msrb.mxu3 %v8742_v2 }
 0x218   : > { %8826 = vmatmul.msk.bf16.gmra.mxu1 %vm1370_vm1, %v10469_v34  ;;  %7536 = vst [vmem:[%s10018_s5 + $0x560] sm:$0xff] %v7024_v27  ;;  %v2699_v55 = vpop.f32.mrf.mxu3  ;;  %v9377_v27 = vld [vmem:[%s9798_s8 + $0x1f4] sm:$0xf0] }
 0x219   : > { %v2365_v21 = vpop.f32.mrf.mxu2  ;;  %14237 = vst [vmem:[#allocation34_spill] sm:$0xff] %v10513_v12 }
 0x21a   : > { %v2366_v61 = vadd.f32 %v2365_v21, %v10003_v22  ;;  %v9471_v21 = vld [vmem:[%s13848_s1 + $0xe4] sm:$0xf0] }
 0x21b   : > { %v1709_v7 = vpop.f32.mrf.mxu0  ;;  %v8582_v2 = vor.u32 %v9471_v21, %v8581_v39 }
 0x21c   : > { %v2695_v48 = vadd.f32 %v2694_v35, %v2366_v61  ;;  %v1710_v34 = vadd.f32 %v1709_v7, %v9999_v19  ;;  %v10504_v35 = vor.u32 %v9377_v27, %v8213_v8 }
 0x21d   : > { %v2043_v6 = vpop.f32.mrf.mxu1  ;;  %2908 = vmatpush.bf16.msrb.mxu1 %v8582_v2 }
 0x21e   : > { %v7028_v28 = vpack.c.bf16 %v2695_v48, %v2037_v51  ;;  %14236 = vst [vmem:[#allocation33_spill] sm:$0xff] %v10504_v35  ;;  %v8586_v51 = vor.u32 %v9467_v41, %v8583_v10  ;;  %v2039_v48 = vadd.f32 %v2038_v42, %v1710_v34  ;;  %v8221_v41 = vld [vmem:[%s9798_s8 + $0x200] sm:$0xf]  ;;  %v9379_v10 = vld [vmem:[%s9798_s8 + $0x204] sm:$0xf0] }
 0x220   : > { %7540 = vst [vmem:[%s10018_s5 + $0x580] sm:$0xff] %v7028_v28  ;;  %v2701_v36 = vpop.f32.mrf.mxu3  ;;  %3566 = vmatpush.bf16.msrb.mxu0 %v8586_v51  ;;  %v8231_v51 = vld [vmem:[%s9798_s8 + $0x218] sm:$0xf0] }
 0x221   : > { %v2367_v15 = vpop.f32.mrf.mxu2 }
 0x222   : > { %v2368_v61 = vadd.f32 %v2367_v15, %v10003_v22 }
 0x223   : > { %v1712_v7 = vpop.f32.mrf.mxu0 }
 0x224   : > { %v2697_v28 = vadd.f32 %v2696_v29, %v2368_v61  ;;  %v1713_v34 = vadd.f32 %v1712_v7, %v9999_v19  ;;  %v9380_v61 = vld [vmem:[%s9798_s8 + $0x214] sm:$0xf] }
 0x225   : > { %v2046_v8 = vpop.f32.mrf.mxu1  ;;  %8891 = vmatmul.msk.bf16.gmra.mxu3 %vm1370_vm1, %v10513_v12 }
 0x226   : > { %1751 = vmatmul.bf16.gmra.mxu0 %v10504_v35  ;;  %v7032_v39 = vpack.c.bf16 %v2697_v28, %v2039_v48  ;;  %2409 = vmatmul.bf16.gmra.mxu2 %v10504_v35  ;;  %v2042_v30 = vadd.f32 %v2041_v11, %v1713_v34  ;;  %v10533_v35 = vor.u32 %v9380_v61, %v8231_v51  ;;  %v8229_v61 = vld [vmem:[%s9798_s8 + $0x210] sm:$0xf]  ;;  %v9381_v51 = vld [vmem:[%s9798_s8 + $0x214] sm:$0xf0] }
 0x228   : > { %8827 = vmatmul.msk.bf16.gmra.mxu1 %vm1370_vm1, %v10513_v12  ;;  %7544 = vst [vmem:[%s10018_s5 + $0x5a0] sm:$0xff] %v7032_v39  ;;  %v2704_v29 = vpop.f32.mrf.mxu3  ;;  %v10530_v39 = vor.u32 %v9379_v10, %v8221_v41 }
 0x229   : > { %v2370_v42 = vpop.f32.mrf.mxu2  ;;  %14239 = vst [vmem:[#allocation36_spill] sm:$0xff] %v10533_v35 }
 0x22a   : > { %v2371_v27 = vadd.f32 %v2370_v42, %v10003_v22  ;;  %14238 = vst [vmem:[#allocation35_spill] sm:$0xff] %v10530_v39 }
 0x22b   : > { %v1714_v63 = vpop.f32.mrf.mxu0 }
 0x22c   : > { %v2700_v21 = vadd.f32 %v2699_v55, %v2371_v27  ;;  %v1715_v48 = vadd.f32 %v1714_v63, %v9999_v19 }
 0x22d   : > { %v2048_v15 = vpop.f32.mrf.mxu1 }
 0x22e   : > { %v7036_v2 = vpack.c.bf16 %v2700_v21, %v2042_v30  ;;  %v2044_v11 = vadd.f32 %v2043_v6, %v1715_v48  ;;  %v9382_v48 = vld [vmem:[%s9798_s8 + $0x224] sm:$0xf] }
 0x230   : > { %7548 = vst [vmem:[%s10018_s5 + $0x5c0] sm:$0xff] %v7036_v2  ;;  %v2706_v7 = vpop.f32.mrf.mxu3 }
 0x231   : > { %v2372_v28 = vpop.f32.mrf.mxu2 }
 0x232   : > { %v2373_v12 = vadd.f32 %v2372_v28, %v10003_v22  ;;  %v8239_v28 = vld [vmem:[%s9798_s8 + $0x228] sm:$0xf0] }
 0x233   : > { %v1717_v42 = vpop.f32.mrf.mxu0 }
 0x234   : > { %v2702_v55 = vadd.f32 %v2701_v36, %v2373_v12  ;;  %v1718_v6 = vadd.f32 %v1717_v42, %v9999_v19 }
 0x235   : > { %v2051_v34 = vpop.f32.mrf.mxu1  ;;  %8892 = vmatmul.msk.bf16.gmra.mxu3 %vm1370_vm1, %v10533_v35 }
 0x236   : > { %1756 = vmatmul.bf16.gmra.mxu0 %v10530_v39  ;;  %v7040_v27 = vpack.c.bf16 %v2702_v55, %v2044_v11  ;;  %2414 = vmatmul.bf16.gmra.mxu2 %v10530_v39  ;;  %v2047_v21 = vadd.f32 %v2046_v8, %v1718_v6  ;;  %v10553_v39 = vor.u32 %v9382_v48, %v8239_v28  ;;  %v8237_v48 = vld [vmem:[%s9798_s8 + $0x220] sm:$0xf]  ;;  %v9383_v28 = vld [vmem:[%s9798_s8 + $0x224] sm:$0xf0] }
 0x238   : > { %8828 = vmatmul.msk.bf16.gmra.mxu1 %vm1370_vm1, %v10533_v35  ;;  %7552 = vst [vmem:[%s10018_s5 + $0x5e0] sm:$0xff] %v7040_v27  ;;  %v2709_v12 = vpop.f32.mrf.mxu3  ;;  %v10550_v27 = vor.u32 %v9381_v51, %v8229_v61 }
 0x239   : > { %v2375_v36 = vpop.f32.mrf.mxu2  ;;  %14241 = vst [vmem:[#allocation38_spill] sm:$0xff] %v10553_v39 }
 0x23a   : > { %v2376_v63 = vadd.f32 %v2375_v36, %v10003_v22  ;;  %14240 = vst [vmem:[#allocation37_spill] sm:$0xff] %v10550_v27 }
 0x23b   : > { %v1719_v30 = vpop.f32.mrf.mxu0 }
 0x23c   : > { %v2705_v2 = vadd.f32 %v2704_v29, %v2376_v63  ;;  %v1720_v11 = vadd.f32 %v1719_v30, %v9999_v19 }
 0x23d   : > { %v2053_v41 = vpop.f32.mrf.mxu1 }
 0x23e   : > { %v7044_v10 = vpack.c.bf16 %v2705_v2, %v2047_v21  ;;  %v2049_v8 = vadd.f32 %v2048_v15, %v1720_v11  ;;  %v9384_v11 = vld [vmem:[%s9798_s8 + $0x234] sm:$0xf] }
 0x240   : > { %7556 = vst [vmem:[%s10018_s5 + $0x600] sm:$0xff] %v7044_v10  ;;  %v2711_v42 = vpop.f32.mrf.mxu3 }
 0x241   : > { %v2377_v55 = vpop.f32.mrf.mxu2 }
 0x242   : > { %v2378_v35 = vadd.f32 %v2377_v55, %v10003_v22  ;;  %v8247_v55 = vld [vmem:[%s9798_s8 + $0x238] sm:$0xf0] }
 0x243   : > { %v1722_v36 = vpop.f32.mrf.mxu0 }
 0x244   : > { %v2707_v29 = vadd.f32 %v2706_v7, %v2378_v35  ;;  %v1723_v35 = vadd.f32 %v1722_v36, %v9999_v19 }
 0x245   : > { %v2056_v6 = vpop.f32.mrf.mxu1  ;;  %8893 = vmatmul.msk.bf16.gmra.mxu3 %vm1370_vm1, %v10553_v39 }
 0x246   : > { %1761 = vmatmul.bf16.gmra.mxu0 %v10550_v27  ;;  %v7048_v63 = vpack.c.bf16 %v2707_v29, %v2049_v8  ;;  %2419 = vmatmul.bf16.gmra.mxu2 %v10550_v27  ;;  %v2052_v2 = vadd.f32 %v2051_v34, %v1723_v35  ;;  %v10573_v27 = vor.u32 %v9384_v11, %v8247_v55  ;;  %v8245_v11 = vld [vmem:[%s9798_s8 + $0x230] sm:$0xf]  ;;  %v9385_v55 = vld [vmem:[%s9798_s8 + $0x234] sm:$0xf0] }
 0x248   : > { %8829 = vmatmul.msk.bf16.gmra.mxu1 %vm1370_vm1, %v10553_v39  ;;  %7560 = vst [vmem:[%s10018_s5 + $0x620] sm:$0xff] %v7048_v63  ;;  %v2714_v7 = vpop.f32.mrf.mxu3  ;;  %v10570_v63 = vor.u32 %v9383_v28, %v8237_v48 }
 0x249   : > { %v2380_v15 = vpop.f32.mrf.mxu2  ;;  %14243 = vst [vmem:[#allocation40_spill] sm:$0xff] %v10573_v27 }
 0x24a   : > { %v2381_v30 = vadd.f32 %v2380_v15, %v10003_v22  ;;  %14242 = vst [vmem:[#allocation39_spill] sm:$0xff] %v10570_v63 }
 0x24b   : > { %v1724_v21 = vpop.f32.mrf.mxu0 }
 0x24c   : > { %v2710_v10 = vadd.f32 %v2709_v12, %v2381_v30  ;;  %v1725_v8 = vadd.f32 %v1724_v21, %v9999_v19 }
 0x24d   : > { %v2058_v61 = vpop.f32.mrf.mxu1 }
 0x24e   : > { %v7052_v51 = vpack.c.bf16 %v2710_v10, %v2052_v2  ;;  %v2054_v34 = vadd.f32 %v2053_v41, %v1725_v8  ;;  %v9386_v8 = vld [vmem:[%s9798_s8 + $0x244] sm:$0xf] }
 0x250   : > { %7564 = vst [vmem:[%s10018_s5 + $0x640] sm:$0xff] %v7052_v51  ;;  %v2716_v36 = vpop.f32.mrf.mxu3 }
 0x251   : > { %v2382_v29 = vpop.f32.mrf.mxu2 }
 0x252   : > { %v2383_v39 = vadd.f32 %v2382_v29, %v10003_v22  ;;  %v8255_v29 = vld [vmem:[%s9798_s8 + $0x248] sm:$0xf0] }
 0x253   : > { %v1727_v15 = vpop.f32.mrf.mxu0 }
 0x254   : > { %v2712_v12 = vadd.f32 %v2711_v42, %v2383_v39  ;;  %v1728_v39 = vadd.f32 %v1727_v15, %v9999_v19 }
 0x255   : > { %v2061_v35 = vpop.f32.mrf.mxu1  ;;  %8894 = vmatmul.msk.bf16.gmra.mxu3 %vm1370_vm1, %v10573_v27 }
 0x256   : > { %1766 = vmatmul.bf16.gmra.mxu0 %v10570_v63  ;;  %v7056_v30 = vpack.c.bf16 %v2712_v12, %v2054_v34  ;;  %2424 = vmatmul.bf16.gmra.mxu2 %v10570_v63  ;;  %v2057_v10 = vadd.f32 %v2056_v6, %v1728_v39  ;;  %v10593_v63 = vor.u32 %v9386_v8, %v8255_v29  ;;  %v8253_v8 = vld [vmem:[%s9798_s8 + $0x240] sm:$0xf]  ;;  %v9387_v29 = vld [vmem:[%s9798_s8 + $0x244] sm:$0xf0] }
 0x258   : > { %8830 = vmatmul.msk.bf16.gmra.mxu1 %vm1370_vm1, %v10573_v27  ;;  %7568 = vst [vmem:[%s10018_s5 + $0x660] sm:$0xff] %v7056_v30  ;;  %v2719_v42 = vpop.f32.mrf.mxu3  ;;  %v10590_v30 = vor.u32 %v9385_v55, %v8245_v11 }
 0x259   : > { %v2385_v41 = vpop.f32.mrf.mxu2  ;;  %14245 = vst [vmem:[#allocation42_spill] sm:$0xff] %v10593_v63 }
 0x25a   : > { %v2386_v21 = vadd.f32 %v2385_v41, %v10003_v22  ;;  %14244 = vst [vmem:[#allocation41_spill] sm:$0xff] %v10590_v30 }
 0x25b   : > { %v1729_v2 = vpop.f32.mrf.mxu0 }
 0x25c   : > { %v2715_v51 = vadd.f32 %v2714_v7, %v2386_v21  ;;  %v1730_v34 = vadd.f32 %v1729_v2, %v9999_v19 }
 0x25d   : > { %v2063_v48 = vpop.f32.mrf.mxu1 }
 0x25e   : > { %v7060_v28 = vpack.c.bf16 %v2715_v51, %v2057_v10  ;;  %v2059_v6 = vadd.f32 %v2058_v61, %v1730_v34  ;;  %v9388_v34 = vld [vmem:[%s9798_s8 + $0x254] sm:$0xf] }
 0x260   : > { %7572 = vst [vmem:[%s10018_s5 + $0x680] sm:$0xff] %v7060_v28  ;;  %v2721_v15 = vpop.f32.mrf.mxu3 }
 0x261   : > { %v2387_v12 = vpop.f32.mrf.mxu2 }
 0x262   : > { %v2388_v27 = vadd.f32 %v2387_v12, %v10003_v22  ;;  %v8263_v12 = vld [vmem:[%s9798_s8 + $0x258] sm:$0xf0] }
 0x263   : > { %v1732_v41 = vpop.f32.mrf.mxu0 }
 0x264   : > { %v2717_v7 = vadd.f32 %v2716_v36, %v2388_v27  ;;  %v1733_v27 = vadd.f32 %v1732_v41, %v9999_v19 }
 0x265   : > { %v2066_v39 = vpop.f32.mrf.mxu1  ;;  %8895 = vmatmul.msk.bf16.gmra.mxu3 %vm1370_vm1, %v10593_v63 }
 0x266   : > { %1771 = vmatmul.bf16.gmra.mxu0 %v10590_v30  ;;  %v7064_v21 = vpack.c.bf16 %v2717_v7, %v2059_v6  ;;  %2429 = vmatmul.bf16.gmra.mxu2 %v10590_v30  ;;  %v2062_v51 = vadd.f32 %v2061_v35, %v1733_v27  ;;  %v10613_v30 = vor.u32 %v9388_v34, %v8263_v12  ;;  %v8261_v34 = vld [vmem:[%s9798_s8 + $0x250] sm:$0xf]  ;;  %v9389_v12 = vld [vmem:[%s9798_s8 + $0x254] sm:$0xf0] }
 0x268   : > { %8831 = vmatmul.msk.bf16.gmra.mxu1 %vm1370_vm1, %v10593_v63  ;;  %7576 = vst [vmem:[%s10018_s5 + $0x6a0] sm:$0xff] %v7064_v21  ;;  %v2724_v36 = vpop.f32.mrf.mxu3  ;;  %v10610_v21 = vor.u32 %v9387_v29, %v8253_v8 }
 0x269   : > { %v2390_v61 = vpop.f32.mrf.mxu2  ;;  %14247 = vst [vmem:[#allocation44_spill] sm:$0xff] %v10613_v30 }
 0x26a   : > { %v2391_v2 = vadd.f32 %v2390_v61, %v10003_v22  ;;  %14246 = vst [vmem:[#allocation43_spill] sm:$0xff] %v10610_v21 }
 0x26b   : > { %v1734_v10 = vpop.f32.mrf.mxu0 }
 0x26c   : > { %v2720_v28 = vadd.f32 %v2719_v42, %v2391_v2  ;;  %v1735_v6 = vadd.f32 %v1734_v10, %v9999_v19 }
 0x26d   : > { %v2068_v11 = vpop.f32.mrf.mxu1 }
 0x26e   : > { %v7068_v55 = vpack.c.bf16 %v2720_v28, %v2062_v51  ;;  %v2064_v35 = vadd.f32 %v2063_v48, %v1735_v6  ;;  %v9390_v6 = vld [vmem:[%s9798_s8 + $0x264] sm:$0xf] }
 0x270   : > { %7580 = vst [vmem:[%s10018_s5 + $0x6c0] sm:$0xff] %v7068_v55  ;;  %v2726_v41 = vpop.f32.mrf.mxu3 }
 0x271   : > { %v2392_v7 = vpop.f32.mrf.mxu2 }
 0x272   : > { %v2393_v63 = vadd.f32 %v2392_v7, %v10003_v22  ;;  %v8271_v7 = vld [vmem:[%s9798_s8 + $0x268] sm:$0xf0] }
 0x273   : > { %v1737_v61 = vpop.f32.mrf.mxu0 }
 0x274   : > { %v2722_v42 = vadd.f32 %v2721_v15, %v2393_v63  ;;  %v1738_v63 = vadd.f32 %v1737_v61, %v9999_v19 }
 0x275   : > { %v2071_v27 = vpop.f32.mrf.mxu1  ;;  %8896 = vmatmul.msk.bf16.gmra.mxu3 %vm1370_vm1, %v10613_v30 }
 0x276   : > { %1776 = vmatmul.bf16.gmra.mxu0 %v10610_v21  ;;  %v7072_v2 = vpack.c.bf16 %v2722_v42, %v2064_v35  ;;  %2434 = vmatmul.bf16.gmra.mxu2 %v10610_v21  ;;  %v2067_v28 = vadd.f32 %v2066_v39, %v1738_v63  ;;  %v10633_v21 = vor.u32 %v9390_v6, %v8271_v7  ;;  %v8269_v6 = vld [vmem:[%s9798_s8 + $0x260] sm:$0xf]  ;;  %v9391_v7 = vld [vmem:[%s9798_s8 + $0x264] sm:$0xf0] }
 0x278   : > { %8832 = vmatmul.msk.bf16.gmra.mxu1 %vm1370_vm1, %v10613_v30  ;;  %7584 = vst [vmem:[%s10018_s5 + $0x6e0] sm:$0xff] %v7072_v2  ;;  %v2729_v15 = vpop.f32.mrf.mxu3  ;;  %v10630_v2 = vor.u32 %v9389_v12, %v8261_v34 }
 0x279   : > { %v2395_v48 = vpop.f32.mrf.mxu2  ;;  %14249 = vst [vmem:[#allocation46_spill] sm:$0xff] %v10633_v21 }
 0x27a   : > { %v2396_v10 = vadd.f32 %v2395_v48, %v10003_v22  ;;  %14248 = vst [vmem:[#allocation45_spill] sm:$0xff] %v10630_v2 }
 0x27b   : > { %v1739_v51 = vpop.f32.mrf.mxu0 }
 0x27c   : > { %v2725_v55 = vadd.f32 %v2724_v36, %v2396_v10  ;;  %v1740_v35 = vadd.f32 %v1739_v51, %v9999_v19 }
 0x27d   : > { %v2073_v8 = vpop.f32.mrf.mxu1 }
 0x27e   : > { %v7076_v29 = vpack.c.bf16 %v2725_v55, %v2067_v28  ;;  %v2069_v39 = vadd.f32 %v2068_v11, %v1740_v35  ;;  %v9392_v35 = vld [vmem:[%s9798_s8 + $0x274] sm:$0xf] }
 0x280   : > { %7588 = vst [vmem:[%s10018_s5 + $0x700] sm:$0xff] %v7076_v29  ;;  %v2731_v61 = vpop.f32.mrf.mxu3 }
 0x281   : > { %v2397_v42 = vpop.f32.mrf.mxu2 }
 0x282   : > { %v2398_v30 = vadd.f32 %v2397_v42, %v10003_v22  ;;  %v8279_v42 = vld [vmem:[%s9798_s8 + $0x278] sm:$0xf0] }
 0x283   : > { %v1742_v48 = vpop.f32.mrf.mxu0 }
 0x284   : > { %v2727_v36 = vadd.f32 %v2726_v41, %v2398_v30  ;;  %v1743_v30 = vadd.f32 %v1742_v48, %v9999_v19 }
 0x285   : > { %v2076_v63 = vpop.f32.mrf.mxu1  ;;  %8897 = vmatmul.msk.bf16.gmra.mxu3 %vm1370_vm1, %v10633_v21 }
 0x286   : > { %1781 = vmatmul.bf16.gmra.mxu0 %v10630_v2  ;;  %v7080_v10 = vpack.c.bf16 %v2727_v36, %v2069_v39  ;;  %2439 = vmatmul.bf16.gmra.mxu2 %v10630_v2  ;;  %v2072_v55 = vadd.f32 %v2071_v27, %v1743_v30  ;;  %v10653_v2 = vor.u32 %v9392_v35, %v8279_v42  ;;  %v8277_v35 = vld [vmem:[%s9798_s8 + $0x270] sm:$0xf]  ;;  %v9393_v42 = vld [vmem:[%s9798_s8 + $0x274] sm:$0xf0] }
 0x288   : > { %8833 = vmatmul.msk.bf16.gmra.mxu1 %vm1370_vm1, %v10633_v21  ;;  %7592 = vst [vmem:[%s10018_s5 + $0x720] sm:$0xff] %v7080_v10  ;;  %v2734_v41 = vpop.f32.mrf.mxu3  ;;  %v10650_v10 = vor.u32 %v9391_v7, %v8269_v6 }
 0x289   : > { %v2400_v11 = vpop.f32.mrf.mxu2  ;;  %14251 = vst [vmem:[#allocation48_spill] sm:$0xff] %v10653_v2 }
 0x28a   : > { %v2401_v51 = vadd.f32 %v2400_v11, %v10003_v22  ;;  %14250 = vst [vmem:[#allocation47_spill] sm:$0xff] %v10650_v10 }
 0x28b   : > { %v1744_v28 = vpop.f32.mrf.mxu0 }
 0x28c   : > { %v2730_v29 = vadd.f32 %v2729_v15, %v2401_v51  ;;  %v1745_v39 = vadd.f32 %v1744_v28, %v9999_v19 }
 0x28d   : > { %v2078_v34 = vpop.f32.mrf.mxu1 }
 0x28e   : > { %v7084_v12 = vpack.c.bf16 %v2730_v29, %v2072_v55  ;;  %v2074_v27 = vadd.f32 %v2073_v8, %v1745_v39  ;;  %v9394_v39 = vld [vmem:[%s9798_s8 + $0x284] sm:$0xf] }
 0x290   : > { %7596 = vst [vmem:[%s10018_s5 + $0x740] sm:$0xff] %v7084_v12  ;;  %v2736_v48 = vpop.f32.mrf.mxu3 }
 0x291   : > { %v2402_v36 = vpop.f32.mrf.mxu2 }
 0x292   : > { %v2403_v21 = vadd.f32 %v2402_v36, %v10003_v22  ;;  %v8287_v36 = vld [vmem:[%s9798_s8 + $0x288] sm:$0xf0] }
 0x293   : > { %v1747_v11 = vpop.f32.mrf.mxu0 }
 0x294   : > { %v2732_v15 = vadd.f32 %v2731_v61, %v2403_v21  ;;  %v1748_v21 = vadd.f32 %v1747_v11, %v9999_v19  ;;  %v8549_v11 = vld [vmem:[%s13848_s1 + $0x88] sm:$0xf] }
 0x295   : > { %v2081_v30 = vpop.f32.mrf.mxu1  ;;  %8898 = vmatmul.msk.bf16.gmra.mxu3 %vm1370_vm1, %v10653_v2 }
 0x296   : > { %1786 = vmatmul.bf16.gmra.mxu0 %v10650_v10  ;;  %v7088_v51 = vpack.c.bf16 %v2732_v15, %v2074_v27  ;;  %2444 = vmatmul.bf16.gmra.mxu2 %v10650_v10  ;;  %v2077_v29 = vadd.f32 %v2076_v63, %v1748_v21  ;;  %v9463_v15 = vld [vmem:[%s13848_s1 + $0xa4] sm:$0xf0]  ;;  %v10676_v63 = vor.u32 %v9393_v42, %v8277_v35 }
 0x297   : > { %v8550_v21 = vor.u32 %v9463_v15, %v8549_v11 }
 0x298   : > { %8834 = vmatmul.msk.bf16.gmra.mxu1 %vm1370_vm1, %v10653_v2  ;;  %7600 = vst [vmem:[%s10018_s5 + $0x760] sm:$0xff] %v7088_v51  ;;  %v2739_v61 = vpop.f32.mrf.mxu3 }
 0x299   : > { %v2405_v8 = vpop.f32.mrf.mxu2  ;;  %14252 = vst [vmem:[#allocation49_spill] sm:$0xff] %v10676_v63  ;;  %2909 = vmatpush.bf16.msrb.mxu1 %v8550_v21 }
 0x29a   : > { %v2406_v28 = vadd.f32 %v2405_v8, %v10003_v22  ;;  %v9459_v8 = vld [vmem:[%s13848_s1 + $0x8c] sm:$0xf] }
 0x29b   : > { %v1749_v55 = vpop.f32.mrf.mxu0 }
 0x29c   : > { %v2735_v12 = vadd.f32 %v2734_v41, %v2406_v28  ;;  %v1750_v27 = vadd.f32 %v1749_v55, %v9999_v19  ;;  %v8551_v28 = vld [vmem:[%s13848_s1 + $0xa8] sm:$0xf0] }
 0x29d   : > { %v2083_v6 = vpop.f32.mrf.mxu1 }
 0x29e   : > { %v7092_v7 = vpack.c.bf16 %v2735_v12, %v2077_v29  ;;  %v10685_v12 = vor.u32 %v9394_v39, %v8287_v36  ;;  %v2079_v35 = vadd.f32 %v2078_v34, %v1750_v27 }
 0x2a0   : > { %7604 = vst [vmem:[%s10018_s5 + $0x780] sm:$0xff] %v7092_v7  ;;  %v2741_v41 = vpop.f32.mrf.mxu3  ;;  %v8554_v7 = vor.u32 %v9459_v8, %v8551_v28  ;;  %v8285_v28 = vld [vmem:[%s9798_s8 + $0x280] sm:$0xf] }
 0x2a1   : > { %v2407_v51 = vpop.f32.mrf.mxu2  ;;  %14253 = vst [vmem:[#allocation50_spill] sm:$0xff] %v10685_v12 }
 0x2a2   : > { %v2408_v55 = vadd.f32 %v2407_v51, %v10003_v22  ;;  %3567 = vmatpush.bf16.msrb.mxu0 %v8554_v7  ;;  %v9396_v7 = vld [vmem:[%s9798_s8 + $0x294] sm:$0xf] }
 0x2a3   : > { %v1752_v29 = vpop.f32.mrf.mxu0 }
 0x2a4   : > { %v2737_v42 = vadd.f32 %v2736_v48, %v2408_v55  ;;  %v1753_v34 = vadd.f32 %v1752_v29, %v9999_v19  ;;  %v9395_v55 = vld [vmem:[%s9798_s8 + $0x284] sm:$0xf0] }
 0x2a5   : > { %v2086_v2 = vpop.f32.mrf.mxu1  ;;  %8899 = vmatmul.msk.bf16.gmra.mxu3 %vm1370_vm1, %v10685_v12 }
 0x2a6   : > { %1791 = vmatmul.bf16.gmra.mxu0 %v10676_v63  ;;  %v7096_v11 = vpack.c.bf16 %v2737_v42, %v2079_v35  ;;  %2449 = vmatmul.bf16.gmra.mxu2 %v10676_v63  ;;  %v2082_v15 = vadd.f32 %v2081_v30, %v1753_v34  ;;  %v8295_v35 = vld [vmem:[%s9798_s8 + $0x298] sm:$0xf0] }
 0x2a7   : > { %v10705_v10 = vor.u32 %v9396_v7, %v8295_v35  ;;  %v8293_v7 = vld [vmem:[%s9798_s8 + $0x290] sm:$0xf]  ;;  %v9397_v35 = vld [vmem:[%s9798_s8 + $0x294] sm:$0xf0] }
 0x2a8   : > { %8835 = vmatmul.msk.bf16.gmra.mxu1 %vm1370_vm1, %v10685_v12  ;;  %7608 = vst [vmem:[%s10018_s5 + $0x7a0] sm:$0xff] %v7096_v11  ;;  %v2744_v39 = vpop.f32.mrf.mxu3  ;;  %v10702_v12 = vor.u32 %v9395_v55, %v8285_v28 }
 0x2a9   : > { %v2410_v48 = vpop.f32.mrf.mxu2  ;;  %14255 = vst [vmem:[#allocation52_spill] sm:$0xff] %v10705_v10 }
 0x2aa   : > { %v2411_v36 = vadd.f32 %v2410_v48, %v10003_v22  ;;  %14254 = vst [vmem:[#allocation51_spill] sm:$0xff] %v10702_v12 }
 0x2ab   : > { %v1754_v27 = vpop.f32.mrf.mxu0 }
 0x2ac   : > { %v2740_v51 = vadd.f32 %v2739_v61, %v2411_v36  ;;  %v1755_v42 = vadd.f32 %v1754_v27, %v9999_v19 }
 0x2ad   : > { %v2088_v21 = vpop.f32.mrf.mxu1 }
 0x2ae   : > { %v7100_v8 = vpack.c.bf16 %v2740_v51, %v2082_v15  ;;  %v2084_v30 = vadd.f32 %v2083_v6, %v1755_v42  ;;  %v9398_v42 = vld [vmem:[%s9798_s8 + $0x2a4] sm:$0xf] }
 0x2b0   : > { %7612 = vst [vmem:[%s10018_s5 + $0x7c0] sm:$0xff] %v7100_v8  ;;  %v2746_v29 = vpop.f32.mrf.mxu3 }
 0x2b1   : > { %v2412_v11 = vpop.f32.mrf.mxu2 }
 0x2b2   : > { %v2413_v63 = vadd.f32 %v2412_v11, %v10003_v22  ;;  %v8303_v11 = vld [vmem:[%s9798_s8 + $0x2a8] sm:$0xf0] }
 0x2b3   : > { %v1757_v48 = vpop.f32.mrf.mxu0 }
 0x2b4   : > { %v2742_v61 = vadd.f32 %v2741_v41, %v2413_v63  ;;  %v1758_v6 = vadd.f32 %v1757_v48, %v9999_v19 }
 0x2b5   : > { %v2091_v34 = vpop.f32.mrf.mxu1  ;;  %8900 = vmatmul.msk.bf16.gmra.mxu3 %vm1370_vm1, %v10705_v10 }
 0x2b6   : > { %1796 = vmatmul.bf16.gmra.mxu0 %v10702_v12  ;;  %v7104_v36 = vpack.c.bf16 %v2742_v61, %v2084_v30  ;;  %2454 = vmatmul.bf16.gmra.mxu2 %v10702_v12  ;;  %v2087_v51 = vadd.f32 %v2086_v2, %v1758_v6  ;;  %v10725_v12 = vor.u32 %v9398_v42, %v8303_v11  ;;  %v8301_v42 = vld [vmem:[%s9798_s8 + $0x2a0] sm:$0xf]  ;;  %v9399_v11 = vld [vmem:[%s9798_s8 + $0x2a4] sm:$0xf0] }
 0x2b8   : > { %8836 = vmatmul.msk.bf16.gmra.mxu1 %vm1370_vm1, %v10705_v10  ;;  %7616 = vst [vmem:[%s10018_s5 + $0x7e0] sm:$0xff] %v7104_v36  ;;  %v2749_v41 = vpop.f32.mrf.mxu3  ;;  %v10722_v36 = vor.u32 %v9397_v35, %v8293_v7 }
 0x2b9   : > { %v2415_v63 = vpop.f32.mrf.mxu2  ;;  %14257 = vst [vmem:[#allocation54_spill] sm:$0xff] %v10725_v12 }
 0x2ba   : > { %v2416_v27 = vadd.f32 %v2415_v63, %v10003_v22  ;;  %14256 = vst [vmem:[#allocation53_spill] sm:$0xff] %v10722_v36 }
 0x2bb   : > { %v1759_v15 = vpop.f32.mrf.mxu0 }
 0x2bc   : > { %v2745_v8 = vadd.f32 %v2744_v39, %v2416_v27  ;;  %v1760_v30 = vadd.f32 %v1759_v15, %v9999_v19 }
 0x2bd   : > { %v2093_v28 = vpop.f32.mrf.mxu1 }
 0x2be   : > { %v7108_v55 = vpack.c.bf16 %v2745_v8, %v2087_v51  ;;  %v2089_v2 = vadd.f32 %v2088_v21, %v1760_v30  ;;  %v9400_v30 = vld [vmem:[%s9798_s8 + $0x2b4] sm:$0xf] }
 0x2c0   : > { %7620 = vst [vmem:[%s10018_s5 + $0x800] sm:$0xff] %v7108_v55  ;;  %v2751_v48 = vpop.f32.mrf.mxu3 }
 0x2c1   : > { %v2417_v61 = vpop.f32.mrf.mxu2 }
 0x2c2   : > { %v2418_v10 = vadd.f32 %v2417_v61, %v10003_v22  ;;  %v8311_v61 = vld [vmem:[%s9798_s8 + $0x2b8] sm:$0xf0] }
 0x2c3   : > { %v1762_v63 = vpop.f32.mrf.mxu0 }
 0x2c4   : > { %v2747_v39 = vadd.f32 %v2746_v29, %v2418_v10  ;;  %v1763_v10 = vadd.f32 %v1762_v63, %v9999_v19 }
 0x2c5   : > { %v2096_v6 = vpop.f32.mrf.mxu1  ;;  %8901 = vmatmul.msk.bf16.gmra.mxu3 %vm1370_vm1, %v10725_v12 }
 0x2c6   : > { %1801 = vmatmul.bf16.gmra.mxu0 %v10722_v36  ;;  %v7112_v27 = vpack.c.bf16 %v2747_v39, %v2089_v2  ;;  %2459 = vmatmul.bf16.gmra.mxu2 %v10722_v36  ;;  %v2092_v8 = vadd.f32 %v2091_v34, %v1763_v10  ;;  %v10745_v36 = vor.u32 %v9400_v30, %v8311_v61  ;;  %v8309_v30 = vld [vmem:[%s9798_s8 + $0x2b0] sm:$0xf]  ;;  %v9401_v61 = vld [vmem:[%s9798_s8 + $0x2b4] sm:$0xf0] }
 0x2c8   : > { %8837 = vmatmul.msk.bf16.gmra.mxu1 %vm1370_vm1, %v10725_v12  ;;  %7624 = vst [vmem:[%s10018_s5 + $0x820] sm:$0xff] %v7112_v27  ;;  %v2754_v29 = vpop.f32.mrf.mxu3  ;;  %v10742_v27 = vor.u32 %v9399_v11, %v8301_v42 }
 0x2c9   : > { %v2420_v21 = vpop.f32.mrf.mxu2  ;;  %14259 = vst [vmem:[#allocation56_spill] sm:$0xff] %v10745_v36 }
 0x2ca   : > { %v2421_v15 = vadd.f32 %v2420_v21, %v10003_v22  ;;  %14258 = vst [vmem:[#allocation55_spill] sm:$0xff] %v10742_v27 }
 0x2cb   : > { %v1764_v51 = vpop.f32.mrf.mxu0 }
 0x2cc   : > { %v2750_v55 = vadd.f32 %v2749_v41, %v2421_v15  ;;  %v1765_v2 = vadd.f32 %v1764_v51, %v9999_v19 }
 0x2cd   : > { %v2098_v7 = vpop.f32.mrf.mxu1 }
 0x2ce   : > { %v7116_v35 = vpack.c.bf16 %v2750_v55, %v2092_v8  ;;  %v2094_v34 = vadd.f32 %v2093_v28, %v1765_v2  ;;  %v9402_v2 = vld [vmem:[%s9798_s8 + $0x2c4] sm:$0xf] }
 0x2d0   : > { %7628 = vst [vmem:[%s10018_s5 + $0x840] sm:$0xff] %v7116_v35  ;;  %v2756_v63 = vpop.f32.mrf.mxu3 }
 0x2d1   : > { %v2422_v39 = vpop.f32.mrf.mxu2 }
 0x2d2   : > { %v2423_v12 = vadd.f32 %v2422_v39, %v10003_v22  ;;  %v8319_v39 = vld [vmem:[%s9798_s8 + $0x2c8] sm:$0xf0] }
 0x2d3   : > { %v1767_v21 = vpop.f32.mrf.mxu0 }
 0x2d4   : > { %v2752_v41 = vadd.f32 %v2751_v48, %v2423_v12  ;;  %v1768_v12 = vadd.f32 %v1767_v21, %v9999_v19 }
 0x2d5   : > { %v2101_v10 = vpop.f32.mrf.mxu1  ;;  %8902 = vmatmul.msk.bf16.gmra.mxu3 %vm1370_vm1, %v10745_v36 }
 0x2d6   : > { %1806 = vmatmul.bf16.gmra.mxu0 %v10742_v27  ;;  %v7120_v15 = vpack.c.bf16 %v2752_v41, %v2094_v34  ;;  %2464 = vmatmul.bf16.gmra.mxu2 %v10742_v27  ;;  %v2097_v55 = vadd.f32 %v2096_v6, %v1768_v12  ;;  %v10765_v27 = vor.u32 %v9402_v2, %v8319_v39  ;;  %v8317_v2 = vld [vmem:[%s9798_s8 + $0x2c0] sm:$0xf]  ;;  %v9403_v39 = vld [vmem:[%s9798_s8 + $0x2c4] sm:$0xf0] }
 0x2d8   : > { %8838 = vmatmul.msk.bf16.gmra.mxu1 %vm1370_vm1, %v10745_v36  ;;  %7632 = vst [vmem:[%s10018_s5 + $0x860] sm:$0xff] %v7120_v15  ;;  %v2759_v48 = vpop.f32.mrf.mxu3  ;;  %v10762_v15 = vor.u32 %v9401_v61, %v8309_v30 }
 0x2d9   : > { %v2425_v28 = vpop.f32.mrf.mxu2  ;;  %14261 = vst [vmem:[#allocation58_spill] sm:$0xff] %v10765_v27 }
 0x2da   : > { %v2426_v51 = vadd.f32 %v2425_v28, %v10003_v22  ;;  %14260 = vst [vmem:[#allocation57_spill] sm:$0xff] %v10762_v15 }
 0x2db   : > { %v1769_v8 = vpop.f32.mrf.mxu0 }
 0x2dc   : > { %v2755_v35 = vadd.f32 %v2754_v29, %v2426_v51  ;;  %v1770_v34 = vadd.f32 %v1769_v8, %v9999_v19 }
 0x2dd   : > { %v2103_v42 = vpop.f32.mrf.mxu1 }
 0x2de   : > { %v7124_v11 = vpack.c.bf16 %v2755_v35, %v2097_v55  ;;  %v2099_v6 = vadd.f32 %v2098_v7, %v1770_v34  ;;  %v9404_v34 = vld [vmem:[%s9798_s8 + $0x2d4] sm:$0xf] }
 0x2e0   : > { %7636 = vst [vmem:[%s10018_s5 + $0x880] sm:$0xff] %v7124_v11  ;;  %v2761_v21 = vpop.f32.mrf.mxu3 }
 0x2e1   : > { %v2427_v41 = vpop.f32.mrf.mxu2 }
 0x2e2   : > { %v2428_v36 = vadd.f32 %v2427_v41, %v10003_v22  ;;  %v8327_v41 = vld [vmem:[%s9798_s8 + $0x2d8] sm:$0xf0] }
 0x2e3   : > { %v1772_v28 = vpop.f32.mrf.mxu0 }
 0x2e4   : > { %v2757_v29 = vadd.f32 %v2756_v63, %v2428_v36  ;;  %v1773_v36 = vadd.f32 %v1772_v28, %v9999_v19 }
 0x2e5   : > { %v2106_v12 = vpop.f32.mrf.mxu1  ;;  %8903 = vmatmul.msk.bf16.gmra.mxu3 %vm1370_vm1, %v10765_v27 }
 0x2e6   : > { %1811 = vmatmul.bf16.gmra.mxu0 %v10762_v15  ;;  %v7128_v51 = vpack.c.bf16 %v2757_v29, %v2099_v6  ;;  %2469 = vmatmul.bf16.gmra.mxu2 %v10762_v15  ;;  %v2102_v35 = vadd.f32 %v2101_v10, %v1773_v36  ;;  %v10785_v15 = vor.u32 %v9404_v34, %v8327_v41  ;;  %v8325_v34 = vld [vmem:[%s9798_s8 + $0x2d0] sm:$0xf]  ;;  %v9405_v41 = vld [vmem:[%s9798_s8 + $0x2d4] sm:$0xf0] }
 0x2e8   : > { %8839 = vmatmul.msk.bf16.gmra.mxu1 %vm1370_vm1, %v10765_v27  ;;  %7640 = vst [vmem:[%s10018_s5 + $0x8a0] sm:$0xff] %v7128_v51  ;;  %v2764_v63 = vpop.f32.mrf.mxu3  ;;  %v10782_v51 = vor.u32 %v9403_v39, %v8317_v2 }
 0x2e9   : > { %v2430_v7 = vpop.f32.mrf.mxu2  ;;  %14263 = vst [vmem:[#allocation60_spill] sm:$0xff] %v10785_v15 }
 0x2ea   : > { %v2431_v8 = vadd.f32 %v2430_v7, %v10003_v22  ;;  %14262 = vst [vmem:[#allocation59_spill] sm:$0xff] %v10782_v51 }
 0x2eb   : > { %v1774_v55 = vpop.f32.mrf.mxu0 }
 0x2ec   : > { %v2760_v11 = vadd.f32 %v2759_v48, %v2431_v8  ;;  %v1775_v6 = vadd.f32 %v1774_v55, %v9999_v19 }
 0x2ed   : > { %v2108_v30 = vpop.f32.mrf.mxu1 }
 0x2ee   : > { %v7132_v61 = vpack.c.bf16 %v2760_v11, %v2102_v35  ;;  %v2104_v10 = vadd.f32 %v2103_v42, %v1775_v6  ;;  %v9406_v6 = vld [vmem:[%s9798_s8 + $0x2e4] sm:$0xf] }
 0x2f0   : > { %7644 = vst [vmem:[%s10018_s5 + $0x8c0] sm:$0xff] %v7132_v61  ;;  %v2766_v28 = vpop.f32.mrf.mxu3 }
 0x2f1   : > { %v2432_v29 = vpop.f32.mrf.mxu2 }
 0x2f2   : > { %v2433_v27 = vadd.f32 %v2432_v29, %v10003_v22  ;;  %v8335_v29 = vld [vmem:[%s9798_s8 + $0x2e8] sm:$0xf0] }
 0x2f3   : > { %v1777_v7 = vpop.f32.mrf.mxu0 }
 0x2f4   : > { %v2762_v48 = vadd.f32 %v2761_v21, %v2433_v27  ;;  %v1778_v27 = vadd.f32 %v1777_v7, %v9999_v19 }
 0x2f5   : > { %v2111_v36 = vpop.f32.mrf.mxu1  ;;  %8904 = vmatmul.msk.bf16.gmra.mxu3 %vm1370_vm1, %v10785_v15 }
 0x2f6   : > { %1816 = vmatmul.bf16.gmra.mxu0 %v10782_v51  ;;  %v7136_v8 = vpack.c.bf16 %v2762_v48, %v2104_v10  ;;  %2474 = vmatmul.bf16.gmra.mxu2 %v10782_v51  ;;  %v2107_v11 = vadd.f32 %v2106_v12, %v1778_v27  ;;  %v10805_v51 = vor.u32 %v9406_v6, %v8335_v29  ;;  %v8333_v6 = vld [vmem:[%s9798_s8 + $0x2e0] sm:$0xf]  ;;  %v9407_v29 = vld [vmem:[%s9798_s8 + $0x2e4] sm:$0xf0] }
 0x2f8   : > { %8840 = vmatmul.msk.bf16.gmra.mxu1 %vm1370_vm1, %v10785_v15  ;;  %7648 = vst [vmem:[%s10018_s5 + $0x8e0] sm:$0xff] %v7136_v8  ;;  %v2769_v21 = vpop.f32.mrf.mxu3  ;;  %v10802_v8 = vor.u32 %v9405_v41, %v8325_v34 }
 0x2f9   : > { %v2435_v42 = vpop.f32.mrf.mxu2  ;;  %14265 = vst [vmem:[#allocation62_spill] sm:$0xff] %v10805_v51 }
 0x2fa   : > { %v2436_v55 = vadd.f32 %v2435_v42, %v10003_v22  ;;  %14264 = vst [vmem:[#allocation61_spill] sm:$0xff] %v10802_v8 }
 0x2fb   : > { %v1779_v35 = vpop.f32.mrf.mxu0 }
 0x2fc   : > { %v2765_v61 = vadd.f32 %v2764_v63, %v2436_v55  ;;  %v1780_v10 = vadd.f32 %v1779_v35, %v9999_v19 }
 0x2fd   : > { %v2113_v2 = vpop.f32.mrf.mxu1 }
 0x2fe   : > { %v7140_v39 = vpack.c.bf16 %v2765_v61, %v2107_v11  ;;  %v2109_v12 = vadd.f32 %v2108_v30, %v1780_v10  ;;  %v9408_v10 = vld [vmem:[%s9798_s8 + $0x2f4] sm:$0xf] }
 0x300   : > { %7652 = vst [vmem:[%s10018_s5 + $0x900] sm:$0xff] %v7140_v39  ;;  %v2771_v7 = vpop.f32.mrf.mxu3 }
 0x301   : > { %v2437_v48 = vpop.f32.mrf.mxu2 }
 0x302   : > { %v2438_v15 = vadd.f32 %v2437_v48, %v10003_v22  ;;  %v8343_v48 = vld [vmem:[%s9798_s8 + $0x2f8] sm:$0xf0] }
 0x303   : > { %v1782_v42 = vpop.f32.mrf.mxu0 }
 0x304   : > { %v2767_v63 = vadd.f32 %v2766_v28, %v2438_v15  ;;  %v1783_v15 = vadd.f32 %v1782_v42, %v9999_v19 }
 0x305   : > { %v2116_v27 = vpop.f32.mrf.mxu1  ;;  %8905 = vmatmul.msk.bf16.gmra.mxu3 %vm1370_vm1, %v10805_v51 }
 0x306   : > { %1821 = vmatmul.bf16.gmra.mxu0 %v10802_v8  ;;  %v7144_v55 = vpack.c.bf16 %v2767_v63, %v2109_v12  ;;  %2479 = vmatmul.bf16.gmra.mxu2 %v10802_v8  ;;  %v2112_v61 = vadd.f32 %v2111_v36, %v1783_v15  ;;  %v10825_v8 = vor.u32 %v9408_v10, %v8343_v48  ;;  %v8341_v10 = vld [vmem:[%s9798_s8 + $0x2f0] sm:$0xf]  ;;  %v9409_v48 = vld [vmem:[%s9798_s8 + $0x2f4] sm:$0xf0] }
 0x308   : > { %8841 = vmatmul.msk.bf16.gmra.mxu1 %vm1370_vm1, %v10805_v51  ;;  %7656 = vst [vmem:[%s10018_s5 + $0x920] sm:$0xff] %v7144_v55  ;;  %v2774_v28 = vpop.f32.mrf.mxu3  ;;  %v10822_v55 = vor.u32 %v9407_v29, %v8333_v6 }
 0x309   : > { %v2440_v30 = vpop.f32.mrf.mxu2  ;;  %14267 = vst [vmem:[#allocation64_spill] sm:$0xff] %v10825_v8 }
 0x30a   : > { %v2441_v35 = vadd.f32 %v2440_v30, %v10003_v22  ;;  %14266 = vst [vmem:[#allocation63_spill] sm:$0xff] %v10822_v55 }
 0x30b   : > { %v1784_v11 = vpop.f32.mrf.mxu0 }
 0x30c   : > { %v2770_v39 = vadd.f32 %v2769_v21, %v2441_v35  ;;  %v1785_v12 = vadd.f32 %v1784_v11, %v9999_v19 }
 0x30d   : > { %v2118_v34 = vpop.f32.mrf.mxu1 }
 0x30e   : > { %v7148_v41 = vpack.c.bf16 %v2770_v39, %v2112_v61  ;;  %v2114_v36 = vadd.f32 %v2113_v2, %v1785_v12  ;;  %v9410_v12 = vld [vmem:[%s9798_s8 + $0x304] sm:$0xf] }
 0x310   : > { %7660 = vst [vmem:[%s10018_s5 + $0x940] sm:$0xff] %v7148_v41  ;;  %v2776_v42 = vpop.f32.mrf.mxu3 }
 0x311   : > { %v2442_v63 = vpop.f32.mrf.mxu2 }
 0x312   : > { %v2443_v51 = vadd.f32 %v2442_v63, %v10003_v22  ;;  %v8351_v63 = vld [vmem:[%s9798_s8 + $0x308] sm:$0xf0] }
 0x313   : > { %v1787_v30 = vpop.f32.mrf.mxu0 }
 0x314   : > { %v2772_v21 = vadd.f32 %v2771_v7, %v2443_v51  ;;  %v1788_v51 = vadd.f32 %v1787_v30, %v9999_v19  ;;  %v8517_v30 = vld [vmem:[%s13848_s1 + $0x48] sm:$0xf] }
 0x315   : > { %v2121_v15 = vpop.f32.mrf.mxu1  ;;  %8906 = vmatmul.msk.bf16.gmra.mxu3 %vm1370_vm1, %v10825_v8 }
 0x316   : > { %1826 = vmatmul.bf16.gmra.mxu0 %v10822_v55  ;;  %v7152_v35 = vpack.c.bf16 %v2772_v21, %v2114_v36  ;;  %2484 = vmatmul.bf16.gmra.mxu2 %v10822_v55  ;;  %v2117_v39 = vadd.f32 %v2116_v27, %v1788_v51  ;;  %v9455_v21 = vld [vmem:[%s13848_s1 + $0x64] sm:$0xf0]  ;;  %v10848_v27 = vor.u32 %v9409_v48, %v8341_v10 }
 0x317   : > { %v8518_v51 = vor.u32 %v9455_v21, %v8517_v30 }
 0x318   : > { %8842 = vmatmul.msk.bf16.gmra.mxu1 %vm1370_vm1, %v10825_v8  ;;  %7664 = vst [vmem:[%s10018_s5 + $0x960] sm:$0xff] %v7152_v35  ;;  %v2779_v7 = vpop.f32.mrf.mxu3 }
 0x319   : > { %v2445_v2 = vpop.f32.mrf.mxu2  ;;  %14268 = vst [vmem:[#allocation65_spill] sm:$0xff] %v10848_v27  ;;  %2910 = vmatpush.bf16.msrb.mxu1 %v8518_v51 }
 0x31a   : > { %v2446_v11 = vadd.f32 %v2445_v2, %v10003_v22  ;;  %v9451_v2 = vld [vmem:[%s13848_s1 + $0x4c] sm:$0xf] }
 0x31b   : > { %v1789_v61 = vpop.f32.mrf.mxu0 }
 0x31c   : > { %v2775_v41 = vadd.f32 %v2774_v28, %v2446_v11  ;;  %v1790_v36 = vadd.f32 %v1789_v61, %v9999_v19  ;;  %v8519_v11 = vld [vmem:[%s13848_s1 + $0x68] sm:$0xf0] }
 0x31d   : > { %v2123_v6 = vpop.f32.mrf.mxu1 }
 0x31e   : > { %v7156_v29 = vpack.c.bf16 %v2775_v41, %v2117_v39  ;;  %v10857_v41 = vor.u32 %v9410_v12, %v8351_v63  ;;  %v2119_v10 = vadd.f32 %v2118_v34, %v1790_v36 }
 0x320   : > { %7668 = vst [vmem:[%s10018_s5 + $0x980] sm:$0xff] %v7156_v29  ;;  %v2781_v28 = vpop.f32.mrf.mxu3  ;;  %v8522_v29 = vor.u32 %v9451_v2, %v8519_v11  ;;  %v8349_v11 = vld [vmem:[%s9798_s8 + $0x300] sm:$0xf] }
 0x321   : > { %v2447_v35 = vpop.f32.mrf.mxu2  ;;  %14269 = vst [vmem:[#allocation66_spill] sm:$0xff] %v10857_v41 }
 0x322   : > { %v2448_v61 = vadd.f32 %v2447_v35, %v10003_v22  ;;  %3568 = vmatpush.bf16.msrb.mxu0 %v8522_v29  ;;  %v9412_v29 = vld [vmem:[%s9798_s8 + $0x314] sm:$0xf] }
 0x323   : > { %v1792_v39 = vpop.f32.mrf.mxu0 }
 0x324   : > { %v2777_v48 = vadd.f32 %v2776_v42, %v2448_v61  ;;  %v1793_v34 = vadd.f32 %v1792_v39, %v9999_v19  ;;  %v9411_v61 = vld [vmem:[%s9798_s8 + $0x304] sm:$0xf0] }
 0x325   : > { %v2126_v8 = vpop.f32.mrf.mxu1  ;;  %8907 = vmatmul.msk.bf16.gmra.mxu3 %vm1370_vm1, %v10857_v41 }
 0x326   : > { %1831 = vmatmul.bf16.gmra.mxu0 %v10848_v27  ;;  %v7160_v30 = vpack.c.bf16 %v2777_v48, %v2119_v10  ;;  %2489 = vmatmul.bf16.gmra.mxu2 %v10848_v27  ;;  %v2122_v21 = vadd.f32 %v2121_v15, %v1793_v34  ;;  %v8359_v10 = vld [vmem:[%s9798_s8 + $0x318] sm:$0xf0] }
 0x327   : > { %v10877_v55 = vor.u32 %v9412_v29, %v8359_v10  ;;  %v8357_v29 = vld [vmem:[%s9798_s8 + $0x310] sm:$0xf]  ;;  %v9413_v10 = vld [vmem:[%s9798_s8 + $0x314] sm:$0xf0] }
 0x328   : > { %8843 = vmatmul.msk.bf16.gmra.mxu1 %vm1370_vm1, %v10857_v41  ;;  %7672 = vst [vmem:[%s10018_s5 + $0x9a0] sm:$0xff] %v7160_v30  ;;  %v2784_v12 = vpop.f32.mrf.mxu3  ;;  %v10874_v41 = vor.u32 %v9411_v61, %v8349_v11 }
 0x329   : > { %v2450_v42 = vpop.f32.mrf.mxu2  ;;  %14271 = vst [vmem:[#allocation68_spill] sm:$0xff] %v10877_v55 }
 0x32a   : > { %v2451_v63 = vadd.f32 %v2450_v42, %v10003_v22  ;;  %14270 = vst [vmem:[#allocation67_spill] sm:$0xff] %v10874_v41 }
 0x32b   : > { %v1794_v36 = vpop.f32.mrf.mxu0 }
 0x32c   : > { %v2780_v35 = vadd.f32 %v2779_v7, %v2451_v63  ;;  %v1795_v48 = vadd.f32 %v1794_v36, %v9999_v19 }
 0x32d   : > { %v2128_v51 = vpop.f32.mrf.mxu1 }
 0x32e   : > { %v7164_v2 = vpack.c.bf16 %v2780_v35, %v2122_v21  ;;  %v2124_v15 = vadd.f32 %v2123_v6, %v1795_v48  ;;  %v9414_v48 = vld [vmem:[%s9798_s8 + $0x324] sm:$0xf] }
 0x330   : > { %7676 = vst [vmem:[%s10018_s5 + $0x9c0] sm:$0xff] %v7164_v2  ;;  %v2786_v39 = vpop.f32.mrf.mxu3 }
 0x331   : > { %v2452_v30 = vpop.f32.mrf.mxu2 }
 0x332   : > { %v2453_v27 = vadd.f32 %v2452_v30, %v10003_v22  ;;  %v8367_v30 = vld [vmem:[%s9798_s8 + $0x328] sm:$0xf0] }
 0x333   : > { %v1797_v42 = vpop.f32.mrf.mxu0 }
 0x334   : > { %v2782_v7 = vadd.f32 %v2781_v28, %v2453_v27  ;;  %v1798_v6 = vadd.f32 %v1797_v42, %v9999_v19 }
 0x335   : > { %v2131_v34 = vpop.f32.mrf.mxu1  ;;  %8908 = vmatmul.msk.bf16.gmra.mxu3 %vm1370_vm1, %v10877_v55 }
 0x336   : > { %1836 = vmatmul.bf16.gmra.mxu0 %v10874_v41  ;;  %v7168_v63 = vpack.c.bf16 %v2782_v7, %v2124_v15  ;;  %2494 = vmatmul.bf16.gmra.mxu2 %v10874_v41  ;;  %v2127_v35 = vadd.f32 %v2126_v8, %v1798_v6  ;;  %v10897_v41 = vor.u32 %v9414_v48, %v8367_v30  ;;  %v8365_v48 = vld [vmem:[%s9798_s8 + $0x320] sm:$0xf]  ;;  %v9415_v30 = vld [vmem:[%s9798_s8 + $0x324] sm:$0xf0] }
 0x338   : > { %8844 = vmatmul.msk.bf16.gmra.mxu1 %vm1370_vm1, %v10877_v55  ;;  %7680 = vst [vmem:[%s10018_s5 + $0x9e0] sm:$0xff] %v7168_v63  ;;  %v2789_v28 = vpop.f32.mrf.mxu3  ;;  %v10894_v63 = vor.u32 %v9413_v10, %v8357_v29 }
 0x339   : > { %v2455_v27 = vpop.f32.mrf.mxu2  ;;  %14273 = vst [vmem:[#allocation70_spill] sm:$0xff] %v10897_v41 }
 0x33a   : > { %v2456_v36 = vadd.f32 %v2455_v27, %v10003_v22  ;;  %14272 = vst [vmem:[#allocation69_spill] sm:$0xff] %v10894_v63 }
 0x33b   : > { %v1799_v21 = vpop.f32.mrf.mxu0 }
 0x33c   : > { %v2785_v2 = vadd.f32 %v2784_v12, %v2456_v36  ;;  %v1800_v15 = vadd.f32 %v1799_v21, %v9999_v19 }
 0x33d   : > { %v2133_v11 = vpop.f32.mrf.mxu1 }
 0x33e   : > { %v7172_v61 = vpack.c.bf16 %v2785_v2, %v2127_v35  ;;  %v2129_v8 = vadd.f32 %v2128_v51, %v1800_v15  ;;  %v9416_v15 = vld [vmem:[%s9798_s8 + $0x334] sm:$0xf] }
 0x340   : > { %7684 = vst [vmem:[%s10018_s5 + $0xa00] sm:$0xff] %v7172_v61  ;;  %v2791_v42 = vpop.f32.mrf.mxu3 }
 0x341   : > { %v2457_v7 = vpop.f32.mrf.mxu2 }
 0x342   : > { %v2458_v55 = vadd.f32 %v2457_v7, %v10003_v22  ;;  %v8375_v7 = vld [vmem:[%s9798_s8 + $0x338] sm:$0xf0] }
 0x343   : > { %v1802_v27 = vpop.f32.mrf.mxu0 }
 0x344   : > { %v2787_v12 = vadd.f32 %v2786_v39, %v2458_v55  ;;  %v1803_v55 = vadd.f32 %v1802_v27, %v9999_v19 }
 0x345   : > { %v2136_v6 = vpop.f32.mrf.mxu1  ;;  %8909 = vmatmul.msk.bf16.gmra.mxu3 %vm1370_vm1, %v10897_v41 }
 0x346   : > { %1841 = vmatmul.bf16.gmra.mxu0 %v10894_v63  ;;  %v7176_v36 = vpack.c.bf16 %v2787_v12, %v2129_v8  ;;  %2499 = vmatmul.bf16.gmra.mxu2 %v10894_v63  ;;  %v2132_v2 = vadd.f32 %v2131_v34, %v1803_v55  ;;  %v10917_v63 = vor.u32 %v9416_v15, %v8375_v7  ;;  %v8373_v15 = vld [vmem:[%s9798_s8 + $0x330] sm:$0xf]  ;;  %v9417_v7 = vld [vmem:[%s9798_s8 + $0x334] sm:$0xf0] }
 0x348   : > { %8845 = vmatmul.msk.bf16.gmra.mxu1 %vm1370_vm1, %v10897_v41  ;;  %7688 = vst [vmem:[%s10018_s5 + $0xa20] sm:$0xff] %v7176_v36  ;;  %v2794_v39 = vpop.f32.mrf.mxu3  ;;  %v10914_v36 = vor.u32 %v9415_v30, %v8365_v48 }
 0x349   : > { %v2460_v51 = vpop.f32.mrf.mxu2  ;;  %14275 = vst [vmem:[#allocation72_spill] sm:$0xff] %v10917_v63 }
 0x34a   : > { %v2461_v21 = vadd.f32 %v2460_v51, %v10003_v22  ;;  %14274 = vst [vmem:[#allocation71_spill] sm:$0xff] %v10914_v36 }
 0x34b   : > { %v1804_v35 = vpop.f32.mrf.mxu0 }
 0x34c   : > { %v2790_v61 = vadd.f32 %v2789_v28, %v2461_v21  ;;  %v1805_v8 = vadd.f32 %v1804_v35, %v9999_v19 }
 0x34d   : > { %v2138_v29 = vpop.f32.mrf.mxu1 }
 0x34e   : > { %v7180_v10 = vpack.c.bf16 %v2790_v61, %v2132_v2  ;;  %v2134_v34 = vadd.f32 %v2133_v11, %v1805_v8  ;;  %v9418_v8 = vld [vmem:[%s9798_s8 + $0x344] sm:$0xf] }
 0x350   : > { %7692 = vst [vmem:[%s10018_s5 + $0xa40] sm:$0xff] %v7180_v10  ;;  %v2796_v27 = vpop.f32.mrf.mxu3 }
 0x351   : > { %v2462_v12 = vpop.f32.mrf.mxu2 }
 0x352   : > { %v2463_v41 = vadd.f32 %v2462_v12, %v10003_v22  ;;  %v8383_v12 = vld [vmem:[%s9798_s8 + $0x348] sm:$0xf0] }
 0x353   : > { %v1807_v51 = vpop.f32.mrf.mxu0 }
 0x354   : > { %v2792_v28 = vadd.f32 %v2791_v42, %v2463_v41  ;;  %v1808_v41 = vadd.f32 %v1807_v51, %v9999_v19 }
 0x355   : > { %v2141_v55 = vpop.f32.mrf.mxu1  ;;  %8910 = vmatmul.msk.bf16.gmra.mxu3 %vm1370_vm1, %v10917_v63 }
 0x356   : > { %1846 = vmatmul.bf16.gmra.mxu0 %v10914_v36  ;;  %v7184_v21 = vpack.c.bf16 %v2792_v28, %v2134_v34  ;;  %2504 = vmatmul.bf16.gmra.mxu2 %v10914_v36  ;;  %v2137_v61 = vadd.f32 %v2136_v6, %v1808_v41  ;;  %v10937_v36 = vor.u32 %v9418_v8, %v8383_v12  ;;  %v8381_v8 = vld [vmem:[%s9798_s8 + $0x340] sm:$0xf]  ;;  %v9419_v12 = vld [vmem:[%s9798_s8 + $0x344] sm:$0xf0] }
 0x358   : > { %8846 = vmatmul.msk.bf16.gmra.mxu1 %vm1370_vm1, %v10917_v63  ;;  %7696 = vst [vmem:[%s10018_s5 + $0xa60] sm:$0xff] %v7184_v21  ;;  %v2799_v42 = vpop.f32.mrf.mxu3  ;;  %v10934_v21 = vor.u32 %v9417_v7, %v8373_v15 }
 0x359   : > { %v2465_v11 = vpop.f32.mrf.mxu2  ;;  %14277 = vst [vmem:[#allocation74_spill] sm:$0xff] %v10937_v36 }
 0x35a   : > { %v2466_v35 = vadd.f32 %v2465_v11, %v10003_v22  ;;  %14276 = vst [vmem:[#allocation73_spill] sm:$0xff] %v10934_v21 }
 0x35b   : > { %v1809_v2 = vpop.f32.mrf.mxu0 }
 0x35c   : > { %v2795_v10 = vadd.f32 %v2794_v39, %v2466_v35  ;;  %v1810_v34 = vadd.f32 %v1809_v2, %v9999_v19 }
 0x35d   : > { %v2143_v48 = vpop.f32.mrf.mxu1 }
 0x35e   : > { %v7188_v30 = vpack.c.bf16 %v2795_v10, %v2137_v61  ;;  %v2139_v6 = vadd.f32 %v2138_v29, %v1810_v34  ;;  %v9420_v34 = vld [vmem:[%s9798_s8 + $0x354] sm:$0xf] }
 0x360   : > { %7700 = vst [vmem:[%s10018_s5 + $0xa80] sm:$0xff] %v7188_v30  ;;  %v2801_v51 = vpop.f32.mrf.mxu3 }
 0x361   : > { %v2467_v28 = vpop.f32.mrf.mxu2 }
 0x362   : > { %v2468_v63 = vadd.f32 %v2467_v28, %v10003_v22  ;;  %v8391_v28 = vld [vmem:[%s9798_s8 + $0x358] sm:$0xf0] }
 0x363   : > { %v1812_v11 = vpop.f32.mrf.mxu0 }
 0x364   : > { %v2797_v39 = vadd.f32 %v2796_v27, %v2468_v63  ;;  %v1813_v63 = vadd.f32 %v1812_v11, %v9999_v19 }
 0x365   : > { %v2146_v41 = vpop.f32.mrf.mxu1  ;;  %8911 = vmatmul.msk.bf16.gmra.mxu3 %vm1370_vm1, %v10937_v36 }
 0x366   : > { %1851 = vmatmul.bf16.gmra.mxu0 %v10934_v21  ;;  %v7192_v35 = vpack.c.bf16 %v2797_v39, %v2139_v6  ;;  %2509 = vmatmul.bf16.gmra.mxu2 %v10934_v21  ;;  %v2142_v10 = vadd.f32 %v2141_v55, %v1813_v63  ;;  %v10957_v21 = vor.u32 %v9420_v34, %v8391_v28  ;;  %v8389_v34 = vld [vmem:[%s9798_s8 + $0x350] sm:$0xf]  ;;  %v9421_v28 = vld [vmem:[%s9798_s8 + $0x354] sm:$0xf0] }
 0x368   : > { %8847 = vmatmul.msk.bf16.gmra.mxu1 %vm1370_vm1, %v10937_v36  ;;  %7704 = vst [vmem:[%s10018_s5 + $0xaa0] sm:$0xff] %v7192_v35  ;;  %v2804_v27 = vpop.f32.mrf.mxu3  ;;  %v10954_v35 = vor.u32 %v9419_v12, %v8381_v8 }
 0x369   : > { %v2470_v29 = vpop.f32.mrf.mxu2  ;;  %14279 = vst [vmem:[#allocation76_spill] sm:$0xff] %v10957_v21 }
 0x36a   : > { %v2471_v2 = vadd.f32 %v2470_v29, %v10003_v22  ;;  %14278 = vst [vmem:[#allocation75_spill] sm:$0xff] %v10954_v35 }
 0x36b   : > { %v1814_v61 = vpop.f32.mrf.mxu0 }
 0x36c   : > { %v2800_v30 = vadd.f32 %v2799_v42, %v2471_v2  ;;  %v1815_v6 = vadd.f32 %v1814_v61, %v9999_v19 }
 0x36d   : > { %v2148_v15 = vpop.f32.mrf.mxu1 }
 0x36e   : > { %v7196_v7 = vpack.c.bf16 %v2800_v30, %v2142_v10  ;;  %v2144_v55 = vadd.f32 %v2143_v48, %v1815_v6  ;;  %v9422_v6 = vld [vmem:[%s9798_s8 + $0x364] sm:$0xf] }
 0x370   : > { %7708 = vst [vmem:[%s10018_s5 + $0xac0] sm:$0xff] %v7196_v7  ;;  %v2806_v11 = vpop.f32.mrf.mxu3 }
 0x371   : > { %v2472_v39 = vpop.f32.mrf.mxu2 }
 0x372   : > { %v2473_v36 = vadd.f32 %v2472_v39, %v10003_v22  ;;  %v8399_v39 = vld [vmem:[%s9798_s8 + $0x368] sm:$0xf0] }
 0x373   : > { %v1817_v29 = vpop.f32.mrf.mxu0 }
 0x374   : > { %v2802_v42 = vadd.f32 %v2801_v51, %v2473_v36  ;;  %v1818_v36 = vadd.f32 %v1817_v29, %v9999_v19 }
 0x375   : > { %v2151_v63 = vpop.f32.mrf.mxu1  ;;  %8912 = vmatmul.msk.bf16.gmra.mxu3 %vm1370_vm1, %v10957_v21 }
 0x376   : > { %1856 = vmatmul.bf16.gmra.mxu0 %v10954_v35  ;;  %v7200_v2 = vpack.c.bf16 %v2802_v42, %v2144_v55  ;;  %2514 = vmatmul.bf16.gmra.mxu2 %v10954_v35  ;;  %v2147_v30 = vadd.f32 %v2146_v41, %v1818_v36  ;;  %v10977_v35 = vor.u32 %v9422_v6, %v8399_v39  ;;  %v8397_v6 = vld [vmem:[%s9798_s8 + $0x360] sm:$0xf]  ;;  %v9423_v39 = vld [vmem:[%s9798_s8 + $0x364] sm:$0xf0] }
 0x378   : > { %8848 = vmatmul.msk.bf16.gmra.mxu1 %vm1370_vm1, %v10957_v21  ;;  %7712 = vst [vmem:[%s10018_s5 + $0xae0] sm:$0xff] %v7200_v2  ;;  %v2809_v51 = vpop.f32.mrf.mxu3  ;;  %v10974_v2 = vor.u32 %v9421_v28, %v8389_v34 }
 0x379   : > { %v2475_v48 = vpop.f32.mrf.mxu2  ;;  %14281 = vst [vmem:[#allocation78_spill] sm:$0xff] %v10977_v35 }
 0x37a   : > { %v2476_v61 = vadd.f32 %v2475_v48, %v10003_v22  ;;  %14280 = vst [vmem:[#allocation77_spill] sm:$0xff] %v10974_v2 }
 0x37b   : > { %v1819_v10 = vpop.f32.mrf.mxu0 }
 0x37c   : > { %v2805_v7 = vadd.f32 %v2804_v27, %v2476_v61  ;;  %v1820_v55 = vadd.f32 %v1819_v10, %v9999_v19 }
 0x37d   : > { %v2153_v8 = vpop.f32.mrf.mxu1 }
 0x37e   : > { %v7204_v12 = vpack.c.bf16 %v2805_v7, %v2147_v30  ;;  %v2149_v41 = vadd.f32 %v2148_v15, %v1820_v55  ;;  %v9424_v55 = vld [vmem:[%s9798_s8 + $0x374] sm:$0xf] }
 0x380   : > { %7716 = vst [vmem:[%s10018_s5 + $0xb00] sm:$0xff] %v7204_v12  ;;  %v2811_v29 = vpop.f32.mrf.mxu3 }
 0x381   : > { %v2477_v42 = vpop.f32.mrf.mxu2 }
 0x382   : > { %v2478_v21 = vadd.f32 %v2477_v42, %v10003_v22  ;;  %v8407_v42 = vld [vmem:[%s9798_s8 + $0x378] sm:$0xf0] }
 0x383   : > { %v1822_v48 = vpop.f32.mrf.mxu0 }
 0x384   : > { %v2807_v27 = vadd.f32 %v2806_v11, %v2478_v21  ;;  %v1823_v21 = vadd.f32 %v1822_v48, %v9999_v19 }
 0x385   : > { %v2156_v36 = vpop.f32.mrf.mxu1  ;;  %8913 = vmatmul.msk.bf16.gmra.mxu3 %vm1370_vm1, %v10977_v35 }
 0x386   : > { %1861 = vmatmul.bf16.gmra.mxu0 %v10974_v2  ;;  %v7208_v61 = vpack.c.bf16 %v2807_v27, %v2149_v41  ;;  %2519 = vmatmul.bf16.gmra.mxu2 %v10974_v2  ;;  %v2152_v7 = vadd.f32 %v2151_v63, %v1823_v21  ;;  %v10997_v2 = vor.u32 %v9424_v55, %v8407_v42  ;;  %v8405_v55 = vld [vmem:[%s9798_s8 + $0x370] sm:$0xf]  ;;  %v9425_v42 = vld [vmem:[%s9798_s8 + $0x374] sm:$0xf0] }
 0x388   : > { %8849 = vmatmul.msk.bf16.gmra.mxu1 %vm1370_vm1, %v10977_v35  ;;  %7720 = vst [vmem:[%s10018_s5 + $0xb20] sm:$0xff] %v7208_v61  ;;  %v2814_v11 = vpop.f32.mrf.mxu3  ;;  %v10994_v61 = vor.u32 %v9423_v39, %v8397_v6 }
 0x389   : > { %v2480_v15 = vpop.f32.mrf.mxu2  ;;  %14283 = vst [vmem:[#allocation80_spill] sm:$0xff] %v10997_v2 }
 0x38a   : > { %v2481_v10 = vadd.f32 %v2480_v15, %v10003_v22  ;;  %14282 = vst [vmem:[#allocation79_spill] sm:$0xff] %v10994_v61 }
 0x38b   : > { %v1824_v30 = vpop.f32.mrf.mxu0 }
 0x38c   : > { %v2810_v12 = vadd.f32 %v2809_v51, %v2481_v10  ;;  %v1825_v41 = vadd.f32 %v1824_v30, %v9999_v19 }
 0x38d   : > { %v2158_v34 = vpop.f32.mrf.mxu1 }
 0x38e   : > { %v7212_v28 = vpack.c.bf16 %v2810_v12, %v2152_v7  ;;  %v2154_v63 = vadd.f32 %v2153_v8, %v1825_v41  ;;  %v9426_v41 = vld [vmem:[%s9798_s8 + $0x384] sm:$0xf] }
 0x390   : > { %7724 = vst [vmem:[%s10018_s5 + $0xb40] sm:$0xff] %v7212_v28  ;;  %v2816_v48 = vpop.f32.mrf.mxu3 }
 0x391   : > { %v2482_v27 = vpop.f32.mrf.mxu2 }
 0x392   : > { %v2483_v35 = vadd.f32 %v2482_v27, %v10003_v22  ;;  %v8415_v27 = vld [vmem:[%s9798_s8 + $0x388] sm:$0xf0] }
 0x393   : > { %v1827_v15 = vpop.f32.mrf.mxu0 }
 0x394   : > { %v2812_v51 = vadd.f32 %v2811_v29, %v2483_v35  ;;  %v1828_v35 = vadd.f32 %v1827_v15, %v9999_v19  ;;  %v8485_v15 = vld [vmem:[%s13848_s1 + $0x8] sm:$0xf] }
 0x395   : > { %v2161_v21 = vpop.f32.mrf.mxu1  ;;  %8914 = vmatmul.msk.bf16.gmra.mxu3 %vm1370_vm1, %v10997_v2 }
 0x396   : > { %1866 = vmatmul.bf16.gmra.mxu0 %v10994_v61  ;;  %v7216_v10 = vpack.c.bf16 %v2812_v51, %v2154_v63  ;;  %2524 = vmatmul.bf16.gmra.mxu2 %v10994_v61  ;;  %v2157_v12 = vadd.f32 %v2156_v36, %v1828_v35  ;;  %v9447_v51 = vld [vmem:[%s13848_s1 + $0x24] sm:$0xf0]  ;;  %v11020_v36 = vor.u32 %v9425_v42, %v8405_v55 }
 0x397   : > { %v8486_v35 = vor.u32 %v9447_v51, %v8485_v15 }
 0x398   : > { %8850 = vmatmul.msk.bf16.gmra.mxu1 %vm1370_vm1, %v10997_v2  ;;  %7728 = vst [vmem:[%s10018_s5 + $0xb60] sm:$0xff] %v7216_v10  ;;  %v2819_v29 = vpop.f32.mrf.mxu3 }
 0x399   : > { %v2485_v8 = vpop.f32.mrf.mxu2  ;;  %14284 = vst [vmem:[#allocation81_spill] sm:$0xff] %v11020_v36  ;;  %2911 = vmatpush.bf16.msrb.mxu1 %v8486_v35 }
 0x39a   : > { %v2486_v30 = vadd.f32 %v2485_v8, %v10003_v22  ;;  %v9443_v8 = vld [vmem:[%s13848_s1 + $0xc] sm:$0xf] }
 0x39b   : > { %v1829_v7 = vpop.f32.mrf.mxu0 }
 0x39c   : > { %v2815_v28 = vadd.f32 %v2814_v11, %v2486_v30  ;;  %v1830_v63 = vadd.f32 %v1829_v7, %v9999_v19  ;;  %v8487_v30 = vld [vmem:[%s13848_s1 + $0x28] sm:$0xf0] }
 0x39d   : > { %v2163_v6 = vpop.f32.mrf.mxu1 }
 0x39e   : > { %v7220_v39 = vpack.c.bf16 %v2815_v28, %v2157_v12  ;;  %v11029_v28 = vor.u32 %v9426_v41, %v8415_v27  ;;  %v2159_v55 = vadd.f32 %v2158_v34, %v1830_v63 }
 0x3a0   : > { %7732 = vst [vmem:[%s10018_s5 + $0xb80] sm:$0xff] %v7220_v39  ;;  %v2821_v11 = vpop.f32.mrf.mxu3  ;;  %v8490_v39 = vor.u32 %v9443_v8, %v8487_v30  ;;  %v8413_v30 = vld [vmem:[%s9798_s8 + $0x380] sm:$0xf] }
 0x3a1   : > { %v2487_v10 = vpop.f32.mrf.mxu2  ;;  %14285 = vst [vmem:[#allocation82_spill] sm:$0xff] %v11029_v28 }
 0x3a2   : > { %v2488_v7 = vadd.f32 %v2487_v10, %v10003_v22  ;;  %3569 = vmatpush.bf16.msrb.mxu0 %v8490_v39  ;;  %v9428_v39 = vld [vmem:[%s9798_s8 + $0x394] sm:$0xf] }
 0x3a3   : > { %v1832_v12 = vpop.f32.mrf.mxu0 }
 0x3a4   : > { %v2817_v42 = vadd.f32 %v2816_v48, %v2488_v7  ;;  %v1833_v34 = vadd.f32 %v1832_v12, %v9999_v19  ;;  %v9427_v7 = vld [vmem:[%s9798_s8 + $0x384] sm:$0xf0] }
 0x3a5   : > { %v2166_v2 = vpop.f32.mrf.mxu1  ;;  %8915 = vmatmul.msk.bf16.gmra.mxu3 %vm1370_vm1, %v11029_v28 }
 0x3a6   : > { %1871 = vmatmul.bf16.gmra.mxu0 %v11020_v36  ;;  %v7224_v15 = vpack.c.bf16 %v2817_v42, %v2159_v55  ;;  %2529 = vmatmul.bf16.gmra.mxu2 %v11020_v36  ;;  %v2162_v51 = vadd.f32 %v2161_v21, %v1833_v34  ;;  %v8423_v55 = vld [vmem:[%s9798_s8 + $0x398] sm:$0xf0] }
 0x3a7   : > { %v11049_v61 = vor.u32 %v9428_v39, %v8423_v55  ;;  %v8421_v39 = vld [vmem:[%s9798_s8 + $0x390] sm:$0xf]  ;;  %v9429_v55 = vld [vmem:[%s9798_s8 + $0x394] sm:$0xf0] }
 0x3a8   : > { %8851 = vmatmul.msk.bf16.gmra.mxu1 %vm1370_vm1, %v11029_v28  ;;  %7736 = vst [vmem:[%s10018_s5 + $0xba0] sm:$0xff] %v7224_v15  ;;  %v2824_v41 = vpop.f32.mrf.mxu3  ;;  %v11046_v28 = vor.u32 %v9427_v7, %v8413_v30 }
 0x3a9   : > { %v2490_v48 = vpop.f32.mrf.mxu2  ;;  %14287 = vst [vmem:[#allocation84_spill] sm:$0xff] %v11049_v61 }
 0x3aa   : > { %v2491_v27 = vadd.f32 %v2490_v48, %v10003_v22  ;;  %14286 = vst [vmem:[#allocation83_spill] sm:$0xff] %v11046_v28 }
 0x3ab   : > { %v1834_v63 = vpop.f32.mrf.mxu0 }
 0x3ac   : > { %v2820_v10 = vadd.f32 %v2819_v29, %v2491_v27  ;;  %v1835_v42 = vadd.f32 %v1834_v63, %v9999_v19 }
 0x3ad   : > { %v2168_v35 = vpop.f32.mrf.mxu1 }
 0x3ae   : > { %v7228_v8 = vpack.c.bf16 %v2820_v10, %v2162_v51  ;;  %v2164_v21 = vadd.f32 %v2163_v6, %v1835_v42  ;;  %v9430_v42 = vld [vmem:[%s9798_s8 + $0x3a4] sm:$0xf] }
 0x3b0   : > { %7740 = vst [vmem:[%s10018_s5 + $0xbc0] sm:$0xff] %v7228_v8  ;;  %v2826_v12 = vpop.f32.mrf.mxu3 }
 0x3b1   : > { %v2492_v15 = vpop.f32.mrf.mxu2 }
 0x3b2   : > { %v2493_v36 = vadd.f32 %v2492_v15, %v10003_v22  ;;  %v8431_v15 = vld [vmem:[%s9798_s8 + $0x3a8] sm:$0xf0] }
 0x3b3   : > { %v1837_v48 = vpop.f32.mrf.mxu0 }
 0x3b4   : > { %v2822_v29 = vadd.f32 %v2821_v11, %v2493_v36  ;;  %v1838_v6 = vadd.f32 %v1837_v48, %v9999_v19 }
 0x3b5   : > { %v2171_v34 = vpop.f32.mrf.mxu1  ;;  %8916 = vmatmul.msk.bf16.gmra.mxu3 %vm1370_vm1, %v11049_v61 }
 0x3b6   : > { %1876 = vmatmul.bf16.gmra.mxu0 %v11046_v28  ;;  %v7232_v27 = vpack.c.bf16 %v2822_v29, %v2164_v21  ;;  %2534 = vmatmul.bf16.gmra.mxu2 %v11046_v28  ;;  %v2167_v10 = vadd.f32 %v2166_v2, %v1838_v6  ;;  %v11069_v28 = vor.u32 %v9430_v42, %v8431_v15  ;;  %v8429_v42 = vld [vmem:[%s9798_s8 + $0x3a0] sm:$0xf]  ;;  %v9431_v15 = vld [vmem:[%s9798_s8 + $0x3a4] sm:$0xf0] }
 0x3b8   : > { %8852 = vmatmul.msk.bf16.gmra.mxu1 %vm1370_vm1, %v11049_v61  ;;  %7744 = vst [vmem:[%s10018_s5 + $0xbe0] sm:$0xff] %v7232_v27  ;;  %v2829_v11 = vpop.f32.mrf.mxu3  ;;  %v11066_v27 = vor.u32 %v9429_v55, %v8421_v39 }
 0x3b9   : > { %v2495_v36 = vpop.f32.mrf.mxu2  ;;  %14289 = vst [vmem:[#allocation86_spill] sm:$0xff] %v11069_v28 }
 0x3ba   : > { %v2496_v63 = vadd.f32 %v2495_v36, %v10003_v22  ;;  %14288 = vst [vmem:[#allocation85_spill] sm:$0xff] %v11066_v27 }
 0x3bb   : > { %v1839_v51 = vpop.f32.mrf.mxu0 }
 0x3bc   : > { %v2825_v8 = vadd.f32 %v2824_v41, %v2496_v63  ;;  %v1840_v21 = vadd.f32 %v1839_v51, %v9999_v19 }
 0x3bd   : > { %v2173_v30 = vpop.f32.mrf.mxu1 }
 0x3be   : > { %v7236_v7 = vpack.c.bf16 %v2825_v8, %v2167_v10  ;;  %v2169_v2 = vadd.f32 %v2168_v35, %v1840_v21  ;;  %v9432_v21 = vld [vmem:[%s9798_s8 + $0x3b4] sm:$0xf] }
 0x3c0   : > { %7748 = vst [vmem:[%s10018_s5 + $0xc00] sm:$0xff] %v7236_v7  ;;  %v2831_v48 = vpop.f32.mrf.mxu3 }
 0x3c1   : > { %v2497_v29 = vpop.f32.mrf.mxu2 }
 0x3c2   : > { %v2498_v61 = vadd.f32 %v2497_v29, %v10003_v22  ;;  %v8439_v29 = vld [vmem:[%s9798_s8 + $0x3b8] sm:$0xf0] }
 0x3c3   : > { %v1842_v36 = vpop.f32.mrf.mxu0 }
 0x3c4   : > { %v2827_v41 = vadd.f32 %v2826_v12, %v2498_v61  ;;  %v1843_v61 = vadd.f32 %v1842_v36, %v9999_v19 }
 0x3c5   : > { %v2176_v6 = vpop.f32.mrf.mxu1  ;;  %8917 = vmatmul.msk.bf16.gmra.mxu3 %vm1370_vm1, %v11069_v28 }
 0x3c6   : > { %1881 = vmatmul.bf16.gmra.mxu0 %v11066_v27  ;;  %v7240_v63 = vpack.c.bf16 %v2827_v41, %v2169_v2  ;;  %2539 = vmatmul.bf16.gmra.mxu2 %v11066_v27  ;;  %v2172_v8 = vadd.f32 %v2171_v34, %v1843_v61  ;;  %v11089_v27 = vor.u32 %v9432_v21, %v8439_v29  ;;  %v8437_v21 = vld [vmem:[%s9798_s8 + $0x3b0] sm:$0xf]  ;;  %v9433_v29 = vld [vmem:[%s9798_s8 + $0x3b4] sm:$0xf0] }
 0x3c8   : > { %8853 = vmatmul.msk.bf16.gmra.mxu1 %vm1370_vm1, %v11069_v28  ;;  %7752 = vst [vmem:[%s10018_s5 + $0xc20] sm:$0xff] %v7240_v63  ;;  %v2834_v12 = vpop.f32.mrf.mxu3  ;;  %v11086_v63 = vor.u32 %v9431_v15, %v8429_v42 }
 0x3c9   : > { %v2500_v35 = vpop.f32.mrf.mxu2  ;;  %14291 = vst [vmem:[#allocation88_spill] sm:$0xff] %v11089_v27 }
 0x3ca   : > { %v2501_v51 = vadd.f32 %v2500_v35, %v10003_v22  ;;  %14290 = vst [vmem:[#allocation87_spill] sm:$0xff] %v11086_v63 }
 0x3cb   : > { %v1844_v10 = vpop.f32.mrf.mxu0 }
 0x3cc   : > { %v2830_v7 = vadd.f32 %v2829_v11, %v2501_v51  ;;  %v1845_v2 = vadd.f32 %v1844_v10, %v9999_v19 }
 0x3cd   : > { %v2178_v39 = vpop.f32.mrf.mxu1 }
 0x3ce   : > { %v7244_v55 = vpack.c.bf16 %v2830_v7, %v2172_v8  ;;  %v2174_v34 = vadd.f32 %v2173_v30, %v1845_v2  ;;  %v9434_v2 = vld [vmem:[%s9798_s8 + $0x3c4] sm:$0xf] }
 0x3d0   : > { %7756 = vst [vmem:[%s10018_s5 + $0xc40] sm:$0xff] %v7244_v55  ;;  %v2836_v36 = vpop.f32.mrf.mxu3 }
 0x3d1   : > { %v2502_v41 = vpop.f32.mrf.mxu2 }
 0x3d2   : > { %v2503_v28 = vadd.f32 %v2502_v41, %v10003_v22  ;;  %v8447_v41 = vld [vmem:[%s9798_s8 + $0x3c8] sm:$0xf0] }
 0x3d3   : > { %v1847_v35 = vpop.f32.mrf.mxu0 }
 0x3d4   : > { %v2832_v11 = vadd.f32 %v2831_v48, %v2503_v28  ;;  %v1848_v28 = vadd.f32 %v1847_v35, %v9999_v19 }
 0x3d5   : > { %v2181_v61 = vpop.f32.mrf.mxu1  ;;  %8918 = vmatmul.msk.bf16.gmra.mxu3 %vm1370_vm1, %v11089_v27 }
 0x3d6   : > { %1886 = vmatmul.bf16.gmra.mxu0 %v11086_v63  ;;  %v7248_v51 = vpack.c.bf16 %v2832_v11, %v2174_v34  ;;  %2544 = vmatmul.bf16.gmra.mxu2 %v11086_v63  ;;  %v2177_v7 = vadd.f32 %v2176_v6, %v1848_v28  ;;  %v11109_v63 = vor.u32 %v9434_v2, %v8447_v41  ;;  %v8445_v2 = vld [vmem:[%s9798_s8 + $0x3c0] sm:$0xf]  ;;  %v9435_v41 = vld [vmem:[%s9798_s8 + $0x3c4] sm:$0xf0] }
 0x3d8   : > { %8854 = vmatmul.msk.bf16.gmra.mxu1 %vm1370_vm1, %v11089_v27  ;;  %7760 = vst [vmem:[%s10018_s5 + $0xc60] sm:$0xff] %v7248_v51  ;;  %v2839_v48 = vpop.f32.mrf.mxu3  ;;  %v11106_v51 = vor.u32 %v9433_v29, %v8437_v21 }
 0x3d9   : > { %v2505_v30 = vpop.f32.mrf.mxu2  ;;  %14293 = vst [vmem:[#allocation90_spill] sm:$0xff] %v11109_v63 }
 0x3da   : > { %v2506_v10 = vadd.f32 %v2505_v30, %v10003_v22  ;;  %14292 = vst [vmem:[#allocation89_spill] sm:$0xff] %v11106_v51 }
 0x3db   : > { %v1849_v8 = vpop.f32.mrf.mxu0 }
 0x3dc   : > { %v2835_v55 = vadd.f32 %v2834_v12, %v2506_v10  ;;  %v1850_v34 = vadd.f32 %v1849_v8, %v9999_v19 }
 0x3dd   : > { %v2183_v42 = vpop.f32.mrf.mxu1 }
 0x3de   : > { %v7252_v15 = vpack.c.bf16 %v2835_v55, %v2177_v7  ;;  %v2179_v6 = vadd.f32 %v2178_v39, %v1850_v34  ;;  %v9436_v34 = vld [vmem:[%s9798_s8 + $0x3d4] sm:$0xf] }
 0x3e0   : > { %7764 = vst [vmem:[%s10018_s5 + $0xc80] sm:$0xff] %v7252_v15  ;;  %v2841_v35 = vpop.f32.mrf.mxu3 }
 0x3e1   : > { %v2507_v11 = vpop.f32.mrf.mxu2 }
 0x3e2   : > { %v2508_v27 = vadd.f32 %v2507_v11, %v10003_v22  ;;  %v8455_v11 = vld [vmem:[%s9798_s8 + $0x3d8] sm:$0xf0] }
 0x3e3   : > { %v1852_v30 = vpop.f32.mrf.mxu0 }
 0x3e4   : > { %v2837_v12 = vadd.f32 %v2836_v36, %v2508_v27  ;;  %v1853_v27 = vadd.f32 %v1852_v30, %v9999_v19 }
 0x3e5   : > { %v2186_v28 = vpop.f32.mrf.mxu1  ;;  %8919 = vmatmul.msk.bf16.gmra.mxu3 %vm1370_vm1, %v11109_v63 }
 0x3e6   : > { %1891 = vmatmul.bf16.gmra.mxu0 %v11106_v51  ;;  %v7256_v10 = vpack.c.bf16 %v2837_v12, %v2179_v6  ;;  %2549 = vmatmul.bf16.gmra.mxu2 %v11106_v51  ;;  %v2182_v55 = vadd.f32 %v2181_v61, %v1853_v27  ;;  %v11129_v51 = vor.u32 %v9436_v34, %v8455_v11  ;;  %v8453_v34 = vld [vmem:[%s9798_s8 + $0x3d0] sm:$0xf]  ;;  %v9437_v11 = vld [vmem:[%s9798_s8 + $0x3d4] sm:$0xf0] }
 0x3e8   : > { %8855 = vmatmul.msk.bf16.gmra.mxu1 %vm1370_vm1, %v11109_v63  ;;  %7768 = vst [vmem:[%s10018_s5 + $0xca0] sm:$0xff] %v7256_v10  ;;  %v2844_v36 = vpop.f32.mrf.mxu3  ;;  %v11126_v10 = vor.u32 %v9435_v41, %v8445_v2 }
 0x3e9   : > { %v2510_v39 = vpop.f32.mrf.mxu2  ;;  %14295 = vst [vmem:[#allocation92_spill] sm:$0xff] %v11129_v51 }
 0x3ea   : > { %v2511_v8 = vadd.f32 %v2510_v39, %v10003_v22  ;;  %14294 = vst [vmem:[#allocation91_spill] sm:$0xff] %v11126_v10 }
 0x3eb   : > { %v1854_v7 = vpop.f32.mrf.mxu0 }
 0x3ec   : > { %v2840_v15 = vadd.f32 %v2839_v48, %v2511_v8  ;;  %v1855_v6 = vadd.f32 %v1854_v7, %v9999_v19 }
 0x3ed   : > { %v2188_v21 = vpop.f32.mrf.mxu1 }
 0x3ee   : > { %v7260_v29 = vpack.c.bf16 %v2840_v15, %v2182_v55  ;;  %v2184_v61 = vadd.f32 %v2183_v42, %v1855_v6  ;;  %v9438_v6 = vld [vmem:[%s9798_s8 + $0x3e4] sm:$0xf] }
 0x3f0   : > { %7772 = vst [vmem:[%s10018_s5 + $0xcc0] sm:$0xff] %v7260_v29  ;;  %v2846_v30 = vpop.f32.mrf.mxu3 }
 0x3f1   : > { %v2512_v12 = vpop.f32.mrf.mxu2 }
 0x3f2   : > { %v2513_v63 = vadd.f32 %v2512_v12, %v10003_v22  ;;  %v8463_v12 = vld [vmem:[%s9798_s8 + $0x3e8] sm:$0xf0] }
 0x3f3   : > { %v1857_v39 = vpop.f32.mrf.mxu0 }
 0x3f4   : > { %v2842_v48 = vadd.f32 %v2841_v35, %v2513_v63  ;;  %v1858_v63 = vadd.f32 %v1857_v39, %v9999_v19 }
 0x3f5   : > { %v2191_v27 = vpop.f32.mrf.mxu1  ;;  %8920 = vmatmul.msk.bf16.gmra.mxu3 %vm1370_vm1, %v11129_v51 }
 0x3f6   : > { %1896 = vmatmul.bf16.gmra.mxu0 %v11126_v10  ;;  %v7264_v8 = vpack.c.bf16 %v2842_v48, %v2184_v61  ;;  %2554 = vmatmul.bf16.gmra.mxu2 %v11126_v10  ;;  %v2187_v15 = vadd.f32 %v2186_v28, %v1858_v63  ;;  %v11149_v10 = vor.u32 %v9438_v6, %v8463_v12  ;;  %v8461_v6 = vld [vmem:[%s9798_s8 + $0x3e0] sm:$0xf]  ;;  %v9439_v12 = vld [vmem:[%s9798_s8 + $0x3e4] sm:$0xf0] }
 0x3f8   : > { %8856 = vmatmul.msk.bf16.gmra.mxu1 %vm1370_vm1, %v11129_v51  ;;  %7776 = vst [vmem:[%s10018_s5 + $0xce0] sm:$0xff] %v7264_v8  ;;  %v2849_v35 = vpop.f32.mrf.mxu3  ;;  %v11146_v8 = vor.u32 %v9437_v11, %v8453_v34 }
 0x3f9   : > { %v2515_v42 = vpop.f32.mrf.mxu2  ;;  %14297 = vst [vmem:[#allocation94_spill] sm:$0xff] %v11149_v10 }
 0x3fa   : > { %v2516_v7 = vadd.f32 %v2515_v42, %v10003_v22  ;;  %14296 = vst [vmem:[#allocation93_spill] sm:$0xff] %v11146_v8 }
 0x3fb   : > { %v1859_v55 = vpop.f32.mrf.mxu0 }
 0x3fc   : > { %v2845_v29 = vadd.f32 %v2844_v36, %v2516_v7  ;;  %v1860_v61 = vadd.f32 %v1859_v55, %v9999_v19 }
 0x3fd   : > { %v2193_v2 = vpop.f32.mrf.mxu1 }
 0x3fe   : > { %v7268_v41 = vpack.c.bf16 %v2845_v29, %v2187_v15  ;;  %v2189_v28 = vadd.f32 %v2188_v21, %v1860_v61  ;;  %v9440_v61 = vld [vmem:[%s9798_s8 + $0x3f4] sm:$0xf] }
 0x400   : > { %7780 = vst [vmem:[%s10018_s5 + $0xd00] sm:$0xff] %v7268_v41  ;;  %v2851_v39 = vpop.f32.mrf.mxu3 }
 0x401   : > { %v2517_v48 = vpop.f32.mrf.mxu2 }
 0x402   : > { %v2518_v51 = vadd.f32 %v2517_v48, %v10003_v22  ;;  %v8471_v48 = vld [vmem:[%s9798_s8 + $0x3f8] sm:$0xf0] }
 0x403   : > { %v1862_v42 = vpop.f32.mrf.mxu0 }
 0x404   : > { %v2847_v36 = vadd.f32 %v2846_v30, %v2518_v51  ;;  %v1863_v51 = vadd.f32 %v1862_v42, %v9999_v19 }
 0x405   : > { %v2196_v63 = vpop.f32.mrf.mxu1  ;;  %8921 = vmatmul.msk.bf16.gmra.mxu3 %vm1370_vm1, %v11149_v10 }
 0x406   : > { %1901 = vmatmul.bf16.gmra.mxu0 %v11146_v8  ;;  %v7272_v7 = vpack.c.bf16 %v2847_v36, %v2189_v28  ;;  %2559 = vmatmul.bf16.gmra.mxu2 %v11146_v8  ;;  %v2192_v29 = vadd.f32 %v2191_v27, %v1863_v51  ;;  %v11169_v8 = vor.u32 %v9440_v61, %v8471_v48 }
 0x408   : > { %8857 = vmatmul.msk.bf16.gmra.mxu1 %vm1370_vm1, %v11149_v10  ;;  %7784 = vst [vmem:[%s10018_s5 + $0xd20] sm:$0xff] %v7272_v7  ;;  %v2854_v30 = vpop.f32.mrf.mxu3  ;;  %v11166_v7 = vor.u32 %v9439_v12, %v8461_v6  ;;  %v8783_v6 = vld [vmem:[%s13848_s1 + $0x270] sm:$0x10] }
 0x409   : > { %v2520_v21 = vpop.f32.mrf.mxu2  ;;  %14299 = vst [vmem:[#allocation96_spill] sm:$0xff] %v11169_v8 }
 0x40a   : > { %v2521_v55 = vadd.f32 %v2520_v21, %v10003_v22  ;;  %14298 = vst [vmem:[#allocation95_spill] sm:$0xff] %v11166_v7 }
 0x40b   : > { %v1864_v15 = vpop.f32.mrf.mxu0 }
 0x40c   : > { %v2850_v41 = vadd.f32 %v2849_v35, %v2521_v55  ;;  %v1865_v28 = vadd.f32 %v1864_v15, %v9999_v19 }
 0x40d   : > { %v2198_v34 = vpop.f32.mrf.mxu1 }
 0x40e   : > { %v7276_v11 = vpack.c.bf16 %v2850_v41, %v2192_v29  ;;  %v2194_v27 = vadd.f32 %v2193_v2, %v1865_v28  ;;  %v8781_v2 = vld [vmem:[%s13848_s1 + $0x250] sm:$0xf] }
 0x410   : > { %7788 = vst [vmem:[%s10018_s5 + $0xd40] sm:$0xff] %v7276_v11  ;;  %v2856_v42 = vpop.f32.mrf.mxu3  ;;  %v9516_v11 = vld [vmem:[%s13848_s1 + $0x254] sm:$0xf] }
 0x411   : > { %v2522_v36 = vpop.f32.mrf.mxu2  ;;  %v8786_v48 = vor.u32 %v9516_v11, %v8783_v6  ;;  %v9500_v6 = vld [vmem:[%s13848_s1 + $0x1d4] sm:$0xf] }
 0x412   : > { %v2523_v10 = vadd.f32 %v2522_v36, %v10003_v22 }
 0x413   : > { %v1867_v21 = vpop.f32.mrf.mxu0 }
 0x414   : > { %v2852_v35 = vadd.f32 %v2851_v39, %v2523_v10  ;;  %v1868_v15 = vadd.f32 %v1867_v21, %v9999_v19  ;;  %v9520_v10 = vld [vmem:[%s13848_s1 + $0x26c] sm:$0x10] }
 0x415   : > { %v2201_v51 = vpop.f32.mrf.mxu1  ;;  %8922 = vmatmul.msk.bf16.gmra.mxu3 %vm1370_vm1, %v11169_v8  ;;  %v8782_v41 = vor.u32 %v9520_v10, %v8781_v2  ;;  %v8469_v2 = vld [vmem:[%s9798_s8 + $0x3f0] sm:$0xf]  ;;  %v9441_v10 = vld [vmem:[%s9798_s8 + $0x3f4] sm:$0xf0] }
 0x416   : > { %1906 = vmatmul.bf16.gmra.mxu0 %v11166_v7  ;;  %v7280_v55 = vpack.c.bf16 %v2852_v35, %v2194_v27  ;;  %2564 = vmatmul.bf16.gmra.mxu2 %v11166_v7  ;;  %v2197_v36 = vadd.f32 %v2196_v63, %v1868_v15  ;;  %v1580_v35 = vsel %vm1563_vm0, %v8786_v48, 0  ;;  %v9504_v63 = vld [vmem:[%s13848_s1 + $0x1ec] sm:$0xf0]  ;;  %v11204_v15 = vor.u32 %v9441_v10, %v8469_v2 }
 0x417   : > { %v1577_v28 = vsel %vm1563_vm0, %v8782_v41, 0  ;;  %5213 = vmatpush.bf16.msra.mxu2 %v1580_v35 }
 0x418   : > { %8858 = vmatmul.msk.bf16.gmra.mxu1 %vm1370_vm1, %v11169_v8  ;;  %7792 = vst [vmem:[%s10018_s5 + $0xd60] sm:$0xff] %v7280_v55  ;;  %v2859_v29 = vpop.f32.mrf.mxu3  ;;  %4555 = vmatpush.bf16.msra.mxu3 %v1577_v28 }
 0x419   : > { %v2525_v39 = vpop.f32.mrf.mxu2  ;;  %14300 = vst [vmem:[#allocation97_spill] sm:$0xff] %v11204_v15 }
 0x41a   : > { %v2526_v12 = vadd.f32 %v2525_v39, %v10003_v22  ;;  %v8717_v39 = vld [vmem:[%s13848_s1 + $0x1d0] sm:$0xf] }
 0x41b   : > { %v1869_v61 = vpop.f32.mrf.mxu0  ;;  %v8718_v11 = vor.u32 %v9504_v63, %v8717_v39 }
 0x41c   : > { %v2855_v21 = vadd.f32 %v2854_v30, %v2526_v12  ;;  %v1870_v8 = vadd.f32 %v1869_v61, %v9999_v19  ;;  %v8719_v12 = vld [vmem:[%s13848_s1 + $0x1f0] sm:$0xf0] }
 0x41d   : > { %v2203_v27 = vpop.f32.mrf.mxu1  ;;  %v8722_v28 = vor.u32 %v9500_v6, %v8719_v12  ;;  %4220 = vmatpush.bf16.msra.mxu1 %v8718_v11 }
 0x41e   : > { %v7284_v55 = vpack.c.bf16 %v2855_v21, %v2197_v36  ;;  %v2199_v36 = vadd.f32 %v2198_v34, %v1870_v8 }
 0x41f   : > { %4878 = vmatpush.bf16.msra.mxu0 %v8722_v28 }
 0x420   : > { %7796 = vst [vmem:[%s10018_s5 + $0xd80] sm:$0xff] %v7284_v55  ;;  %v2861_v41 = vpop.f32.mrf.mxu3 }
 0x421   : > { %v2527_v30 = vpop.f32.mrf.mxu2 }
 0x422   : > { %v2528_v61 = vadd.f32 %v2527_v30, %v10003_v22 }
 0x423   : > { %v1872_v48 = vpop.f32.mrf.mxu0 }
 0x424   : > { %v2857_v21 = vadd.f32 %v2856_v42, %v2528_v61  ;;  %v1873_v2 = vadd.f32 %v1872_v48, %v9999_v19 }
 0x425   : > { %v2206_v35 = vpop.f32.mrf.mxu1  ;;  %8923 = vmatmul.msk.bf16.vlgmr.msrb.gmra.mxu3 %vm1370_vm1, %v9814_v53 }
 0x426   : > { %1911 = vmatmul.bf16.gmra.mxu0 %v11204_v15  ;;  %v7288_v55 = vpack.c.bf16 %v2857_v21, %v2199_v36  ;;  %2569 = vmatmul.bf16.gmra.mxu2 %v11204_v15  ;;  %v2202_v42 = vadd.f32 %v2201_v51, %v1873_v2 }
 0x428   : > { %2912 = vmatmul.bf16.vlgmr.msrb.gmra.mxu1 %v9867_v18  ;;  %7800 = vst [vmem:[%s10018_s5 + $0xda0] sm:$0xff] %v7288_v55  ;;  %v2864_v39 = vpop.f32.mrf.mxu3 }
 0x429   : > { %v2530_v10 = vpop.f32.mrf.mxu2 }
 0x42a   : > { %v2531_v8 = vadd.f32 %v2530_v10, %v10003_v22 }
 0x42b   : > { %v1874_v34 = vpop.f32.mrf.mxu0 }
 0x42c   : > { %v2860_v63 = vadd.f32 %v2859_v29, %v2531_v8  ;;  %v1875_v6 = vadd.f32 %v1874_v34, %v9999_v19 }
 0x42d   : > { %v2208_v30 = vpop.f32.mrf.mxu1 }
 0x42e   : > { %v7292_v11 = vpack.c.bf16 %v2860_v63, %v2202_v42  ;;  %v2204_v21 = vadd.f32 %v2203_v27, %v1875_v6 }
 0x430   : > { %7804 = vst [vmem:[%s10018_s5 + $0xdc0] sm:$0xff] %v7292_v11  ;;  %v2866_v61 = vpop.f32.mrf.mxu3 }
 0x431   : > { %v2532_v12 = vpop.f32.mrf.mxu2 }
 0x432   : > { %v2533_v28 = vadd.f32 %v2532_v12, %v10003_v22 }
 0x433   : > { %v1877_v36 = vpop.f32.mrf.mxu0 }
 0x434   : > { %v2862_v48 = vadd.f32 %v2861_v41, %v2533_v28  ;;  %v1878_v51 = vadd.f32 %v1877_v36, %v9999_v19 }
 0x435   : > { %v2211_v55 = vpop.f32.mrf.mxu1  ;;  %8924 = vmatmul.msk.bf16.gmra.mxu3 %vm1370_vm1, %v9870_v20 }
 0x436   : > { %3570 = vmatmul.bf16.vlgmr.msrb.gmra.mxu0 %v9867_v18  ;;  %v7296_v10 = vpack.c.bf16 %v2862_v48, %v2204_v21  ;;  %8987 = vmatmul.msk.bf16.vlgmr.msrb.gmra.mxu2 %vm1370_vm1, %v9814_v53  ;;  %v2207_v8 = vadd.f32 %v2206_v35, %v1878_v51 }
 0x438   : > { %2917 = vmatmul.bf16.gmra.mxu1 %v9882_v25  ;;  %7808 = vst [vmem:[%s10018_s5 + $0xde0] sm:$0xff] %v7296_v10  ;;  %v2869_v2 = vpop.f32.mrf.mxu3 }
 0x439   : > { %v2535_v29 = vpop.f32.mrf.mxu2 }
 0x43a   : > { %v2536_v27 = vadd.f32 %v2535_v29, %v10003_v22 }
 0x43b   : > { %v1879_v41 = vpop.f32.mrf.mxu0 }
 0x43c   : > { %v2865_v34 = vadd.f32 %v2864_v39, %v2536_v27  ;;  %v1880_v11 = vadd.f32 %v1879_v41, %v9999_v19 }
 0x43d   : > { %v2213_v42 = vpop.f32.mrf.mxu1 }
 0x43e   : > { %v7300_v63 = vpack.c.bf16 %v2865_v34, %v2207_v8  ;;  %v2209_v48 = vadd.f32 %v2208_v30, %v1880_v11 }
 0x440   : > { %7812 = vst [vmem:[%s10018_s5 + $0xe00] sm:$0xff] %v7300_v63  ;;  %v2871_v12 = vpop.f32.mrf.mxu3 }
 0x441   : > { %v2537_v6 = vpop.f32.mrf.mxu2 }
 0x442   : > { %v2538_v28 = vadd.f32 %v2537_v6, %v10003_v22 }
 0x443   : > { %v1882_v21 = vpop.f32.mrf.mxu0 }
 0x444   : > { %v2867_v36 = vadd.f32 %v2866_v61, %v2538_v28  ;;  %v1883_v35 = vadd.f32 %v1882_v21, %v9999_v19 }
 0x445   : > { %v2216_v10 = vpop.f32.mrf.mxu1  ;;  %8925 = vmatmul.msk.bf16.gmra.mxu3 %vm1370_vm1, %v9884_v26 }
 0x446   : > { %3575 = vmatmul.bf16.gmra.mxu0 %v9882_v25  ;;  %v7304_v29 = vpack.c.bf16 %v2867_v36, %v2209_v48  ;;  %8988 = vmatmul.msk.bf16.gmra.mxu2 %vm1370_vm1, %v9870_v20  ;;  %v2212_v27 = vadd.f32 %v2211_v55, %v1883_v35 }
 0x448   : > { %2922 = vmatmul.bf16.gmra.mxu1 %v9896_v31  ;;  %7816 = vst [vmem:[%s10018_s5 + $0xe20] sm:$0xff] %v7304_v29  ;;  %v2874_v51 = vpop.f32.mrf.mxu3 }
 0x449   : > { %v2540_v39 = vpop.f32.mrf.mxu2 }
 0x44a   : > { %v2541_v30 = vadd.f32 %v2540_v39, %v10003_v22 }
 0x44b   : > { %v1884_v61 = vpop.f32.mrf.mxu0 }
 0x44c   : > { %v2870_v41 = vadd.f32 %v2869_v2, %v2541_v30  ;;  %v1885_v63 = vadd.f32 %v1884_v61, %v9999_v19 }
 0x44d   : > { %v2218_v8 = vpop.f32.mrf.mxu1 }
 0x44e   : > { %v7308_v34 = vpack.c.bf16 %v2870_v41, %v2212_v27  ;;  %v2214_v36 = vadd.f32 %v2213_v42, %v1885_v63 }
 0x450   : > { %7820 = vst [vmem:[%s10018_s5 + $0xe40] sm:$0xff] %v7308_v34  ;;  %v2876_v6 = vpop.f32.mrf.mxu3 }
 0x451   : > { %v2542_v11 = vpop.f32.mrf.mxu2 }
 0x452   : > { %v2543_v28 = vadd.f32 %v2542_v11, %v10003_v22 }
 0x453   : > { %v1887_v48 = vpop.f32.mrf.mxu0 }
 0x454   : > { %v2872_v21 = vadd.f32 %v2871_v12, %v2543_v28  ;;  %v1888_v55 = vadd.f32 %v1887_v48, %v9999_v19 }
 0x455   : > { %v2221_v29 = vpop.f32.mrf.mxu1  ;;  %8926 = vmatmul.msk.bf16.gmra.mxu3 %vm1370_vm1, %v9898_v32 }
 0x456   : > { %3580 = vmatmul.bf16.gmra.mxu0 %v9896_v31  ;;  %v7312_v39 = vpack.c.bf16 %v2872_v21, %v2214_v36  ;;  %8989 = vmatmul.msk.bf16.gmra.mxu2 %vm1370_vm1, %v9884_v26  ;;  %v2217_v30 = vadd.f32 %v2216_v10, %v1888_v55 }
 0x458   : > { %2927 = vmatmul.bf16.gmra.mxu1 %v9910_v37  ;;  %7824 = vst [vmem:[%s10018_s5 + $0xe60] sm:$0xff] %v7312_v39  ;;  %v2879_v35 = vpop.f32.mrf.mxu3 }
 0x459   : > { %v2545_v2 = vpop.f32.mrf.mxu2 }
 0x45a   : > { %v2546_v42 = vadd.f32 %v2545_v2, %v10003_v22 }
 0x45b   : > { %v1889_v12 = vpop.f32.mrf.mxu0 }
 0x45c   : > { %v2875_v61 = vadd.f32 %v2874_v51, %v2546_v42  ;;  %v1890_v34 = vadd.f32 %v1889_v12, %v9999_v19 }
 0x45d   : > { %v2223_v27 = vpop.f32.mrf.mxu1 }
 0x45e   : > { %v7316_v41 = vpack.c.bf16 %v2875_v61, %v2217_v30  ;;  %v2219_v21 = vadd.f32 %v2218_v8, %v1890_v34 }
 0x460   : > { %7828 = vst [vmem:[%s10018_s5 + $0xe80] sm:$0xff] %v7316_v41  ;;  %v2881_v11 = vpop.f32.mrf.mxu3 }
 0x461   : > { %v2547_v63 = vpop.f32.mrf.mxu2 }
 0x462   : > { %v2548_v28 = vadd.f32 %v2547_v63, %v10003_v22 }
 0x463   : > { %v1892_v36 = vpop.f32.mrf.mxu0 }
 0x464   : > { %v2877_v48 = vadd.f32 %v2876_v6, %v2548_v28  ;;  %v1893_v10 = vadd.f32 %v1892_v36, %v9999_v19 }
 0x465   : > { %v2226_v39 = vpop.f32.mrf.mxu1  ;;  %8927 = vmatmul.msk.bf16.gmra.mxu3 %vm1370_vm1, %v9912_v38 }
 0x466   : > { %3585 = vmatmul.bf16.gmra.mxu0 %v9910_v37  ;;  %v7320_v2 = vpack.c.bf16 %v2877_v48, %v2219_v21  ;;  %8990 = vmatmul.msk.bf16.gmra.mxu2 %vm1370_vm1, %v9898_v32  ;;  %v2222_v42 = vadd.f32 %v2221_v29, %v1893_v10 }
 0x468   : > { %2932 = vmatmul.bf16.gmra.mxu1 %v9924_v43  ;;  %7832 = vst [vmem:[%s10018_s5 + $0xea0] sm:$0xff] %v7320_v2  ;;  %v2884_v55 = vpop.f32.mrf.mxu3 }
 0x469   : > { %v2550_v51 = vpop.f32.mrf.mxu2 }
 0x46a   : > { %v2551_v8 = vadd.f32 %v2550_v51, %v10003_v22 }
 0x46b   : > { %v1894_v6 = vpop.f32.mrf.mxu0 }
 0x46c   : > { %v2880_v12 = vadd.f32 %v2879_v35, %v2551_v8  ;;  %v1895_v41 = vadd.f32 %v1894_v6, %v9999_v19 }
 0x46d   : > { %v2228_v30 = vpop.f32.mrf.mxu1 }
 0x46e   : > { %v7324_v61 = vpack.c.bf16 %v2880_v12, %v2222_v42  ;;  %v2224_v48 = vadd.f32 %v2223_v27, %v1895_v41 }
 0x470   : > { %7836 = vst [vmem:[%s10018_s5 + $0xec0] sm:$0xff] %v7324_v61  ;;  %v2886_v63 = vpop.f32.mrf.mxu3 }
 0x471   : > { %v2552_v34 = vpop.f32.mrf.mxu2 }
 0x472   : > { %v2553_v28 = vadd.f32 %v2552_v34, %v10003_v22 }
 0x473   : > { %v1897_v21 = vpop.f32.mrf.mxu0 }
 0x474   : > { %v2882_v36 = vadd.f32 %v2881_v11, %v2553_v28  ;;  %v1898_v29 = vadd.f32 %v1897_v21, %v9999_v19 }
 0x475   : > { %v2231_v2 = vpop.f32.mrf.mxu1  ;;  %8928 = vmatmul.msk.bf16.gmra.mxu3 %vm1370_vm1, %v9926_v44 }
 0x476   : > { %3590 = vmatmul.bf16.gmra.mxu0 %v9924_v43  ;;  %v7328_v51 = vpack.c.bf16 %v2882_v36, %v2224_v48  ;;  %8991 = vmatmul.msk.bf16.gmra.mxu2 %vm1370_vm1, %v9912_v38  ;;  %v2227_v8 = vadd.f32 %v2226_v39, %v1898_v29 }
 0x478   : > { %2937 = vmatmul.bf16.gmra.mxu1 %v9938_v49  ;;  %7840 = vst [vmem:[%s10018_s5 + $0xee0] sm:$0xff] %v7328_v51  ;;  %v2889_v10 = vpop.f32.mrf.mxu3 }
 0x479   : > { %v2555_v35 = vpop.f32.mrf.mxu2 }
 0x47a   : > { %v2556_v27 = vadd.f32 %v2555_v35, %v10003_v22 }
 0x47b   : > { %v1899_v11 = vpop.f32.mrf.mxu0 }
 0x47c   : > { %v2885_v6 = vadd.f32 %v2884_v55, %v2556_v27  ;;  %v1900_v61 = vadd.f32 %v1899_v11, %v9999_v19 }
 0x47d   : > { %v2233_v42 = vpop.f32.mrf.mxu1 }
 0x47e   : > { %v7332_v12 = vpack.c.bf16 %v2885_v6, %v2227_v8  ;;  %v2229_v36 = vadd.f32 %v2228_v30, %v1900_v61 }
 0x480   : > { %7844 = vst [vmem:[%s10018_s5 + $0xf00] sm:$0xff] %v7332_v12  ;;  %v2891_v34 = vpop.f32.mrf.mxu3 }
 0x481   : > { %v2557_v41 = vpop.f32.mrf.mxu2 }
 0x482   : > { %v2558_v28 = vadd.f32 %v2557_v41, %v10003_v22 }
 0x483   : > { %v1902_v48 = vpop.f32.mrf.mxu0 }
 0x484   : > { %v2887_v21 = vadd.f32 %v2886_v63, %v2558_v28  ;;  %v1903_v39 = vadd.f32 %v1902_v48, %v9999_v19 }
 0x485   : > { %v2236_v51 = vpop.f32.mrf.mxu1  ;;  %8929 = vmatmul.msk.bf16.gmra.mxu3 %vm1370_vm1, %v9940_v50 }
 0x486   : > { %3595 = vmatmul.bf16.gmra.mxu0 %v9938_v49  ;;  %v7336_v35 = vpack.c.bf16 %v2887_v21, %v2229_v36  ;;  %8992 = vmatmul.msk.bf16.gmra.mxu2 %vm1370_vm1, %v9926_v44  ;;  %v2232_v27 = vadd.f32 %v2231_v2, %v1903_v39 }
 0x488   : > { %2942 = vmatmul.bf16.gmra.mxu1 %v9952_v56  ;;  %7848 = vst [vmem:[%s10018_s5 + $0xf20] sm:$0xff] %v7336_v35  ;;  %v2894_v29 = vpop.f32.mrf.mxu3 }
 0x489   : > { %v2560_v55 = vpop.f32.mrf.mxu2 }
 0x48a   : > { %v2561_v30 = vadd.f32 %v2560_v55, %v10003_v22 }
 0x48b   : > { %v1904_v63 = vpop.f32.mrf.mxu0 }
 0x48c   : > { %v2890_v11 = vadd.f32 %v2889_v10, %v2561_v30  ;;  %v1905_v12 = vadd.f32 %v1904_v63, %v9999_v19 }
 0x48d   : > { %v2238_v8 = vpop.f32.mrf.mxu1 }
 0x48e   : > { %v7340_v6 = vpack.c.bf16 %v2890_v11, %v2232_v27  ;;  %v2234_v21 = vadd.f32 %v2233_v42, %v1905_v12  ;;  %v9496_v12 = vld [vmem:[%s13848_s1 + $0x1ac] sm:$0xf0] }
 0x490   : > { %7852 = vst [vmem:[%s10018_s5 + $0xf40] sm:$0xff] %v7340_v6  ;;  %v2896_v41 = vpop.f32.mrf.mxu3  ;;  %v8685_v6 = vld [vmem:[%s13848_s1 + $0x190] sm:$0xf] }
 0x491   : > { %v2562_v61 = vpop.f32.mrf.mxu2 }
 0x492   : > { %v2563_v28 = vadd.f32 %v2562_v61, %v10003_v22  ;;  %v9492_v61 = vld [vmem:[%s13848_s1 + $0x194] sm:$0xf] }
 0x493   : > { %v1907_v36 = vpop.f32.mrf.mxu0 }
 0x494   : > { %v2892_v48 = vadd.f32 %v2891_v34, %v2563_v28  ;;  %v1908_v2 = vadd.f32 %v1907_v36, %v9999_v19  ;;  %v8686_v28 = vor.u32 %v9496_v12, %v8685_v6 }
 0x495   : > { %v2241_v35 = vpop.f32.mrf.mxu1  ;;  %8930 = vmatmul.msk.bf16.gmra.mxu3 %vm1370_vm1, %v9954_v57 }
 0x496   : > { %3600 = vmatmul.bf16.gmra.mxu0 %v9952_v56  ;;  %v7344_v55 = vpack.c.bf16 %v2892_v48, %v2234_v21  ;;  %8993 = vmatmul.msk.bf16.gmra.mxu2 %vm1370_vm1, %v9940_v50  ;;  %v2237_v30 = vadd.f32 %v2236_v51, %v1908_v2  ;;  %v8687_v51 = vld [vmem:[%s13848_s1 + $0x1b0] sm:$0xf0] }
 0x497   : > { %v8690_v36 = vor.u32 %v9492_v61, %v8687_v51  ;;  %4221 = vmatpush.bf16.msra.mxu1 %v8686_v28 }
 0x498   : > { %2947 = vmatmul.bf16.gmra.mxu1 %v9975_v1  ;;  %7856 = vst [vmem:[%s10018_s5 + $0xf60] sm:$0xff] %v7344_v55  ;;  %v2899_v39 = vpop.f32.mrf.mxu3 }
 0x499   : > { %v2565_v10 = vpop.f32.mrf.mxu2  ;;  %4879 = vmatpush.bf16.msra.mxu0 %v8690_v36  ;;  %v9565_v36 = vld [vmem:[%s13849_s2] sm:$0xff] }
 0x49a   : > { %v2566_v42 = vadd.f32 %v2565_v10, %v10003_v22 }
 0x49b   : > { %v1909_v34 = vpop.f32.mrf.mxu0 }
 0x49c   : > { %v2895_v63 = vadd.f32 %v2894_v29, %v2566_v42  ;;  %v1910_v29 = vadd.f32 %v1909_v34, %v9999_v19 }
 0x49d   : > { %v2243_v27 = vpop.f32.mrf.mxu1 }
 0x49e   : > { %v7348_v11 = vpack.c.bf16 %v2895_v63, %v2237_v30  ;;  %v2239_v10 = vadd.f32 %v2238_v8, %v1910_v29 }
 0x4a0   : > { %7860 = vst [vmem:[%s10018_s5 + $0xf80] sm:$0xff] %v7348_v11  ;;  %v2901_v48 = vpop.f32.mrf.mxu3 }
 0x4a1   : > { %v2567_v21 = vpop.f32.mrf.mxu2 }
 0x4a2   : > { %v2568_v55 = vadd.f32 %v2567_v21, %v10003_v22  ;;  %v11334_v21 = vperm.slane %v9565_v36, 2 }
 0x4a3   : > { %v1912_v2 = vpop.f32.mrf.mxu0 }
 0x4a4   : > { %v2897_v42 = vadd.f32 %v2896_v41, %v2568_v55  ;;  %v1913_v34 = vadd.f32 %v1912_v2, %v9999_v19 }
 0x4a5   : > { %v2913_v30 = vpop.f32.mrf.mxu1  ;;  %8931 = vmatmul.msk.bf16.gmra.mxu3 %vm1370_vm1, %v9980_v4 }
 0x4a6   : > { %3605 = vmatmul.bf16.gmra.mxu0 %v9975_v1  ;;  %v7352_v63 = vpack.c.bf16 %v2897_v42, %v2239_v10  ;;  %8994 = vmatmul.msk.bf16.gmra.mxu2 %vm1370_vm1, %v9954_v57  ;;  %v2242_v12 = vadd.f32 %v2241_v35, %v1913_v34  ;;  %v11337_v42 = vperm.slane %v9565_v36, 3 }
 0x4a8   : > { %2952 = vmatmul.bf16.gmra.mxu1 %v9995_v14  ;;  %7864 = vst [vmem:[%s10018_s5 + $0xfa0] sm:$0xff] %v7352_v63  ;;  %v3242_v6 = vpop.f32.mrf.mxu3  ;;  %v2914_v63 = vadd.f32 %v2913_v30, %v11334_v21 }
 0x4a9   : > { %v2570_v11 = vpop.f32.mrf.mxu2 }
 0x4aa   : > { %v2571_v8 = vadd.f32 %v2570_v11, %v10003_v22 }
 0x4ab   : > { %v1914_v41 = vpop.f32.mrf.mxu0 }
 0x4ac   : > { %v2900_v61 = vadd.f32 %v2899_v39, %v2571_v8  ;;  %v1915_v29 = vadd.f32 %v1914_v41, %v9999_v19 }
 0x4ad   : > { %v2915_v28 = vpop.f32.mrf.mxu1 }
 0x4ae   : > { %v7356_v51 = vpack.c.bf16 %v2900_v61, %v2242_v12  ;;  %v2244_v39 = vadd.f32 %v2243_v27, %v1915_v29 }
 0x4b0   : > { %7868 = vst [vmem:[%s10018_s5 + $0xfc0] sm:$0xff] %v7356_v51  ;;  %v3244_v2 = vpop.f32.mrf.mxu3  ;;  %v2916_v51 = vadd.f32 %v2915_v28, %v11334_v21 }
 0x4b1   : > { %v2572_v55 = vpop.f32.mrf.mxu2 }
 0x4b2   : > { %v2573_v10 = vadd.f32 %v2572_v55, %v10003_v22  ;;  %v3243_v22 = vadd.f32 %v3242_v6, %v2914_v63 }
 0x4b3   : > { %v3571_v35 = vpop.f32.mrf.mxu0 }
 0x4b4   : > { %v2902_v34 = vadd.f32 %v2901_v48, %v2573_v10  ;;  %v3572_v8 = vadd.f32 %v3571_v35, %v11337_v42  ;;  %v3245_v10 = vadd.f32 %v3244_v2, %v2916_v51 }
 0x4b5   : > { %v2918_v11 = vpop.f32.mrf.mxu1  ;;  %8932 = vmatmul.msk.bf16.gmra.mxu3 %vm1370_vm1, %v9997_v17 }
 0x4b6   : > { %3610 = vmatmul.bf16.gmra.mxu0 %v9995_v14  ;;  %v7360_v19 = vpack.c.bf16 %v2902_v34, %v2244_v39  ;;  %8995 = vmatmul.msk.bf16.gmra.mxu2 %vm1370_vm1, %v9980_v4  ;;  %v2919_v34 = vadd.f32 %v2918_v11, %v11334_v21 }
 0x4b8   : > { %2957 = vmatmul.bf16.gmra.mxu1 %v10022_v46  ;;  %7872 = vst [vmem:[%s10018_s5 + $0xfe0] sm:$0xff] %v7360_v19  ;;  %v3247_v30 = vpop.f32.mrf.mxu3 }
 0x4b9   : > { %v3900_v27 = vpop.f32.mrf.mxu2  ;;  %v3248_v28 = vadd.f32 %v3247_v30, %v2919_v34 }
 0x4ba   : > { %v3901_v48 = vadd.f32 %v3900_v27, %v3572_v8 }
 0x4bb   : > { %v3573_v41 = vpop.f32.mrf.mxu0 }
 0x4bc   : > { %v6853_v12 = vpack.c.bf16 %v3901_v48, %v3243_v22  ;;  %v3574_v29 = vadd.f32 %v3573_v41, %v11337_v42 }
 0x4bd   : > { %v2920_v61 = vpop.f32.mrf.mxu1 }
 0x4be   : > { %7365 = vst [vmem:[%s10018_s5 + $0x8] sm:$0xff] %v6853_v12  ;;  %v2921_v41 = vadd.f32 %v2920_v61, %v11334_v21 }
 0x4c0   : > { %v3249_v55 = vpop.f32.mrf.mxu3 }
 0x4c1   : > { %v3902_v36 = vpop.f32.mrf.mxu2 }
 0x4c2   : > { %v3903_v35 = vadd.f32 %v3902_v36, %v3574_v29  ;;  %v3250_v36 = vadd.f32 %v3249_v55, %v2921_v41 }
 0x4c3   : > { %v3576_v39 = vpop.f32.mrf.mxu0 }
 0x4c4   : > { %v6857_v6 = vpack.c.bf16 %v3903_v35, %v3245_v10  ;;  %v3577_v19 = vadd.f32 %v3576_v39, %v11337_v42 }
 0x4c5   : > { %v2923_v63 = vpop.f32.mrf.mxu1  ;;  %8933 = vmatmul.msk.bf16.gmra.mxu3 %vm1370_vm1, %v10025_v52 }
 0x4c6   : > { %3615 = vmatmul.bf16.gmra.mxu0 %v10022_v46  ;;  %7369 = vst [vmem:[%s10018_s5 + $0x28] sm:$0xff] %v6857_v6  ;;  %8996 = vmatmul.msk.bf16.gmra.mxu2 %vm1370_vm1, %v9997_v17  ;;  %v2924_v39 = vadd.f32 %v2923_v63, %v11334_v21 }
 0x4c8   : > { %2962 = vmatmul.bf16.gmra.mxu1 %v10042_v13  ;;  %v3252_v8 = vpop.f32.mrf.mxu3 }
 0x4c9   : > { %v3905_v2 = vpop.f32.mrf.mxu2  ;;  %v3253_v61 = vadd.f32 %v3252_v8, %v2924_v39 }
 0x4ca   : > { %v3906_v11 = vadd.f32 %v3905_v2, %v3577_v19 }
 0x4cb   : > { %v3578_v22 = vpop.f32.mrf.mxu0 }
 0x4cc   : > { %v6861_v27 = vpack.c.bf16 %v3906_v11, %v3248_v28  ;;  %v3579_v12 = vadd.f32 %v3578_v22, %v11337_v42 }
 0x4cd   : > { %v2925_v48 = vpop.f32.mrf.mxu1 }
 0x4ce   : > { %7373 = vst [vmem:[%s10018_s5 + $0x48] sm:$0xff] %v6861_v27  ;;  %v2926_v22 = vadd.f32 %v2925_v48, %v11334_v21 }
 0x4d0   : > { %v3254_v29 = vpop.f32.mrf.mxu3 }
 0x4d1   : > { %v3907_v51 = vpop.f32.mrf.mxu2 }
 0x4d2   : > { %v3908_v10 = vadd.f32 %v3907_v51, %v3579_v12  ;;  %v3255_v51 = vadd.f32 %v3254_v29, %v2926_v22 }
 0x4d3   : > { %v3581_v35 = vpop.f32.mrf.mxu0 }
 0x4d4   : > { %v6865_v30 = vpack.c.bf16 %v3908_v10, %v3250_v36  ;;  %v3582_v6 = vadd.f32 %v3581_v35, %v11337_v42 }
 0x4d5   : > { %v2928_v34 = vpop.f32.mrf.mxu1  ;;  %8934 = vmatmul.msk.bf16.gmra.mxu3 %vm1370_vm1, %v10045_v24 }
 0x4d6   : > { %3620 = vmatmul.bf16.gmra.mxu0 %v10042_v13  ;;  %7377 = vst [vmem:[%s10018_s5 + $0x68] sm:$0xff] %v6865_v30  ;;  %8997 = vmatmul.msk.bf16.gmra.mxu2 %vm1370_vm1, %v10025_v52  ;;  %v2929_v35 = vadd.f32 %v2928_v34, %v11334_v21 }
 0x4d8   : > { %2967 = vmatmul.bf16.gmra.mxu1 %v10062_v59  ;;  %v3257_v19 = vpop.f32.mrf.mxu3 }
 0x4d9   : > { %v3910_v55 = vpop.f32.mrf.mxu2  ;;  %v3258_v48 = vadd.f32 %v3257_v19, %v2929_v35 }
 0x4da   : > { %v3911_v63 = vadd.f32 %v3910_v55, %v3582_v6 }
 0x4db   : > { %v3583_v28 = vpop.f32.mrf.mxu0 }
 0x4dc   : > { %v6869_v2 = vpack.c.bf16 %v3911_v63, %v3253_v61  ;;  %v3584_v27 = vadd.f32 %v3583_v28, %v11337_v42 }
 0x4dd   : > { %v2930_v11 = vpop.f32.mrf.mxu1 }
 0x4de   : > { %7381 = vst [vmem:[%s10018_s5 + $0x88] sm:$0xff] %v6869_v2  ;;  %v2931_v28 = vadd.f32 %v2930_v11, %v11334_v21 }
 0x4e0   : > { %v3259_v12 = vpop.f32.mrf.mxu3 }
 0x4e1   : > { %v3912_v41 = vpop.f32.mrf.mxu2 }
 0x4e2   : > { %v3913_v36 = vadd.f32 %v3912_v41, %v3584_v27  ;;  %v3260_v41 = vadd.f32 %v3259_v12, %v2931_v28 }
 0x4e3   : > { %v3586_v10 = vpop.f32.mrf.mxu0 }
 0x4e4   : > { %v6873_v8 = vpack.c.bf16 %v3913_v36, %v3255_v51  ;;  %v3587_v30 = vadd.f32 %v3586_v10, %v11337_v42 }
 0x4e5   : > { %v2933_v39 = vpop.f32.mrf.mxu1  ;;  %8935 = vmatmul.msk.bf16.gmra.mxu3 %vm1370_vm1, %v10065_v0 }
 0x4e6   : > { %3625 = vmatmul.bf16.gmra.mxu0 %v10062_v59  ;;  %7385 = vst [vmem:[%s10018_s5 + $0xa8] sm:$0xff] %v6873_v8  ;;  %8998 = vmatmul.msk.bf16.gmra.mxu2 %vm1370_vm1, %v10045_v24  ;;  %v2934_v10 = vadd.f32 %v2933_v39, %v11334_v21 }
 0x4e8   : > { %2972 = vmatmul.bf16.gmra.mxu1 %v10082_v33  ;;  %v3262_v6 = vpop.f32.mrf.mxu3 }
 0x4e9   : > { %v3915_v29 = vpop.f32.mrf.mxu2  ;;  %v3263_v11 = vadd.f32 %v3262_v6, %v2934_v10 }
 0x4ea   : > { %v3916_v34 = vadd.f32 %v3915_v29, %v3587_v30 }
 0x4eb   : > { %v3588_v61 = vpop.f32.mrf.mxu0 }
 0x4ec   : > { %v6877_v55 = vpack.c.bf16 %v3916_v34, %v3258_v48  ;;  %v3589_v2 = vadd.f32 %v3588_v61, %v11337_v42 }
 0x4ed   : > { %v2935_v63 = vpop.f32.mrf.mxu1 }
 0x4ee   : > { %7389 = vst [vmem:[%s10018_s5 + $0xc8] sm:$0xff] %v6877_v55  ;;  %v2936_v61 = vadd.f32 %v2935_v63, %v11334_v21 }
 0x4f0   : > { %v3264_v27 = vpop.f32.mrf.mxu3 }
 0x4f1   : > { %v3917_v22 = vpop.f32.mrf.mxu2 }
 0x4f2   : > { %v3918_v51 = vadd.f32 %v3917_v22, %v3589_v2  ;;  %v3265_v22 = vadd.f32 %v3264_v27, %v2936_v61 }
 0x4f3   : > { %v3591_v36 = vpop.f32.mrf.mxu0 }
 0x4f4   : > { %v6881_v19 = vpack.c.bf16 %v3918_v51, %v3260_v41  ;;  %v3592_v8 = vadd.f32 %v3591_v36, %v11337_v42 }
 0x4f5   : > { %v2938_v35 = vpop.f32.mrf.mxu1  ;;  %8936 = vmatmul.msk.bf16.gmra.mxu3 %vm1370_vm1, %v10085_v40 }
 0x4f6   : > { %3630 = vmatmul.bf16.gmra.mxu0 %v10082_v33  ;;  %7393 = vst [vmem:[%s10018_s5 + $0xe8] sm:$0xff] %v6881_v19  ;;  %8999 = vmatmul.msk.bf16.gmra.mxu2 %vm1370_vm1, %v10065_v0  ;;  %v2939_v36 = vadd.f32 %v2938_v35, %v11334_v21 }
 0x4f8   : > { %2977 = vmatmul.bf16.gmra.mxu1 %v10102_v9  ;;  %v3267_v30 = vpop.f32.mrf.mxu3 }
 0x4f9   : > { %v3920_v12 = vpop.f32.mrf.mxu2  ;;  %v3268_v63 = vadd.f32 %v3267_v30, %v2939_v36 }
 0x4fa   : > { %v3921_v39 = vadd.f32 %v3920_v12, %v3592_v8 }
 0x4fb   : > { %v3593_v48 = vpop.f32.mrf.mxu0 }
 0x4fc   : > { %v6885_v29 = vpack.c.bf16 %v3921_v39, %v3263_v11  ;;  %v3594_v55 = vadd.f32 %v3593_v48, %v11337_v42 }
 0x4fd   : > { %v2940_v34 = vpop.f32.mrf.mxu1 }
 0x4fe   : > { %7397 = vst [vmem:[%s10018_s5 + $0x108] sm:$0xff] %v6885_v29  ;;  %v2941_v48 = vadd.f32 %v2940_v34, %v11334_v21 }
 0x500   : > { %v3269_v2 = vpop.f32.mrf.mxu3 }
 0x501   : > { %v3922_v28 = vpop.f32.mrf.mxu2 }
 0x502   : > { %v3923_v41 = vadd.f32 %v3922_v28, %v3594_v55  ;;  %v3270_v28 = vadd.f32 %v3269_v2, %v2941_v48  ;;  %v9488_v48 = vld [vmem:[%s13848_s1 + $0x16c] sm:$0xf0] }
 0x503   : > { %v3596_v51 = vpop.f32.mrf.mxu0 }
 0x504   : > { %v6889_v6 = vpack.c.bf16 %v3923_v41, %v3265_v22  ;;  %v3597_v19 = vadd.f32 %v3596_v51, %v11337_v42 }
 0x505   : > { %v2943_v10 = vpop.f32.mrf.mxu1  ;;  %8937 = vmatmul.msk.bf16.gmra.mxu3 %vm1370_vm1, %v10105_v16 }
 0x506   : > { %3635 = vmatmul.bf16.gmra.mxu0 %v10102_v9  ;;  %7401 = vst [vmem:[%s10018_s5 + $0x128] sm:$0xff] %v6889_v6  ;;  %9000 = vmatmul.msk.bf16.gmra.mxu2 %vm1370_vm1, %v10085_v40  ;;  %v2944_v51 = vadd.f32 %v2943_v10, %v11334_v21 }
 0x508   : > { %2982 = vmatmul.bf16.gmra.mxu1 %v10122_v60  ;;  %v3272_v8 = vpop.f32.mrf.mxu3 }
 0x509   : > { %v3925_v27 = vpop.f32.mrf.mxu2  ;;  %v3273_v34 = vadd.f32 %v3272_v8, %v2944_v51  ;;  %v9484_v8 = vld [vmem:[%s13848_s1 + $0x154] sm:$0xf] }
 0x50a   : > { %v3926_v35 = vadd.f32 %v3925_v27, %v3597_v19 }
 0x50b   : > { %v3598_v11 = vpop.f32.mrf.mxu0 }
 0x50c   : > { %v6893_v12 = vpack.c.bf16 %v3926_v35, %v3268_v63  ;;  %v3599_v29 = vadd.f32 %v3598_v11, %v11337_v42 }
 0x50d   : > { %v2945_v39 = vpop.f32.mrf.mxu1 }
 0x50e   : > { %7405 = vst [vmem:[%s10018_s5 + $0x148] sm:$0xff] %v6893_v12  ;;  %v2946_v11 = vadd.f32 %v2945_v39, %v11334_v21  ;;  %v8653_v12 = vld [vmem:[%s13848_s1 + $0x150] sm:$0xf] }
 0x510   : > { %v3274_v55 = vpop.f32.mrf.mxu3 }
 0x511   : > { %v3927_v61 = vpop.f32.mrf.mxu2  ;;  %v3275_v51 = vadd.f32 %v3274_v55, %v2946_v11 }
 0x512   : > { %v3928_v22 = vadd.f32 %v3927_v61, %v3599_v29  ;;  %v8654_v29 = vor.u32 %v9488_v48, %v8653_v12  ;;  %v8655_v61 = vld [vmem:[%s13848_s1 + $0x170] sm:$0xf0] }
 0x513   : > { %v3601_v41 = vpop.f32.mrf.mxu0 }
 0x514   : > { %v6897_v30 = vpack.c.bf16 %v3928_v22, %v3270_v28  ;;  %v3602_v6 = vadd.f32 %v3601_v41, %v11337_v42  ;;  %v8658_v28 = vor.u32 %v9484_v8, %v8655_v61  ;;  %4222 = vmatpush.bf16.msra.mxu1 %v8654_v29 }
 0x515   : > { %v2948_v36 = vpop.f32.mrf.mxu1  ;;  %8938 = vmatmul.msk.bf16.gmra.mxu3 %vm1370_vm1, %v10125_v3 }
 0x516   : > { %3640 = vmatmul.bf16.gmra.mxu0 %v10122_v60  ;;  %7409 = vst [vmem:[%s10018_s5 + $0x168] sm:$0xff] %v6897_v30  ;;  %9001 = vmatmul.msk.bf16.gmra.mxu2 %vm1370_vm1, %v10105_v16 }
 0x517   : > { %4880 = vmatpush.bf16.msra.mxu0 %v8658_v28 }
 0x518   : > { %2987 = vmatmul.bf16.gmra.mxu1 %v10148_v23  ;;  %v3277_v19 = vpop.f32.mrf.mxu3 }
 0x519   : > { %v3930_v2 = vpop.f32.mrf.mxu2 }
 0x51a   : > { %v3931_v10 = vadd.f32 %v3930_v2, %v3602_v6 }
 0x51b   : > { %v3603_v63 = vpop.f32.mrf.mxu0 }
 0x51c   : > { %v6901_v27 = vpack.c.bf16 %v3931_v10, %v3273_v34  ;;  %v3604_v39 = vadd.f32 %v3603_v63, %v11337_v42  ;;  %v2949_v34 = vadd.f32 %v2948_v36, %v11334_v21 }
 0x51d   : > { %v2950_v35 = vpop.f32.mrf.mxu1 }
 0x51e   : > { %7413 = vst [vmem:[%s10018_s5 + $0x188] sm:$0xff] %v6901_v27  ;;  %v3278_v55 = vadd.f32 %v3277_v19, %v2949_v34  ;;  %v2951_v8 = vadd.f32 %v2950_v35, %v11334_v21 }
 0x520   : > { %v3279_v41 = vpop.f32.mrf.mxu3 }
 0x521   : > { %v3932_v22 = vpop.f32.mrf.mxu2 }
 0x522   : > { %v3933_v30 = vadd.f32 %v3932_v22, %v3604_v39  ;;  %v3280_v22 = vadd.f32 %v3279_v41, %v2951_v8 }
 0x523   : > { %v3606_v6 = vpop.f32.mrf.mxu0 }
 0x524   : > { %v6905_v2 = vpack.c.bf16 %v3933_v30, %v3275_v51  ;;  %v3607_v27 = vadd.f32 %v3606_v6, %v11337_v42 }
 0x525   : > { %v2953_v10 = vpop.f32.mrf.mxu1  ;;  %8939 = vmatmul.msk.bf16.gmra.mxu3 %vm1370_vm1, %v10157_v62 }
 0x526   : > { %3645 = vmatmul.bf16.gmra.mxu0 %v10148_v23  ;;  %7417 = vst [vmem:[%s10018_s5 + $0x1a8] sm:$0xff] %v6905_v2  ;;  %9002 = vmatmul.msk.bf16.gmra.mxu2 %vm1370_vm1, %v10125_v3  ;;  %v2954_v6 = vadd.f32 %v2953_v10, %v11334_v21 }
 0x528   : > { %2992 = vmatmul.bf16.gmra.mxu1 %v10174_v47  ;;  %v3282_v11 = vpop.f32.mrf.mxu3 }
 0x529   : > { %v3935_v63 = vpop.f32.mrf.mxu2  ;;  %v3283_v35 = vadd.f32 %v3282_v11, %v2954_v6 }
 0x52a   : > { %v3936_v36 = vadd.f32 %v3935_v63, %v3607_v27 }
 0x52b   : > { %v3608_v12 = vpop.f32.mrf.mxu0 }
 0x52c   : > { %v6909_v48 = vpack.c.bf16 %v3936_v36, %v3278_v55  ;;  %v3609_v61 = vadd.f32 %v3608_v12, %v11337_v42 }
 0x52d   : > { %v2955_v29 = vpop.f32.mrf.mxu1 }
 0x52e   : > { %7421 = vst [vmem:[%s10018_s5 + $0x1c8] sm:$0xff] %v6909_v48  ;;  %v2956_v12 = vadd.f32 %v2955_v29, %v11334_v21 }
 0x530   : > { %v3284_v28 = vpop.f32.mrf.mxu3 }
 0x531   : > { %v3937_v39 = vpop.f32.mrf.mxu2 }
 0x532   : > { %v3938_v51 = vadd.f32 %v3937_v39, %v3609_v61  ;;  %v3285_v39 = vadd.f32 %v3284_v28, %v2956_v12 }
 0x533   : > { %v3611_v30 = vpop.f32.mrf.mxu0 }
 0x534   : > { %v6913_v19 = vpack.c.bf16 %v3938_v51, %v3280_v22  ;;  %v3612_v2 = vadd.f32 %v3611_v30, %v11337_v42 }
 0x535   : > { %v2958_v34 = vpop.f32.mrf.mxu1  ;;  %8940 = vmatmul.msk.bf16.gmra.mxu3 %vm1370_vm1, %v10177_v58 }
 0x536   : > { %3650 = vmatmul.bf16.gmra.mxu0 %v10174_v47  ;;  %7425 = vst [vmem:[%s10018_s5 + $0x1e8] sm:$0xff] %v6913_v19  ;;  %9003 = vmatmul.msk.bf16.gmra.mxu2 %vm1370_vm1, %v10157_v62  ;;  %v2959_v30 = vadd.f32 %v2958_v34, %v11334_v21 }
 0x538   : > { %2997 = vmatmul.bf16.gmra.mxu1 %v10194_v45  ;;  %v3287_v27 = vpop.f32.mrf.mxu3 }
 0x539   : > { %v3940_v41 = vpop.f32.mrf.mxu2  ;;  %v3288_v29 = vadd.f32 %v3287_v27, %v2959_v30 }
 0x53a   : > { %v3941_v10 = vadd.f32 %v3940_v41, %v3612_v2 }
 0x53b   : > { %v3613_v55 = vpop.f32.mrf.mxu0 }
 0x53c   : > { %v6917_v63 = vpack.c.bf16 %v3941_v10, %v3283_v35  ;;  %v3614_v48 = vadd.f32 %v3613_v55, %v11337_v42 }
 0x53d   : > { %v2960_v36 = vpop.f32.mrf.mxu1 }
 0x53e   : > { %7429 = vst [vmem:[%s10018_s5 + $0x208] sm:$0xff] %v6917_v63  ;;  %v2961_v55 = vadd.f32 %v2960_v36, %v11334_v21  ;;  %v14301_v36 = vld [vmem:[#allocation8_spill] sm:$0xff] }
 0x540   : > { %v3289_v61 = vpop.f32.mrf.mxu3 }
 0x541   : > { %v3942_v8 = vpop.f32.mrf.mxu2 }
 0x542   : > { %v3943_v22 = vadd.f32 %v3942_v8, %v3614_v48  ;;  %v3290_v8 = vadd.f32 %v3289_v61, %v2961_v55 }
 0x543   : > { %v3616_v51 = vpop.f32.mrf.mxu0 }
 0x544   : > { %v6921_v11 = vpack.c.bf16 %v3943_v22, %v3285_v39  ;;  %v3617_v19 = vadd.f32 %v3616_v51, %v11337_v42 }
 0x545   : > { %v2963_v6 = vpop.f32.mrf.mxu1  ;;  %8941 = vmatmul.msk.bf16.gmra.mxu3 %vm1370_vm1, %v10197_v5 }
 0x546   : > { %3655 = vmatmul.bf16.gmra.mxu0 %v10194_v45  ;;  %7433 = vst [vmem:[%s10018_s5 + $0x228] sm:$0xff] %v6921_v11  ;;  %9004 = vmatmul.msk.bf16.gmra.mxu2 %vm1370_vm1, %v10177_v58  ;;  %v2964_v51 = vadd.f32 %v2963_v6, %v11334_v21 }
 0x548   : > { %3002 = vmatmul.bf16.gmra.mxu1 %v10214_v54  ;;  %v3292_v2 = vpop.f32.mrf.mxu3 }
 0x549   : > { %v3945_v28 = vpop.f32.mrf.mxu2  ;;  %v3293_v61 = vadd.f32 %v3292_v2, %v2964_v51 }
 0x54a   : > { %v3946_v34 = vadd.f32 %v3945_v28, %v3617_v19  ;;  %v14302_v19 = vld [vmem:[#allocation9_spill] sm:$0xff] }
 0x54b   : > { %v3618_v35 = vpop.f32.mrf.mxu0 }
 0x54c   : > { %v6925_v41 = vpack.c.bf16 %v3946_v34, %v3288_v29  ;;  %v3619_v63 = vadd.f32 %v3618_v35, %v11337_v42 }
 0x54d   : > { %v2965_v10 = vpop.f32.mrf.mxu1 }
 0x54e   : > { %7437 = vst [vmem:[%s10018_s5 + $0x248] sm:$0xff] %v6925_v41  ;;  %v2966_v55 = vadd.f32 %v2965_v10, %v11334_v21  ;;  %v14303_v10 = vld [vmem:[#allocation10_spill] sm:$0xff] }
 0x550   : > { %v3294_v48 = vpop.f32.mrf.mxu3 }
 0x551   : > { %v3947_v12 = vpop.f32.mrf.mxu2 }
 0x552   : > { %v3948_v39 = vadd.f32 %v3947_v12, %v3619_v63 }
 0x553   : > { %v3621_v22 = vpop.f32.mrf.mxu0 }
 0x554   : > { %v6929_v27 = vpack.c.bf16 %v3948_v39, %v3290_v8  ;;  %v3622_v11 = vadd.f32 %v3621_v22, %v11337_v42  ;;  %v3295_v39 = vadd.f32 %v3294_v48, %v2966_v55 }
 0x555   : > { %v2968_v30 = vpop.f32.mrf.mxu1  ;;  %8942 = vmatmul.msk.bf16.gmra.mxu3 %vm1370_vm1, %v14301_v36 }
 0x556   : > { %3660 = vmatmul.bf16.gmra.mxu0 %v10214_v54  ;;  %7441 = vst [vmem:[%s10018_s5 + $0x268] sm:$0xff] %v6929_v27  ;;  %9005 = vmatmul.msk.bf16.gmra.mxu2 %vm1370_vm1, %v10197_v5  ;;  %v2969_v54 = vadd.f32 %v2968_v30, %v11334_v21 }
 0x558   : > { %3007 = vmatmul.bf16.gmra.mxu1 %v14302_v19  ;;  %v3297_v28 = vpop.f32.mrf.mxu3 }
 0x559   : > { %v3950_v29 = vpop.f32.mrf.mxu2  ;;  %v3298_v48 = vadd.f32 %v3297_v28, %v2969_v54 }
 0x55a   : > { %v3951_v6 = vadd.f32 %v3950_v29, %v3622_v11 }
 0x55b   : > { %v3623_v34 = vpop.f32.mrf.mxu0 }
 0x55c   : > { %v6933_v35 = vpack.c.bf16 %v3951_v6, %v3293_v61  ;;  %v3624_v63 = vadd.f32 %v3623_v34, %v11337_v42  ;;  %v14304_v61 = vld [vmem:[#allocation11_spill] sm:$0xff] }
 0x55d   : > { %v2970_v41 = vpop.f32.mrf.mxu1 }
 0x55e   : > { %7445 = vst [vmem:[%s10018_s5 + $0x288] sm:$0xff] %v6933_v35 }
 0x560   : > { %v3299_v8 = vpop.f32.mrf.mxu3 }
 0x561   : > { %v3952_v12 = vpop.f32.mrf.mxu2 }
 0x562   : > { %v3953_v22 = vadd.f32 %v3952_v12, %v3624_v63  ;;  %v2971_v63 = vadd.f32 %v2970_v41, %v11334_v21  ;;  %v14305_v41 = vld [vmem:[#allocation12_spill] sm:$0xff] }
 0x563   : > { %v3626_v27 = vpop.f32.mrf.mxu0 }
 0x564   : > { %v6937_v2 = vpack.c.bf16 %v3953_v22, %v3295_v39  ;;  %v3627_v11 = vadd.f32 %v3626_v27, %v11337_v42  ;;  %v3300_v27 = vadd.f32 %v3299_v8, %v2971_v63 }
 0x565   : > { %v2973_v51 = vpop.f32.mrf.mxu1  ;;  %8943 = vmatmul.msk.bf16.gmra.mxu3 %vm1370_vm1, %v14303_v10 }
 0x566   : > { %3665 = vmatmul.bf16.gmra.mxu0 %v14302_v19  ;;  %7449 = vst [vmem:[%s10018_s5 + $0x2a8] sm:$0xff] %v6937_v2  ;;  %9006 = vmatmul.msk.bf16.gmra.mxu2 %vm1370_vm1, %v14301_v36  ;;  %v2974_v36 = vadd.f32 %v2973_v51, %v11334_v21 }
 0x568   : > { %3012 = vmatmul.bf16.gmra.mxu1 %v14304_v61  ;;  %v3302_v6 = vpop.f32.mrf.mxu3 }
 0x569   : > { %v3955_v29 = vpop.f32.mrf.mxu2  ;;  %v3303_v8 = vadd.f32 %v3302_v6, %v2974_v36 }
 0x56a   : > { %v3956_v30 = vadd.f32 %v3955_v29, %v3627_v11 }
 0x56b   : > { %v3628_v34 = vpop.f32.mrf.mxu0 }
 0x56c   : > { %v6941_v35 = vpack.c.bf16 %v3956_v30, %v3298_v48  ;;  %v3629_v12 = vadd.f32 %v3628_v34, %v11337_v42  ;;  %v14306_v48 = vld [vmem:[#allocation13_spill] sm:$0xff] }
 0x56d   : > { %v2975_v55 = vpop.f32.mrf.mxu1 }
 0x56e   : > { %7453 = vst [vmem:[%s10018_s5 + $0x2c8] sm:$0xff] %v6941_v35 }
 0x570   : > { %v3304_v22 = vpop.f32.mrf.mxu3 }
 0x571   : > { %v3957_v39 = vpop.f32.mrf.mxu2 }
 0x572   : > { %v3958_v2 = vadd.f32 %v3957_v39, %v3629_v12  ;;  %v2976_v12 = vadd.f32 %v2975_v55, %v11334_v21  ;;  %v14307_v55 = vld [vmem:[#allocation14_spill] sm:$0xff] }
 0x573   : > { %v3631_v19 = vpop.f32.mrf.mxu0 }
 0x574   : > { %v6945_v54 = vpack.c.bf16 %v3958_v2, %v3300_v27  ;;  %v3632_v11 = vadd.f32 %v3631_v19, %v11337_v42  ;;  %v3305_v2 = vadd.f32 %v3304_v22, %v2976_v12 }
 0x575   : > { %v2978_v28 = vpop.f32.mrf.mxu1  ;;  %8944 = vmatmul.msk.bf16.gmra.mxu3 %vm1370_vm1, %v14305_v41 }
 0x576   : > { %3670 = vmatmul.bf16.gmra.mxu0 %v14304_v61  ;;  %7457 = vst [vmem:[%s10018_s5 + $0x2e8] sm:$0xff] %v6945_v54  ;;  %9007 = vmatmul.msk.bf16.gmra.mxu2 %vm1370_vm1, %v14303_v10  ;;  %v2979_v10 = vadd.f32 %v2978_v28, %v11334_v21 }
 0x578   : > { %3017 = vmatmul.bf16.gmra.mxu1 %v14306_v48  ;;  %v3307_v30 = vpop.f32.mrf.mxu3 }
 0x579   : > { %v3960_v29 = vpop.f32.mrf.mxu2  ;;  %v3308_v22 = vadd.f32 %v3307_v30, %v2979_v10 }
 0x57a   : > { %v3961_v51 = vadd.f32 %v3960_v29, %v3632_v11 }
 0x57b   : > { %v3633_v34 = vpop.f32.mrf.mxu0 }
 0x57c   : > { %v6949_v35 = vpack.c.bf16 %v3961_v51, %v3303_v8  ;;  %v3634_v19 = vadd.f32 %v3633_v34, %v11337_v42  ;;  %v14308_v8 = vld [vmem:[#allocation15_spill] sm:$0xff] }
 0x57d   : > { %v2980_v63 = vpop.f32.mrf.mxu1 }
 0x57e   : > { %7461 = vst [vmem:[%s10018_s5 + $0x308] sm:$0xff] %v6949_v35 }
 0x580   : > { %v3309_v27 = vpop.f32.mrf.mxu3 }
 0x581   : > { %v3962_v39 = vpop.f32.mrf.mxu2 }
 0x582   : > { %v3963_v54 = vadd.f32 %v3962_v39, %v3634_v19  ;;  %v2981_v19 = vadd.f32 %v2980_v63, %v11334_v21  ;;  %v14309_v63 = vld [vmem:[#allocation16_spill] sm:$0xff] }
 0x583   : > { %v3636_v61 = vpop.f32.mrf.mxu0 }
 0x584   : > { %v6953_v36 = vpack.c.bf16 %v3963_v54, %v3305_v2  ;;  %v3637_v11 = vadd.f32 %v3636_v61, %v11337_v42  ;;  %v3310_v54 = vadd.f32 %v3309_v27, %v2981_v19 }
 0x585   : > { %v2983_v6 = vpop.f32.mrf.mxu1  ;;  %8945 = vmatmul.msk.bf16.gmra.mxu3 %vm1370_vm1, %v14307_v55 }
 0x586   : > { %3675 = vmatmul.bf16.gmra.mxu0 %v14306_v48  ;;  %7465 = vst [vmem:[%s10018_s5 + $0x328] sm:$0xff] %v6953_v36  ;;  %9008 = vmatmul.msk.bf16.gmra.mxu2 %vm1370_vm1, %v14305_v41  ;;  %v2984_v41 = vadd.f32 %v2983_v6, %v11334_v21 }
 0x588   : > { %3022 = vmatmul.bf16.gmra.mxu1 %v14308_v8  ;;  %v3312_v51 = vpop.f32.mrf.mxu3 }
 0x589   : > { %v3965_v29 = vpop.f32.mrf.mxu2  ;;  %v3313_v27 = vadd.f32 %v3312_v51, %v2984_v41  ;;  %v9476_v41 = vld [vmem:[%s13848_s1 + $0x114] sm:$0xf] }
 0x58a   : > { %v3966_v28 = vadd.f32 %v3965_v29, %v3637_v11  ;;  %v8623_v51 = vld [vmem:[%s13848_s1 + $0x130] sm:$0xf0] }
 0x58b   : > { %v3638_v34 = vpop.f32.mrf.mxu0 }
 0x58c   : > { %v6957_v35 = vpack.c.bf16 %v3966_v28, %v3308_v22  ;;  %v3639_v61 = vadd.f32 %v3638_v34, %v11337_v42  ;;  %v14310_v22 = vld [vmem:[#allocation17_spill] sm:$0xff] }
 0x58d   : > { %v2985_v12 = vpop.f32.mrf.mxu1 }
 0x58e   : > { %7469 = vst [vmem:[%s10018_s5 + $0x348] sm:$0xff] %v6957_v35 }
 0x590   : > { %v3314_v2 = vpop.f32.mrf.mxu3 }
 0x591   : > { %v3967_v39 = vpop.f32.mrf.mxu2 }
 0x592   : > { %v3968_v36 = vadd.f32 %v3967_v39, %v3639_v61  ;;  %v2986_v61 = vadd.f32 %v2985_v12, %v11334_v21  ;;  %v9480_v39 = vld [vmem:[%s13848_s1 + $0x12c] sm:$0xf0] }
 0x593   : > { %v3641_v48 = vpop.f32.mrf.mxu0 }
 0x594   : > { %v6961_v10 = vpack.c.bf16 %v3968_v36, %v3310_v54  ;;  %v3642_v11 = vadd.f32 %v3641_v48, %v11337_v42  ;;  %v8621_v48 = vld [vmem:[%s13848_s1 + $0x110] sm:$0xf]  ;;  %v8626_v36 = vor.u32 %v9476_v41, %v8623_v51 }
 0x595   : > { %v2988_v30 = vpop.f32.mrf.mxu1  ;;  %8946 = vmatmul.msk.bf16.gmra.mxu3 %vm1370_vm1, %v14309_v63  ;;  %v8622_v54 = vor.u32 %v9480_v39, %v8621_v48 }
 0x596   : > { %3680 = vmatmul.bf16.gmra.mxu0 %v14308_v8  ;;  %7473 = vst [vmem:[%s10018_s5 + $0x368] sm:$0xff] %v6961_v10  ;;  %9009 = vmatmul.msk.bf16.gmra.mxu2 %vm1370_vm1, %v14307_v55 }
 0x597   : > { %4223 = vmatpush.bf16.msra.mxu1 %v8622_v54  ;;  %4881 = vmatpush.bf16.msra.mxu0 %v8626_v36 }
 0x598   : > { %3027 = vmatmul.bf16.gmra.mxu1 %v14310_v22  ;;  %v3317_v28 = vpop.f32.mrf.mxu3 }
 0x599   : > { %v3970_v29 = vpop.f32.mrf.mxu2 }
 0x59a   : > { %v3971_v6 = vadd.f32 %v3970_v29, %v3642_v11 }
 0x59b   : > { %v3643_v34 = vpop.f32.mrf.mxu0 }
 0x59c   : > { %v6965_v35 = vpack.c.bf16 %v3971_v6, %v3313_v27  ;;  %v3644_v12 = vadd.f32 %v3643_v34, %v11337_v42  ;;  %v3315_v27 = vadd.f32 %v3314_v2, %v2986_v61  ;;  %v14311_v34 = vld [vmem:[#allocation18_spill] sm:$0xff]  ;;  %v14312_v2 = vld [vmem:[#allocation19_spill] sm:$0xff] }
 0x59d   : > { %v2990_v19 = vpop.f32.mrf.mxu1 }
 0x59e   : > { %7477 = vst [vmem:[%s10018_s5 + $0x388] sm:$0xff] %v6965_v35  ;;  %v2989_v35 = vadd.f32 %v2988_v30, %v11334_v21 }
 0x5a0   : > { %v3319_v11 = vpop.f32.mrf.mxu3  ;;  %v3318_v61 = vadd.f32 %v3317_v28, %v2989_v35 }
 0x5a1   : > { %v3972_v10 = vpop.f32.mrf.mxu2 }
 0x5a2   : > { %v3973_v29 = vadd.f32 %v3972_v10, %v3644_v12  ;;  %v2991_v10 = vadd.f32 %v2990_v19, %v11334_v21  ;;  %v14313_v19 = vld [vmem:[#allocation20_spill] sm:$0xff] }
 0x5a3   : > { %v3646_v6 = vpop.f32.mrf.mxu0 }
 0x5a4   : > { %v6969_v48 = vpack.c.bf16 %v3973_v29, %v3315_v27  ;;  %v3647_v8 = vadd.f32 %v3646_v6, %v11337_v42 }
 0x5a5   : > { %v2993_v39 = vpop.f32.mrf.mxu1  ;;  %8947 = vmatmul.msk.bf16.gmra.mxu3 %vm1370_vm1, %v14311_v34 }
 0x5a6   : > { %3685 = vmatmul.bf16.gmra.mxu0 %v14310_v22  ;;  %7481 = vst [vmem:[%s10018_s5 + $0x3a8] sm:$0xff] %v6969_v48  ;;  %9010 = vmatmul.msk.bf16.gmra.mxu2 %vm1370_vm1, %v14309_v63  ;;  %v3320_v48 = vadd.f32 %v3319_v11, %v2991_v10  ;;  %v2994_v55 = vadd.f32 %v2993_v39, %v11334_v21 }
 0x5a8   : > { %3032 = vmatmul.bf16.gmra.mxu1 %v14312_v2  ;;  %v3322_v41 = vpop.f32.mrf.mxu3 }
 0x5a9   : > { %v3975_v54 = vpop.f32.mrf.mxu2  ;;  %v3323_v11 = vadd.f32 %v3322_v41, %v2994_v55 }
 0x5aa   : > { %v3976_v30 = vadd.f32 %v3975_v54, %v3647_v8 }
 0x5ab   : > { %v3648_v51 = vpop.f32.mrf.mxu0 }
 0x5ac   : > { %v6973_v12 = vpack.c.bf16 %v3976_v30, %v3318_v61  ;;  %v3649_v27 = vadd.f32 %v3648_v51, %v11337_v42  ;;  %v14314_v61 = vld [vmem:[#allocation21_spill] sm:$0xff] }
 0x5ad   : > { %v2995_v36 = vpop.f32.mrf.mxu1 }
 0x5ae   : > { %7485 = vst [vmem:[%s10018_s5 + $0x3c8] sm:$0xff] %v6973_v12  ;;  %v2996_v10 = vadd.f32 %v2995_v36, %v11334_v21  ;;  %v14315_v36 = vld [vmem:[#allocation22_spill] sm:$0xff] }
 0x5b0   : > { %v3324_v6 = vpop.f32.mrf.mxu3 }
 0x5b1   : > { %v3977_v29 = vpop.f32.mrf.mxu2 }
 0x5b2   : > { %v3978_v22 = vadd.f32 %v3977_v29, %v3649_v27 }
 0x5b3   : > { %v3651_v63 = vpop.f32.mrf.mxu0 }
 0x5b4   : > { %v6977_v28 = vpack.c.bf16 %v3978_v22, %v3320_v48  ;;  %v3652_v8 = vadd.f32 %v3651_v63, %v11337_v42  ;;  %v3325_v48 = vadd.f32 %v3324_v6, %v2996_v10 }
 0x5b5   : > { %v2998_v35 = vpop.f32.mrf.mxu1  ;;  %8948 = vmatmul.msk.bf16.gmra.mxu3 %vm1370_vm1, %v14313_v19 }
 0x5b6   : > { %3690 = vmatmul.bf16.gmra.mxu0 %v14312_v2  ;;  %7489 = vst [vmem:[%s10018_s5 + $0x3e8] sm:$0xff] %v6977_v28  ;;  %9011 = vmatmul.msk.bf16.gmra.mxu2 %vm1370_vm1, %v14311_v34  ;;  %v2999_v34 = vadd.f32 %v2998_v35, %v11334_v21 }
 0x5b8   : > { %3037 = vmatmul.bf16.gmra.mxu1 %v14314_v61  ;;  %v3327_v30 = vpop.f32.mrf.mxu3 }
 0x5b9   : > { %v3980_v54 = vpop.f32.mrf.mxu2  ;;  %v3328_v6 = vadd.f32 %v3327_v30, %v2999_v34 }
 0x5ba   : > { %v3981_v39 = vadd.f32 %v3980_v54, %v3652_v8 }
 0x5bb   : > { %v3653_v22 = vpop.f32.mrf.mxu0 }
 0x5bc   : > { %v6981_v51 = vpack.c.bf16 %v3981_v39, %v3323_v11  ;;  %v3654_v63 = vadd.f32 %v3653_v22, %v11337_v42  ;;  %v14316_v11 = vld [vmem:[#allocation23_spill] sm:$0xff] }
 0x5bd   : > { %v3000_v12 = vpop.f32.mrf.mxu1 }
 0x5be   : > { %7493 = vst [vmem:[%s10018_s5 + $0x408] sm:$0xff] %v6981_v51 }
 0x5c0   : > { %v3329_v29 = vpop.f32.mrf.mxu3 }
 0x5c1   : > { %v3982_v27 = vpop.f32.mrf.mxu2 }
 0x5c2   : > { %v3983_v28 = vadd.f32 %v3982_v27, %v3654_v63  ;;  %v3001_v63 = vadd.f32 %v3000_v12, %v11334_v21  ;;  %v14317_v12 = vld [vmem:[#allocation24_spill] sm:$0xff] }
 0x5c3   : > { %v3656_v2 = vpop.f32.mrf.mxu0 }
 0x5c4   : > { %v6985_v55 = vpack.c.bf16 %v3983_v28, %v3325_v48  ;;  %v3657_v8 = vadd.f32 %v3656_v2, %v11337_v42  ;;  %v3330_v28 = vadd.f32 %v3329_v29, %v3001_v63 }
 0x5c5   : > { %v3003_v41 = vpop.f32.mrf.mxu1  ;;  %8949 = vmatmul.msk.bf16.gmra.mxu3 %vm1370_vm1, %v14315_v36 }
 0x5c6   : > { %3695 = vmatmul.bf16.gmra.mxu0 %v14314_v61  ;;  %7497 = vst [vmem:[%s10018_s5 + $0x428] sm:$0xff] %v6985_v55  ;;  %9012 = vmatmul.msk.bf16.gmra.mxu2 %vm1370_vm1, %v14313_v19  ;;  %v3004_v19 = vadd.f32 %v3003_v41, %v11334_v21 }
 0x5c8   : > { %3042 = vmatmul.bf16.gmra.mxu1 %v14316_v11  ;;  %v3332_v39 = vpop.f32.mrf.mxu3 }
 0x5c9   : > { %v3985_v54 = vpop.f32.mrf.mxu2  ;;  %v3333_v29 = vadd.f32 %v3332_v39, %v3004_v19 }
 0x5ca   : > { %v3986_v35 = vadd.f32 %v3985_v54, %v3657_v8 }
 0x5cb   : > { %v3658_v22 = vpop.f32.mrf.mxu0 }
 0x5cc   : > { %v6989_v51 = vpack.c.bf16 %v3986_v35, %v3328_v6  ;;  %v3659_v2 = vadd.f32 %v3658_v22, %v11337_v42  ;;  %v14318_v6 = vld [vmem:[#allocation25_spill] sm:$0xff] }
 0x5cd   : > { %v3005_v10 = vpop.f32.mrf.mxu1 }
 0x5ce   : > { %7501 = vst [vmem:[%s10018_s5 + $0x448] sm:$0xff] %v6989_v51 }
 0x5d0   : > { %v3334_v48 = vpop.f32.mrf.mxu3 }
 0x5d1   : > { %v3987_v27 = vpop.f32.mrf.mxu2 }
 0x5d2   : > { %v3988_v55 = vadd.f32 %v3987_v27, %v3659_v2  ;;  %v3006_v2 = vadd.f32 %v3005_v10, %v11334_v21  ;;  %v14319_v10 = vld [vmem:[#allocation26_spill] sm:$0xff] }
 0x5d3   : > { %v3661_v61 = vpop.f32.mrf.mxu0 }
 0x5d4   : > { %v6993_v34 = vpack.c.bf16 %v3988_v55, %v3330_v28  ;;  %v3662_v8 = vadd.f32 %v3661_v61, %v11337_v42  ;;  %v3335_v55 = vadd.f32 %v3334_v48, %v3006_v2 }
 0x5d5   : > { %v3008_v30 = vpop.f32.mrf.mxu1  ;;  %8950 = vmatmul.msk.bf16.gmra.mxu3 %vm1370_vm1, %v14317_v12 }
 0x5d6   : > { %3700 = vmatmul.bf16.gmra.mxu0 %v14316_v11  ;;  %7505 = vst [vmem:[%s10018_s5 + $0x468] sm:$0xff] %v6993_v34  ;;  %9013 = vmatmul.msk.bf16.gmra.mxu2 %vm1370_vm1, %v14315_v36  ;;  %v3009_v36 = vadd.f32 %v3008_v30, %v11334_v21 }
 0x5d8   : > { %3047 = vmatmul.bf16.gmra.mxu1 %v14318_v6  ;;  %v3337_v35 = vpop.f32.mrf.mxu3 }
 0x5d9   : > { %v3990_v54 = vpop.f32.mrf.mxu2  ;;  %v3338_v48 = vadd.f32 %v3337_v35, %v3009_v36 }
 0x5da   : > { %v3991_v41 = vadd.f32 %v3990_v54, %v3662_v8 }
 0x5db   : > { %v3663_v22 = vpop.f32.mrf.mxu0 }
 0x5dc   : > { %v6997_v51 = vpack.c.bf16 %v3991_v41, %v3333_v29  ;;  %v3664_v61 = vadd.f32 %v3663_v22, %v11337_v42  ;;  %v14320_v29 = vld [vmem:[#allocation27_spill] sm:$0xff] }
 0x5dd   : > { %v3010_v63 = vpop.f32.mrf.mxu1 }
 0x5de   : > { %7509 = vst [vmem:[%s10018_s5 + $0x488] sm:$0xff] %v6997_v51 }
 0x5e0   : > { %v3339_v28 = vpop.f32.mrf.mxu3 }
 0x5e1   : > { %v3992_v27 = vpop.f32.mrf.mxu2 }
 0x5e2   : > { %v3993_v34 = vadd.f32 %v3992_v27, %v3664_v61  ;;  %v3011_v61 = vadd.f32 %v3010_v63, %v11334_v21  ;;  %v14321_v63 = vld [vmem:[#allocation28_spill] sm:$0xff] }
 0x5e3   : > { %v3666_v11 = vpop.f32.mrf.mxu0 }
 0x5e4   : > { %v7001_v19 = vpack.c.bf16 %v3993_v34, %v3335_v55  ;;  %v3667_v8 = vadd.f32 %v3666_v11, %v11337_v42  ;;  %v3340_v34 = vadd.f32 %v3339_v28, %v3011_v61 }
 0x5e5   : > { %v3013_v39 = vpop.f32.mrf.mxu1  ;;  %8951 = vmatmul.msk.bf16.gmra.mxu3 %vm1370_vm1, %v14319_v10 }
 0x5e6   : > { %3705 = vmatmul.bf16.gmra.mxu0 %v14318_v6  ;;  %7513 = vst [vmem:[%s10018_s5 + $0x4a8] sm:$0xff] %v7001_v19  ;;  %9014 = vmatmul.msk.bf16.gmra.mxu2 %vm1370_vm1, %v14317_v12  ;;  %v3014_v12 = vadd.f32 %v3013_v39, %v11334_v21 }
 0x5e8   : > { %3052 = vmatmul.bf16.gmra.mxu1 %v14320_v29  ;;  %v3342_v41 = vpop.f32.mrf.mxu3 }
 0x5e9   : > { %v3995_v54 = vpop.f32.mrf.mxu2  ;;  %v3343_v28 = vadd.f32 %v3342_v41, %v3014_v12 }
 0x5ea   : > { %v3996_v30 = vadd.f32 %v3995_v54, %v3667_v8 }
 0x5eb   : > { %v3668_v22 = vpop.f32.mrf.mxu0 }
 0x5ec   : > { %v7005_v51 = vpack.c.bf16 %v3996_v30, %v3338_v48  ;;  %v3669_v11 = vadd.f32 %v3668_v22, %v11337_v42  ;;  %v14322_v48 = vld [vmem:[#allocation29_spill] sm:$0xff] }
 0x5ed   : > { %v3015_v2 = vpop.f32.mrf.mxu1 }
 0x5ee   : > { %7517 = vst [vmem:[%s10018_s5 + $0x4c8] sm:$0xff] %v7005_v51 }
 0x5f0   : > { %v3344_v55 = vpop.f32.mrf.mxu3 }
 0x5f1   : > { %v3997_v27 = vpop.f32.mrf.mxu2 }
 0x5f2   : > { %v3998_v19 = vadd.f32 %v3997_v27, %v3669_v11  ;;  %v3016_v11 = vadd.f32 %v3015_v2, %v11334_v21  ;;  %v14323_v2 = vld [vmem:[#allocation30_spill] sm:$0xff] }
 0x5f3   : > { %v3671_v6 = vpop.f32.mrf.mxu0 }
 0x5f4   : > { %v7009_v36 = vpack.c.bf16 %v3998_v19, %v3340_v34  ;;  %v3672_v8 = vadd.f32 %v3671_v6, %v11337_v42  ;;  %v3345_v19 = vadd.f32 %v3344_v55, %v3016_v11 }
 0x5f5   : > { %v3018_v35 = vpop.f32.mrf.mxu1  ;;  %8952 = vmatmul.msk.bf16.gmra.mxu3 %vm1370_vm1, %v14321_v63 }
 0x5f6   : > { %3710 = vmatmul.bf16.gmra.mxu0 %v14320_v29  ;;  %7521 = vst [vmem:[%s10018_s5 + $0x4e8] sm:$0xff] %v7009_v36  ;;  %9015 = vmatmul.msk.bf16.gmra.mxu2 %vm1370_vm1, %v14319_v10  ;;  %v3019_v10 = vadd.f32 %v3018_v35, %v11334_v21 }
 0x5f8   : > { %3057 = vmatmul.bf16.gmra.mxu1 %v14322_v48  ;;  %v3347_v30 = vpop.f32.mrf.mxu3 }
 0x5f9   : > { %v4000_v54 = vpop.f32.mrf.mxu2  ;;  %v3348_v55 = vadd.f32 %v3347_v30, %v3019_v10 }
 0x5fa   : > { %v4001_v39 = vadd.f32 %v4000_v54, %v3672_v8 }
 0x5fb   : > { %v3673_v22 = vpop.f32.mrf.mxu0 }
 0x5fc   : > { %v7013_v51 = vpack.c.bf16 %v4001_v39, %v3343_v28  ;;  %v3674_v6 = vadd.f32 %v3673_v22, %v11337_v42  ;;  %v14324_v28 = vld [vmem:[#allocation31_spill] sm:$0xff] }
 0x5fd   : > { %v3020_v61 = vpop.f32.mrf.mxu1 }
 0x5fe   : > { %7525 = vst [vmem:[%s10018_s5 + $0x508] sm:$0xff] %v7013_v51 }
 0x600   : > { %v3349_v34 = vpop.f32.mrf.mxu3 }
 0x601   : > { %v4002_v27 = vpop.f32.mrf.mxu2 }
 0x602   : > { %v4003_v36 = vadd.f32 %v4002_v27, %v3674_v6  ;;  %v3021_v6 = vadd.f32 %v3020_v61, %v11334_v21  ;;  %v14325_v61 = vld [vmem:[#allocation32_spill] sm:$0xff] }
 0x603   : > { %v3676_v29 = vpop.f32.mrf.mxu0 }
 0x604   : > { %v7017_v12 = vpack.c.bf16 %v4003_v36, %v3345_v19  ;;  %v3677_v8 = vadd.f32 %v3676_v29, %v11337_v42  ;;  %v3350_v36 = vadd.f32 %v3349_v34, %v3021_v6  ;;  %v8749_v34 = vld [vmem:[%s13848_s1 + $0x210] sm:$0xf] }
 0x605   : > { %v3023_v41 = vpop.f32.mrf.mxu1  ;;  %8953 = vmatmul.msk.bf16.gmra.mxu3 %vm1370_vm1, %v14323_v2 }
 0x606   : > { %3715 = vmatmul.bf16.gmra.mxu0 %v14322_v48  ;;  %7529 = vst [vmem:[%s10018_s5 + $0x528] sm:$0xff] %v7017_v12  ;;  %9016 = vmatmul.msk.bf16.gmra.mxu2 %vm1370_vm1, %v14321_v63  ;;  %v3024_v63 = vadd.f32 %v3023_v41, %v11334_v21  ;;  %v9512_v41 = vld [vmem:[%s13848_s1 + $0x22c] sm:$0xf0] }
 0x608   : > { %3062 = vmatmul.bf16.gmra.mxu1 %v14324_v28  ;;  %v3352_v39 = vpop.f32.mrf.mxu3 }
 0x609   : > { %v4005_v54 = vpop.f32.mrf.mxu2 }
 0x60a   : > { %v4006_v35 = vadd.f32 %v4005_v54, %v3677_v8  ;;  %v8750_v54 = vor.u32 %v9512_v41, %v8749_v34  ;;  %v8589_v41 = vld [vmem:[%s13848_s1 + $0xd0] sm:$0xf] }
 0x60b   : > { %v3678_v22 = vpop.f32.mrf.mxu0 }
 0x60c   : > { %v7021_v51 = vpack.c.bf16 %v4006_v35, %v3348_v55  ;;  %v3679_v29 = vadd.f32 %v3678_v22, %v11337_v42  ;;  %v14326_v55 = vld [vmem:[#allocation33_spill] sm:$0xff]  ;;  %v8751_v35 = vld [vmem:[%s13848_s1 + $0x230] sm:$0xf0]  ;;  %v3353_v22 = vadd.f32 %v3352_v39, %v3024_v63  ;;  %4556 = vmatpush.bf16.msra.mxu3 %v8750_v54  ;;  %v9472_v63 = vld [vmem:[%s13848_s1 + $0xec] sm:$0xf0] }
 0x60d   : > { %v3025_v11 = vpop.f32.mrf.mxu1  ;;  %v8590_v39 = vor.u32 %v9472_v63, %v8589_v41  ;;  %v8591_v54 = vld [vmem:[%s13848_s1 + $0xf0] sm:$0xf0] }
 0x60e   : > { %7533 = vst [vmem:[%s10018_s5 + $0x548] sm:$0xff] %v7021_v51  ;;  %v3026_v34 = vadd.f32 %v3025_v11, %v11334_v21 }
 0x60f   : > { %4224 = vmatpush.bf16.msra.mxu1 %v8590_v39 }
 0x610   : > { %v3354_v19 = vpop.f32.mrf.mxu3 }
 0x611   : > { %v4007_v27 = vpop.f32.mrf.mxu2 }
 0x612   : > { %v4008_v12 = vadd.f32 %v4007_v27, %v3679_v29 }
 0x613   : > { %v3681_v48 = vpop.f32.mrf.mxu0 }
 0x614   : > { %v7025_v10 = vpack.c.bf16 %v4008_v12, %v3350_v36  ;;  %v3682_v8 = vadd.f32 %v3681_v48, %v11337_v42  ;;  %v9508_v48 = vld [vmem:[%s13848_s1 + $0x214] sm:$0xf] }
 0x615   : > { %v3028_v30 = vpop.f32.mrf.mxu1  ;;  %8954 = vmatmul.msk.bf16.gmra.mxu3 %vm1370_vm1, %v14325_v61  ;;  %v8754_v51 = vor.u32 %v9508_v48, %v8751_v35 }
 0x616   : > { %3720 = vmatmul.bf16.gmra.mxu0 %v14324_v28  ;;  %7537 = vst [vmem:[%s10018_s5 + $0x568] sm:$0xff] %v7025_v10  ;;  %9017 = vmatmul.msk.bf16.gmra.mxu2 %vm1370_vm1, %v14323_v2 }
 0x617   : > { %5214 = vmatpush.bf16.msra.mxu2 %v8754_v51  ;;  %v3355_v51 = vadd.f32 %v3354_v19, %v3026_v34  ;;  %v14328_v19 = vld [vmem:[#allocation35_spill] sm:$0xff] }
 0x618   : > { %3067 = vmatmul.bf16.gmra.mxu1 %v14326_v55  ;;  %v3357_v29 = vpop.f32.mrf.mxu3 }
 0x619   : > { %v4010_v6 = vpop.f32.mrf.mxu2 }
 0x61a   : > { %v4011_v27 = vadd.f32 %v4010_v6, %v3682_v8  ;;  %v9468_v8 = vld [vmem:[%s13848_s1 + $0xd4] sm:$0xf] }
 0x61b   : > { %v3683_v36 = vpop.f32.mrf.mxu0  ;;  %v8594_v48 = vor.u32 %v9468_v8, %v8591_v54 }
 0x61c   : > { %v7029_v12 = vpack.c.bf16 %v4011_v27, %v3353_v22  ;;  %v3684_v11 = vadd.f32 %v3683_v36, %v11337_v42  ;;  %v14327_v36 = vld [vmem:[#allocation34_spill] sm:$0xff] }
 0x61d   : > { %v3030_v10 = vpop.f32.mrf.mxu1  ;;  %4882 = vmatpush.bf16.msra.mxu0 %v8594_v48 }
 0x61e   : > { %7541 = vst [vmem:[%s10018_s5 + $0x588] sm:$0xff] %v7029_v12  ;;  %v3029_v12 = vadd.f32 %v3028_v30, %v11334_v21 }
 0x620   : > { %v3359_v22 = vpop.f32.mrf.mxu3  ;;  %v3358_v34 = vadd.f32 %v3357_v29, %v3029_v12 }
 0x621   : > { %v4012_v35 = vpop.f32.mrf.mxu2 }
 0x622   : > { %v4013_v6 = vadd.f32 %v4012_v35, %v3684_v11  ;;  %v3031_v35 = vadd.f32 %v3030_v10, %v11334_v21  ;;  %v14329_v10 = vld [vmem:[#allocation36_spill] sm:$0xff] }
 0x623   : > { %v3686_v27 = vpop.f32.mrf.mxu0 }
 0x624   : > { %v7033_v41 = vpack.c.bf16 %v4013_v6, %v3355_v51  ;;  %v3687_v28 = vadd.f32 %v3686_v27, %v11337_v42 }
 0x625   : > { %v3033_v63 = vpop.f32.mrf.mxu1  ;;  %8955 = vmatmul.msk.bf16.gmra.mxu3 %vm1370_vm1, %v14327_v36 }
 0x626   : > { %3725 = vmatmul.bf16.gmra.mxu0 %v14326_v55  ;;  %7545 = vst [vmem:[%s10018_s5 + $0x5a8] sm:$0xff] %v7033_v41  ;;  %9018 = vmatmul.msk.bf16.gmra.mxu2 %vm1370_vm1, %v14325_v61  ;;  %v3360_v41 = vadd.f32 %v3359_v22, %v3031_v35  ;;  %v3034_v2 = vadd.f32 %v3033_v63, %v11334_v21 }
 0x628   : > { %3072 = vmatmul.bf16.gmra.mxu1 %v14328_v19  ;;  %v3362_v8 = vpop.f32.mrf.mxu3 }
 0x629   : > { %v4015_v39 = vpop.f32.mrf.mxu2  ;;  %v3363_v22 = vadd.f32 %v3362_v8, %v3034_v2 }
 0x62a   : > { %v4016_v30 = vadd.f32 %v4015_v39, %v3687_v28 }
 0x62b   : > { %v3688_v54 = vpop.f32.mrf.mxu0 }
 0x62c   : > { %v7037_v11 = vpack.c.bf16 %v4016_v30, %v3358_v34  ;;  %v3689_v51 = vadd.f32 %v3688_v54, %v11337_v42  ;;  %v14330_v34 = vld [vmem:[#allocation37_spill] sm:$0xff] }
 0x62d   : > { %v3035_v48 = vpop.f32.mrf.mxu1 }
 0x62e   : > { %7549 = vst [vmem:[%s10018_s5 + $0x5c8] sm:$0xff] %v7037_v11  ;;  %v3036_v35 = vadd.f32 %v3035_v48, %v11334_v21  ;;  %v14331_v48 = vld [vmem:[#allocation38_spill] sm:$0xff] }
 0x630   : > { %v3364_v27 = vpop.f32.mrf.mxu3 }
 0x631   : > { %v4017_v6 = vpop.f32.mrf.mxu2 }
 0x632   : > { %v4018_v55 = vadd.f32 %v4017_v6, %v3689_v51 }
 0x633   : > { %v3691_v61 = vpop.f32.mrf.mxu0 }
 0x634   : > { %v7041_v29 = vpack.c.bf16 %v4018_v55, %v3360_v41  ;;  %v3692_v28 = vadd.f32 %v3691_v61, %v11337_v42  ;;  %v3365_v41 = vadd.f32 %v3364_v27, %v3036_v35 }
 0x635   : > { %v3038_v12 = vpop.f32.mrf.mxu1  ;;  %8956 = vmatmul.msk.bf16.gmra.mxu3 %vm1370_vm1, %v14329_v10 }
 0x636   : > { %3730 = vmatmul.bf16.gmra.mxu0 %v14328_v19  ;;  %7553 = vst [vmem:[%s10018_s5 + $0x5e8] sm:$0xff] %v7041_v29  ;;  %9019 = vmatmul.msk.bf16.gmra.mxu2 %vm1370_vm1, %v14327_v36  ;;  %v3039_v36 = vadd.f32 %v3038_v12, %v11334_v21 }
 0x638   : > { %3077 = vmatmul.bf16.gmra.mxu1 %v14330_v34  ;;  %v3367_v30 = vpop.f32.mrf.mxu3 }
 0x639   : > { %v4020_v39 = vpop.f32.mrf.mxu2  ;;  %v3368_v27 = vadd.f32 %v3367_v30, %v3039_v36 }
 0x63a   : > { %v4021_v63 = vadd.f32 %v4020_v39, %v3692_v28 }
 0x63b   : > { %v3693_v55 = vpop.f32.mrf.mxu0 }
 0x63c   : > { %v7045_v54 = vpack.c.bf16 %v4021_v63, %v3363_v22  ;;  %v3694_v61 = vadd.f32 %v3693_v55, %v11337_v42  ;;  %v14332_v22 = vld [vmem:[#allocation39_spill] sm:$0xff] }
 0x63d   : > { %v3040_v11 = vpop.f32.mrf.mxu1 }
 0x63e   : > { %7557 = vst [vmem:[%s10018_s5 + $0x608] sm:$0xff] %v7045_v54 }
 0x640   : > { %v3369_v6 = vpop.f32.mrf.mxu3 }
 0x641   : > { %v4022_v51 = vpop.f32.mrf.mxu2 }
 0x642   : > { %v4023_v29 = vadd.f32 %v4022_v51, %v3694_v61  ;;  %v3041_v61 = vadd.f32 %v3040_v11, %v11334_v21  ;;  %v14333_v11 = vld [vmem:[#allocation40_spill] sm:$0xff] }
 0x643   : > { %v3696_v19 = vpop.f32.mrf.mxu0 }
 0x644   : > { %v7049_v2 = vpack.c.bf16 %v4023_v29, %v3365_v41  ;;  %v3697_v28 = vadd.f32 %v3696_v19, %v11337_v42  ;;  %v3370_v29 = vadd.f32 %v3369_v6, %v3041_v61 }
 0x645   : > { %v3043_v8 = vpop.f32.mrf.mxu1  ;;  %8957 = vmatmul.msk.bf16.gmra.mxu3 %vm1370_vm1, %v14331_v48 }
 0x646   : > { %3735 = vmatmul.bf16.gmra.mxu0 %v14330_v34  ;;  %7561 = vst [vmem:[%s10018_s5 + $0x628] sm:$0xff] %v7049_v2  ;;  %9020 = vmatmul.msk.bf16.gmra.mxu2 %vm1370_vm1, %v14329_v10  ;;  %v3044_v10 = vadd.f32 %v3043_v8, %v11334_v21 }
 0x648   : > { %3082 = vmatmul.bf16.gmra.mxu1 %v14332_v22  ;;  %v3372_v63 = vpop.f32.mrf.mxu3 }
 0x649   : > { %v4025_v39 = vpop.f32.mrf.mxu2  ;;  %v3373_v6 = vadd.f32 %v3372_v63, %v3044_v10 }
 0x64a   : > { %v4026_v12 = vadd.f32 %v4025_v39, %v3697_v28 }
 0x64b   : > { %v3698_v55 = vpop.f32.mrf.mxu0 }
 0x64c   : > { %v7053_v54 = vpack.c.bf16 %v4026_v12, %v3368_v27  ;;  %v3699_v19 = vadd.f32 %v3698_v55, %v11337_v42  ;;  %v14334_v27 = vld [vmem:[#allocation41_spill] sm:$0xff] }
 0x64d   : > { %v3045_v35 = vpop.f32.mrf.mxu1 }
 0x64e   : > { %7565 = vst [vmem:[%s10018_s5 + $0x648] sm:$0xff] %v7053_v54 }
 0x650   : > { %v3374_v41 = vpop.f32.mrf.mxu3 }
 0x651   : > { %v4027_v51 = vpop.f32.mrf.mxu2 }
 0x652   : > { %v4028_v2 = vadd.f32 %v4027_v51, %v3699_v19  ;;  %v3046_v19 = vadd.f32 %v3045_v35, %v11334_v21  ;;  %v14335_v35 = vld [vmem:[#allocation42_spill] sm:$0xff] }
 0x653   : > { %v3701_v34 = vpop.f32.mrf.mxu0 }
 0x654   : > { %v7057_v36 = vpack.c.bf16 %v4028_v2, %v3370_v29  ;;  %v3702_v28 = vadd.f32 %v3701_v34, %v11337_v42  ;;  %v3375_v2 = vadd.f32 %v3374_v41, %v3046_v19 }
 0x655   : > { %v3048_v30 = vpop.f32.mrf.mxu1  ;;  %8958 = vmatmul.msk.bf16.gmra.mxu3 %vm1370_vm1, %v14333_v11 }
 0x656   : > { %3740 = vmatmul.bf16.gmra.mxu0 %v14332_v22  ;;  %7569 = vst [vmem:[%s10018_s5 + $0x668] sm:$0xff] %v7057_v36  ;;  %9021 = vmatmul.msk.bf16.gmra.mxu2 %vm1370_vm1, %v14331_v48  ;;  %v3049_v48 = vadd.f32 %v3048_v30, %v11334_v21 }
 0x658   : > { %3087 = vmatmul.bf16.gmra.mxu1 %v14334_v27  ;;  %v3377_v12 = vpop.f32.mrf.mxu3 }
 0x659   : > { %v4030_v39 = vpop.f32.mrf.mxu2  ;;  %v3378_v41 = vadd.f32 %v3377_v12, %v3049_v48 }
 0x65a   : > { %v4031_v8 = vadd.f32 %v4030_v39, %v3702_v28 }
 0x65b   : > { %v3703_v55 = vpop.f32.mrf.mxu0 }
 0x65c   : > { %v7061_v54 = vpack.c.bf16 %v4031_v8, %v3373_v6  ;;  %v3704_v34 = vadd.f32 %v3703_v55, %v11337_v42  ;;  %v14336_v6 = vld [vmem:[#allocation43_spill] sm:$0xff] }
 0x65d   : > { %v3050_v61 = vpop.f32.mrf.mxu1 }
 0x65e   : > { %7573 = vst [vmem:[%s10018_s5 + $0x688] sm:$0xff] %v7061_v54 }
 0x660   : > { %v3379_v29 = vpop.f32.mrf.mxu3 }
 0x661   : > { %v4032_v51 = vpop.f32.mrf.mxu2 }
 0x662   : > { %v4033_v36 = vadd.f32 %v4032_v51, %v3704_v34  ;;  %v3051_v34 = vadd.f32 %v3050_v61, %v11334_v21  ;;  %v14337_v61 = vld [vmem:[#allocation44_spill] sm:$0xff] }
 0x663   : > { %v3706_v22 = vpop.f32.mrf.mxu0 }
 0x664   : > { %v7065_v10 = vpack.c.bf16 %v4033_v36, %v3375_v2  ;;  %v3707_v28 = vadd.f32 %v3706_v22, %v11337_v42  ;;  %v3380_v36 = vadd.f32 %v3379_v29, %v3051_v34 }
 0x665   : > { %v3053_v63 = vpop.f32.mrf.mxu1  ;;  %8959 = vmatmul.msk.bf16.gmra.mxu3 %vm1370_vm1, %v14335_v35 }
 0x666   : > { %3745 = vmatmul.bf16.gmra.mxu0 %v14334_v27  ;;  %7577 = vst [vmem:[%s10018_s5 + $0x6a8] sm:$0xff] %v7065_v10  ;;  %9022 = vmatmul.msk.bf16.gmra.mxu2 %vm1370_vm1, %v14333_v11  ;;  %v3054_v11 = vadd.f32 %v3053_v63, %v11334_v21 }
 0x668   : > { %3092 = vmatmul.bf16.gmra.mxu1 %v14336_v6  ;;  %v3382_v8 = vpop.f32.mrf.mxu3 }
 0x669   : > { %v4035_v39 = vpop.f32.mrf.mxu2  ;;  %v3383_v29 = vadd.f32 %v3382_v8, %v3054_v11 }
 0x66a   : > { %v4036_v30 = vadd.f32 %v4035_v39, %v3707_v28 }
 0x66b   : > { %v3708_v55 = vpop.f32.mrf.mxu0 }
 0x66c   : > { %v7069_v54 = vpack.c.bf16 %v4036_v30, %v3378_v41  ;;  %v3709_v22 = vadd.f32 %v3708_v55, %v11337_v42  ;;  %v14338_v41 = vld [vmem:[#allocation45_spill] sm:$0xff] }
 0x66d   : > { %v3055_v19 = vpop.f32.mrf.mxu1 }
 0x66e   : > { %7581 = vst [vmem:[%s10018_s5 + $0x6c8] sm:$0xff] %v7069_v54 }
 0x670   : > { %v3384_v2 = vpop.f32.mrf.mxu3 }
 0x671   : > { %v4037_v51 = vpop.f32.mrf.mxu2 }
 0x672   : > { %v4038_v10 = vadd.f32 %v4037_v51, %v3709_v22  ;;  %v3056_v22 = vadd.f32 %v3055_v19, %v11334_v21  ;;  %v14339_v19 = vld [vmem:[#allocation46_spill] sm:$0xff] }
 0x673   : > { %v3711_v27 = vpop.f32.mrf.mxu0 }
 0x674   : > { %v7073_v48 = vpack.c.bf16 %v4038_v10, %v3380_v36  ;;  %v3712_v28 = vadd.f32 %v3711_v27, %v11337_v42  ;;  %v3385_v10 = vadd.f32 %v3384_v2, %v3056_v22 }
 0x675   : > { %v3058_v12 = vpop.f32.mrf.mxu1  ;;  %8960 = vmatmul.msk.bf16.gmra.mxu3 %vm1370_vm1, %v14337_v61 }
 0x676   : > { %3750 = vmatmul.bf16.gmra.mxu0 %v14336_v6  ;;  %7585 = vst [vmem:[%s10018_s5 + $0x6e8] sm:$0xff] %v7073_v48  ;;  %9023 = vmatmul.msk.bf16.gmra.mxu2 %vm1370_vm1, %v14335_v35  ;;  %v3059_v35 = vadd.f32 %v3058_v12, %v11334_v21 }
 0x678   : > { %3097 = vmatmul.bf16.gmra.mxu1 %v14338_v41  ;;  %v3387_v30 = vpop.f32.mrf.mxu3 }
 0x679   : > { %v4040_v39 = vpop.f32.mrf.mxu2  ;;  %v3388_v2 = vadd.f32 %v3387_v30, %v3059_v35 }
 0x67a   : > { %v4041_v63 = vadd.f32 %v4040_v39, %v3712_v28 }
 0x67b   : > { %v3713_v55 = vpop.f32.mrf.mxu0 }
 0x67c   : > { %v7077_v54 = vpack.c.bf16 %v4041_v63, %v3383_v29  ;;  %v3714_v27 = vadd.f32 %v3713_v55, %v11337_v42  ;;  %v14340_v29 = vld [vmem:[#allocation47_spill] sm:$0xff] }
 0x67d   : > { %v3060_v34 = vpop.f32.mrf.mxu1 }
 0x67e   : > { %7589 = vst [vmem:[%s10018_s5 + $0x708] sm:$0xff] %v7077_v54 }
 0x680   : > { %v3389_v36 = vpop.f32.mrf.mxu3 }
 0x681   : > { %v4042_v51 = vpop.f32.mrf.mxu2 }
 0x682   : > { %v4043_v48 = vadd.f32 %v4042_v51, %v3714_v27  ;;  %v3061_v27 = vadd.f32 %v3060_v34, %v11334_v21  ;;  %v14341_v34 = vld [vmem:[#allocation48_spill] sm:$0xff] }
 0x683   : > { %v3716_v6 = vpop.f32.mrf.mxu0 }
 0x684   : > { %v7081_v11 = vpack.c.bf16 %v4043_v48, %v3385_v10  ;;  %v3717_v28 = vadd.f32 %v3716_v6, %v11337_v42  ;;  %v3390_v48 = vadd.f32 %v3389_v36, %v3061_v27 }
 0x685   : > { %v3063_v8 = vpop.f32.mrf.mxu1  ;;  %8961 = vmatmul.msk.bf16.gmra.mxu3 %vm1370_vm1, %v14339_v19 }
 0x686   : > { %3755 = vmatmul.bf16.gmra.mxu0 %v14338_v41  ;;  %7593 = vst [vmem:[%s10018_s5 + $0x728] sm:$0xff] %v7081_v11  ;;  %9024 = vmatmul.msk.bf16.gmra.mxu2 %vm1370_vm1, %v14337_v61  ;;  %v3064_v61 = vadd.f32 %v3063_v8, %v11334_v21 }
 0x688   : > { %3102 = vmatmul.bf16.gmra.mxu1 %v14340_v29  ;;  %v3392_v63 = vpop.f32.mrf.mxu3 }
 0x689   : > { %v4045_v39 = vpop.f32.mrf.mxu2  ;;  %v3393_v36 = vadd.f32 %v3392_v63, %v3064_v61  ;;  %v9460_v61 = vld [vmem:[%s13848_s1 + $0x94] sm:$0xf] }
 0x68a   : > { %v4046_v12 = vadd.f32 %v4045_v39, %v3717_v28  ;;  %v8559_v63 = vld [vmem:[%s13848_s1 + $0xb0] sm:$0xf0] }
 0x68b   : > { %v3718_v55 = vpop.f32.mrf.mxu0 }
 0x68c   : > { %v7085_v54 = vpack.c.bf16 %v4046_v12, %v3388_v2  ;;  %v3719_v6 = vadd.f32 %v3718_v55, %v11337_v42  ;;  %v14342_v2 = vld [vmem:[#allocation49_spill] sm:$0xff] }
 0x68d   : > { %v3065_v22 = vpop.f32.mrf.mxu1 }
 0x68e   : > { %7597 = vst [vmem:[%s10018_s5 + $0x748] sm:$0xff] %v7085_v54 }
 0x690   : > { %v3394_v10 = vpop.f32.mrf.mxu3 }
 0x691   : > { %v4047_v51 = vpop.f32.mrf.mxu2 }
 0x692   : > { %v4048_v11 = vadd.f32 %v4047_v51, %v3719_v6  ;;  %v3066_v6 = vadd.f32 %v3065_v22, %v11334_v21  ;;  %v9464_v51 = vld [vmem:[%s13848_s1 + $0xac] sm:$0xf0] }
 0x693   : > { %v3721_v41 = vpop.f32.mrf.mxu0 }
 0x694   : > { %v7089_v35 = vpack.c.bf16 %v4048_v11, %v3390_v48  ;;  %v3722_v28 = vadd.f32 %v3721_v41, %v11337_v42  ;;  %v8557_v41 = vld [vmem:[%s13848_s1 + $0x90] sm:$0xf]  ;;  %v8562_v11 = vor.u32 %v9460_v61, %v8559_v63 }
 0x695   : > { %v3068_v30 = vpop.f32.mrf.mxu1  ;;  %8962 = vmatmul.msk.bf16.gmra.mxu3 %vm1370_vm1, %v14341_v34  ;;  %v8558_v48 = vor.u32 %v9464_v51, %v8557_v41 }
 0x696   : > { %3760 = vmatmul.bf16.gmra.mxu0 %v14340_v29  ;;  %7601 = vst [vmem:[%s10018_s5 + $0x768] sm:$0xff] %v7089_v35  ;;  %9025 = vmatmul.msk.bf16.gmra.mxu2 %vm1370_vm1, %v14339_v19 }
 0x697   : > { %4225 = vmatpush.bf16.msra.mxu1 %v8558_v48  ;;  %4883 = vmatpush.bf16.msra.mxu0 %v8562_v11 }
 0x698   : > { %3107 = vmatmul.bf16.gmra.mxu1 %v14342_v2  ;;  %v3397_v12 = vpop.f32.mrf.mxu3 }
 0x699   : > { %v4050_v39 = vpop.f32.mrf.mxu2 }
 0x69a   : > { %v4051_v8 = vadd.f32 %v4050_v39, %v3722_v28 }
 0x69b   : > { %v3723_v55 = vpop.f32.mrf.mxu0 }
 0x69c   : > { %v7093_v54 = vpack.c.bf16 %v4051_v8, %v3393_v36  ;;  %v3724_v22 = vadd.f32 %v3723_v55, %v11337_v42  ;;  %v3395_v36 = vadd.f32 %v3394_v10, %v3066_v6  ;;  %v14343_v55 = vld [vmem:[#allocation50_spill] sm:$0xff]  ;;  %v14344_v10 = vld [vmem:[#allocation51_spill] sm:$0xff] }
 0x69d   : > { %v3070_v27 = vpop.f32.mrf.mxu1 }
 0x69e   : > { %7605 = vst [vmem:[%s10018_s5 + $0x788] sm:$0xff] %v7093_v54  ;;  %v3069_v54 = vadd.f32 %v3068_v30, %v11334_v21 }
 0x6a0   : > { %v3399_v28 = vpop.f32.mrf.mxu3  ;;  %v3398_v6 = vadd.f32 %v3397_v12, %v3069_v54 }
 0x6a1   : > { %v4052_v35 = vpop.f32.mrf.mxu2 }
 0x6a2   : > { %v4053_v39 = vadd.f32 %v4052_v35, %v3724_v22  ;;  %v3071_v35 = vadd.f32 %v3070_v27, %v11334_v21  ;;  %v14345_v27 = vld [vmem:[#allocation52_spill] sm:$0xff] }
 0x6a3   : > { %v3726_v8 = vpop.f32.mrf.mxu0 }
 0x6a4   : > { %v7097_v41 = vpack.c.bf16 %v4053_v39, %v3395_v36  ;;  %v3727_v29 = vadd.f32 %v3726_v8, %v11337_v42 }
 0x6a5   : > { %v3073_v51 = vpop.f32.mrf.mxu1  ;;  %8963 = vmatmul.msk.bf16.gmra.mxu3 %vm1370_vm1, %v14343_v55 }
 0x6a6   : > { %3765 = vmatmul.bf16.gmra.mxu0 %v14342_v2  ;;  %7609 = vst [vmem:[%s10018_s5 + $0x7a8] sm:$0xff] %v7097_v41  ;;  %9026 = vmatmul.msk.bf16.gmra.mxu2 %vm1370_vm1, %v14341_v34  ;;  %v3400_v41 = vadd.f32 %v3399_v28, %v3071_v35  ;;  %v3074_v19 = vadd.f32 %v3073_v51, %v11334_v21 }
 0x6a8   : > { %3112 = vmatmul.bf16.gmra.mxu1 %v14344_v10  ;;  %v3402_v61 = vpop.f32.mrf.mxu3 }
 0x6a9   : > { %v4055_v48 = vpop.f32.mrf.mxu2  ;;  %v3403_v28 = vadd.f32 %v3402_v61, %v3074_v19 }
 0x6aa   : > { %v4056_v30 = vadd.f32 %v4055_v48, %v3727_v29 }
 0x6ab   : > { %v3728_v63 = vpop.f32.mrf.mxu0 }
 0x6ac   : > { %v7101_v22 = vpack.c.bf16 %v4056_v30, %v3398_v6  ;;  %v3729_v36 = vadd.f32 %v3728_v63, %v11337_v42  ;;  %v14346_v6 = vld [vmem:[#allocation53_spill] sm:$0xff] }
 0x6ad   : > { %v3075_v11 = vpop.f32.mrf.mxu1 }
 0x6ae   : > { %7613 = vst [vmem:[%s10018_s5 + $0x7c8] sm:$0xff] %v7101_v22  ;;  %v3076_v35 = vadd.f32 %v3075_v11, %v11334_v21  ;;  %v14347_v11 = vld [vmem:[#allocation54_spill] sm:$0xff] }
 0x6b0   : > { %v3404_v8 = vpop.f32.mrf.mxu3 }
 0x6b1   : > { %v4057_v39 = vpop.f32.mrf.mxu2 }
 0x6b2   : > { %v4058_v2 = vadd.f32 %v4057_v39, %v3729_v36 }
 0x6b3   : > { %v3731_v34 = vpop.f32.mrf.mxu0 }
 0x6b4   : > { %v7105_v12 = vpack.c.bf16 %v4058_v2, %v3400_v41  ;;  %v3732_v29 = vadd.f32 %v3731_v34, %v11337_v42  ;;  %v3405_v41 = vadd.f32 %v3404_v8, %v3076_v35 }
 0x6b5   : > { %v3078_v54 = vpop.f32.mrf.mxu1  ;;  %8964 = vmatmul.msk.bf16.gmra.mxu3 %vm1370_vm1, %v14345_v27 }
 0x6b6   : > { %3770 = vmatmul.bf16.gmra.mxu0 %v14344_v10  ;;  %7617 = vst [vmem:[%s10018_s5 + $0x7e8] sm:$0xff] %v7105_v12  ;;  %9027 = vmatmul.msk.bf16.gmra.mxu2 %vm1370_vm1, %v14343_v55  ;;  %v3079_v55 = vadd.f32 %v3078_v54, %v11334_v21 }
 0x6b8   : > { %3117 = vmatmul.bf16.gmra.mxu1 %v14346_v6  ;;  %v3407_v30 = vpop.f32.mrf.mxu3 }
 0x6b9   : > { %v4060_v48 = vpop.f32.mrf.mxu2  ;;  %v3408_v8 = vadd.f32 %v3407_v30, %v3079_v55 }
 0x6ba   : > { %v4061_v51 = vadd.f32 %v4060_v48, %v3732_v29 }
 0x6bb   : > { %v3733_v2 = vpop.f32.mrf.mxu0 }
 0x6bc   : > { %v7109_v63 = vpack.c.bf16 %v4061_v51, %v3403_v28  ;;  %v3734_v34 = vadd.f32 %v3733_v2, %v11337_v42  ;;  %v14348_v28 = vld [vmem:[#allocation55_spill] sm:$0xff] }
 0x6bd   : > { %v3080_v22 = vpop.f32.mrf.mxu1 }
 0x6be   : > { %7621 = vst [vmem:[%s10018_s5 + $0x808] sm:$0xff] %v7109_v63 }
 0x6c0   : > { %v3409_v39 = vpop.f32.mrf.mxu3 }
 0x6c1   : > { %v4062_v36 = vpop.f32.mrf.mxu2 }
 0x6c2   : > { %v4063_v12 = vadd.f32 %v4062_v36, %v3734_v34  ;;  %v3081_v34 = vadd.f32 %v3080_v22, %v11334_v21  ;;  %v14349_v22 = vld [vmem:[#allocation56_spill] sm:$0xff] }
 0x6c3   : > { %v3736_v10 = vpop.f32.mrf.mxu0 }
 0x6c4   : > { %v7113_v19 = vpack.c.bf16 %v4063_v12, %v3405_v41  ;;  %v3737_v29 = vadd.f32 %v3736_v10, %v11337_v42  ;;  %v3410_v12 = vadd.f32 %v3409_v39, %v3081_v34 }
 0x6c5   : > { %v3083_v61 = vpop.f32.mrf.mxu1  ;;  %8965 = vmatmul.msk.bf16.gmra.mxu3 %vm1370_vm1, %v14347_v11 }
 0x6c6   : > { %3775 = vmatmul.bf16.gmra.mxu0 %v14346_v6  ;;  %7625 = vst [vmem:[%s10018_s5 + $0x828] sm:$0xff] %v7113_v19  ;;  %9028 = vmatmul.msk.bf16.gmra.mxu2 %vm1370_vm1, %v14345_v27  ;;  %v3084_v27 = vadd.f32 %v3083_v61, %v11334_v21 }
 0x6c8   : > { %3122 = vmatmul.bf16.gmra.mxu1 %v14348_v28  ;;  %v3412_v51 = vpop.f32.mrf.mxu3 }
 0x6c9   : > { %v4065_v48 = vpop.f32.mrf.mxu2  ;;  %v3413_v39 = vadd.f32 %v3412_v51, %v3084_v27 }
 0x6ca   : > { %v4066_v54 = vadd.f32 %v4065_v48, %v3737_v29 }
 0x6cb   : > { %v3738_v2 = vpop.f32.mrf.mxu0 }
 0x6cc   : > { %v7117_v63 = vpack.c.bf16 %v4066_v54, %v3408_v8  ;;  %v3739_v10 = vadd.f32 %v3738_v2, %v11337_v42  ;;  %v14350_v8 = vld [vmem:[#allocation57_spill] sm:$0xff] }
 0x6cd   : > { %v3085_v35 = vpop.f32.mrf.mxu1 }
 0x6ce   : > { %7629 = vst [vmem:[%s10018_s5 + $0x848] sm:$0xff] %v7117_v63 }
 0x6d0   : > { %v3414_v41 = vpop.f32.mrf.mxu3 }
 0x6d1   : > { %v4067_v36 = vpop.f32.mrf.mxu2 }
 0x6d2   : > { %v4068_v19 = vadd.f32 %v4067_v36, %v3739_v10  ;;  %v3086_v10 = vadd.f32 %v3085_v35, %v11334_v21  ;;  %v14351_v35 = vld [vmem:[#allocation58_spill] sm:$0xff] }
 0x6d3   : > { %v3741_v6 = vpop.f32.mrf.mxu0 }
 0x6d4   : > { %v7121_v55 = vpack.c.bf16 %v4068_v19, %v3410_v12  ;;  %v3742_v29 = vadd.f32 %v3741_v6, %v11337_v42  ;;  %v3415_v19 = vadd.f32 %v3414_v41, %v3086_v10 }
 0x6d5   : > { %v3088_v30 = vpop.f32.mrf.mxu1  ;;  %8966 = vmatmul.msk.bf16.gmra.mxu3 %vm1370_vm1, %v14349_v22 }
 0x6d6   : > { %3780 = vmatmul.bf16.gmra.mxu0 %v14348_v28  ;;  %7633 = vst [vmem:[%s10018_s5 + $0x868] sm:$0xff] %v7121_v55  ;;  %9029 = vmatmul.msk.bf16.gmra.mxu2 %vm1370_vm1, %v14347_v11  ;;  %v3089_v11 = vadd.f32 %v3088_v30, %v11334_v21 }
 0x6d8   : > { %3127 = vmatmul.bf16.gmra.mxu1 %v14350_v8  ;;  %v3417_v54 = vpop.f32.mrf.mxu3 }
 0x6d9   : > { %v4070_v48 = vpop.f32.mrf.mxu2  ;;  %v3418_v41 = vadd.f32 %v3417_v54, %v3089_v11 }
 0x6da   : > { %v4071_v61 = vadd.f32 %v4070_v48, %v3742_v29 }
 0x6db   : > { %v3743_v2 = vpop.f32.mrf.mxu0 }
 0x6dc   : > { %v7125_v63 = vpack.c.bf16 %v4071_v61, %v3413_v39  ;;  %v3744_v6 = vadd.f32 %v3743_v2, %v11337_v42  ;;  %v14352_v39 = vld [vmem:[#allocation59_spill] sm:$0xff] }
 0x6dd   : > { %v3090_v34 = vpop.f32.mrf.mxu1 }
 0x6de   : > { %7637 = vst [vmem:[%s10018_s5 + $0x888] sm:$0xff] %v7125_v63 }
 0x6e0   : > { %v3419_v12 = vpop.f32.mrf.mxu3 }
 0x6e1   : > { %v4072_v36 = vpop.f32.mrf.mxu2 }
 0x6e2   : > { %v4073_v55 = vadd.f32 %v4072_v36, %v3744_v6  ;;  %v3091_v6 = vadd.f32 %v3090_v34, %v11334_v21  ;;  %v14353_v34 = vld [vmem:[#allocation60_spill] sm:$0xff] }
 0x6e3   : > { %v3746_v28 = vpop.f32.mrf.mxu0 }
 0x6e4   : > { %v7129_v27 = vpack.c.bf16 %v4073_v55, %v3415_v19  ;;  %v3747_v29 = vadd.f32 %v3746_v28, %v11337_v42  ;;  %v3420_v55 = vadd.f32 %v3419_v12, %v3091_v6 }
 0x6e5   : > { %v3093_v51 = vpop.f32.mrf.mxu1  ;;  %8967 = vmatmul.msk.bf16.gmra.mxu3 %vm1370_vm1, %v14351_v35 }
 0x6e6   : > { %3785 = vmatmul.bf16.gmra.mxu0 %v14350_v8  ;;  %7641 = vst [vmem:[%s10018_s5 + $0x8a8] sm:$0xff] %v7129_v27  ;;  %9030 = vmatmul.msk.bf16.gmra.mxu2 %vm1370_vm1, %v14349_v22  ;;  %v3094_v22 = vadd.f32 %v3093_v51, %v11334_v21 }
 0x6e8   : > { %3132 = vmatmul.bf16.gmra.mxu1 %v14352_v39  ;;  %v3422_v61 = vpop.f32.mrf.mxu3 }
 0x6e9   : > { %v4075_v48 = vpop.f32.mrf.mxu2  ;;  %v3423_v12 = vadd.f32 %v3422_v61, %v3094_v22 }
 0x6ea   : > { %v4076_v30 = vadd.f32 %v4075_v48, %v3747_v29 }
 0x6eb   : > { %v3748_v2 = vpop.f32.mrf.mxu0 }
 0x6ec   : > { %v7133_v63 = vpack.c.bf16 %v4076_v30, %v3418_v41  ;;  %v3749_v28 = vadd.f32 %v3748_v2, %v11337_v42  ;;  %v14354_v41 = vld [vmem:[#allocation61_spill] sm:$0xff] }
 0x6ed   : > { %v3095_v10 = vpop.f32.mrf.mxu1 }
 0x6ee   : > { %7645 = vst [vmem:[%s10018_s5 + $0x8c8] sm:$0xff] %v7133_v63 }
 0x6f0   : > { %v3424_v19 = vpop.f32.mrf.mxu3 }
 0x6f1   : > { %v4077_v36 = vpop.f32.mrf.mxu2 }
 0x6f2   : > { %v4078_v27 = vadd.f32 %v4077_v36, %v3749_v28  ;;  %v3096_v28 = vadd.f32 %v3095_v10, %v11334_v21  ;;  %v14355_v10 = vld [vmem:[#allocation62_spill] sm:$0xff] }
 0x6f3   : > { %v3751_v8 = vpop.f32.mrf.mxu0 }
 0x6f4   : > { %v7137_v11 = vpack.c.bf16 %v4078_v27, %v3420_v55  ;;  %v3752_v29 = vadd.f32 %v3751_v8, %v11337_v42  ;;  %v3425_v27 = vadd.f32 %v3424_v19, %v3096_v28 }
 0x6f5   : > { %v3098_v54 = vpop.f32.mrf.mxu1  ;;  %8968 = vmatmul.msk.bf16.gmra.mxu3 %vm1370_vm1, %v14353_v34 }
 0x6f6   : > { %3790 = vmatmul.bf16.gmra.mxu0 %v14352_v39  ;;  %7649 = vst [vmem:[%s10018_s5 + $0x8e8] sm:$0xff] %v7137_v11  ;;  %9031 = vmatmul.msk.bf16.gmra.mxu2 %vm1370_vm1, %v14351_v35  ;;  %v3099_v35 = vadd.f32 %v3098_v54, %v11334_v21 }
 0x6f8   : > { %3137 = vmatmul.bf16.gmra.mxu1 %v14354_v41  ;;  %v3427_v30 = vpop.f32.mrf.mxu3 }
 0x6f9   : > { %v4080_v48 = vpop.f32.mrf.mxu2  ;;  %v3428_v19 = vadd.f32 %v3427_v30, %v3099_v35 }
 0x6fa   : > { %v4081_v51 = vadd.f32 %v4080_v48, %v3752_v29 }
 0x6fb   : > { %v3753_v2 = vpop.f32.mrf.mxu0 }
 0x6fc   : > { %v7141_v63 = vpack.c.bf16 %v4081_v51, %v3423_v12  ;;  %v3754_v8 = vadd.f32 %v3753_v2, %v11337_v42  ;;  %v14356_v12 = vld [vmem:[#allocation63_spill] sm:$0xff] }
 0x6fd   : > { %v3100_v6 = vpop.f32.mrf.mxu1 }
 0x6fe   : > { %7653 = vst [vmem:[%s10018_s5 + $0x908] sm:$0xff] %v7141_v63 }
 0x700   : > { %v3429_v55 = vpop.f32.mrf.mxu3 }
 0x701   : > { %v4082_v36 = vpop.f32.mrf.mxu2 }
 0x702   : > { %v4083_v11 = vadd.f32 %v4082_v36, %v3754_v8  ;;  %v3101_v8 = vadd.f32 %v3100_v6, %v11334_v21  ;;  %v14357_v6 = vld [vmem:[#allocation64_spill] sm:$0xff] }
 0x703   : > { %v3756_v39 = vpop.f32.mrf.mxu0 }
 0x704   : > { %v7145_v22 = vpack.c.bf16 %v4083_v11, %v3425_v27  ;;  %v3757_v29 = vadd.f32 %v3756_v39, %v11337_v42  ;;  %v3430_v11 = vadd.f32 %v3429_v55, %v3101_v8 }
 0x705   : > { %v3103_v61 = vpop.f32.mrf.mxu1  ;;  %8969 = vmatmul.msk.bf16.gmra.mxu3 %vm1370_vm1, %v14355_v10 }
 0x706   : > { %3795 = vmatmul.bf16.gmra.mxu0 %v14354_v41  ;;  %7657 = vst [vmem:[%s10018_s5 + $0x928] sm:$0xff] %v7145_v22  ;;  %9032 = vmatmul.msk.bf16.gmra.mxu2 %vm1370_vm1, %v14353_v34  ;;  %v3104_v34 = vadd.f32 %v3103_v61, %v11334_v21 }
 0x708   : > { %3142 = vmatmul.bf16.gmra.mxu1 %v14356_v12  ;;  %v3432_v51 = vpop.f32.mrf.mxu3 }
 0x709   : > { %v4085_v48 = vpop.f32.mrf.mxu2  ;;  %v3433_v55 = vadd.f32 %v3432_v51, %v3104_v34  ;;  %v9452_v34 = vld [vmem:[%s13848_s1 + $0x54] sm:$0xf] }
 0x70a   : > { %v4086_v54 = vadd.f32 %v4085_v48, %v3757_v29  ;;  %v8527_v51 = vld [vmem:[%s13848_s1 + $0x70] sm:$0xf0] }
 0x70b   : > { %v3758_v2 = vpop.f32.mrf.mxu0 }
 0x70c   : > { %v7149_v63 = vpack.c.bf16 %v4086_v54, %v3428_v19  ;;  %v3759_v39 = vadd.f32 %v3758_v2, %v11337_v42  ;;  %v14358_v19 = vld [vmem:[#allocation65_spill] sm:$0xff] }
 0x70d   : > { %v3105_v28 = vpop.f32.mrf.mxu1 }
 0x70e   : > { %7661 = vst [vmem:[%s10018_s5 + $0x948] sm:$0xff] %v7149_v63 }
 0x710   : > { %v3434_v27 = vpop.f32.mrf.mxu3 }
 0x711   : > { %v4087_v36 = vpop.f32.mrf.mxu2 }
 0x712   : > { %v4088_v22 = vadd.f32 %v4087_v36, %v3759_v39  ;;  %v3106_v39 = vadd.f32 %v3105_v28, %v11334_v21  ;;  %v9456_v36 = vld [vmem:[%s13848_s1 + $0x6c] sm:$0xf0] }
 0x713   : > { %v3761_v41 = vpop.f32.mrf.mxu0 }
 0x714   : > { %v7153_v35 = vpack.c.bf16 %v4088_v22, %v3430_v11  ;;  %v3762_v29 = vadd.f32 %v3761_v41, %v11337_v42  ;;  %v8525_v41 = vld [vmem:[%s13848_s1 + $0x50] sm:$0xf]  ;;  %v8530_v22 = vor.u32 %v9452_v34, %v8527_v51 }
 0x715   : > { %v3108_v30 = vpop.f32.mrf.mxu1  ;;  %8970 = vmatmul.msk.bf16.gmra.mxu3 %vm1370_vm1, %v14357_v6  ;;  %v8526_v11 = vor.u32 %v9456_v36, %v8525_v41 }
 0x716   : > { %3800 = vmatmul.bf16.gmra.mxu0 %v14356_v12  ;;  %7665 = vst [vmem:[%s10018_s5 + $0x968] sm:$0xff] %v7153_v35  ;;  %9033 = vmatmul.msk.bf16.gmra.mxu2 %vm1370_vm1, %v14355_v10 }
 0x717   : > { %4226 = vmatpush.bf16.msra.mxu1 %v8526_v11  ;;  %4884 = vmatpush.bf16.msra.mxu0 %v8530_v22 }
 0x718   : > { %3147 = vmatmul.bf16.gmra.mxu1 %v14358_v19  ;;  %v3437_v54 = vpop.f32.mrf.mxu3 }
 0x719   : > { %v4090_v48 = vpop.f32.mrf.mxu2 }
 0x71a   : > { %v4091_v61 = vadd.f32 %v4090_v48, %v3762_v29 }
 0x71b   : > { %v3763_v2 = vpop.f32.mrf.mxu0 }
 0x71c   : > { %v7157_v63 = vpack.c.bf16 %v4091_v61, %v3433_v55  ;;  %v3764_v28 = vadd.f32 %v3763_v2, %v11337_v42  ;;  %v3435_v55 = vadd.f32 %v3434_v27, %v3106_v39  ;;  %v14359_v2 = vld [vmem:[#allocation66_spill] sm:$0xff]  ;;  %v14360_v27 = vld [vmem:[#allocation67_spill] sm:$0xff] }
 0x71d   : > { %v3110_v8 = vpop.f32.mrf.mxu1 }
 0x71e   : > { %7669 = vst [vmem:[%s10018_s5 + $0x988] sm:$0xff] %v7157_v63  ;;  %v3109_v63 = vadd.f32 %v3108_v30, %v11334_v21 }
 0x720   : > { %v3439_v29 = vpop.f32.mrf.mxu3  ;;  %v3438_v39 = vadd.f32 %v3437_v54, %v3109_v63 }
 0x721   : > { %v4092_v35 = vpop.f32.mrf.mxu2 }
 0x722   : > { %v4093_v48 = vadd.f32 %v4092_v35, %v3764_v28  ;;  %v3111_v35 = vadd.f32 %v3110_v8, %v11334_v21  ;;  %v14361_v8 = vld [vmem:[#allocation68_spill] sm:$0xff] }
 0x723   : > { %v3766_v61 = vpop.f32.mrf.mxu0 }
 0x724   : > { %v7161_v41 = vpack.c.bf16 %v4093_v48, %v3435_v55  ;;  %v3767_v12 = vadd.f32 %v3766_v61, %v11337_v42 }
 0x725   : > { %v3113_v36 = vpop.f32.mrf.mxu1  ;;  %8971 = vmatmul.msk.bf16.gmra.mxu3 %vm1370_vm1, %v14359_v2 }
 0x726   : > { %3805 = vmatmul.bf16.gmra.mxu0 %v14358_v19  ;;  %7673 = vst [vmem:[%s10018_s5 + $0x9a8] sm:$0xff] %v7161_v41  ;;  %9034 = vmatmul.msk.bf16.gmra.mxu2 %vm1370_vm1, %v14357_v6  ;;  %v3440_v41 = vadd.f32 %v3439_v29, %v3111_v35  ;;  %v3114_v10 = vadd.f32 %v3113_v36, %v11334_v21 }
 0x728   : > { %3152 = vmatmul.bf16.gmra.mxu1 %v14360_v27  ;;  %v3442_v34 = vpop.f32.mrf.mxu3 }
 0x729   : > { %v4095_v11 = vpop.f32.mrf.mxu2  ;;  %v3443_v29 = vadd.f32 %v3442_v34, %v3114_v10 }
 0x72a   : > { %v4096_v30 = vadd.f32 %v4095_v11, %v3767_v12 }
 0x72b   : > { %v3768_v51 = vpop.f32.mrf.mxu0 }
 0x72c   : > { %v7165_v28 = vpack.c.bf16 %v4096_v30, %v3438_v39  ;;  %v3769_v55 = vadd.f32 %v3768_v51, %v11337_v42  ;;  %v14362_v39 = vld [vmem:[#allocation69_spill] sm:$0xff] }
 0x72d   : > { %v3115_v22 = vpop.f32.mrf.mxu1 }
 0x72e   : > { %7677 = vst [vmem:[%s10018_s5 + $0x9c8] sm:$0xff] %v7165_v28  ;;  %v3116_v35 = vadd.f32 %v3115_v22, %v11334_v21  ;;  %v14363_v22 = vld [vmem:[#allocation70_spill] sm:$0xff] }
 0x730   : > { %v3444_v61 = vpop.f32.mrf.mxu3 }
 0x731   : > { %v4097_v48 = vpop.f32.mrf.mxu2 }
 0x732   : > { %v4098_v19 = vadd.f32 %v4097_v48, %v3769_v55 }
 0x733   : > { %v3771_v6 = vpop.f32.mrf.mxu0 }
 0x734   : > { %v7169_v54 = vpack.c.bf16 %v4098_v19, %v3440_v41  ;;  %v3772_v12 = vadd.f32 %v3771_v6, %v11337_v42  ;;  %v3445_v41 = vadd.f32 %v3444_v61, %v3116_v35 }
 0x735   : > { %v3118_v63 = vpop.f32.mrf.mxu1  ;;  %8972 = vmatmul.msk.bf16.gmra.mxu3 %vm1370_vm1, %v14361_v8 }
 0x736   : > { %3810 = vmatmul.bf16.gmra.mxu0 %v14360_v27  ;;  %7681 = vst [vmem:[%s10018_s5 + $0x9e8] sm:$0xff] %v7169_v54  ;;  %9035 = vmatmul.msk.bf16.gmra.mxu2 %vm1370_vm1, %v14359_v2  ;;  %v3119_v2 = vadd.f32 %v3118_v63, %v11334_v21 }
 0x738   : > { %3157 = vmatmul.bf16.gmra.mxu1 %v14362_v39  ;;  %v3447_v30 = vpop.f32.mrf.mxu3 }
 0x739   : > { %v4100_v11 = vpop.f32.mrf.mxu2  ;;  %v3448_v61 = vadd.f32 %v3447_v30, %v3119_v2 }
 0x73a   : > { %v4101_v36 = vadd.f32 %v4100_v11, %v3772_v12 }
 0x73b   : > { %v3773_v19 = vpop.f32.mrf.mxu0 }
 0x73c   : > { %v7173_v51 = vpack.c.bf16 %v4101_v36, %v3443_v29  ;;  %v3774_v6 = vadd.f32 %v3773_v19, %v11337_v42  ;;  %v14364_v29 = vld [vmem:[#allocation71_spill] sm:$0xff] }
 0x73d   : > { %v3120_v28 = vpop.f32.mrf.mxu1 }
 0x73e   : > { %7685 = vst [vmem:[%s10018_s5 + $0xa08] sm:$0xff] %v7173_v51 }
 0x740   : > { %v3449_v48 = vpop.f32.mrf.mxu3 }
 0x741   : > { %v4102_v55 = vpop.f32.mrf.mxu2 }
 0x742   : > { %v4103_v54 = vadd.f32 %v4102_v55, %v3774_v6  ;;  %v3121_v6 = vadd.f32 %v3120_v28, %v11334_v21  ;;  %v14365_v28 = vld [vmem:[#allocation72_spill] sm:$0xff] }
 0x743   : > { %v3776_v27 = vpop.f32.mrf.mxu0 }
 0x744   : > { %v7177_v10 = vpack.c.bf16 %v4103_v54, %v3445_v41  ;;  %v3777_v12 = vadd.f32 %v3776_v27, %v11337_v42  ;;  %v3450_v54 = vadd.f32 %v3449_v48, %v3121_v6 }
 0x745   : > { %v3123_v34 = vpop.f32.mrf.mxu1  ;;  %8973 = vmatmul.msk.bf16.gmra.mxu3 %vm1370_vm1, %v14363_v22 }
 0x746   : > { %3815 = vmatmul.bf16.gmra.mxu0 %v14362_v39  ;;  %7689 = vst [vmem:[%s10018_s5 + $0xa28] sm:$0xff] %v7177_v10  ;;  %9036 = vmatmul.msk.bf16.gmra.mxu2 %vm1370_vm1, %v14361_v8  ;;  %v3124_v8 = vadd.f32 %v3123_v34, %v11334_v21 }
 0x748   : > { %3162 = vmatmul.bf16.gmra.mxu1 %v14364_v29  ;;  %v3452_v36 = vpop.f32.mrf.mxu3 }
 0x749   : > { %v4105_v11 = vpop.f32.mrf.mxu2  ;;  %v3453_v48 = vadd.f32 %v3452_v36, %v3124_v8 }
 0x74a   : > { %v4106_v63 = vadd.f32 %v4105_v11, %v3777_v12 }
 0x74b   : > { %v3778_v19 = vpop.f32.mrf.mxu0 }
 0x74c   : > { %v7181_v51 = vpack.c.bf16 %v4106_v63, %v3448_v61  ;;  %v3779_v27 = vadd.f32 %v3778_v19, %v11337_v42  ;;  %v14366_v61 = vld [vmem:[#allocation73_spill] sm:$0xff] }
 0x74d   : > { %v3125_v35 = vpop.f32.mrf.mxu1 }
 0x74e   : > { %7693 = vst [vmem:[%s10018_s5 + $0xa48] sm:$0xff] %v7181_v51 }
 0x750   : > { %v3454_v41 = vpop.f32.mrf.mxu3 }
 0x751   : > { %v4107_v55 = vpop.f32.mrf.mxu2 }
 0x752   : > { %v4108_v10 = vadd.f32 %v4107_v55, %v3779_v27  ;;  %v3126_v27 = vadd.f32 %v3125_v35, %v11334_v21  ;;  %v14367_v35 = vld [vmem:[#allocation74_spill] sm:$0xff] }
 0x753   : > { %v3781_v39 = vpop.f32.mrf.mxu0 }
 0x754   : > { %v7185_v2 = vpack.c.bf16 %v4108_v10, %v3450_v54  ;;  %v3782_v12 = vadd.f32 %v3781_v39, %v11337_v42  ;;  %v3455_v10 = vadd.f32 %v3454_v41, %v3126_v27 }
 0x755   : > { %v3128_v30 = vpop.f32.mrf.mxu1  ;;  %8974 = vmatmul.msk.bf16.gmra.mxu3 %vm1370_vm1, %v14365_v28 }
 0x756   : > { %3820 = vmatmul.bf16.gmra.mxu0 %v14364_v29  ;;  %7697 = vst [vmem:[%s10018_s5 + $0xa68] sm:$0xff] %v7185_v2  ;;  %9037 = vmatmul.msk.bf16.gmra.mxu2 %vm1370_vm1, %v14363_v22  ;;  %v3129_v22 = vadd.f32 %v3128_v30, %v11334_v21 }
 0x758   : > { %3167 = vmatmul.bf16.gmra.mxu1 %v14366_v61  ;;  %v3457_v63 = vpop.f32.mrf.mxu3 }
 0x759   : > { %v4110_v11 = vpop.f32.mrf.mxu2  ;;  %v3458_v41 = vadd.f32 %v3457_v63, %v3129_v22 }
 0x75a   : > { %v4111_v34 = vadd.f32 %v4110_v11, %v3782_v12 }
 0x75b   : > { %v3783_v19 = vpop.f32.mrf.mxu0 }
 0x75c   : > { %v7189_v51 = vpack.c.bf16 %v4111_v34, %v3453_v48  ;;  %v3784_v39 = vadd.f32 %v3783_v19, %v11337_v42  ;;  %v14368_v48 = vld [vmem:[#allocation75_spill] sm:$0xff] }
 0x75d   : > { %v3130_v6 = vpop.f32.mrf.mxu1 }
 0x75e   : > { %7701 = vst [vmem:[%s10018_s5 + $0xa88] sm:$0xff] %v7189_v51 }
 0x760   : > { %v3459_v54 = vpop.f32.mrf.mxu3 }
 0x761   : > { %v4112_v55 = vpop.f32.mrf.mxu2 }
 0x762   : > { %v4113_v2 = vadd.f32 %v4112_v55, %v3784_v39  ;;  %v3131_v39 = vadd.f32 %v3130_v6, %v11334_v21  ;;  %v14369_v6 = vld [vmem:[#allocation76_spill] sm:$0xff] }
 0x763   : > { %v3786_v29 = vpop.f32.mrf.mxu0 }
 0x764   : > { %v7193_v8 = vpack.c.bf16 %v4113_v2, %v3455_v10  ;;  %v3787_v12 = vadd.f32 %v3786_v29, %v11337_v42  ;;  %v3460_v2 = vadd.f32 %v3459_v54, %v3131_v39 }
 0x765   : > { %v3133_v36 = vpop.f32.mrf.mxu1  ;;  %8975 = vmatmul.msk.bf16.gmra.mxu3 %vm1370_vm1, %v14367_v35 }
 0x766   : > { %3825 = vmatmul.bf16.gmra.mxu0 %v14366_v61  ;;  %7705 = vst [vmem:[%s10018_s5 + $0xaa8] sm:$0xff] %v7193_v8  ;;  %9038 = vmatmul.msk.bf16.gmra.mxu2 %vm1370_vm1, %v14365_v28  ;;  %v3134_v28 = vadd.f32 %v3133_v36, %v11334_v21 }
 0x768   : > { %3172 = vmatmul.bf16.gmra.mxu1 %v14368_v48  ;;  %v3462_v34 = vpop.f32.mrf.mxu3 }
 0x769   : > { %v4115_v11 = vpop.f32.mrf.mxu2  ;;  %v3463_v54 = vadd.f32 %v3462_v34, %v3134_v28 }
 0x76a   : > { %v4116_v30 = vadd.f32 %v4115_v11, %v3787_v12 }
 0x76b   : > { %v3788_v19 = vpop.f32.mrf.mxu0 }
 0x76c   : > { %v7197_v51 = vpack.c.bf16 %v4116_v30, %v3458_v41  ;;  %v3789_v29 = vadd.f32 %v3788_v19, %v11337_v42  ;;  %v14370_v41 = vld [vmem:[#allocation77_spill] sm:$0xff] }
 0x76d   : > { %v3135_v27 = vpop.f32.mrf.mxu1 }
 0x76e   : > { %7709 = vst [vmem:[%s10018_s5 + $0xac8] sm:$0xff] %v7197_v51 }
 0x770   : > { %v3464_v10 = vpop.f32.mrf.mxu3 }
 0x771   : > { %v4117_v55 = vpop.f32.mrf.mxu2 }
 0x772   : > { %v4118_v8 = vadd.f32 %v4117_v55, %v3789_v29  ;;  %v3136_v29 = vadd.f32 %v3135_v27, %v11334_v21  ;;  %v14371_v27 = vld [vmem:[#allocation78_spill] sm:$0xff] }
 0x773   : > { %v3791_v61 = vpop.f32.mrf.mxu0 }
 0x774   : > { %v7201_v22 = vpack.c.bf16 %v4118_v8, %v3460_v2  ;;  %v3792_v12 = vadd.f32 %v3791_v61, %v11337_v42  ;;  %v3465_v8 = vadd.f32 %v3464_v10, %v3136_v29 }
 0x775   : > { %v3138_v63 = vpop.f32.mrf.mxu1  ;;  %8976 = vmatmul.msk.bf16.gmra.mxu3 %vm1370_vm1, %v14369_v6 }
 0x776   : > { %3830 = vmatmul.bf16.gmra.mxu0 %v14368_v48  ;;  %7713 = vst [vmem:[%s10018_s5 + $0xae8] sm:$0xff] %v7201_v22  ;;  %9039 = vmatmul.msk.bf16.gmra.mxu2 %vm1370_vm1, %v14367_v35  ;;  %v3139_v35 = vadd.f32 %v3138_v63, %v11334_v21 }
 0x778   : > { %3177 = vmatmul.bf16.gmra.mxu1 %v14370_v41  ;;  %v3467_v30 = vpop.f32.mrf.mxu3 }
 0x779   : > { %v4120_v11 = vpop.f32.mrf.mxu2  ;;  %v3468_v10 = vadd.f32 %v3467_v30, %v3139_v35 }
 0x77a   : > { %v4121_v36 = vadd.f32 %v4120_v11, %v3792_v12 }
 0x77b   : > { %v3793_v19 = vpop.f32.mrf.mxu0 }
 0x77c   : > { %v7205_v51 = vpack.c.bf16 %v4121_v36, %v3463_v54  ;;  %v3794_v61 = vadd.f32 %v3793_v19, %v11337_v42  ;;  %v14372_v54 = vld [vmem:[#allocation79_spill] sm:$0xff] }
 0x77d   : > { %v3140_v39 = vpop.f32.mrf.mxu1 }
 0x77e   : > { %7717 = vst [vmem:[%s10018_s5 + $0xb08] sm:$0xff] %v7205_v51 }
 0x780   : > { %v3469_v2 = vpop.f32.mrf.mxu3 }
 0x781   : > { %v4122_v55 = vpop.f32.mrf.mxu2 }
 0x782   : > { %v4123_v22 = vadd.f32 %v4122_v55, %v3794_v61  ;;  %v3141_v61 = vadd.f32 %v3140_v39, %v11334_v21  ;;  %v14373_v39 = vld [vmem:[#allocation80_spill] sm:$0xff] }
 0x783   : > { %v3796_v48 = vpop.f32.mrf.mxu0 }
 0x784   : > { %v7209_v28 = vpack.c.bf16 %v4123_v22, %v3465_v8  ;;  %v3797_v12 = vadd.f32 %v3796_v48, %v11337_v42  ;;  %v3470_v22 = vadd.f32 %v3469_v2, %v3141_v61 }
 0x785   : > { %v3143_v34 = vpop.f32.mrf.mxu1  ;;  %8977 = vmatmul.msk.bf16.gmra.mxu3 %vm1370_vm1, %v14371_v27 }
 0x786   : > { %3835 = vmatmul.bf16.gmra.mxu0 %v14370_v41  ;;  %7721 = vst [vmem:[%s10018_s5 + $0xb28] sm:$0xff] %v7209_v28  ;;  %9040 = vmatmul.msk.bf16.gmra.mxu2 %vm1370_vm1, %v14369_v6  ;;  %v3144_v6 = vadd.f32 %v3143_v34, %v11334_v21 }
 0x788   : > { %3182 = vmatmul.bf16.gmra.mxu1 %v14372_v54  ;;  %v3472_v36 = vpop.f32.mrf.mxu3 }
 0x789   : > { %v4125_v11 = vpop.f32.mrf.mxu2  ;;  %v3473_v2 = vadd.f32 %v3472_v36, %v3144_v6  ;;  %v9444_v6 = vld [vmem:[%s13848_s1 + $0x14] sm:$0xf] }
 0x78a   : > { %v4126_v63 = vadd.f32 %v4125_v11, %v3797_v12  ;;  %v8495_v36 = vld [vmem:[%s13848_s1 + $0x30] sm:$0xf0] }
 0x78b   : > { %v3798_v19 = vpop.f32.mrf.mxu0 }
 0x78c   : > { %v7213_v51 = vpack.c.bf16 %v4126_v63, %v3468_v10  ;;  %v3799_v48 = vadd.f32 %v3798_v19, %v11337_v42  ;;  %v14374_v10 = vld [vmem:[#allocation81_spill] sm:$0xff] }
 0x78d   : > { %v3145_v29 = vpop.f32.mrf.mxu1 }
 0x78e   : > { %7725 = vst [vmem:[%s10018_s5 + $0xb48] sm:$0xff] %v7213_v51 }
 0x790   : > { %v3474_v8 = vpop.f32.mrf.mxu3 }
 0x791   : > { %v4127_v55 = vpop.f32.mrf.mxu2 }
 0x792   : > { %v4128_v28 = vadd.f32 %v4127_v55, %v3799_v48  ;;  %v3146_v48 = vadd.f32 %v3145_v29, %v11334_v21  ;;  %v9448_v55 = vld [vmem:[%s13848_s1 + $0x2c] sm:$0xf0] }
 0x793   : > { %v3801_v41 = vpop.f32.mrf.mxu0 }
 0x794   : > { %v7217_v35 = vpack.c.bf16 %v4128_v28, %v3470_v22  ;;  %v3802_v12 = vadd.f32 %v3801_v41, %v11337_v42  ;;  %v8493_v41 = vld [vmem:[%s13848_s1 + $0x10] sm:$0xf]  ;;  %v8498_v28 = vor.u32 %v9444_v6, %v8495_v36 }
 0x795   : > { %v3148_v30 = vpop.f32.mrf.mxu1  ;;  %8978 = vmatmul.msk.bf16.gmra.mxu3 %vm1370_vm1, %v14373_v39  ;;  %v8494_v22 = vor.u32 %v9448_v55, %v8493_v41 }
 0x796   : > { %3840 = vmatmul.bf16.gmra.mxu0 %v14372_v54  ;;  %7729 = vst [vmem:[%s10018_s5 + $0xb68] sm:$0xff] %v7217_v35  ;;  %9041 = vmatmul.msk.bf16.gmra.mxu2 %vm1370_vm1, %v14371_v27 }
 0x797   : > { %4227 = vmatpush.bf16.msra.mxu1 %v8494_v22  ;;  %4885 = vmatpush.bf16.msra.mxu0 %v8498_v28 }
 0x798   : > { %3187 = vmatmul.bf16.gmra.mxu1 %v14374_v10  ;;  %v3477_v63 = vpop.f32.mrf.mxu3 }
 0x799   : > { %v4130_v11 = vpop.f32.mrf.mxu2 }
 0x79a   : > { %v4131_v34 = vadd.f32 %v4130_v11, %v3802_v12 }
 0x79b   : > { %v3803_v19 = vpop.f32.mrf.mxu0 }
 0x79c   : > { %v7221_v51 = vpack.c.bf16 %v4131_v34, %v3473_v2  ;;  %v3804_v29 = vadd.f32 %v3803_v19, %v11337_v42  ;;  %v3475_v2 = vadd.f32 %v3474_v8, %v3146_v48  ;;  %v14375_v19 = vld [vmem:[#allocation82_spill] sm:$0xff]  ;;  %v14376_v8 = vld [vmem:[#allocation83_spill] sm:$0xff] }
 0x79d   : > { %v3150_v61 = vpop.f32.mrf.mxu1 }
 0x79e   : > { %7733 = vst [vmem:[%s10018_s5 + $0xb88] sm:$0xff] %v7221_v51  ;;  %v3149_v51 = vadd.f32 %v3148_v30, %v11334_v21 }
 0x7a0   : > { %v3479_v12 = vpop.f32.mrf.mxu3  ;;  %v3478_v48 = vadd.f32 %v3477_v63, %v3149_v51 }
 0x7a1   : > { %v4132_v35 = vpop.f32.mrf.mxu2 }
 0x7a2   : > { %v4133_v11 = vadd.f32 %v4132_v35, %v3804_v29  ;;  %v3151_v35 = vadd.f32 %v3150_v61, %v11334_v21  ;;  %v14377_v61 = vld [vmem:[#allocation84_spill] sm:$0xff] }
 0x7a3   : > { %v3806_v34 = vpop.f32.mrf.mxu0 }
 0x7a4   : > { %v7225_v41 = vpack.c.bf16 %v4133_v11, %v3475_v2  ;;  %v3807_v54 = vadd.f32 %v3806_v34, %v11337_v42 }
 0x7a5   : > { %v3153_v55 = vpop.f32.mrf.mxu1  ;;  %8979 = vmatmul.msk.bf16.gmra.mxu3 %vm1370_vm1, %v14375_v19 }
 0x7a6   : > { %3845 = vmatmul.bf16.gmra.mxu0 %v14374_v10  ;;  %7737 = vst [vmem:[%s10018_s5 + $0xba8] sm:$0xff] %v7225_v41  ;;  %9042 = vmatmul.msk.bf16.gmra.mxu2 %vm1370_vm1, %v14373_v39  ;;  %v3480_v41 = vadd.f32 %v3479_v12, %v3151_v35  ;;  %v3154_v27 = vadd.f32 %v3153_v55, %v11334_v21 }
 0x7a8   : > { %3192 = vmatmul.bf16.gmra.mxu1 %v14376_v8  ;;  %v3482_v6 = vpop.f32.mrf.mxu3 }
 0x7a9   : > { %v4135_v22 = vpop.f32.mrf.mxu2  ;;  %v3483_v12 = vadd.f32 %v3482_v6, %v3154_v27 }
 0x7aa   : > { %v4136_v30 = vadd.f32 %v4135_v22, %v3807_v54 }
 0x7ab   : > { %v3808_v36 = vpop.f32.mrf.mxu0 }
 0x7ac   : > { %v7229_v29 = vpack.c.bf16 %v4136_v30, %v3478_v48  ;;  %v3809_v2 = vadd.f32 %v3808_v36, %v11337_v42  ;;  %v14378_v48 = vld [vmem:[#allocation85_spill] sm:$0xff] }
 0x7ad   : > { %v3155_v28 = vpop.f32.mrf.mxu1 }
 0x7ae   : > { %7741 = vst [vmem:[%s10018_s5 + $0xbc8] sm:$0xff] %v7229_v29  ;;  %v3156_v35 = vadd.f32 %v3155_v28, %v11334_v21  ;;  %v14379_v28 = vld [vmem:[#allocation86_spill] sm:$0xff] }
 0x7b0   : > { %v3484_v34 = vpop.f32.mrf.mxu3 }
 0x7b1   : > { %v4137_v11 = vpop.f32.mrf.mxu2 }
 0x7b2   : > { %v4138_v10 = vadd.f32 %v4137_v11, %v3809_v2 }
 0x7b3   : > { %v3811_v39 = vpop.f32.mrf.mxu0 }
 0x7b4   : > { %v7233_v63 = vpack.c.bf16 %v4138_v10, %v3480_v41  ;;  %v3812_v54 = vadd.f32 %v3811_v39, %v11337_v42  ;;  %v3485_v41 = vadd.f32 %v3484_v34, %v3156_v35 }
 0x7b5   : > { %v3158_v51 = vpop.f32.mrf.mxu1  ;;  %8980 = vmatmul.msk.bf16.gmra.mxu3 %vm1370_vm1, %v14377_v61 }
 0x7b6   : > { %3850 = vmatmul.bf16.gmra.mxu0 %v14376_v8  ;;  %7745 = vst [vmem:[%s10018_s5 + $0xbe8] sm:$0xff] %v7233_v63  ;;  %9043 = vmatmul.msk.bf16.gmra.mxu2 %vm1370_vm1, %v14375_v19  ;;  %v3159_v19 = vadd.f32 %v3158_v51, %v11334_v21 }
 0x7b8   : > { %3197 = vmatmul.bf16.gmra.mxu1 %v14378_v48  ;;  %v3487_v30 = vpop.f32.mrf.mxu3 }
 0x7b9   : > { %v4140_v22 = vpop.f32.mrf.mxu2  ;;  %v3488_v34 = vadd.f32 %v3487_v30, %v3159_v19 }
 0x7ba   : > { %v4141_v55 = vadd.f32 %v4140_v22, %v3812_v54 }
 0x7bb   : > { %v3813_v10 = vpop.f32.mrf.mxu0 }
 0x7bc   : > { %v7237_v36 = vpack.c.bf16 %v4141_v55, %v3483_v12  ;;  %v3814_v39 = vadd.f32 %v3813_v10, %v11337_v42  ;;  %v14380_v12 = vld [vmem:[#allocation87_spill] sm:$0xff] }
 0x7bd   : > { %v3160_v29 = vpop.f32.mrf.mxu1 }
 0x7be   : > { %7749 = vst [vmem:[%s10018_s5 + $0xc08] sm:$0xff] %v7237_v36 }
 0x7c0   : > { %v3489_v11 = vpop.f32.mrf.mxu3 }
 0x7c1   : > { %v4142_v2 = vpop.f32.mrf.mxu2 }
 0x7c2   : > { %v4143_v63 = vadd.f32 %v4142_v2, %v3814_v39  ;;  %v3161_v39 = vadd.f32 %v3160_v29, %v11334_v21  ;;  %v14381_v29 = vld [vmem:[#allocation88_spill] sm:$0xff] }
 0x7c3   : > { %v3816_v8 = vpop.f32.mrf.mxu0 }
 0x7c4   : > { %v7241_v27 = vpack.c.bf16 %v4143_v63, %v3485_v41  ;;  %v3817_v54 = vadd.f32 %v3816_v8, %v11337_v42  ;;  %v3490_v63 = vadd.f32 %v3489_v11, %v3161_v39 }
 0x7c5   : > { %v3163_v6 = vpop.f32.mrf.mxu1  ;;  %8981 = vmatmul.msk.bf16.gmra.mxu3 %vm1370_vm1, %v14379_v28 }
 0x7c6   : > { %3855 = vmatmul.bf16.gmra.mxu0 %v14378_v48  ;;  %7753 = vst [vmem:[%s10018_s5 + $0xc28] sm:$0xff] %v7241_v27  ;;  %9044 = vmatmul.msk.bf16.gmra.mxu2 %vm1370_vm1, %v14377_v61  ;;  %v3164_v61 = vadd.f32 %v3163_v6, %v11334_v21 }
 0x7c8   : > { %3202 = vmatmul.bf16.gmra.mxu1 %v14380_v12  ;;  %v3492_v55 = vpop.f32.mrf.mxu3 }
 0x7c9   : > { %v4145_v22 = vpop.f32.mrf.mxu2  ;;  %v3493_v11 = vadd.f32 %v3492_v55, %v3164_v61 }
 0x7ca   : > { %v4146_v51 = vadd.f32 %v4145_v22, %v3817_v54 }
 0x7cb   : > { %v3818_v10 = vpop.f32.mrf.mxu0 }
 0x7cc   : > { %v7245_v36 = vpack.c.bf16 %v4146_v51, %v3488_v34  ;;  %v3819_v8 = vadd.f32 %v3818_v10, %v11337_v42  ;;  %v14382_v34 = vld [vmem:[#allocation89_spill] sm:$0xff] }
 0x7cd   : > { %v3165_v35 = vpop.f32.mrf.mxu1 }
 0x7ce   : > { %7757 = vst [vmem:[%s10018_s5 + $0xc48] sm:$0xff] %v7245_v36 }
 0x7d0   : > { %v3494_v41 = vpop.f32.mrf.mxu3 }
 0x7d1   : > { %v4147_v2 = vpop.f32.mrf.mxu2 }
 0x7d2   : > { %v4148_v27 = vadd.f32 %v4147_v2, %v3819_v8  ;;  %v3166_v8 = vadd.f32 %v3165_v35, %v11334_v21  ;;  %v14383_v35 = vld [vmem:[#allocation90_spill] sm:$0xff] }
 0x7d3   : > { %v3821_v48 = vpop.f32.mrf.mxu0 }
 0x7d4   : > { %v7249_v19 = vpack.c.bf16 %v4148_v27, %v3490_v63  ;;  %v3822_v54 = vadd.f32 %v3821_v48, %v11337_v42  ;;  %v3495_v27 = vadd.f32 %v3494_v41, %v3166_v8 }
 0x7d5   : > { %v3168_v30 = vpop.f32.mrf.mxu1  ;;  %8982 = vmatmul.msk.bf16.gmra.mxu3 %vm1370_vm1, %v14381_v29 }
 0x7d6   : > { %3860 = vmatmul.bf16.gmra.mxu0 %v14380_v12  ;;  %7761 = vst [vmem:[%s10018_s5 + $0xc68] sm:$0xff] %v7249_v19  ;;  %9045 = vmatmul.msk.bf16.gmra.mxu2 %vm1370_vm1, %v14379_v28  ;;  %v3169_v28 = vadd.f32 %v3168_v30, %v11334_v21 }
 0x7d8   : > { %3207 = vmatmul.bf16.gmra.mxu1 %v14382_v34  ;;  %v3497_v51 = vpop.f32.mrf.mxu3 }
 0x7d9   : > { %v4150_v22 = vpop.f32.mrf.mxu2  ;;  %v3498_v41 = vadd.f32 %v3497_v51, %v3169_v28 }
 0x7da   : > { %v4151_v6 = vadd.f32 %v4150_v22, %v3822_v54 }
 0x7db   : > { %v3823_v10 = vpop.f32.mrf.mxu0 }
 0x7dc   : > { %v7253_v36 = vpack.c.bf16 %v4151_v6, %v3493_v11  ;;  %v3824_v48 = vadd.f32 %v3823_v10, %v11337_v42  ;;  %v14384_v11 = vld [vmem:[#allocation91_spill] sm:$0xff] }
 0x7dd   : > { %v3170_v39 = vpop.f32.mrf.mxu1 }
 0x7de   : > { %7765 = vst [vmem:[%s10018_s5 + $0xc88] sm:$0xff] %v7253_v36 }
 0x7e0   : > { %v3499_v63 = vpop.f32.mrf.mxu3 }
 0x7e1   : > { %v4152_v2 = vpop.f32.mrf.mxu2 }
 0x7e2   : > { %v4153_v19 = vadd.f32 %v4152_v2, %v3824_v48  ;;  %v3171_v48 = vadd.f32 %v3170_v39, %v11334_v21  ;;  %v14385_v39 = vld [vmem:[#allocation92_spill] sm:$0xff] }
 0x7e3   : > { %v3826_v12 = vpop.f32.mrf.mxu0 }
 0x7e4   : > { %v7257_v61 = vpack.c.bf16 %v4153_v19, %v3495_v27  ;;  %v3827_v54 = vadd.f32 %v3826_v12, %v11337_v42  ;;  %v3500_v19 = vadd.f32 %v3499_v63, %v3171_v48 }
 0x7e5   : > { %v3173_v55 = vpop.f32.mrf.mxu1  ;;  %8983 = vmatmul.msk.bf16.gmra.mxu3 %vm1370_vm1, %v14383_v35 }
 0x7e6   : > { %3865 = vmatmul.bf16.gmra.mxu0 %v14382_v34  ;;  %7769 = vst [vmem:[%s10018_s5 + $0xca8] sm:$0xff] %v7257_v61  ;;  %9046 = vmatmul.msk.bf16.gmra.mxu2 %vm1370_vm1, %v14381_v29  ;;  %v3174_v29 = vadd.f32 %v3173_v55, %v11334_v21 }
 0x7e8   : > { %3212 = vmatmul.bf16.gmra.mxu1 %v14384_v11  ;;  %v3502_v6 = vpop.f32.mrf.mxu3 }
 0x7e9   : > { %v4155_v22 = vpop.f32.mrf.mxu2  ;;  %v3503_v63 = vadd.f32 %v3502_v6, %v3174_v29 }
 0x7ea   : > { %v4156_v30 = vadd.f32 %v4155_v22, %v3827_v54 }
 0x7eb   : > { %v3828_v10 = vpop.f32.mrf.mxu0 }
 0x7ec   : > { %v7261_v36 = vpack.c.bf16 %v4156_v30, %v3498_v41  ;;  %v3829_v12 = vadd.f32 %v3828_v10, %v11337_v42  ;;  %v14386_v41 = vld [vmem:[#allocation93_spill] sm:$0xff] }
 0x7ed   : > { %v3175_v8 = vpop.f32.mrf.mxu1 }
 0x7ee   : > { %7773 = vst [vmem:[%s10018_s5 + $0xcc8] sm:$0xff] %v7261_v36 }
 0x7f0   : > { %v3504_v27 = vpop.f32.mrf.mxu3 }
 0x7f1   : > { %v4157_v2 = vpop.f32.mrf.mxu2 }
 0x7f2   : > { %v4158_v61 = vadd.f32 %v4157_v2, %v3829_v12  ;;  %v3176_v12 = vadd.f32 %v3175_v8, %v11334_v21  ;;  %v14387_v8 = vld [vmem:[#allocation94_spill] sm:$0xff] }
 0x7f3   : > { %v3831_v34 = vpop.f32.mrf.mxu0 }
 0x7f4   : > { %v7265_v28 = vpack.c.bf16 %v4158_v61, %v3500_v19  ;;  %v3832_v54 = vadd.f32 %v3831_v34, %v11337_v42  ;;  %v3505_v61 = vadd.f32 %v3504_v27, %v3176_v12 }
 0x7f5   : > { %v3178_v51 = vpop.f32.mrf.mxu1  ;;  %8984 = vmatmul.msk.bf16.gmra.mxu3 %vm1370_vm1, %v14385_v39 }
 0x7f6   : > { %3870 = vmatmul.bf16.gmra.mxu0 %v14384_v11  ;;  %7777 = vst [vmem:[%s10018_s5 + $0xce8] sm:$0xff] %v7265_v28  ;;  %9047 = vmatmul.msk.bf16.gmra.mxu2 %vm1370_vm1, %v14383_v35  ;;  %v3179_v35 = vadd.f32 %v3178_v51, %v11334_v21 }
 0x7f8   : > { %3217 = vmatmul.bf16.gmra.mxu1 %v14386_v41  ;;  %v3507_v30 = vpop.f32.mrf.mxu3 }
 0x7f9   : > { %v4160_v22 = vpop.f32.mrf.mxu2  ;;  %v3508_v27 = vadd.f32 %v3507_v30, %v3179_v35 }
 0x7fa   : > { %v4161_v55 = vadd.f32 %v4160_v22, %v3832_v54 }
 0x7fb   : > { %v3833_v10 = vpop.f32.mrf.mxu0 }
 0x7fc   : > { %v7269_v36 = vpack.c.bf16 %v4161_v55, %v3503_v63  ;;  %v3834_v34 = vadd.f32 %v3833_v10, %v11337_v42 }
 0x7fd   : > { %v3180_v48 = vpop.f32.mrf.mxu1 }
 0x7fe   : > { %7781 = vst [vmem:[%s10018_s5 + $0xd08] sm:$0xff] %v7269_v36  ;;  %v3181_v12 = vadd.f32 %v3180_v48, %v11334_v21  ;;  %v14388_v48 = vld [vmem:[#allocation96_spill] sm:$0xff] }
 0x800   : > { %v3509_v19 = vpop.f32.mrf.mxu3 }
 0x801   : > { %v4162_v2 = vpop.f32.mrf.mxu2 }
 0x802   : > { %v4163_v28 = vadd.f32 %v4162_v2, %v3834_v34 }
 0x803   : > { %v3836_v11 = vpop.f32.mrf.mxu0 }
 0x804   : > { %v7273_v29 = vpack.c.bf16 %v4163_v28, %v3505_v61  ;;  %v3837_v54 = vadd.f32 %v3836_v11, %v11337_v42  ;;  %v3510_v61 = vadd.f32 %v3509_v19, %v3181_v12  ;;  %v8789_v19 = vld [vmem:[%s13848_s1 + $0x258] sm:$0xf] }
 0x805   : > { %v3183_v6 = vpop.f32.mrf.mxu1  ;;  %8985 = vmatmul.msk.bf16.gmra.mxu3 %vm1370_vm1, %v14387_v8 }
 0x806   : > { %3875 = vmatmul.bf16.gmra.mxu0 %v14386_v41  ;;  %7785 = vst [vmem:[%s10018_s5 + $0xd28] sm:$0xff] %v7273_v29  ;;  %9048 = vmatmul.msk.bf16.gmra.mxu2 %vm1370_vm1, %v14385_v39  ;;  %v3184_v41 = vadd.f32 %v3183_v6, %v11334_v21  ;;  %v9521_v6 = vld [vmem:[%s13848_s1 + $0x274] sm:$0x10] }
 0x808   : > { %3222 = vmatmul.bf16.gmra.mxu1 %v11166_v7  ;;  %v3512_v22 = vpop.f32.mrf.mxu3 }
 0x809   : > { %v4165_v63 = vpop.f32.mrf.mxu2 }
 0x80a   : > { %v4166_v51 = vadd.f32 %v4165_v63, %v3837_v54  ;;  %v9517_v63 = vld [vmem:[%s13848_s1 + $0x25c] sm:$0xf] }
 0x80b   : > { %v3838_v55 = vpop.f32.mrf.mxu0 }
 0x80c   : > { %v7277_v10 = vpack.c.bf16 %v4166_v51, %v3508_v27  ;;  %v3839_v11 = vadd.f32 %v3838_v55, %v11337_v42  ;;  %v8790_v27 = vor.u32 %v9521_v6, %v8789_v19  ;;  %v8791_v51 = vld [vmem:[%s13848_s1 + $0x278] sm:$0x10]  ;;  %v3513_v55 = vadd.f32 %v3512_v22, %v3184_v41  ;;  %v8725_v41 = vld [vmem:[%s13848_s1 + $0x1d8] sm:$0xf] }
 0x80d   : > { %v3185_v36 = vpop.f32.mrf.mxu1  ;;  %v9505_v22 = vld [vmem:[%s13848_s1 + $0x1f4] sm:$0xf0] }
 0x80e   : > { %7789 = vst [vmem:[%s10018_s5 + $0xd48] sm:$0xff] %v7277_v10  ;;  %v8794_v10 = vor.u32 %v9517_v63, %v8791_v51  ;;  %v3186_v6 = vadd.f32 %v3185_v36, %v11334_v21  ;;  %v8727_v63 = vld [vmem:[%s13848_s1 + $0x1f8] sm:$0xf0] }
 0x810   : > { %v3514_v2 = vpop.f32.mrf.mxu3 }
 0x811   : > { %v4167_v34 = vpop.f32.mrf.mxu2 }
 0x812   : > { %v4168_v28 = vadd.f32 %v4167_v34, %v3839_v11  ;;  %v1583_v34 = vsel %vm1563_vm0, %v8790_v27, 0  ;;  %v8726_v27 = vor.u32 %v9505_v22, %v8725_v41 }
 0x813   : > { %v3841_v29 = vpop.f32.mrf.mxu0  ;;  %5871 = vmatpush.bf16.msrb.mxu3 %v1583_v34 }
 0x814   : > { %v7281_v35 = vpack.c.bf16 %v4168_v28, %v3510_v61  ;;  %v3842_v54 = vadd.f32 %v3841_v29, %v11337_v42  ;;  %v1586_v29 = vsel %vm1563_vm0, %v8794_v10, 0  ;;  %5536 = vmatpush.bf16.msrb.mxu1 %v8726_v27 }
 0x815   : > { %v3188_v30 = vpop.f32.mrf.mxu1  ;;  %8986 = vmatmul.msk.bf16.gmra.mxu3 %vm1370_vm1, %v14388_v48  ;;  %6529 = vmatpush.bf16.msrb.mxu2 %v1586_v29 }
 0x816   : > { %3880 = vmatmul.bf16.gmra.mxu0 %v11166_v7  ;;  %7793 = vst [vmem:[%s10018_s5 + $0xd68] sm:$0xff] %v7281_v35  ;;  %9049 = vmatmul.msk.bf16.gmra.mxu2 %vm1370_vm1, %v14387_v8  ;;  %v3189_v29 = vadd.f32 %v3188_v30, %v11334_v21 }
 0x818   : > { %3227 = vmatmul.bf16.gmra.mxu1 %v11204_v15  ;;  %v3517_v11 = vpop.f32.mrf.mxu3 }
 0x819   : > { %v4170_v12 = vpop.f32.mrf.mxu2 }
 0x81a   : > { %v4171_v61 = vadd.f32 %v4170_v12, %v3842_v54  ;;  %v9501_v54 = vld [vmem:[%s13848_s1 + $0x1dc] sm:$0xf]  ;;  %v3515_v12 = vadd.f32 %v3514_v2, %v3186_v6  ;;  %v3518_v2 = vadd.f32 %v3517_v11, %v3189_v29 }
 0x81b   : > { %v3843_v28 = vpop.f32.mrf.mxu0  ;;  %v8730_v51 = vor.u32 %v9501_v54, %v8727_v63 }
 0x81c   : > { %v7285_v35 = vpack.c.bf16 %v4171_v61, %v3513_v55  ;;  %v3844_v36 = vadd.f32 %v3843_v28, %v11337_v42 }
 0x81d   : > { %v3190_v19 = vpop.f32.mrf.mxu1  ;;  %6194 = vmatpush.bf16.msrb.mxu0 %v8730_v51 }
 0x81e   : > { %7797 = vst [vmem:[%s10018_s5 + $0xd88] sm:$0xff] %v7285_v35 }
 0x820   : > { %v3519_v10 = vpop.f32.mrf.mxu3 }
 0x821   : > { %v4172_v55 = vpop.f32.mrf.mxu2 }
 0x822   : > { %v4173_v34 = vadd.f32 %v4172_v55, %v3844_v36  ;;  %v3191_v36 = vadd.f32 %v3190_v19, %v11334_v21 }
 0x823   : > { %v3846_v61 = vpop.f32.mrf.mxu0 }
 0x824   : > { %v7289_v35 = vpack.c.bf16 %v4173_v34, %v3515_v12  ;;  %v3847_v22 = vadd.f32 %v3846_v61, %v11337_v42  ;;  %v3520_v34 = vadd.f32 %v3519_v10, %v3191_v36 }
 0x825   : > { %v3193_v41 = vpop.f32.mrf.mxu1  ;;  %9051 = vmatmul.msk.bf16.vlgmr.msra.gmra.mxu3 %vm1370_vm1, %v9814_v53 }
 0x826   : > { %3885 = vmatmul.bf16.gmra.mxu0 %v11204_v15  ;;  %7801 = vst [vmem:[%s10018_s5 + $0xda8] sm:$0xff] %v7289_v35  ;;  %9050 = vmatmul.msk.bf16.gmra.mxu2 %vm1370_vm1, %v14388_v48  ;;  %v3194_v15 = vadd.f32 %v3193_v41, %v11334_v21 }
 0x828   : > { %4228 = vmatmul.bf16.vlgmr.msra.gmra.mxu1 %v9867_v18  ;;  %v3522_v6 = vpop.f32.mrf.mxu3 }
 0x829   : > { %v4175_v28 = vpop.f32.mrf.mxu2  ;;  %v3523_v19 = vadd.f32 %v3522_v6, %v3194_v15 }
 0x82a   : > { %v4176_v30 = vadd.f32 %v4175_v28, %v3847_v22 }
 0x82b   : > { %v3848_v27 = vpop.f32.mrf.mxu0 }
 0x82c   : > { %v7293_v54 = vpack.c.bf16 %v4176_v30, %v3518_v2  ;;  %v3849_v51 = vadd.f32 %v3848_v27, %v11337_v42 }
 0x82d   : > { %v3195_v63 = vpop.f32.mrf.mxu1 }
 0x82e   : > { %7805 = vst [vmem:[%s10018_s5 + $0xdc8] sm:$0xff] %v7293_v54  ;;  %v3196_v54 = vadd.f32 %v3195_v63, %v11334_v21 }
 0x830   : > { %v3524_v12 = vpop.f32.mrf.mxu3 }
 0x831   : > { %v4177_v55 = vpop.f32.mrf.mxu2 }
 0x832   : > { %v4178_v61 = vadd.f32 %v4177_v55, %v3849_v51 }
 0x833   : > { %v3851_v35 = vpop.f32.mrf.mxu0 }
 0x834   : > { %v7297_v11 = vpack.c.bf16 %v4178_v61, %v3520_v34  ;;  %v3852_v22 = vadd.f32 %v3851_v35, %v11337_v42  ;;  %v3525_v34 = vadd.f32 %v3524_v12, %v3196_v54 }
 0x835   : > { %v3198_v29 = vpop.f32.mrf.mxu1  ;;  %9052 = vmatmul.msk.bf16.gmra.mxu3 %vm1370_vm1, %v9870_v20 }
 0x836   : > { %4886 = vmatmul.bf16.vlgmr.msra.gmra.mxu0 %v9867_v18  ;;  %7809 = vst [vmem:[%s10018_s5 + $0xde8] sm:$0xff] %v7297_v11  ;;  %9115 = vmatmul.msk.bf16.vlgmr.msra.gmra.mxu2 %vm1370_vm1, %v9814_v53  ;;  %v3199_v11 = vadd.f32 %v3198_v29, %v11334_v21 }
 0x838   : > { %4233 = vmatmul.bf16.gmra.mxu1 %v9882_v25  ;;  %v3527_v2 = vpop.f32.mrf.mxu3 }
 0x839   : > { %v4180_v10 = vpop.f32.mrf.mxu2  ;;  %v3528_v63 = vadd.f32 %v3527_v2, %v3199_v11 }
 0x83a   : > { %v4181_v41 = vadd.f32 %v4180_v10, %v3852_v22 }
 0x83b   : > { %v3853_v28 = vpop.f32.mrf.mxu0 }
 0x83c   : > { %v7301_v30 = vpack.c.bf16 %v4181_v41, %v3523_v19  ;;  %v3854_v36 = vadd.f32 %v3853_v28, %v11337_v42 }
 0x83d   : > { %v3200_v27 = vpop.f32.mrf.mxu1 }
 0x83e   : > { %7813 = vst [vmem:[%s10018_s5 + $0xe08] sm:$0xff] %v7301_v30  ;;  %v3201_v30 = vadd.f32 %v3200_v27, %v11334_v21 }
 0x840   : > { %v3529_v55 = vpop.f32.mrf.mxu3 }
 0x841   : > { %v4182_v51 = vpop.f32.mrf.mxu2 }
 0x842   : > { %v4183_v61 = vadd.f32 %v4182_v51, %v3854_v36 }
 0x843   : > { %v3856_v35 = vpop.f32.mrf.mxu0 }
 0x844   : > { %v7305_v15 = vpack.c.bf16 %v4183_v61, %v3525_v34  ;;  %v3857_v22 = vadd.f32 %v3856_v35, %v11337_v42  ;;  %v3530_v34 = vadd.f32 %v3529_v55, %v3201_v30 }
 0x845   : > { %v3203_v6 = vpop.f32.mrf.mxu1  ;;  %9053 = vmatmul.msk.bf16.gmra.mxu3 %vm1370_vm1, %v9884_v26 }
 0x846   : > { %4891 = vmatmul.bf16.gmra.mxu0 %v9882_v25  ;;  %7817 = vst [vmem:[%s10018_s5 + $0xe28] sm:$0xff] %v7305_v15  ;;  %9116 = vmatmul.msk.bf16.gmra.mxu2 %vm1370_vm1, %v9870_v20  ;;  %v3204_v15 = vadd.f32 %v3203_v6, %v11334_v21 }
 0x848   : > { %4238 = vmatmul.bf16.gmra.mxu1 %v9896_v31  ;;  %v3532_v19 = vpop.f32.mrf.mxu3 }
 0x849   : > { %v4185_v12 = vpop.f32.mrf.mxu2  ;;  %v3533_v27 = vadd.f32 %v3532_v19, %v3204_v15 }
 0x84a   : > { %v4186_v29 = vadd.f32 %v4185_v12, %v3857_v22 }
 0x84b   : > { %v3858_v10 = vpop.f32.mrf.mxu0 }
 0x84c   : > { %v7309_v41 = vpack.c.bf16 %v4186_v29, %v3528_v63  ;;  %v3859_v54 = vadd.f32 %v3858_v10, %v11337_v42 }
 0x84d   : > { %v3205_v28 = vpop.f32.mrf.mxu1 }
 0x84e   : > { %7821 = vst [vmem:[%s10018_s5 + $0xe48] sm:$0xff] %v7309_v41  ;;  %v3206_v41 = vadd.f32 %v3205_v28, %v11334_v21 }
 0x850   : > { %v3534_v51 = vpop.f32.mrf.mxu3 }
 0x851   : > { %v4187_v36 = vpop.f32.mrf.mxu2 }
 0x852   : > { %v4188_v61 = vadd.f32 %v4187_v36, %v3859_v54 }
 0x853   : > { %v3861_v35 = vpop.f32.mrf.mxu0 }
 0x854   : > { %v7313_v2 = vpack.c.bf16 %v4188_v61, %v3530_v34  ;;  %v3862_v22 = vadd.f32 %v3861_v35, %v11337_v42  ;;  %v3535_v34 = vadd.f32 %v3534_v51, %v3206_v41 }
 0x855   : > { %v3208_v11 = vpop.f32.mrf.mxu1  ;;  %9054 = vmatmul.msk.bf16.gmra.mxu3 %vm1370_vm1, %v9898_v32 }
 0x856   : > { %4896 = vmatmul.bf16.gmra.mxu0 %v9896_v31  ;;  %7825 = vst [vmem:[%s10018_s5 + $0xe68] sm:$0xff] %v7313_v2  ;;  %9117 = vmatmul.msk.bf16.gmra.mxu2 %vm1370_vm1, %v9884_v26  ;;  %v3209_v2 = vadd.f32 %v3208_v11, %v11334_v21 }
 0x858   : > { %4243 = vmatmul.bf16.gmra.mxu1 %v9910_v37  ;;  %v3537_v63 = vpop.f32.mrf.mxu3 }
 0x859   : > { %v4190_v55 = vpop.f32.mrf.mxu2  ;;  %v3538_v28 = vadd.f32 %v3537_v63, %v3209_v2 }
 0x85a   : > { %v4191_v6 = vadd.f32 %v4190_v55, %v3862_v22 }
 0x85b   : > { %v3863_v12 = vpop.f32.mrf.mxu0 }
 0x85c   : > { %v7317_v29 = vpack.c.bf16 %v4191_v6, %v3533_v27  ;;  %v3864_v30 = vadd.f32 %v3863_v12, %v11337_v42 }
 0x85d   : > { %v3210_v10 = vpop.f32.mrf.mxu1 }
 0x85e   : > { %7829 = vst [vmem:[%s10018_s5 + $0xe88] sm:$0xff] %v7317_v29  ;;  %v3211_v29 = vadd.f32 %v3210_v10, %v11334_v21 }
 0x860   : > { %v3539_v36 = vpop.f32.mrf.mxu3 }
 0x861   : > { %v4192_v54 = vpop.f32.mrf.mxu2 }
 0x862   : > { %v4193_v61 = vadd.f32 %v4192_v54, %v3864_v30 }
 0x863   : > { %v3866_v35 = vpop.f32.mrf.mxu0 }
 0x864   : > { %v7321_v19 = vpack.c.bf16 %v4193_v61, %v3535_v34  ;;  %v3867_v22 = vadd.f32 %v3866_v35, %v11337_v42  ;;  %v3540_v34 = vadd.f32 %v3539_v36, %v3211_v29 }
 0x865   : > { %v3213_v15 = vpop.f32.mrf.mxu1  ;;  %9055 = vmatmul.msk.bf16.gmra.mxu3 %vm1370_vm1, %v9912_v38 }
 0x866   : > { %4901 = vmatmul.bf16.gmra.mxu0 %v9910_v37  ;;  %7833 = vst [vmem:[%s10018_s5 + $0xea8] sm:$0xff] %v7321_v19  ;;  %9118 = vmatmul.msk.bf16.gmra.mxu2 %vm1370_vm1, %v9898_v32  ;;  %v3214_v19 = vadd.f32 %v3213_v15, %v11334_v21 }
 0x868   : > { %4248 = vmatmul.bf16.gmra.mxu1 %v9924_v43  ;;  %v3542_v27 = vpop.f32.mrf.mxu3 }
 0x869   : > { %v4195_v51 = vpop.f32.mrf.mxu2  ;;  %v3543_v10 = vadd.f32 %v3542_v27, %v3214_v19 }
 0x86a   : > { %v4196_v11 = vadd.f32 %v4195_v51, %v3867_v22 }
 0x86b   : > { %v3868_v55 = vpop.f32.mrf.mxu0 }
 0x86c   : > { %v7325_v6 = vpack.c.bf16 %v4196_v11, %v3538_v28  ;;  %v3869_v41 = vadd.f32 %v3868_v55, %v11337_v42 }
 0x86d   : > { %v3215_v12 = vpop.f32.mrf.mxu1 }
 0x86e   : > { %7837 = vst [vmem:[%s10018_s5 + $0xec8] sm:$0xff] %v7325_v6  ;;  %v3216_v6 = vadd.f32 %v3215_v12, %v11334_v21 }
 0x870   : > { %v3544_v54 = vpop.f32.mrf.mxu3 }
 0x871   : > { %v4197_v30 = vpop.f32.mrf.mxu2 }
 0x872   : > { %v4198_v61 = vadd.f32 %v4197_v30, %v3869_v41 }
 0x873   : > { %v3871_v35 = vpop.f32.mrf.mxu0 }
 0x874   : > { %v7329_v63 = vpack.c.bf16 %v4198_v61, %v3540_v34  ;;  %v3872_v22 = vadd.f32 %v3871_v35, %v11337_v42  ;;  %v3545_v34 = vadd.f32 %v3544_v54, %v3216_v6 }
 0x875   : > { %v3218_v2 = vpop.f32.mrf.mxu1  ;;  %9056 = vmatmul.msk.bf16.gmra.mxu3 %vm1370_vm1, %v9926_v44 }
 0x876   : > { %4906 = vmatmul.bf16.gmra.mxu0 %v9924_v43  ;;  %7841 = vst [vmem:[%s10018_s5 + $0xee8] sm:$0xff] %v7329_v63  ;;  %9119 = vmatmul.msk.bf16.gmra.mxu2 %vm1370_vm1, %v9912_v38  ;;  %v3219_v63 = vadd.f32 %v3218_v2, %v11334_v21 }
 0x878   : > { %4253 = vmatmul.bf16.gmra.mxu1 %v9938_v49  ;;  %v3547_v28 = vpop.f32.mrf.mxu3 }
 0x879   : > { %v4200_v36 = vpop.f32.mrf.mxu2  ;;  %v3548_v12 = vadd.f32 %v3547_v28, %v3219_v63 }
 0x87a   : > { %v4201_v15 = vadd.f32 %v4200_v36, %v3872_v22 }
 0x87b   : > { %v3873_v51 = vpop.f32.mrf.mxu0 }
 0x87c   : > { %v7333_v11 = vpack.c.bf16 %v4201_v15, %v3543_v10  ;;  %v3874_v29 = vadd.f32 %v3873_v51, %v11337_v42 }
 0x87d   : > { %v3220_v55 = vpop.f32.mrf.mxu1 }
 0x87e   : > { %7845 = vst [vmem:[%s10018_s5 + $0xf08] sm:$0xff] %v7333_v11  ;;  %v3221_v11 = vadd.f32 %v3220_v55, %v11334_v21 }
 0x880   : > { %v3549_v30 = vpop.f32.mrf.mxu3 }
 0x881   : > { %v4202_v41 = vpop.f32.mrf.mxu2 }
 0x882   : > { %v4203_v61 = vadd.f32 %v4202_v41, %v3874_v29 }
 0x883   : > { %v3876_v35 = vpop.f32.mrf.mxu0 }
 0x884   : > { %v7337_v27 = vpack.c.bf16 %v4203_v61, %v3545_v34  ;;  %v3877_v22 = vadd.f32 %v3876_v35, %v11337_v42  ;;  %v3550_v34 = vadd.f32 %v3549_v30, %v3221_v11  ;;  %v8693_v11 = vld [vmem:[%s13848_s1 + $0x198] sm:$0xf] }
 0x885   : > { %v3223_v19 = vpop.f32.mrf.mxu1  ;;  %9057 = vmatmul.msk.bf16.gmra.mxu3 %vm1370_vm1, %v9940_v50 }
 0x886   : > { %4911 = vmatmul.bf16.gmra.mxu0 %v9938_v49  ;;  %7849 = vst [vmem:[%s10018_s5 + $0xf28] sm:$0xff] %v7337_v27  ;;  %9120 = vmatmul.msk.bf16.gmra.mxu2 %vm1370_vm1, %v9926_v44  ;;  %v3224_v27 = vadd.f32 %v3223_v19, %v11334_v21 }
 0x888   : > { %4258 = vmatmul.bf16.gmra.mxu1 %v9952_v56  ;;  %v3552_v10 = vpop.f32.mrf.mxu3 }
 0x889   : > { %v4205_v54 = vpop.f32.mrf.mxu2  ;;  %v3553_v55 = vadd.f32 %v3552_v10, %v3224_v27  ;;  %v9493_v10 = vld [vmem:[%s13848_s1 + $0x19c] sm:$0xf] }
 0x88a   : > { %v4206_v2 = vadd.f32 %v4205_v54, %v3877_v22 }
 0x88b   : > { %v3878_v36 = vpop.f32.mrf.mxu0 }
 0x88c   : > { %v7341_v15 = vpack.c.bf16 %v4206_v2, %v3548_v12  ;;  %v3879_v6 = vadd.f32 %v3878_v36, %v11337_v42 }
 0x88d   : > { %v3225_v51 = vpop.f32.mrf.mxu1 }
 0x88e   : > { %7853 = vst [vmem:[%s10018_s5 + $0xf48] sm:$0xff] %v7341_v15  ;;  %v3226_v15 = vadd.f32 %v3225_v51, %v11334_v21 }
 0x890   : > { %v3554_v41 = vpop.f32.mrf.mxu3 }
 0x891   : > { %v4207_v29 = vpop.f32.mrf.mxu2 }
 0x892   : > { %v4208_v61 = vadd.f32 %v4207_v29, %v3879_v6  ;;  %v9497_v6 = vld [vmem:[%s13848_s1 + $0x1b4] sm:$0xf0] }
 0x893   : > { %v3881_v35 = vpop.f32.mrf.mxu0  ;;  %v8694_v29 = vor.u32 %v9497_v6, %v8693_v11 }
 0x894   : > { %v7345_v28 = vpack.c.bf16 %v4208_v61, %v3550_v34  ;;  %v3882_v22 = vadd.f32 %v3881_v35, %v11337_v42  ;;  %v8695_v34 = vld [vmem:[%s13848_s1 + $0x1b8] sm:$0xf0] }
 0x895   : > { %v3228_v63 = vpop.f32.mrf.mxu1  ;;  %9058 = vmatmul.msk.bf16.gmra.mxu3 %vm1370_vm1, %v9954_v57  ;;  %v8698_v61 = vor.u32 %v9493_v10, %v8695_v34  ;;  %5537 = vmatpush.bf16.msrb.mxu1 %v8694_v29 }
 0x896   : > { %4916 = vmatmul.bf16.gmra.mxu0 %v9952_v56  ;;  %7857 = vst [vmem:[%s10018_s5 + $0xf68] sm:$0xff] %v7345_v28  ;;  %9121 = vmatmul.msk.bf16.gmra.mxu2 %vm1370_vm1, %v9940_v50  ;;  %v3555_v28 = vadd.f32 %v3554_v41, %v3226_v15 }
 0x897   : > { %6195 = vmatpush.bf16.msrb.mxu0 %v8698_v61  ;;  %v9566_v61 = vld [vmem:[%s13849_s2] sm:$0xff] }
 0x898   : > { %4263 = vmatmul.bf16.gmra.mxu1 %v9975_v1  ;;  %v3557_v12 = vpop.f32.mrf.mxu3 }
 0x899   : > { %v4210_v30 = vpop.f32.mrf.mxu2 }
 0x89a   : > { %v4211_v19 = vadd.f32 %v4210_v30, %v3882_v22  ;;  %v3229_v30 = vadd.f32 %v3228_v63, %v11334_v21 }
 0x89b   : > { %v3883_v54 = vpop.f32.mrf.mxu0 }
 0x89c   : > { %v7349_v2 = vpack.c.bf16 %v4211_v19, %v3553_v55  ;;  %v3884_v51 = vadd.f32 %v3883_v54, %v11337_v42  ;;  %v3558_v41 = vadd.f32 %v3557_v12, %v3229_v30  ;;  %v12234_v30 = vperm.slane %v9566_v61, 5 }
 0x89d   : > { %v3230_v36 = vpop.f32.mrf.mxu1 }
 0x89e   : > { %7861 = vst [vmem:[%s10018_s5 + $0xf88] sm:$0xff] %v7349_v2  ;;  %v3231_v34 = vadd.f32 %v3230_v36, %v11334_v21 }
 0x8a0   : > { %v3559_v27 = vpop.f32.mrf.mxu3 }
 0x8a1   : > { %v4212_v35 = vpop.f32.mrf.mxu2 }
 0x8a2   : > { %v4213_v22 = vadd.f32 %v4212_v35, %v3884_v51  ;;  %v12232_v35 = vperm.slane %v9566_v61, 4 }
 0x8a3   : > { %v3886_v55 = vpop.f32.mrf.mxu0 }
 0x8a4   : > { %v7353_v19 = vpack.c.bf16 %v4213_v22, %v3555_v28  ;;  %v3887_v11 = vadd.f32 %v3886_v55, %v11337_v42  ;;  %v3560_v22 = vadd.f32 %v3559_v27, %v3231_v34 }
 0x8a5   : > { %v4229_v2 = vpop.f32.mrf.mxu1  ;;  %9059 = vmatmul.msk.bf16.gmra.mxu3 %vm1370_vm1, %v9980_v4 }
 0x8a6   : > { %4921 = vmatmul.bf16.gmra.mxu0 %v9975_v1  ;;  %7865 = vst [vmem:[%s10018_s5 + $0xfa8] sm:$0xff] %v7353_v19  ;;  %9122 = vmatmul.msk.bf16.gmra.mxu2 %vm1370_vm1, %v9954_v57 }
 0x8a8   : > { %4268 = vmatmul.bf16.gmra.mxu1 %v9995_v14  ;;  %v4558_v15 = vpop.f32.mrf.mxu3 }
 0x8a9   : > { %v4215_v54 = vpop.f32.mrf.mxu2 }
 0x8aa   : > { %v4216_v63 = vadd.f32 %v4215_v54, %v3887_v11  ;;  %v4230_v11 = vadd.f32 %v4229_v2, %v12232_v35 }
 0x8ab   : > { %v3888_v6 = vpop.f32.mrf.mxu0 }
 0x8ac   : > { %v7357_v29 = vpack.c.bf16 %v4216_v63, %v3558_v41  ;;  %v3889_v51 = vadd.f32 %v3888_v6, %v11337_v42  ;;  %v4559_v36 = vadd.f32 %v4558_v15, %v4230_v11 }
 0x8ad   : > { %v4231_v10 = vpop.f32.mrf.mxu1 }
 0x8ae   : > { %7869 = vst [vmem:[%s10018_s5 + $0xfc8] sm:$0xff] %v7357_v29  ;;  %v4232_v34 = vadd.f32 %v4231_v10, %v12232_v35 }
 0x8b0   : > { %v4560_v12 = vpop.f32.mrf.mxu3 }
 0x8b1   : > { %v4217_v28 = vpop.f32.mrf.mxu2 }
 0x8b2   : > { %v4218_v55 = vadd.f32 %v4217_v28, %v3889_v51 }
 0x8b3   : > { %v4887_v19 = vpop.f32.mrf.mxu0 }
 0x8b4   : > { %v7361_v41 = vpack.c.bf16 %v4218_v55, %v3560_v22  ;;  %v4888_v42 = vadd.f32 %v4887_v19, %v12234_v30  ;;  %v4561_v22 = vadd.f32 %v4560_v12, %v4232_v34 }
 0x8b5   : > { %v4234_v21 = vpop.f32.mrf.mxu1  ;;  %9060 = vmatmul.msk.bf16.gmra.mxu3 %vm1370_vm1, %v9997_v17 }
 0x8b6   : > { %4926 = vmatmul.bf16.gmra.mxu0 %v9995_v14  ;;  %7873 = vst [vmem:[%s10018_s5 + $0xfe8] sm:$0xff] %v7361_v41  ;;  %9123 = vmatmul.msk.bf16.gmra.mxu2 %vm1370_vm1, %v9980_v4  ;;  %v4235_v41 = vadd.f32 %v4234_v21, %v12232_v35 }
 0x8b8   : > { %4273 = vmatmul.bf16.gmra.mxu1 %v10022_v46  ;;  %v4563_v54 = vpop.f32.mrf.mxu3 }
 0x8b9   : > { %v5216_v27 = vpop.f32.mrf.mxu2  ;;  %v4564_v10 = vadd.f32 %v4563_v54, %v4235_v41 }
 0x8ba   : > { %v5217_v2 = vadd.f32 %v5216_v27, %v4888_v42 }
 0x8bb   : > { %v4889_v63 = vpop.f32.mrf.mxu0 }
 0x8bc   : > { %v6854_v6 = vpack.c.bf16 %v5217_v2, %v4559_v36  ;;  %v4890_v51 = vadd.f32 %v4889_v63, %v12234_v30 }
 0x8bd   : > { %v4236_v29 = vpop.f32.mrf.mxu1 }
 0x8be   : > { %7366 = vst [vmem:[%s10018_s5 + $0x10] sm:$0xff] %v6854_v6  ;;  %v4237_v6 = vadd.f32 %v4236_v29, %v12232_v35 }
 0x8c0   : > { %v4565_v28 = vpop.f32.mrf.mxu3 }
 0x8c1   : > { %v5218_v61 = vpop.f32.mrf.mxu2 }
 0x8c2   : > { %v5219_v55 = vadd.f32 %v5218_v61, %v4890_v51 }
 0x8c3   : > { %v4892_v19 = vpop.f32.mrf.mxu0 }
 0x8c4   : > { %v6858_v15 = vpack.c.bf16 %v5219_v55, %v4561_v22  ;;  %v4893_v42 = vadd.f32 %v4892_v19, %v12234_v30  ;;  %v4566_v22 = vadd.f32 %v4565_v28, %v4237_v6 }
 0x8c5   : > { %v4239_v11 = vpop.f32.mrf.mxu1  ;;  %9061 = vmatmul.msk.bf16.gmra.mxu3 %vm1370_vm1, %v10025_v52 }
 0x8c6   : > { %4931 = vmatmul.bf16.gmra.mxu0 %v10022_v46  ;;  %7370 = vst [vmem:[%s10018_s5 + $0x30] sm:$0xff] %v6858_v15  ;;  %9124 = vmatmul.msk.bf16.gmra.mxu2 %vm1370_vm1, %v9997_v17  ;;  %v4240_v15 = vadd.f32 %v4239_v11, %v12232_v35 }
 0x8c8   : > { %4278 = vmatmul.bf16.gmra.mxu1 %v10042_v13  ;;  %v4568_v36 = vpop.f32.mrf.mxu3 }
 0x8c9   : > { %v5221_v12 = vpop.f32.mrf.mxu2  ;;  %v4569_v29 = vadd.f32 %v4568_v36, %v4240_v15 }
 0x8ca   : > { %v5222_v21 = vadd.f32 %v5221_v12, %v4893_v42 }
 0x8cb   : > { %v4894_v27 = vpop.f32.mrf.mxu0 }
 0x8cc   : > { %v6862_v2 = vpack.c.bf16 %v5222_v21, %v4564_v10  ;;  %v4895_v34 = vadd.f32 %v4894_v27, %v12234_v30 }
 0x8cd   : > { %v4241_v63 = vpop.f32.mrf.mxu1 }
 0x8ce   : > { %7374 = vst [vmem:[%s10018_s5 + $0x50] sm:$0xff] %v6862_v2  ;;  %v4242_v2 = vadd.f32 %v4241_v63, %v12232_v35 }
 0x8d0   : > { %v4570_v61 = vpop.f32.mrf.mxu3 }
 0x8d1   : > { %v5223_v51 = vpop.f32.mrf.mxu2 }
 0x8d2   : > { %v5224_v55 = vadd.f32 %v5223_v51, %v4895_v34 }
 0x8d3   : > { %v4897_v19 = vpop.f32.mrf.mxu0 }
 0x8d4   : > { %v6866_v54 = vpack.c.bf16 %v5224_v55, %v4566_v22  ;;  %v4898_v42 = vadd.f32 %v4897_v19, %v12234_v30  ;;  %v4571_v22 = vadd.f32 %v4570_v61, %v4242_v2 }
 0x8d5   : > { %v4244_v41 = vpop.f32.mrf.mxu1  ;;  %9062 = vmatmul.msk.bf16.gmra.mxu3 %vm1370_vm1, %v10045_v24 }
 0x8d6   : > { %4936 = vmatmul.bf16.gmra.mxu0 %v10042_v13  ;;  %7378 = vst [vmem:[%s10018_s5 + $0x70] sm:$0xff] %v6866_v54  ;;  %9125 = vmatmul.msk.bf16.gmra.mxu2 %vm1370_vm1, %v10025_v52  ;;  %v4245_v54 = vadd.f32 %v4244_v41, %v12232_v35 }
 0x8d8   : > { %4283 = vmatmul.bf16.gmra.mxu1 %v10062_v59  ;;  %v4573_v10 = vpop.f32.mrf.mxu3 }
 0x8d9   : > { %v5226_v28 = vpop.f32.mrf.mxu2  ;;  %v4574_v63 = vadd.f32 %v4573_v10, %v4245_v54 }
 0x8da   : > { %v5227_v11 = vadd.f32 %v5226_v28, %v4898_v42 }
 0x8db   : > { %v4899_v12 = vpop.f32.mrf.mxu0 }
 0x8dc   : > { %v6870_v21 = vpack.c.bf16 %v5227_v11, %v4569_v29  ;;  %v4900_v6 = vadd.f32 %v4899_v12, %v12234_v30 }
 0x8dd   : > { %v4246_v27 = vpop.f32.mrf.mxu1 }
 0x8de   : > { %7382 = vst [vmem:[%s10018_s5 + $0x90] sm:$0xff] %v6870_v21  ;;  %v4247_v21 = vadd.f32 %v4246_v27, %v12232_v35 }
 0x8e0   : > { %v4575_v51 = vpop.f32.mrf.mxu3 }
 0x8e1   : > { %v5228_v34 = vpop.f32.mrf.mxu2 }
 0x8e2   : > { %v5229_v55 = vadd.f32 %v5228_v34, %v4900_v6 }
 0x8e3   : > { %v4902_v19 = vpop.f32.mrf.mxu0 }
 0x8e4   : > { %v6874_v36 = vpack.c.bf16 %v5229_v55, %v4571_v22  ;;  %v4903_v42 = vadd.f32 %v4902_v19, %v12234_v30  ;;  %v4576_v22 = vadd.f32 %v4575_v51, %v4247_v21 }
 0x8e5   : > { %v4249_v15 = vpop.f32.mrf.mxu1  ;;  %9063 = vmatmul.msk.bf16.gmra.mxu3 %vm1370_vm1, %v10065_v0 }
 0x8e6   : > { %4941 = vmatmul.bf16.gmra.mxu0 %v10062_v59  ;;  %7386 = vst [vmem:[%s10018_s5 + $0xb0] sm:$0xff] %v6874_v36  ;;  %9126 = vmatmul.msk.bf16.gmra.mxu2 %vm1370_vm1, %v10045_v24  ;;  %v4250_v36 = vadd.f32 %v4249_v15, %v12232_v35 }
 0x8e8   : > { %4288 = vmatmul.bf16.gmra.mxu1 %v10082_v33  ;;  %v4578_v29 = vpop.f32.mrf.mxu3 }
 0x8e9   : > { %v5231_v61 = vpop.f32.mrf.mxu2  ;;  %v4579_v27 = vadd.f32 %v4578_v29, %v4250_v36 }
 0x8ea   : > { %v5232_v41 = vadd.f32 %v5231_v61, %v4903_v42 }
 0x8eb   : > { %v4904_v28 = vpop.f32.mrf.mxu0 }
 0x8ec   : > { %v6878_v11 = vpack.c.bf16 %v5232_v41, %v4574_v63  ;;  %v4905_v2 = vadd.f32 %v4904_v28, %v12234_v30 }
 0x8ed   : > { %v4251_v12 = vpop.f32.mrf.mxu1 }
 0x8ee   : > { %7390 = vst [vmem:[%s10018_s5 + $0xd0] sm:$0xff] %v6878_v11  ;;  %v4252_v11 = vadd.f32 %v4251_v12, %v12232_v35 }
 0x8f0   : > { %v4580_v34 = vpop.f32.mrf.mxu3 }
 0x8f1   : > { %v5233_v6 = vpop.f32.mrf.mxu2 }
 0x8f2   : > { %v5234_v55 = vadd.f32 %v5233_v6, %v4905_v2 }
 0x8f3   : > { %v4907_v19 = vpop.f32.mrf.mxu0 }
 0x8f4   : > { %v6882_v10 = vpack.c.bf16 %v5234_v55, %v4576_v22  ;;  %v4908_v42 = vadd.f32 %v4907_v19, %v12234_v30  ;;  %v4581_v22 = vadd.f32 %v4580_v34, %v4252_v11 }
 0x8f5   : > { %v4254_v54 = vpop.f32.mrf.mxu1  ;;  %9064 = vmatmul.msk.bf16.gmra.mxu3 %vm1370_vm1, %v10085_v40 }
 0x8f6   : > { %4946 = vmatmul.bf16.gmra.mxu0 %v10082_v33  ;;  %7394 = vst [vmem:[%s10018_s5 + $0xf0] sm:$0xff] %v6882_v10  ;;  %9127 = vmatmul.msk.bf16.gmra.mxu2 %vm1370_vm1, %v10065_v0  ;;  %v4255_v10 = vadd.f32 %v4254_v54, %v12232_v35 }
 0x8f8   : > { %4293 = vmatmul.bf16.gmra.mxu1 %v10102_v9  ;;  %v4583_v63 = vpop.f32.mrf.mxu3 }
 0x8f9   : > { %v5236_v51 = vpop.f32.mrf.mxu2  ;;  %v4584_v12 = vadd.f32 %v4583_v63, %v4255_v10 }
 0x8fa   : > { %v5237_v15 = vadd.f32 %v5236_v51, %v4908_v42 }
 0x8fb   : > { %v4909_v61 = vpop.f32.mrf.mxu0 }
 0x8fc   : > { %v6886_v41 = vpack.c.bf16 %v5237_v15, %v4579_v27  ;;  %v4910_v21 = vadd.f32 %v4909_v61, %v12234_v30 }
 0x8fd   : > { %v4256_v28 = vpop.f32.mrf.mxu1 }
 0x8fe   : > { %7398 = vst [vmem:[%s10018_s5 + $0x110] sm:$0xff] %v6886_v41  ;;  %v4257_v41 = vadd.f32 %v4256_v28, %v12232_v35 }
 0x900   : > { %v4585_v6 = vpop.f32.mrf.mxu3 }
 0x901   : > { %v5238_v2 = vpop.f32.mrf.mxu2 }
 0x902   : > { %v5239_v55 = vadd.f32 %v5238_v2, %v4910_v21 }
 0x903   : > { %v4912_v19 = vpop.f32.mrf.mxu0 }
 0x904   : > { %v6890_v29 = vpack.c.bf16 %v5239_v55, %v4581_v22  ;;  %v4913_v42 = vadd.f32 %v4912_v19, %v12234_v30  ;;  %v4586_v22 = vadd.f32 %v4585_v6, %v4257_v41  ;;  %v8661_v41 = vld [vmem:[%s13848_s1 + $0x158] sm:$0xf] }
 0x905   : > { %v4259_v36 = vpop.f32.mrf.mxu1  ;;  %9065 = vmatmul.msk.bf16.gmra.mxu3 %vm1370_vm1, %v10105_v16 }
 0x906   : > { %4951 = vmatmul.bf16.gmra.mxu0 %v10102_v9  ;;  %7402 = vst [vmem:[%s10018_s5 + $0x130] sm:$0xff] %v6890_v29  ;;  %9128 = vmatmul.msk.bf16.gmra.mxu2 %vm1370_vm1, %v10085_v40  ;;  %v4260_v29 = vadd.f32 %v4259_v36, %v12232_v35 }
 0x908   : > { %4298 = vmatmul.bf16.gmra.mxu1 %v10122_v60  ;;  %v4588_v27 = vpop.f32.mrf.mxu3 }
 0x909   : > { %v5241_v34 = vpop.f32.mrf.mxu2  ;;  %v4589_v28 = vadd.f32 %v4588_v27, %v4260_v29  ;;  %v9485_v27 = vld [vmem:[%s13848_s1 + $0x15c] sm:$0xf] }
 0x90a   : > { %v5242_v54 = vadd.f32 %v5241_v34, %v4913_v42 }
 0x90b   : > { %v4914_v51 = vpop.f32.mrf.mxu0 }
 0x90c   : > { %v6894_v15 = vpack.c.bf16 %v5242_v54, %v4584_v12  ;;  %v4915_v11 = vadd.f32 %v4914_v51, %v12234_v30 }
 0x90d   : > { %v4261_v61 = vpop.f32.mrf.mxu1 }
 0x90e   : > { %7406 = vst [vmem:[%s10018_s5 + $0x150] sm:$0xff] %v6894_v15  ;;  %v4262_v15 = vadd.f32 %v4261_v61, %v12232_v35 }
 0x910   : > { %v4590_v2 = vpop.f32.mrf.mxu3 }
 0x911   : > { %v5243_v21 = vpop.f32.mrf.mxu2 }
 0x912   : > { %v5244_v55 = vadd.f32 %v5243_v21, %v4915_v11  ;;  %v9489_v11 = vld [vmem:[%s13848_s1 + $0x174] sm:$0xf0] }
 0x913   : > { %v4917_v19 = vpop.f32.mrf.mxu0  ;;  %v8662_v21 = vor.u32 %v9489_v11, %v8661_v41 }
 0x914   : > { %v6898_v63 = vpack.c.bf16 %v5244_v55, %v4586_v22  ;;  %v4918_v42 = vadd.f32 %v4917_v19, %v12234_v30  ;;  %v8663_v22 = vld [vmem:[%s13848_s1 + $0x178] sm:$0xf0] }
 0x915   : > { %v4264_v10 = vpop.f32.mrf.mxu1  ;;  %9066 = vmatmul.msk.bf16.gmra.mxu3 %vm1370_vm1, %v10125_v3  ;;  %v8666_v55 = vor.u32 %v9485_v27, %v8663_v22  ;;  %5538 = vmatpush.bf16.msrb.mxu1 %v8662_v21 }
 0x916   : > { %4956 = vmatmul.bf16.gmra.mxu0 %v10122_v60  ;;  %7410 = vst [vmem:[%s10018_s5 + $0x170] sm:$0xff] %v6898_v63  ;;  %9129 = vmatmul.msk.bf16.gmra.mxu2 %vm1370_vm1, %v10105_v16  ;;  %v4591_v63 = vadd.f32 %v4590_v2, %v4262_v15 }
 0x917   : > { %6196 = vmatpush.bf16.msrb.mxu0 %v8666_v55 }
 0x918   : > { %4303 = vmatmul.bf16.gmra.mxu1 %v10148_v23  ;;  %v4593_v12 = vpop.f32.mrf.mxu3 }
 0x919   : > { %v5246_v6 = vpop.f32.mrf.mxu2 }
 0x91a   : > { %v5247_v36 = vadd.f32 %v5246_v6, %v4918_v42  ;;  %v4265_v6 = vadd.f32 %v4264_v10, %v12232_v35 }
 0x91b   : > { %v4919_v34 = vpop.f32.mrf.mxu0 }
 0x91c   : > { %v6902_v54 = vpack.c.bf16 %v5247_v36, %v4589_v28  ;;  %v4920_v61 = vadd.f32 %v4919_v34, %v12234_v30  ;;  %v4594_v2 = vadd.f32 %v4593_v12, %v4265_v6 }
 0x91d   : > { %v4266_v51 = vpop.f32.mrf.mxu1 }
 0x91e   : > { %7414 = vst [vmem:[%s10018_s5 + $0x190] sm:$0xff] %v6902_v54  ;;  %v4267_v22 = vadd.f32 %v4266_v51, %v12232_v35 }
 0x920   : > { %v4595_v29 = vpop.f32.mrf.mxu3 }
 0x921   : > { %v5248_v19 = vpop.f32.mrf.mxu2 }
 0x922   : > { %v5249_v42 = vadd.f32 %v5248_v19, %v4920_v61 }
 0x923   : > { %v4922_v28 = vpop.f32.mrf.mxu0 }
 0x924   : > { %v6906_v36 = vpack.c.bf16 %v5249_v42, %v4591_v63  ;;  %v4923_v41 = vadd.f32 %v4922_v28, %v12234_v30  ;;  %v4596_v63 = vadd.f32 %v4595_v29, %v4267_v22 }
 0x925   : > { %v4269_v54 = vpop.f32.mrf.mxu1  ;;  %9067 = vmatmul.msk.bf16.gmra.mxu3 %vm1370_vm1, %v10157_v62 }
 0x926   : > { %4961 = vmatmul.bf16.gmra.mxu0 %v10148_v23  ;;  %7418 = vst [vmem:[%s10018_s5 + $0x1b0] sm:$0xff] %v6906_v36  ;;  %9130 = vmatmul.msk.bf16.gmra.mxu2 %vm1370_vm1, %v10125_v3  ;;  %v4270_v36 = vadd.f32 %v4269_v54, %v12232_v35 }
 0x928   : > { %4308 = vmatmul.bf16.gmra.mxu1 %v10174_v47  ;;  %v4598_v15 = vpop.f32.mrf.mxu3 }
 0x929   : > { %v5251_v34 = vpop.f32.mrf.mxu2  ;;  %v4599_v51 = vadd.f32 %v4598_v15, %v4270_v36 }
 0x92a   : > { %v5252_v10 = vadd.f32 %v5251_v34, %v4923_v41 }
 0x92b   : > { %v4924_v11 = vpop.f32.mrf.mxu0 }
 0x92c   : > { %v6910_v21 = vpack.c.bf16 %v5252_v10, %v4594_v2  ;;  %v4925_v61 = vadd.f32 %v4924_v11, %v12234_v30 }
 0x92d   : > { %v4271_v27 = vpop.f32.mrf.mxu1 }
 0x92e   : > { %7422 = vst [vmem:[%s10018_s5 + $0x1d0] sm:$0xff] %v6910_v21  ;;  %v4272_v21 = vadd.f32 %v4271_v27, %v12232_v35  ;;  %v14389_v27 = vld [vmem:[#allocation7_spill] sm:$0xff] }
 0x930   : > { %v4600_v19 = vpop.f32.mrf.mxu3 }
 0x931   : > { %v5253_v55 = vpop.f32.mrf.mxu2 }
 0x932   : > { %v5254_v42 = vadd.f32 %v5253_v55, %v4925_v61 }
 0x933   : > { %v4927_v28 = vpop.f32.mrf.mxu0 }
 0x934   : > { %v6914_v12 = vpack.c.bf16 %v5254_v42, %v4596_v63  ;;  %v4928_v41 = vadd.f32 %v4927_v28, %v12234_v30  ;;  %v4601_v63 = vadd.f32 %v4600_v19, %v4272_v21 }
 0x935   : > { %v4274_v6 = vpop.f32.mrf.mxu1  ;;  %9068 = vmatmul.msk.bf16.gmra.mxu3 %vm1370_vm1, %v10177_v58 }
 0x936   : > { %4966 = vmatmul.bf16.gmra.mxu0 %v10174_v47  ;;  %7426 = vst [vmem:[%s10018_s5 + $0x1f0] sm:$0xff] %v6914_v12  ;;  %9131 = vmatmul.msk.bf16.gmra.mxu2 %vm1370_vm1, %v10157_v62  ;;  %v4275_v12 = vadd.f32 %v4274_v6, %v12232_v35 }
 0x938   : > { %4313 = vmatmul.bf16.gmra.mxu1 %v10194_v45  ;;  %v4603_v2 = vpop.f32.mrf.mxu3 }
 0x939   : > { %v5256_v29 = vpop.f32.mrf.mxu2  ;;  %v4604_v19 = vadd.f32 %v4603_v2, %v4275_v12 }
 0x93a   : > { %v5257_v54 = vadd.f32 %v5256_v29, %v4928_v41 }
 0x93b   : > { %v4929_v34 = vpop.f32.mrf.mxu0 }
 0x93c   : > { %v6918_v10 = vpack.c.bf16 %v5257_v54, %v4599_v51  ;;  %v4930_v22 = vadd.f32 %v4929_v34, %v12234_v30 }
 0x93d   : > { %v4276_v11 = vpop.f32.mrf.mxu1 }
 0x93e   : > { %7430 = vst [vmem:[%s10018_s5 + $0x210] sm:$0xff] %v6918_v10  ;;  %v4277_v21 = vadd.f32 %v4276_v11, %v12232_v35  ;;  %v14390_v11 = vld [vmem:[#allocation8_spill] sm:$0xff] }
 0x940   : > { %v4605_v55 = vpop.f32.mrf.mxu3 }
 0x941   : > { %v5258_v61 = vpop.f32.mrf.mxu2 }
 0x942   : > { %v5259_v42 = vadd.f32 %v5258_v61, %v4930_v22 }
 0x943   : > { %v4932_v28 = vpop.f32.mrf.mxu0 }
 0x944   : > { %v6922_v15 = vpack.c.bf16 %v5259_v42, %v4601_v63  ;;  %v4933_v41 = vadd.f32 %v4932_v28, %v12234_v30  ;;  %v4606_v42 = vadd.f32 %v4605_v55, %v4277_v21 }
 0x945   : > { %v4279_v36 = vpop.f32.mrf.mxu1  ;;  %9069 = vmatmul.msk.bf16.gmra.mxu3 %vm1370_vm1, %v10197_v5 }
 0x946   : > { %4971 = vmatmul.bf16.gmra.mxu0 %v10194_v45  ;;  %7434 = vst [vmem:[%s10018_s5 + $0x230] sm:$0xff] %v6922_v15  ;;  %9132 = vmatmul.msk.bf16.gmra.mxu2 %vm1370_vm1, %v10177_v58  ;;  %v4280_v45 = vadd.f32 %v4279_v36, %v12232_v35 }
 0x948   : > { %4318 = vmatmul.bf16.gmra.mxu1 %v14389_v27  ;;  %v4608_v29 = vpop.f32.mrf.mxu3 }
 0x949   : > { %v5261_v51 = vpop.f32.mrf.mxu2  ;;  %v4609_v55 = vadd.f32 %v4608_v29, %v4280_v45 }
 0x94a   : > { %v5262_v6 = vadd.f32 %v5261_v51, %v4933_v41 }
 0x94b   : > { %v4934_v54 = vpop.f32.mrf.mxu0 }
 0x94c   : > { %v6926_v34 = vpack.c.bf16 %v5262_v6, %v4604_v19  ;;  %v4935_v22 = vadd.f32 %v4934_v54, %v12234_v30  ;;  %v14391_v19 = vld [vmem:[#allocation9_spill] sm:$0xff] }
 0x94d   : > { %v4281_v10 = vpop.f32.mrf.mxu1 }
 0x94e   : > { %7438 = vst [vmem:[%s10018_s5 + $0x250] sm:$0xff] %v6926_v34 }
 0x950   : > { %v4610_v63 = vpop.f32.mrf.mxu3 }
 0x951   : > { %v5263_v61 = vpop.f32.mrf.mxu2 }
 0x952   : > { %v5264_v28 = vadd.f32 %v5263_v61, %v4935_v22  ;;  %v4282_v22 = vadd.f32 %v4281_v10, %v12232_v35  ;;  %v14392_v10 = vld [vmem:[#allocation10_spill] sm:$0xff] }
 0x953   : > { %v4937_v15 = vpop.f32.mrf.mxu0 }
 0x954   : > { %v6930_v2 = vpack.c.bf16 %v5264_v28, %v4606_v42  ;;  %v4938_v41 = vadd.f32 %v4937_v15, %v12234_v30  ;;  %v4611_v15 = vadd.f32 %v4610_v63, %v4282_v22 }
 0x955   : > { %v4284_v12 = vpop.f32.mrf.mxu1  ;;  %9070 = vmatmul.msk.bf16.gmra.mxu3 %vm1370_vm1, %v14390_v11 }
 0x956   : > { %4976 = vmatmul.bf16.gmra.mxu0 %v14389_v27  ;;  %7442 = vst [vmem:[%s10018_s5 + $0x270] sm:$0xff] %v6930_v2  ;;  %9133 = vmatmul.msk.bf16.gmra.mxu2 %vm1370_vm1, %v10197_v5  ;;  %v4285_v5 = vadd.f32 %v4284_v12, %v12232_v35 }
 0x958   : > { %4323 = vmatmul.bf16.gmra.mxu1 %v14391_v19  ;;  %v4613_v6 = vpop.f32.mrf.mxu3 }
 0x959   : > { %v5266_v51 = vpop.f32.mrf.mxu2  ;;  %v4614_v63 = vadd.f32 %v4613_v6, %v4285_v5 }
 0x95a   : > { %v5267_v36 = vadd.f32 %v5266_v51, %v4938_v41 }
 0x95b   : > { %v4939_v54 = vpop.f32.mrf.mxu0 }
 0x95c   : > { %v6934_v34 = vpack.c.bf16 %v5267_v36, %v4609_v55  ;;  %v4940_v61 = vadd.f32 %v4939_v54, %v12234_v30  ;;  %v14393_v55 = vld [vmem:[#allocation11_spill] sm:$0xff] }
 0x95d   : > { %v4286_v21 = vpop.f32.mrf.mxu1 }
 0x95e   : > { %7446 = vst [vmem:[%s10018_s5 + $0x290] sm:$0xff] %v6934_v34 }
 0x960   : > { %v4615_v28 = vpop.f32.mrf.mxu3 }
 0x961   : > { %v5268_v42 = vpop.f32.mrf.mxu2 }
 0x962   : > { %v5269_v2 = vadd.f32 %v5268_v42, %v4940_v61  ;;  %v4287_v61 = vadd.f32 %v4286_v21, %v12232_v35  ;;  %v14394_v21 = vld [vmem:[#allocation12_spill] sm:$0xff] }
 0x963   : > { %v4942_v27 = vpop.f32.mrf.mxu0 }
 0x964   : > { %v6938_v45 = vpack.c.bf16 %v5269_v2, %v4611_v15  ;;  %v4943_v41 = vadd.f32 %v4942_v27, %v12234_v30  ;;  %v4616_v2 = vadd.f32 %v4615_v28, %v4287_v61 }
 0x965   : > { %v4289_v29 = vpop.f32.mrf.mxu1  ;;  %9071 = vmatmul.msk.bf16.gmra.mxu3 %vm1370_vm1, %v14392_v10 }
 0x966   : > { %4981 = vmatmul.bf16.gmra.mxu0 %v14391_v19  ;;  %7450 = vst [vmem:[%s10018_s5 + $0x2b0] sm:$0xff] %v6938_v45  ;;  %9134 = vmatmul.msk.bf16.gmra.mxu2 %vm1370_vm1, %v14390_v11  ;;  %v4290_v11 = vadd.f32 %v4289_v29, %v12232_v35 }
 0x968   : > { %4328 = vmatmul.bf16.gmra.mxu1 %v14393_v55  ;;  %v4618_v36 = vpop.f32.mrf.mxu3 }
 0x969   : > { %v5271_v51 = vpop.f32.mrf.mxu2  ;;  %v4619_v28 = vadd.f32 %v4618_v36, %v4290_v11 }
 0x96a   : > { %v5272_v12 = vadd.f32 %v5271_v51, %v4943_v41 }
 0x96b   : > { %v4944_v54 = vpop.f32.mrf.mxu0 }
 0x96c   : > { %v6942_v34 = vpack.c.bf16 %v5272_v12, %v4614_v63  ;;  %v4945_v27 = vadd.f32 %v4944_v54, %v12234_v30  ;;  %v14395_v63 = vld [vmem:[#allocation13_spill] sm:$0xff] }
 0x96d   : > { %v4291_v22 = vpop.f32.mrf.mxu1 }
 0x96e   : > { %7454 = vst [vmem:[%s10018_s5 + $0x2d0] sm:$0xff] %v6942_v34 }
 0x970   : > { %v4620_v15 = vpop.f32.mrf.mxu3 }
 0x971   : > { %v5273_v42 = vpop.f32.mrf.mxu2 }
 0x972   : > { %v5274_v45 = vadd.f32 %v5273_v42, %v4945_v27  ;;  %v4292_v27 = vadd.f32 %v4291_v22, %v12232_v35  ;;  %v14396_v22 = vld [vmem:[#allocation14_spill] sm:$0xff] }
 0x973   : > { %v4947_v19 = vpop.f32.mrf.mxu0 }
 0x974   : > { %v6946_v5 = vpack.c.bf16 %v5274_v45, %v4616_v2  ;;  %v4948_v41 = vadd.f32 %v4947_v19, %v12234_v30  ;;  %v4621_v45 = vadd.f32 %v4620_v15, %v4292_v27 }
 0x975   : > { %v4294_v6 = vpop.f32.mrf.mxu1  ;;  %9072 = vmatmul.msk.bf16.gmra.mxu3 %vm1370_vm1, %v14394_v21 }
 0x976   : > { %4986 = vmatmul.bf16.gmra.mxu0 %v14393_v55  ;;  %7458 = vst [vmem:[%s10018_s5 + $0x2f0] sm:$0xff] %v6946_v5  ;;  %9135 = vmatmul.msk.bf16.gmra.mxu2 %vm1370_vm1, %v14392_v10  ;;  %v4295_v10 = vadd.f32 %v4294_v6, %v12232_v35 }
 0x978   : > { %4333 = vmatmul.bf16.gmra.mxu1 %v14395_v63  ;;  %v4623_v12 = vpop.f32.mrf.mxu3 }
 0x979   : > { %v5276_v51 = vpop.f32.mrf.mxu2  ;;  %v4624_v15 = vadd.f32 %v4623_v12, %v4295_v10 }
 0x97a   : > { %v5277_v29 = vadd.f32 %v5276_v51, %v4948_v41 }
 0x97b   : > { %v4949_v54 = vpop.f32.mrf.mxu0 }
 0x97c   : > { %v6950_v34 = vpack.c.bf16 %v5277_v29, %v4619_v28  ;;  %v4950_v19 = vadd.f32 %v4949_v54, %v12234_v30  ;;  %v14397_v28 = vld [vmem:[#allocation15_spill] sm:$0xff] }
 0x97d   : > { %v4296_v61 = vpop.f32.mrf.mxu1 }
 0x97e   : > { %7462 = vst [vmem:[%s10018_s5 + $0x310] sm:$0xff] %v6950_v34 }
 0x980   : > { %v4625_v2 = vpop.f32.mrf.mxu3 }
 0x981   : > { %v5278_v42 = vpop.f32.mrf.mxu2 }
 0x982   : > { %v5279_v5 = vadd.f32 %v5278_v42, %v4950_v19  ;;  %v4297_v19 = vadd.f32 %v4296_v61, %v12232_v35  ;;  %v14398_v61 = vld [vmem:[#allocation16_spill] sm:$0xff] }
 0x983   : > { %v4952_v55 = vpop.f32.mrf.mxu0 }
 0x984   : > { %v6954_v11 = vpack.c.bf16 %v5279_v5, %v4621_v45  ;;  %v4953_v41 = vadd.f32 %v4952_v55, %v12234_v30  ;;  %v4626_v5 = vadd.f32 %v4625_v2, %v4297_v19 }
 0x985   : > { %v4299_v36 = vpop.f32.mrf.mxu1  ;;  %9073 = vmatmul.msk.bf16.gmra.mxu3 %vm1370_vm1, %v14396_v22 }
 0x986   : > { %4991 = vmatmul.bf16.gmra.mxu0 %v14395_v63  ;;  %7466 = vst [vmem:[%s10018_s5 + $0x330] sm:$0xff] %v6954_v11  ;;  %9136 = vmatmul.msk.bf16.gmra.mxu2 %vm1370_vm1, %v14394_v21  ;;  %v4300_v21 = vadd.f32 %v4299_v36, %v12232_v35 }
 0x988   : > { %4338 = vmatmul.bf16.gmra.mxu1 %v14397_v28  ;;  %v4628_v29 = vpop.f32.mrf.mxu3 }
 0x989   : > { %v5281_v51 = vpop.f32.mrf.mxu2  ;;  %v4629_v2 = vadd.f32 %v4628_v29, %v4300_v21  ;;  %v9477_v21 = vld [vmem:[%s13848_s1 + $0x11c] sm:$0xf] }
 0x98a   : > { %v5282_v6 = vadd.f32 %v5281_v51, %v4953_v41  ;;  %v8631_v29 = vld [vmem:[%s13848_s1 + $0x138] sm:$0xf0] }
 0x98b   : > { %v4954_v54 = vpop.f32.mrf.mxu0 }
 0x98c   : > { %v6958_v34 = vpack.c.bf16 %v5282_v6, %v4624_v15  ;;  %v4955_v55 = vadd.f32 %v4954_v54, %v12234_v30  ;;  %v14399_v15 = vld [vmem:[#allocation17_spill] sm:$0xff] }
 0x98d   : > { %v4301_v27 = vpop.f32.mrf.mxu1 }
 0x98e   : > { %7470 = vst [vmem:[%s10018_s5 + $0x350] sm:$0xff] %v6958_v34 }
 0x990   : > { %v4630_v45 = vpop.f32.mrf.mxu3 }
 0x991   : > { %v5283_v42 = vpop.f32.mrf.mxu2 }
 0x992   : > { %v5284_v11 = vadd.f32 %v5283_v42, %v4955_v55  ;;  %v4302_v55 = vadd.f32 %v4301_v27, %v12232_v35  ;;  %v9481_v42 = vld [vmem:[%s13848_s1 + $0x134] sm:$0xf0] }
 0x993   : > { %v4957_v63 = vpop.f32.mrf.mxu0 }
 0x994   : > { %v6962_v10 = vpack.c.bf16 %v5284_v11, %v4626_v5  ;;  %v4958_v41 = vadd.f32 %v4957_v63, %v12234_v30  ;;  %v8629_v63 = vld [vmem:[%s13848_s1 + $0x118] sm:$0xf]  ;;  %v8634_v11 = vor.u32 %v9477_v21, %v8631_v29 }
 0x995   : > { %v4304_v12 = vpop.f32.mrf.mxu1  ;;  %9074 = vmatmul.msk.bf16.gmra.mxu3 %vm1370_vm1, %v14398_v61  ;;  %v8630_v5 = vor.u32 %v9481_v42, %v8629_v63 }
 0x996   : > { %4996 = vmatmul.bf16.gmra.mxu0 %v14397_v28  ;;  %7474 = vst [vmem:[%s10018_s5 + $0x370] sm:$0xff] %v6962_v10  ;;  %9137 = vmatmul.msk.bf16.gmra.mxu2 %vm1370_vm1, %v14396_v22 }
 0x997   : > { %5539 = vmatpush.bf16.msrb.mxu1 %v8630_v5  ;;  %6197 = vmatpush.bf16.msrb.mxu0 %v8634_v11 }
 0x998   : > { %4343 = vmatmul.bf16.gmra.mxu1 %v14399_v15  ;;  %v4633_v6 = vpop.f32.mrf.mxu3 }
 0x999   : > { %v5286_v51 = vpop.f32.mrf.mxu2 }
 0x99a   : > { %v5287_v36 = vadd.f32 %v5286_v51, %v4958_v41 }
 0x99b   : > { %v4959_v54 = vpop.f32.mrf.mxu0 }
 0x99c   : > { %v6966_v34 = vpack.c.bf16 %v5287_v36, %v4629_v2  ;;  %v4960_v27 = vadd.f32 %v4959_v54, %v12234_v30  ;;  %v4631_v2 = vadd.f32 %v4630_v45, %v4302_v55  ;;  %v14400_v54 = vld [vmem:[#allocation18_spill] sm:$0xff]  ;;  %v14401_v45 = vld [vmem:[#allocation19_spill] sm:$0xff] }
 0x99d   : > { %v4306_v19 = vpop.f32.mrf.mxu1 }
 0x99e   : > { %7478 = vst [vmem:[%s10018_s5 + $0x390] sm:$0xff] %v6966_v34  ;;  %v4305_v34 = vadd.f32 %v4304_v12, %v12232_v35 }
 0x9a0   : > { %v4635_v41 = vpop.f32.mrf.mxu3  ;;  %v4634_v55 = vadd.f32 %v4633_v6, %v4305_v34 }
 0x9a1   : > { %v5288_v10 = vpop.f32.mrf.mxu2 }
 0x9a2   : > { %v5289_v51 = vadd.f32 %v5288_v10, %v4960_v27  ;;  %v4307_v10 = vadd.f32 %v4306_v19, %v12232_v35  ;;  %v14402_v19 = vld [vmem:[#allocation20_spill] sm:$0xff] }
 0x9a3   : > { %v4962_v36 = vpop.f32.mrf.mxu0 }
 0x9a4   : > { %v6970_v63 = vpack.c.bf16 %v5289_v51, %v4631_v2  ;;  %v4963_v28 = vadd.f32 %v4962_v36, %v12234_v30 }
 0x9a5   : > { %v4309_v42 = vpop.f32.mrf.mxu1  ;;  %9075 = vmatmul.msk.bf16.gmra.mxu3 %vm1370_vm1, %v14400_v54 }
 0x9a6   : > { %5001 = vmatmul.bf16.gmra.mxu0 %v14399_v15  ;;  %7482 = vst [vmem:[%s10018_s5 + $0x3b0] sm:$0xff] %v6970_v63  ;;  %9138 = vmatmul.msk.bf16.gmra.mxu2 %vm1370_vm1, %v14398_v61  ;;  %v4636_v63 = vadd.f32 %v4635_v41, %v4307_v10  ;;  %v4310_v22 = vadd.f32 %v4309_v42, %v12232_v35 }
 0x9a8   : > { %4348 = vmatmul.bf16.gmra.mxu1 %v14401_v45  ;;  %v4638_v21 = vpop.f32.mrf.mxu3 }
 0x9a9   : > { %v5291_v5 = vpop.f32.mrf.mxu2  ;;  %v4639_v41 = vadd.f32 %v4638_v21, %v4310_v22 }
 0x9aa   : > { %v5292_v12 = vadd.f32 %v5291_v5, %v4963_v28 }
 0x9ab   : > { %v4964_v29 = vpop.f32.mrf.mxu0 }
 0x9ac   : > { %v6974_v27 = vpack.c.bf16 %v5292_v12, %v4634_v55  ;;  %v4965_v2 = vadd.f32 %v4964_v29, %v12234_v30  ;;  %v14403_v55 = vld [vmem:[#allocation21_spill] sm:$0xff] }
 0x9ad   : > { %v4311_v11 = vpop.f32.mrf.mxu1 }
 0x9ae   : > { %7486 = vst [vmem:[%s10018_s5 + $0x3d0] sm:$0xff] %v6974_v27  ;;  %v4312_v10 = vadd.f32 %v4311_v11, %v12232_v35  ;;  %v14404_v11 = vld [vmem:[#allocation22_spill] sm:$0xff] }
 0x9b0   : > { %v4640_v36 = vpop.f32.mrf.mxu3 }
 0x9b1   : > { %v5293_v51 = vpop.f32.mrf.mxu2 }
 0x9b2   : > { %v5294_v15 = vadd.f32 %v5293_v51, %v4965_v2 }
 0x9b3   : > { %v4967_v61 = vpop.f32.mrf.mxu0 }
 0x9b4   : > { %v6978_v6 = vpack.c.bf16 %v5294_v15, %v4636_v63  ;;  %v4968_v28 = vadd.f32 %v4967_v61, %v12234_v30  ;;  %v4641_v63 = vadd.f32 %v4640_v36, %v4312_v10 }
 0x9b5   : > { %v4314_v34 = vpop.f32.mrf.mxu1  ;;  %9076 = vmatmul.msk.bf16.gmra.mxu3 %vm1370_vm1, %v14402_v19 }
 0x9b6   : > { %5006 = vmatmul.bf16.gmra.mxu0 %v14401_v45  ;;  %7490 = vst [vmem:[%s10018_s5 + $0x3f0] sm:$0xff] %v6978_v6  ;;  %9139 = vmatmul.msk.bf16.gmra.mxu2 %vm1370_vm1, %v14400_v54  ;;  %v4315_v54 = vadd.f32 %v4314_v34, %v12232_v35 }
 0x9b8   : > { %4353 = vmatmul.bf16.gmra.mxu1 %v14403_v55  ;;  %v4643_v12 = vpop.f32.mrf.mxu3 }
 0x9b9   : > { %v5296_v5 = vpop.f32.mrf.mxu2  ;;  %v4644_v36 = vadd.f32 %v4643_v12, %v4315_v54 }
 0x9ba   : > { %v5297_v42 = vadd.f32 %v5296_v5, %v4968_v28 }
 0x9bb   : > { %v4969_v15 = vpop.f32.mrf.mxu0 }
 0x9bc   : > { %v6982_v29 = vpack.c.bf16 %v5297_v42, %v4639_v41  ;;  %v4970_v61 = vadd.f32 %v4969_v15, %v12234_v30  ;;  %v14405_v41 = vld [vmem:[#allocation23_spill] sm:$0xff] }
 0x9bd   : > { %v4316_v27 = vpop.f32.mrf.mxu1 }
 0x9be   : > { %7494 = vst [vmem:[%s10018_s5 + $0x410] sm:$0xff] %v6982_v29 }
 0x9c0   : > { %v4645_v51 = vpop.f32.mrf.mxu3 }
 0x9c1   : > { %v5298_v2 = vpop.f32.mrf.mxu2 }
 0x9c2   : > { %v5299_v6 = vadd.f32 %v5298_v2, %v4970_v61  ;;  %v4317_v61 = vadd.f32 %v4316_v27, %v12232_v35  ;;  %v14406_v27 = vld [vmem:[#allocation24_spill] sm:$0xff] }
 0x9c3   : > { %v4972_v45 = vpop.f32.mrf.mxu0 }
 0x9c4   : > { %v6986_v22 = vpack.c.bf16 %v5299_v6, %v4641_v63  ;;  %v4973_v28 = vadd.f32 %v4972_v45, %v12234_v30  ;;  %v4646_v6 = vadd.f32 %v4645_v51, %v4317_v61 }
 0x9c5   : > { %v4319_v21 = vpop.f32.mrf.mxu1  ;;  %9077 = vmatmul.msk.bf16.gmra.mxu3 %vm1370_vm1, %v14404_v11 }
 0x9c6   : > { %5011 = vmatmul.bf16.gmra.mxu0 %v14403_v55  ;;  %7498 = vst [vmem:[%s10018_s5 + $0x430] sm:$0xff] %v6986_v22  ;;  %9140 = vmatmul.msk.bf16.gmra.mxu2 %vm1370_vm1, %v14402_v19  ;;  %v4320_v19 = vadd.f32 %v4319_v21, %v12232_v35 }
 0x9c8   : > { %4358 = vmatmul.bf16.gmra.mxu1 %v14405_v41  ;;  %v4648_v42 = vpop.f32.mrf.mxu3 }
 0x9c9   : > { %v5301_v5 = vpop.f32.mrf.mxu2  ;;  %v4649_v51 = vadd.f32 %v4648_v42, %v4320_v19 }
 0x9ca   : > { %v5302_v34 = vadd.f32 %v5301_v5, %v4973_v28 }
 0x9cb   : > { %v4974_v15 = vpop.f32.mrf.mxu0 }
 0x9cc   : > { %v6990_v29 = vpack.c.bf16 %v5302_v34, %v4644_v36  ;;  %v4975_v45 = vadd.f32 %v4974_v15, %v12234_v30  ;;  %v14407_v36 = vld [vmem:[#allocation25_spill] sm:$0xff] }
 0x9cd   : > { %v4321_v10 = vpop.f32.mrf.mxu1 }
 0x9ce   : > { %7502 = vst [vmem:[%s10018_s5 + $0x450] sm:$0xff] %v6990_v29 }
 0x9d0   : > { %v4650_v63 = vpop.f32.mrf.mxu3 }
 0x9d1   : > { %v5303_v2 = vpop.f32.mrf.mxu2 }
 0x9d2   : > { %v5304_v22 = vadd.f32 %v5303_v2, %v4975_v45  ;;  %v4322_v45 = vadd.f32 %v4321_v10, %v12232_v35  ;;  %v14408_v10 = vld [vmem:[#allocation26_spill] sm:$0xff] }
 0x9d3   : > { %v4977_v55 = vpop.f32.mrf.mxu0 }
 0x9d4   : > { %v6994_v54 = vpack.c.bf16 %v5304_v22, %v4646_v6  ;;  %v4978_v28 = vadd.f32 %v4977_v55, %v12234_v30  ;;  %v4651_v22 = vadd.f32 %v4650_v63, %v4322_v45 }
 0x9d5   : > { %v4324_v12 = vpop.f32.mrf.mxu1  ;;  %9078 = vmatmul.msk.bf16.gmra.mxu3 %vm1370_vm1, %v14406_v27 }
 0x9d6   : > { %5016 = vmatmul.bf16.gmra.mxu0 %v14405_v41  ;;  %7506 = vst [vmem:[%s10018_s5 + $0x470] sm:$0xff] %v6994_v54  ;;  %9141 = vmatmul.msk.bf16.gmra.mxu2 %vm1370_vm1, %v14404_v11  ;;  %v4325_v11 = vadd.f32 %v4324_v12, %v12232_v35 }
 0x9d8   : > { %4363 = vmatmul.bf16.gmra.mxu1 %v14407_v36  ;;  %v4653_v34 = vpop.f32.mrf.mxu3 }
 0x9d9   : > { %v5306_v5 = vpop.f32.mrf.mxu2  ;;  %v4654_v63 = vadd.f32 %v4653_v34, %v4325_v11 }
 0x9da   : > { %v5307_v21 = vadd.f32 %v5306_v5, %v4978_v28 }
 0x9db   : > { %v4979_v15 = vpop.f32.mrf.mxu0 }
 0x9dc   : > { %v6998_v29 = vpack.c.bf16 %v5307_v21, %v4649_v51  ;;  %v4980_v55 = vadd.f32 %v4979_v15, %v12234_v30  ;;  %v14409_v51 = vld [vmem:[#allocation27_spill] sm:$0xff] }
 0x9dd   : > { %v4326_v61 = vpop.f32.mrf.mxu1 }
 0x9de   : > { %7510 = vst [vmem:[%s10018_s5 + $0x490] sm:$0xff] %v6998_v29 }
 0x9e0   : > { %v4655_v6 = vpop.f32.mrf.mxu3 }
 0x9e1   : > { %v5308_v2 = vpop.f32.mrf.mxu2 }
 0x9e2   : > { %v5309_v54 = vadd.f32 %v5308_v2, %v4980_v55  ;;  %v4327_v55 = vadd.f32 %v4326_v61, %v12232_v35  ;;  %v14410_v61 = vld [vmem:[#allocation28_spill] sm:$0xff] }
 0x9e3   : > { %v4982_v41 = vpop.f32.mrf.mxu0 }
 0x9e4   : > { %v7002_v19 = vpack.c.bf16 %v5309_v54, %v4651_v22  ;;  %v4983_v28 = vadd.f32 %v4982_v41, %v12234_v30  ;;  %v4656_v54 = vadd.f32 %v4655_v6, %v4327_v55 }
 0x9e5   : > { %v4329_v42 = vpop.f32.mrf.mxu1  ;;  %9079 = vmatmul.msk.bf16.gmra.mxu3 %vm1370_vm1, %v14408_v10 }
 0x9e6   : > { %5021 = vmatmul.bf16.gmra.mxu0 %v14407_v36  ;;  %7514 = vst [vmem:[%s10018_s5 + $0x4b0] sm:$0xff] %v7002_v19  ;;  %9142 = vmatmul.msk.bf16.gmra.mxu2 %vm1370_vm1, %v14406_v27  ;;  %v4330_v27 = vadd.f32 %v4329_v42, %v12232_v35 }
 0x9e8   : > { %4368 = vmatmul.bf16.gmra.mxu1 %v14409_v51  ;;  %v4658_v21 = vpop.f32.mrf.mxu3 }
 0x9e9   : > { %v5311_v5 = vpop.f32.mrf.mxu2  ;;  %v4659_v6 = vadd.f32 %v4658_v21, %v4330_v27 }
 0x9ea   : > { %v5312_v12 = vadd.f32 %v5311_v5, %v4983_v28 }
 0x9eb   : > { %v4984_v15 = vpop.f32.mrf.mxu0 }
 0x9ec   : > { %v7006_v29 = vpack.c.bf16 %v5312_v12, %v4654_v63  ;;  %v4985_v41 = vadd.f32 %v4984_v15, %v12234_v30  ;;  %v14411_v63 = vld [vmem:[#allocation29_spill] sm:$0xff] }
 0x9ed   : > { %v4331_v45 = vpop.f32.mrf.mxu1 }
 0x9ee   : > { %7518 = vst [vmem:[%s10018_s5 + $0x4d0] sm:$0xff] %v7006_v29 }
 0x9f0   : > { %v4660_v22 = vpop.f32.mrf.mxu3 }
 0x9f1   : > { %v5313_v2 = vpop.f32.mrf.mxu2 }
 0x9f2   : > { %v5314_v19 = vadd.f32 %v5313_v2, %v4985_v41  ;;  %v4332_v41 = vadd.f32 %v4331_v45, %v12232_v35  ;;  %v14412_v45 = vld [vmem:[#allocation30_spill] sm:$0xff] }
 0x9f3   : > { %v4987_v36 = vpop.f32.mrf.mxu0 }
 0x9f4   : > { %v7010_v11 = vpack.c.bf16 %v5314_v19, %v4656_v54  ;;  %v4988_v28 = vadd.f32 %v4987_v36, %v12234_v30  ;;  %v4661_v19 = vadd.f32 %v4660_v22, %v4332_v41 }
 0x9f5   : > { %v4334_v34 = vpop.f32.mrf.mxu1  ;;  %9080 = vmatmul.msk.bf16.gmra.mxu3 %vm1370_vm1, %v14410_v61 }
 0x9f6   : > { %5026 = vmatmul.bf16.gmra.mxu0 %v14409_v51  ;;  %7522 = vst [vmem:[%s10018_s5 + $0x4f0] sm:$0xff] %v7010_v11  ;;  %9143 = vmatmul.msk.bf16.gmra.mxu2 %vm1370_vm1, %v14408_v10  ;;  %v4335_v10 = vadd.f32 %v4334_v34, %v12232_v35 }
 0x9f8   : > { %4373 = vmatmul.bf16.gmra.mxu1 %v14411_v63  ;;  %v4663_v12 = vpop.f32.mrf.mxu3 }
 0x9f9   : > { %v5316_v5 = vpop.f32.mrf.mxu2  ;;  %v4664_v22 = vadd.f32 %v4663_v12, %v4335_v10 }
 0x9fa   : > { %v5317_v42 = vadd.f32 %v5316_v5, %v4988_v28 }
 0x9fb   : > { %v4989_v15 = vpop.f32.mrf.mxu0 }
 0x9fc   : > { %v7014_v29 = vpack.c.bf16 %v5317_v42, %v4659_v6  ;;  %v4990_v36 = vadd.f32 %v4989_v15, %v12234_v30  ;;  %v14413_v6 = vld [vmem:[#allocation31_spill] sm:$0xff] }
 0x9fd   : > { %v4336_v55 = vpop.f32.mrf.mxu1 }
 0x9fe   : > { %7526 = vst [vmem:[%s10018_s5 + $0x510] sm:$0xff] %v7014_v29 }
 0xa00   : > { %v4665_v54 = vpop.f32.mrf.mxu3 }
 0xa01   : > { %v5318_v2 = vpop.f32.mrf.mxu2 }
 0xa02   : > { %v5319_v11 = vadd.f32 %v5318_v2, %v4990_v36  ;;  %v4337_v36 = vadd.f32 %v4336_v55, %v12232_v35  ;;  %v14414_v55 = vld [vmem:[#allocation32_spill] sm:$0xff] }
 0xa03   : > { %v4992_v51 = vpop.f32.mrf.mxu0 }
 0xa04   : > { %v7018_v27 = vpack.c.bf16 %v5319_v11, %v4661_v19  ;;  %v4993_v28 = vadd.f32 %v4992_v51, %v12234_v30  ;;  %v4666_v11 = vadd.f32 %v4665_v54, %v4337_v36  ;;  %v8757_v54 = vld [vmem:[%s13848_s1 + $0x218] sm:$0xf] }
 0xa05   : > { %v4339_v21 = vpop.f32.mrf.mxu1  ;;  %9081 = vmatmul.msk.bf16.gmra.mxu3 %vm1370_vm1, %v14412_v45 }
 0xa06   : > { %5031 = vmatmul.bf16.gmra.mxu0 %v14411_v63  ;;  %7530 = vst [vmem:[%s10018_s5 + $0x530] sm:$0xff] %v7018_v27  ;;  %9144 = vmatmul.msk.bf16.gmra.mxu2 %vm1370_vm1, %v14410_v61  ;;  %v4340_v61 = vadd.f32 %v4339_v21, %v12232_v35  ;;  %v9513_v21 = vld [vmem:[%s13848_s1 + $0x234] sm:$0xf0] }
 0xa08   : > { %4378 = vmatmul.bf16.gmra.mxu1 %v14413_v6  ;;  %v4668_v42 = vpop.f32.mrf.mxu3 }
 0xa09   : > { %v5321_v5 = vpop.f32.mrf.mxu2 }
 0xa0a   : > { %v5322_v34 = vadd.f32 %v5321_v5, %v4993_v28  ;;  %v8758_v5 = vor.u32 %v9513_v21, %v8757_v54  ;;  %v8597_v21 = vld [vmem:[%s13848_s1 + $0xd8] sm:$0xf] }
 0xa0b   : > { %v4994_v15 = vpop.f32.mrf.mxu0 }
 0xa0c   : > { %v7022_v29 = vpack.c.bf16 %v5322_v34, %v4664_v22  ;;  %v4995_v51 = vadd.f32 %v4994_v15, %v12234_v30  ;;  %v14415_v22 = vld [vmem:[#allocation33_spill] sm:$0xff]  ;;  %v8759_v34 = vld [vmem:[%s13848_s1 + $0x238] sm:$0xf0]  ;;  %v4669_v15 = vadd.f32 %v4668_v42, %v4340_v61  ;;  %5872 = vmatpush.bf16.msrb.mxu3 %v8758_v5  ;;  %v9473_v61 = vld [vmem:[%s13848_s1 + $0xf4] sm:$0xf0] }
 0xa0d   : > { %v4341_v41 = vpop.f32.mrf.mxu1  ;;  %v8598_v42 = vor.u32 %v9473_v61, %v8597_v21  ;;  %v8599_v5 = vld [vmem:[%s13848_s1 + $0xf8] sm:$0xf0] }
 0xa0e   : > { %7534 = vst [vmem:[%s10018_s5 + $0x550] sm:$0xff] %v7022_v29  ;;  %v4342_v54 = vadd.f32 %v4341_v41, %v12232_v35 }
 0xa0f   : > { %5540 = vmatpush.bf16.msrb.mxu1 %v8598_v42 }
 0xa10   : > { %v4670_v19 = vpop.f32.mrf.mxu3 }
 0xa11   : > { %v5323_v2 = vpop.f32.mrf.mxu2 }
 0xa12   : > { %v5324_v27 = vadd.f32 %v5323_v2, %v4995_v51 }
 0xa13   : > { %v4997_v63 = vpop.f32.mrf.mxu0 }
 0xa14   : > { %v7026_v10 = vpack.c.bf16 %v5324_v27, %v4666_v11  ;;  %v4998_v28 = vadd.f32 %v4997_v63, %v12234_v30  ;;  %v9509_v63 = vld [vmem:[%s13848_s1 + $0x21c] sm:$0xf] }
 0xa15   : > { %v4344_v12 = vpop.f32.mrf.mxu1  ;;  %9082 = vmatmul.msk.bf16.gmra.mxu3 %vm1370_vm1, %v14414_v55  ;;  %v8762_v29 = vor.u32 %v9509_v63, %v8759_v34 }
 0xa16   : > { %5036 = vmatmul.bf16.gmra.mxu0 %v14413_v6  ;;  %7538 = vst [vmem:[%s10018_s5 + $0x570] sm:$0xff] %v7026_v10  ;;  %9145 = vmatmul.msk.bf16.gmra.mxu2 %vm1370_vm1, %v14412_v45 }
 0xa17   : > { %6530 = vmatpush.bf16.msrb.mxu2 %v8762_v29  ;;  %v4671_v29 = vadd.f32 %v4670_v19, %v4342_v54  ;;  %v14417_v19 = vld [vmem:[#allocation35_spill] sm:$0xff] }
 0xa18   : > { %4383 = vmatmul.bf16.gmra.mxu1 %v14415_v22  ;;  %v4673_v51 = vpop.f32.mrf.mxu3 }
 0xa19   : > { %v5326_v36 = vpop.f32.mrf.mxu2 }
 0xa1a   : > { %v5327_v2 = vadd.f32 %v5326_v36, %v4998_v28  ;;  %v9469_v28 = vld [vmem:[%s13848_s1 + $0xdc] sm:$0xf] }
 0xa1b   : > { %v4999_v11 = vpop.f32.mrf.mxu0  ;;  %v8602_v63 = vor.u32 %v9469_v28, %v8599_v5 }
 0xa1c   : > { %v7030_v27 = vpack.c.bf16 %v5327_v2, %v4669_v15  ;;  %v5000_v41 = vadd.f32 %v4999_v11, %v12234_v30  ;;  %v14416_v11 = vld [vmem:[#allocation34_spill] sm:$0xff] }
 0xa1d   : > { %v4346_v10 = vpop.f32.mrf.mxu1  ;;  %6198 = vmatpush.bf16.msrb.mxu0 %v8602_v63 }
 0xa1e   : > { %7542 = vst [vmem:[%s10018_s5 + $0x590] sm:$0xff] %v7030_v27  ;;  %v4345_v27 = vadd.f32 %v4344_v12, %v12232_v35 }
 0xa20   : > { %v4675_v15 = vpop.f32.mrf.mxu3  ;;  %v4674_v54 = vadd.f32 %v4673_v51, %v4345_v27 }
 0xa21   : > { %v5328_v34 = vpop.f32.mrf.mxu2 }
 0xa22   : > { %v5329_v36 = vadd.f32 %v5328_v34, %v5000_v41  ;;  %v4347_v34 = vadd.f32 %v4346_v10, %v12232_v35  ;;  %v14418_v10 = vld [vmem:[#allocation36_spill] sm:$0xff] }
 0xa23   : > { %v5002_v2 = vpop.f32.mrf.mxu0 }
 0xa24   : > { %v7034_v21 = vpack.c.bf16 %v5329_v36, %v4671_v29  ;;  %v5003_v6 = vadd.f32 %v5002_v2, %v12234_v30 }
 0xa25   : > { %v4349_v61 = vpop.f32.mrf.mxu1  ;;  %9083 = vmatmul.msk.bf16.gmra.mxu3 %vm1370_vm1, %v14416_v11 }
 0xa26   : > { %5041 = vmatmul.bf16.gmra.mxu0 %v14415_v22  ;;  %7546 = vst [vmem:[%s10018_s5 + $0x5b0] sm:$0xff] %v7034_v21  ;;  %9146 = vmatmul.msk.bf16.gmra.mxu2 %vm1370_vm1, %v14414_v55  ;;  %v4676_v21 = vadd.f32 %v4675_v15, %v4347_v34  ;;  %v4350_v45 = vadd.f32 %v4349_v61, %v12232_v35 }
 0xa28   : > { %4388 = vmatmul.bf16.gmra.mxu1 %v14417_v19  ;;  %v4678_v28 = vpop.f32.mrf.mxu3 }
 0xa29   : > { %v5331_v42 = vpop.f32.mrf.mxu2  ;;  %v4679_v15 = vadd.f32 %v4678_v28, %v4350_v45 }
 0xa2a   : > { %v5332_v12 = vadd.f32 %v5331_v42, %v5003_v6 }
 0xa2b   : > { %v5004_v5 = vpop.f32.mrf.mxu0 }
 0xa2c   : > { %v7038_v41 = vpack.c.bf16 %v5332_v12, %v4674_v54  ;;  %v5005_v29 = vadd.f32 %v5004_v5, %v12234_v30  ;;  %v14419_v54 = vld [vmem:[#allocation37_spill] sm:$0xff] }
 0xa2d   : > { %v4351_v63 = vpop.f32.mrf.mxu1 }
 0xa2e   : > { %7550 = vst [vmem:[%s10018_s5 + $0x5d0] sm:$0xff] %v7038_v41  ;;  %v4352_v34 = vadd.f32 %v4351_v63, %v12232_v35  ;;  %v14420_v63 = vld [vmem:[#allocation38_spill] sm:$0xff] }
 0xa30   : > { %v4680_v2 = vpop.f32.mrf.mxu3 }
 0xa31   : > { %v5333_v36 = vpop.f32.mrf.mxu2 }
 0xa32   : > { %v5334_v22 = vadd.f32 %v5333_v36, %v5005_v29 }
 0xa33   : > { %v5007_v55 = vpop.f32.mrf.mxu0 }
 0xa34   : > { %v7042_v51 = vpack.c.bf16 %v5334_v22, %v4676_v21  ;;  %v5008_v6 = vadd.f32 %v5007_v55, %v12234_v30  ;;  %v4681_v21 = vadd.f32 %v4680_v2, %v4352_v34 }
 0xa35   : > { %v4354_v27 = vpop.f32.mrf.mxu1  ;;  %9084 = vmatmul.msk.bf16.gmra.mxu3 %vm1370_vm1, %v14418_v10 }
 0xa36   : > { %5046 = vmatmul.bf16.gmra.mxu0 %v14417_v19  ;;  %7554 = vst [vmem:[%s10018_s5 + $0x5f0] sm:$0xff] %v7042_v51  ;;  %9147 = vmatmul.msk.bf16.gmra.mxu2 %vm1370_vm1, %v14416_v11  ;;  %v4355_v11 = vadd.f32 %v4354_v27, %v12232_v35 }
 0xa38   : > { %4393 = vmatmul.bf16.gmra.mxu1 %v14419_v54  ;;  %v4683_v12 = vpop.f32.mrf.mxu3 }
 0xa39   : > { %v5336_v42 = vpop.f32.mrf.mxu2  ;;  %v4684_v2 = vadd.f32 %v4683_v12, %v4355_v11 }
 0xa3a   : > { %v5337_v61 = vadd.f32 %v5336_v42, %v5008_v6 }
 0xa3b   : > { %v5009_v22 = vpop.f32.mrf.mxu0 }
 0xa3c   : > { %v7046_v5 = vpack.c.bf16 %v5337_v61, %v4679_v15  ;;  %v5010_v55 = vadd.f32 %v5009_v22, %v12234_v30  ;;  %v14421_v15 = vld [vmem:[#allocation39_spill] sm:$0xff] }
 0xa3d   : > { %v4356_v41 = vpop.f32.mrf.mxu1 }
 0xa3e   : > { %7558 = vst [vmem:[%s10018_s5 + $0x610] sm:$0xff] %v7046_v5 }
 0xa40   : > { %v4685_v36 = vpop.f32.mrf.mxu3 }
 0xa41   : > { %v5338_v29 = vpop.f32.mrf.mxu2 }
 0xa42   : > { %v5339_v51 = vadd.f32 %v5338_v29, %v5010_v55  ;;  %v4357_v55 = vadd.f32 %v4356_v41, %v12232_v35  ;;  %v14422_v41 = vld [vmem:[#allocation40_spill] sm:$0xff] }
 0xa43   : > { %v5012_v19 = vpop.f32.mrf.mxu0 }
 0xa44   : > { %v7050_v45 = vpack.c.bf16 %v5339_v51, %v4681_v21  ;;  %v5013_v6 = vadd.f32 %v5012_v19, %v12234_v30  ;;  %v4686_v51 = vadd.f32 %v4685_v36, %v4357_v55 }
 0xa45   : > { %v4359_v28 = vpop.f32.mrf.mxu1  ;;  %9085 = vmatmul.msk.bf16.gmra.mxu3 %vm1370_vm1, %v14420_v63 }
 0xa46   : > { %5051 = vmatmul.bf16.gmra.mxu0 %v14419_v54  ;;  %7562 = vst [vmem:[%s10018_s5 + $0x630] sm:$0xff] %v7050_v45  ;;  %9148 = vmatmul.msk.bf16.gmra.mxu2 %vm1370_vm1, %v14418_v10  ;;  %v4360_v10 = vadd.f32 %v4359_v28, %v12232_v35 }
 0xa48   : > { %4398 = vmatmul.bf16.gmra.mxu1 %v14421_v15  ;;  %v4688_v61 = vpop.f32.mrf.mxu3 }
 0xa49   : > { %v5341_v42 = vpop.f32.mrf.mxu2  ;;  %v4689_v36 = vadd.f32 %v4688_v61, %v4360_v10 }
 0xa4a   : > { %v5342_v27 = vadd.f32 %v5341_v42, %v5013_v6 }
 0xa4b   : > { %v5014_v22 = vpop.f32.mrf.mxu0 }
 0xa4c   : > { %v7054_v5 = vpack.c.bf16 %v5342_v27, %v4684_v2  ;;  %v5015_v19 = vadd.f32 %v5014_v22, %v12234_v30  ;;  %v14423_v2 = vld [vmem:[#allocation41_spill] sm:$0xff] }
 0xa4d   : > { %v4361_v34 = vpop.f32.mrf.mxu1 }
 0xa4e   : > { %7566 = vst [vmem:[%s10018_s5 + $0x650] sm:$0xff] %v7054_v5 }
 0xa50   : > { %v4690_v21 = vpop.f32.mrf.mxu3 }
 0xa51   : > { %v5343_v29 = vpop.f32.mrf.mxu2 }
 0xa52   : > { %v5344_v45 = vadd.f32 %v5343_v29, %v5015_v19  ;;  %v4362_v19 = vadd.f32 %v4361_v34, %v12232_v35  ;;  %v14424_v34 = vld [vmem:[#allocation42_spill] sm:$0xff] }
 0xa53   : > { %v5017_v54 = vpop.f32.mrf.mxu0 }
 0xa54   : > { %v7058_v11 = vpack.c.bf16 %v5344_v45, %v4686_v51  ;;  %v5018_v6 = vadd.f32 %v5017_v54, %v12234_v30  ;;  %v4691_v45 = vadd.f32 %v4690_v21, %v4362_v19 }
 0xa55   : > { %v4364_v12 = vpop.f32.mrf.mxu1  ;;  %9086 = vmatmul.msk.bf16.gmra.mxu3 %vm1370_vm1, %v14422_v41 }
 0xa56   : > { %5056 = vmatmul.bf16.gmra.mxu0 %v14421_v15  ;;  %7570 = vst [vmem:[%s10018_s5 + $0x670] sm:$0xff] %v7058_v11  ;;  %9149 = vmatmul.msk.bf16.gmra.mxu2 %vm1370_vm1, %v14420_v63  ;;  %v4365_v63 = vadd.f32 %v4364_v12, %v12232_v35 }
 0xa58   : > { %4403 = vmatmul.bf16.gmra.mxu1 %v14423_v2  ;;  %v4693_v27 = vpop.f32.mrf.mxu3 }
 0xa59   : > { %v5346_v42 = vpop.f32.mrf.mxu2  ;;  %v4694_v21 = vadd.f32 %v4693_v27, %v4365_v63 }
 0xa5a   : > { %v5347_v28 = vadd.f32 %v5346_v42, %v5018_v6 }
 0xa5b   : > { %v5019_v22 = vpop.f32.mrf.mxu0 }
 0xa5c   : > { %v7062_v5 = vpack.c.bf16 %v5347_v28, %v4689_v36  ;;  %v5020_v54 = vadd.f32 %v5019_v22, %v12234_v30  ;;  %v14425_v36 = vld [vmem:[#allocation43_spill] sm:$0xff] }
 0xa5d   : > { %v4366_v55 = vpop.f32.mrf.mxu1 }
 0xa5e   : > { %7574 = vst [vmem:[%s10018_s5 + $0x690] sm:$0xff] %v7062_v5 }
 0xa60   : > { %v4695_v51 = vpop.f32.mrf.mxu3 }
 0xa61   : > { %v5348_v29 = vpop.f32.mrf.mxu2 }
 0xa62   : > { %v5349_v11 = vadd.f32 %v5348_v29, %v5020_v54  ;;  %v4367_v54 = vadd.f32 %v4366_v55, %v12232_v35  ;;  %v14426_v55 = vld [vmem:[#allocation44_spill] sm:$0xff] }
 0xa63   : > { %v5022_v15 = vpop.f32.mrf.mxu0 }
 0xa64   : > { %v7066_v10 = vpack.c.bf16 %v5349_v11, %v4691_v45  ;;  %v5023_v6 = vadd.f32 %v5022_v15, %v12234_v30  ;;  %v4696_v11 = vadd.f32 %v4695_v51, %v4367_v54 }
 0xa65   : > { %v4369_v61 = vpop.f32.mrf.mxu1  ;;  %9087 = vmatmul.msk.bf16.gmra.mxu3 %vm1370_vm1, %v14424_v34 }
 0xa66   : > { %5061 = vmatmul.bf16.gmra.mxu0 %v14423_v2  ;;  %7578 = vst [vmem:[%s10018_s5 + $0x6b0] sm:$0xff] %v7066_v10  ;;  %9150 = vmatmul.msk.bf16.gmra.mxu2 %vm1370_vm1, %v14422_v41  ;;  %v4370_v41 = vadd.f32 %v4369_v61, %v12232_v35 }
 0xa68   : > { %4408 = vmatmul.bf16.gmra.mxu1 %v14425_v36  ;;  %v4698_v28 = vpop.f32.mrf.mxu3 }
 0xa69   : > { %v5351_v42 = vpop.f32.mrf.mxu2  ;;  %v4699_v51 = vadd.f32 %v4698_v28, %v4370_v41 }
 0xa6a   : > { %v5352_v12 = vadd.f32 %v5351_v42, %v5023_v6 }
 0xa6b   : > { %v5024_v22 = vpop.f32.mrf.mxu0 }
 0xa6c   : > { %v7070_v5 = vpack.c.bf16 %v5352_v12, %v4694_v21  ;;  %v5025_v15 = vadd.f32 %v5024_v22, %v12234_v30  ;;  %v14427_v21 = vld [vmem:[#allocation45_spill] sm:$0xff] }
 0xa6d   : > { %v4371_v19 = vpop.f32.mrf.mxu1 }
 0xa6e   : > { %7582 = vst [vmem:[%s10018_s5 + $0x6d0] sm:$0xff] %v7070_v5 }
 0xa70   : > { %v4700_v45 = vpop.f32.mrf.mxu3 }
 0xa71   : > { %v5353_v29 = vpop.f32.mrf.mxu2 }
 0xa72   : > { %v5354_v10 = vadd.f32 %v5353_v29, %v5025_v15  ;;  %v4372_v15 = vadd.f32 %v4371_v19, %v12232_v35  ;;  %v14428_v19 = vld [vmem:[#allocation46_spill] sm:$0xff] }
 0xa73   : > { %v5027_v2 = vpop.f32.mrf.mxu0 }
 0xa74   : > { %v7074_v63 = vpack.c.bf16 %v5354_v10, %v4696_v11  ;;  %v5028_v6 = vadd.f32 %v5027_v2, %v12234_v30  ;;  %v4701_v10 = vadd.f32 %v4700_v45, %v4372_v15 }
 0xa75   : > { %v4374_v27 = vpop.f32.mrf.mxu1  ;;  %9088 = vmatmul.msk.bf16.gmra.mxu3 %vm1370_vm1, %v14426_v55 }
 0xa76   : > { %5066 = vmatmul.bf16.gmra.mxu0 %v14425_v36  ;;  %7586 = vst [vmem:[%s10018_s5 + $0x6f0] sm:$0xff] %v7074_v63  ;;  %9151 = vmatmul.msk.bf16.gmra.mxu2 %vm1370_vm1, %v14424_v34  ;;  %v4375_v34 = vadd.f32 %v4374_v27, %v12232_v35 }
 0xa78   : > { %4413 = vmatmul.bf16.gmra.mxu1 %v14427_v21  ;;  %v4703_v12 = vpop.f32.mrf.mxu3 }
 0xa79   : > { %v5356_v42 = vpop.f32.mrf.mxu2  ;;  %v4704_v45 = vadd.f32 %v4703_v12, %v4375_v34 }
 0xa7a   : > { %v5357_v61 = vadd.f32 %v5356_v42, %v5028_v6 }
 0xa7b   : > { %v5029_v22 = vpop.f32.mrf.mxu0 }
 0xa7c   : > { %v7078_v5 = vpack.c.bf16 %v5357_v61, %v4699_v51  ;;  %v5030_v2 = vadd.f32 %v5029_v22, %v12234_v30  ;;  %v14429_v51 = vld [vmem:[#allocation47_spill] sm:$0xff] }
 0xa7d   : > { %v4376_v54 = vpop.f32.mrf.mxu1 }
 0xa7e   : > { %7590 = vst [vmem:[%s10018_s5 + $0x710] sm:$0xff] %v7078_v5 }
 0xa80   : > { %v4705_v11 = vpop.f32.mrf.mxu3 }
 0xa81   : > { %v5358_v29 = vpop.f32.mrf.mxu2 }
 0xa82   : > { %v5359_v63 = vadd.f32 %v5358_v29, %v5030_v2  ;;  %v4377_v2 = vadd.f32 %v4376_v54, %v12232_v35  ;;  %v14430_v54 = vld [vmem:[#allocation48_spill] sm:$0xff] }
 0xa83   : > { %v5032_v36 = vpop.f32.mrf.mxu0 }
 0xa84   : > { %v7082_v41 = vpack.c.bf16 %v5359_v63, %v4701_v10  ;;  %v5033_v6 = vadd.f32 %v5032_v36, %v12234_v30  ;;  %v4706_v63 = vadd.f32 %v4705_v11, %v4377_v2 }
 0xa85   : > { %v4379_v28 = vpop.f32.mrf.mxu1  ;;  %9089 = vmatmul.msk.bf16.gmra.mxu3 %vm1370_vm1, %v14428_v19 }
 0xa86   : > { %5071 = vmatmul.bf16.gmra.mxu0 %v14427_v21  ;;  %7594 = vst [vmem:[%s10018_s5 + $0x730] sm:$0xff] %v7082_v41  ;;  %9152 = vmatmul.msk.bf16.gmra.mxu2 %vm1370_vm1, %v14426_v55  ;;  %v4380_v55 = vadd.f32 %v4379_v28, %v12232_v35 }
 0xa88   : > { %4418 = vmatmul.bf16.gmra.mxu1 %v14429_v51  ;;  %v4708_v61 = vpop.f32.mrf.mxu3 }
 0xa89   : > { %v5361_v42 = vpop.f32.mrf.mxu2  ;;  %v4709_v11 = vadd.f32 %v4708_v61, %v4380_v55  ;;  %v9461_v55 = vld [vmem:[%s13848_s1 + $0x9c] sm:$0xf] }
 0xa8a   : > { %v5362_v27 = vadd.f32 %v5361_v42, %v5033_v6  ;;  %v8567_v61 = vld [vmem:[%s13848_s1 + $0xb8] sm:$0xf0] }
 0xa8b   : > { %v5034_v22 = vpop.f32.mrf.mxu0 }
 0xa8c   : > { %v7086_v5 = vpack.c.bf16 %v5362_v27, %v4704_v45  ;;  %v5035_v36 = vadd.f32 %v5034_v22, %v12234_v30  ;;  %v14431_v45 = vld [vmem:[#allocation49_spill] sm:$0xff] }
 0xa8d   : > { %v4381_v15 = vpop.f32.mrf.mxu1 }
 0xa8e   : > { %7598 = vst [vmem:[%s10018_s5 + $0x750] sm:$0xff] %v7086_v5 }
 0xa90   : > { %v4710_v10 = vpop.f32.mrf.mxu3 }
 0xa91   : > { %v5363_v29 = vpop.f32.mrf.mxu2 }
 0xa92   : > { %v5364_v41 = vadd.f32 %v5363_v29, %v5035_v36  ;;  %v4382_v36 = vadd.f32 %v4381_v15, %v12232_v35  ;;  %v9465_v29 = vld [vmem:[%s13848_s1 + $0xb4] sm:$0xf0] }
 0xa93   : > { %v5037_v21 = vpop.f32.mrf.mxu0 }
 0xa94   : > { %v7090_v34 = vpack.c.bf16 %v5364_v41, %v4706_v63  ;;  %v5038_v6 = vadd.f32 %v5037_v21, %v12234_v30  ;;  %v8565_v21 = vld [vmem:[%s13848_s1 + $0x98] sm:$0xf]  ;;  %v8570_v41 = vor.u32 %v9461_v55, %v8567_v61 }
 0xa95   : > { %v4384_v12 = vpop.f32.mrf.mxu1  ;;  %9090 = vmatmul.msk.bf16.gmra.mxu3 %vm1370_vm1, %v14430_v54  ;;  %v8566_v63 = vor.u32 %v9465_v29, %v8565_v21 }
 0xa96   : > { %5076 = vmatmul.bf16.gmra.mxu0 %v14429_v51  ;;  %7602 = vst [vmem:[%s10018_s5 + $0x770] sm:$0xff] %v7090_v34  ;;  %9153 = vmatmul.msk.bf16.gmra.mxu2 %vm1370_vm1, %v14428_v19 }
 0xa97   : > { %5541 = vmatpush.bf16.msrb.mxu1 %v8566_v63  ;;  %6199 = vmatpush.bf16.msrb.mxu0 %v8570_v41 }
 0xa98   : > { %4423 = vmatmul.bf16.gmra.mxu1 %v14431_v45  ;;  %v4713_v27 = vpop.f32.mrf.mxu3 }
 0xa99   : > { %v5366_v42 = vpop.f32.mrf.mxu2 }
 0xa9a   : > { %v5367_v28 = vadd.f32 %v5366_v42, %v5038_v6 }
 0xa9b   : > { %v5039_v22 = vpop.f32.mrf.mxu0 }
 0xa9c   : > { %v7094_v5 = vpack.c.bf16 %v5367_v28, %v4709_v11  ;;  %v5040_v15 = vadd.f32 %v5039_v22, %v12234_v30  ;;  %v4711_v11 = vadd.f32 %v4710_v10, %v4382_v36  ;;  %v14432_v22 = vld [vmem:[#allocation50_spill] sm:$0xff]  ;;  %v14433_v10 = vld [vmem:[#allocation51_spill] sm:$0xff] }
 0xa9d   : > { %v4386_v2 = vpop.f32.mrf.mxu1 }
 0xa9e   : > { %7606 = vst [vmem:[%s10018_s5 + $0x790] sm:$0xff] %v7094_v5  ;;  %v4385_v5 = vadd.f32 %v4384_v12, %v12232_v35 }
 0xaa0   : > { %v4715_v6 = vpop.f32.mrf.mxu3  ;;  %v4714_v36 = vadd.f32 %v4713_v27, %v4385_v5 }
 0xaa1   : > { %v5368_v34 = vpop.f32.mrf.mxu2 }
 0xaa2   : > { %v5369_v42 = vadd.f32 %v5368_v34, %v5040_v15  ;;  %v4387_v34 = vadd.f32 %v4386_v2, %v12232_v35  ;;  %v14434_v2 = vld [vmem:[#allocation52_spill] sm:$0xff] }
 0xaa3   : > { %v5042_v28 = vpop.f32.mrf.mxu0 }
 0xaa4   : > { %v7098_v21 = vpack.c.bf16 %v5369_v42, %v4711_v11  ;;  %v5043_v51 = vadd.f32 %v5042_v28, %v12234_v30 }
 0xaa5   : > { %v4389_v29 = vpop.f32.mrf.mxu1  ;;  %9091 = vmatmul.msk.bf16.gmra.mxu3 %vm1370_vm1, %v14432_v22 }
 0xaa6   : > { %5081 = vmatmul.bf16.gmra.mxu0 %v14431_v45  ;;  %7610 = vst [vmem:[%s10018_s5 + $0x7b0] sm:$0xff] %v7098_v21  ;;  %9154 = vmatmul.msk.bf16.gmra.mxu2 %vm1370_vm1, %v14430_v54  ;;  %v4716_v21 = vadd.f32 %v4715_v6, %v4387_v34  ;;  %v4390_v19 = vadd.f32 %v4389_v29, %v12232_v35 }
 0xaa8   : > { %4428 = vmatmul.bf16.gmra.mxu1 %v14433_v10  ;;  %v4718_v55 = vpop.f32.mrf.mxu3 }
 0xaa9   : > { %v5371_v63 = vpop.f32.mrf.mxu2  ;;  %v4719_v6 = vadd.f32 %v4718_v55, %v4390_v19 }
 0xaaa   : > { %v5372_v12 = vadd.f32 %v5371_v63, %v5043_v51 }
 0xaab   : > { %v5044_v61 = vpop.f32.mrf.mxu0 }
 0xaac   : > { %v7102_v15 = vpack.c.bf16 %v5372_v12, %v4714_v36  ;;  %v5045_v11 = vadd.f32 %v5044_v61, %v12234_v30  ;;  %v14435_v36 = vld [vmem:[#allocation53_spill] sm:$0xff] }
 0xaad   : > { %v4391_v41 = vpop.f32.mrf.mxu1 }
 0xaae   : > { %7614 = vst [vmem:[%s10018_s5 + $0x7d0] sm:$0xff] %v7102_v15  ;;  %v4392_v34 = vadd.f32 %v4391_v41, %v12232_v35  ;;  %v14436_v41 = vld [vmem:[#allocation54_spill] sm:$0xff] }
 0xab0   : > { %v4720_v28 = vpop.f32.mrf.mxu3 }
 0xab1   : > { %v5373_v42 = vpop.f32.mrf.mxu2 }
 0xab2   : > { %v5374_v45 = vadd.f32 %v5373_v42, %v5045_v11 }
 0xab3   : > { %v5047_v54 = vpop.f32.mrf.mxu0 }
 0xab4   : > { %v7106_v27 = vpack.c.bf16 %v5374_v45, %v4716_v21  ;;  %v5048_v51 = vadd.f32 %v5047_v54, %v12234_v30  ;;  %v4721_v21 = vadd.f32 %v4720_v28, %v4392_v34 }
 0xab5   : > { %v4394_v5 = vpop.f32.mrf.mxu1  ;;  %9092 = vmatmul.msk.bf16.gmra.mxu3 %vm1370_vm1, %v14434_v2 }
 0xab6   : > { %5086 = vmatmul.bf16.gmra.mxu0 %v14433_v10  ;;  %7618 = vst [vmem:[%s10018_s5 + $0x7f0] sm:$0xff] %v7106_v27  ;;  %9155 = vmatmul.msk.bf16.gmra.mxu2 %vm1370_vm1, %v14432_v22  ;;  %v4395_v22 = vadd.f32 %v4394_v5, %v12232_v35 }
 0xab8   : > { %4433 = vmatmul.bf16.gmra.mxu1 %v14435_v36  ;;  %v4723_v12 = vpop.f32.mrf.mxu3 }
 0xab9   : > { %v5376_v63 = vpop.f32.mrf.mxu2  ;;  %v4724_v28 = vadd.f32 %v4723_v12, %v4395_v22 }
 0xaba   : > { %v5377_v29 = vadd.f32 %v5376_v63, %v5048_v51 }
 0xabb   : > { %v5049_v45 = vpop.f32.mrf.mxu0 }
 0xabc   : > { %v7110_v61 = vpack.c.bf16 %v5377_v29, %v4719_v6  ;;  %v5050_v54 = vadd.f32 %v5049_v45, %v12234_v30  ;;  %v14437_v6 = vld [vmem:[#allocation55_spill] sm:$0xff] }
 0xabd   : > { %v4396_v15 = vpop.f32.mrf.mxu1 }
 0xabe   : > { %7622 = vst [vmem:[%s10018_s5 + $0x810] sm:$0xff] %v7110_v61 }
 0xac0   : > { %v4725_v42 = vpop.f32.mrf.mxu3 }
 0xac1   : > { %v5378_v11 = vpop.f32.mrf.mxu2 }
 0xac2   : > { %v5379_v27 = vadd.f32 %v5378_v11, %v5050_v54  ;;  %v4397_v54 = vadd.f32 %v4396_v15, %v12232_v35  ;;  %v14438_v15 = vld [vmem:[#allocation56_spill] sm:$0xff] }
 0xac3   : > { %v5052_v10 = vpop.f32.mrf.mxu0 }
 0xac4   : > { %v7114_v19 = vpack.c.bf16 %v5379_v27, %v4721_v21  ;;  %v5053_v51 = vadd.f32 %v5052_v10, %v12234_v30  ;;  %v4726_v27 = vadd.f32 %v4725_v42, %v4397_v54 }
 0xac5   : > { %v4399_v55 = vpop.f32.mrf.mxu1  ;;  %9093 = vmatmul.msk.bf16.gmra.mxu3 %vm1370_vm1, %v14436_v41 }
 0xac6   : > { %5091 = vmatmul.bf16.gmra.mxu0 %v14435_v36  ;;  %7626 = vst [vmem:[%s10018_s5 + $0x830] sm:$0xff] %v7114_v19  ;;  %9156 = vmatmul.msk.bf16.gmra.mxu2 %vm1370_vm1, %v14434_v2  ;;  %v4400_v2 = vadd.f32 %v4399_v55, %v12232_v35 }
 0xac8   : > { %4438 = vmatmul.bf16.gmra.mxu1 %v14437_v6  ;;  %v4728_v29 = vpop.f32.mrf.mxu3 }
 0xac9   : > { %v5381_v63 = vpop.f32.mrf.mxu2  ;;  %v4729_v42 = vadd.f32 %v4728_v29, %v4400_v2 }
 0xaca   : > { %v5382_v5 = vadd.f32 %v5381_v63, %v5053_v51 }
 0xacb   : > { %v5054_v45 = vpop.f32.mrf.mxu0 }
 0xacc   : > { %v7118_v61 = vpack.c.bf16 %v5382_v5, %v4724_v28  ;;  %v5055_v10 = vadd.f32 %v5054_v45, %v12234_v30  ;;  %v14439_v28 = vld [vmem:[#allocation57_spill] sm:$0xff] }
 0xacd   : > { %v4401_v34 = vpop.f32.mrf.mxu1 }
 0xace   : > { %7630 = vst [vmem:[%s10018_s5 + $0x850] sm:$0xff] %v7118_v61 }
 0xad0   : > { %v4730_v21 = vpop.f32.mrf.mxu3 }
 0xad1   : > { %v5383_v11 = vpop.f32.mrf.mxu2 }
 0xad2   : > { %v5384_v19 = vadd.f32 %v5383_v11, %v5055_v10  ;;  %v4402_v10 = vadd.f32 %v4401_v34, %v12232_v35  ;;  %v14440_v34 = vld [vmem:[#allocation58_spill] sm:$0xff] }
 0xad3   : > { %v5057_v36 = vpop.f32.mrf.mxu0 }
 0xad4   : > { %v7122_v22 = vpack.c.bf16 %v5384_v19, %v4726_v27  ;;  %v5058_v51 = vadd.f32 %v5057_v36, %v12234_v30  ;;  %v4731_v19 = vadd.f32 %v4730_v21, %v4402_v10 }
 0xad5   : > { %v4404_v12 = vpop.f32.mrf.mxu1  ;;  %9094 = vmatmul.msk.bf16.gmra.mxu3 %vm1370_vm1, %v14438_v15 }
 0xad6   : > { %5096 = vmatmul.bf16.gmra.mxu0 %v14437_v6  ;;  %7634 = vst [vmem:[%s10018_s5 + $0x870] sm:$0xff] %v7122_v22  ;;  %9157 = vmatmul.msk.bf16.gmra.mxu2 %vm1370_vm1, %v14436_v41  ;;  %v4405_v41 = vadd.f32 %v4404_v12, %v12232_v35 }
 0xad8   : > { %4443 = vmatmul.bf16.gmra.mxu1 %v14439_v28  ;;  %v4733_v5 = vpop.f32.mrf.mxu3 }
 0xad9   : > { %v5386_v63 = vpop.f32.mrf.mxu2  ;;  %v4734_v21 = vadd.f32 %v4733_v5, %v4405_v41 }
 0xada   : > { %v5387_v55 = vadd.f32 %v5386_v63, %v5058_v51 }
 0xadb   : > { %v5059_v45 = vpop.f32.mrf.mxu0 }
 0xadc   : > { %v7126_v61 = vpack.c.bf16 %v5387_v55, %v4729_v42  ;;  %v5060_v36 = vadd.f32 %v5059_v45, %v12234_v30  ;;  %v14441_v42 = vld [vmem:[#allocation59_spill] sm:$0xff] }
 0xadd   : > { %v4406_v54 = vpop.f32.mrf.mxu1 }
 0xade   : > { %7638 = vst [vmem:[%s10018_s5 + $0x890] sm:$0xff] %v7126_v61 }
 0xae0   : > { %v4735_v27 = vpop.f32.mrf.mxu3 }
 0xae1   : > { %v5388_v11 = vpop.f32.mrf.mxu2 }
 0xae2   : > { %v5389_v22 = vadd.f32 %v5388_v11, %v5060_v36  ;;  %v4407_v36 = vadd.f32 %v4406_v54, %v12232_v35  ;;  %v14442_v54 = vld [vmem:[#allocation60_spill] sm:$0xff] }
 0xae3   : > { %v5062_v6 = vpop.f32.mrf.mxu0 }
 0xae4   : > { %v7130_v2 = vpack.c.bf16 %v5389_v22, %v4731_v19  ;;  %v5063_v51 = vadd.f32 %v5062_v6, %v12234_v30  ;;  %v4736_v22 = vadd.f32 %v4735_v27, %v4407_v36 }
 0xae5   : > { %v4409_v29 = vpop.f32.mrf.mxu1  ;;  %9095 = vmatmul.msk.bf16.gmra.mxu3 %vm1370_vm1, %v14440_v34 }
 0xae6   : > { %5101 = vmatmul.bf16.gmra.mxu0 %v14439_v28  ;;  %7642 = vst [vmem:[%s10018_s5 + $0x8b0] sm:$0xff] %v7130_v2  ;;  %9158 = vmatmul.msk.bf16.gmra.mxu2 %vm1370_vm1, %v14438_v15  ;;  %v4410_v15 = vadd.f32 %v4409_v29, %v12232_v35 }
 0xae8   : > { %4448 = vmatmul.bf16.gmra.mxu1 %v14441_v42  ;;  %v4738_v55 = vpop.f32.mrf.mxu3 }
 0xae9   : > { %v5391_v63 = vpop.f32.mrf.mxu2  ;;  %v4739_v27 = vadd.f32 %v4738_v55, %v4410_v15 }
 0xaea   : > { %v5392_v12 = vadd.f32 %v5391_v63, %v5063_v51 }
 0xaeb   : > { %v5064_v45 = vpop.f32.mrf.mxu0 }
 0xaec   : > { %v7134_v61 = vpack.c.bf16 %v5392_v12, %v4734_v21  ;;  %v5065_v6 = vadd.f32 %v5064_v45, %v12234_v30  ;;  %v14443_v21 = vld [vmem:[#allocation61_spill] sm:$0xff] }
 0xaed   : > { %v4411_v10 = vpop.f32.mrf.mxu1 }
 0xaee   : > { %7646 = vst [vmem:[%s10018_s5 + $0x8d0] sm:$0xff] %v7134_v61 }
 0xaf0   : > { %v4740_v19 = vpop.f32.mrf.mxu3 }
 0xaf1   : > { %v5393_v11 = vpop.f32.mrf.mxu2 }
 0xaf2   : > { %v5394_v2 = vadd.f32 %v5393_v11, %v5065_v6  ;;  %v4412_v6 = vadd.f32 %v4411_v10, %v12232_v35  ;;  %v14444_v10 = vld [vmem:[#allocation62_spill] sm:$0xff] }
 0xaf3   : > { %v5067_v28 = vpop.f32.mrf.mxu0 }
 0xaf4   : > { %v7138_v41 = vpack.c.bf16 %v5394_v2, %v4736_v22  ;;  %v5068_v51 = vadd.f32 %v5067_v28, %v12234_v30  ;;  %v4741_v2 = vadd.f32 %v4740_v19, %v4412_v6 }
 0xaf5   : > { %v4414_v5 = vpop.f32.mrf.mxu1  ;;  %9096 = vmatmul.msk.bf16.gmra.mxu3 %vm1370_vm1, %v14442_v54 }
 0xaf6   : > { %5106 = vmatmul.bf16.gmra.mxu0 %v14441_v42  ;;  %7650 = vst [vmem:[%s10018_s5 + $0x8f0] sm:$0xff] %v7138_v41  ;;  %9159 = vmatmul.msk.bf16.gmra.mxu2 %vm1370_vm1, %v14440_v34  ;;  %v4415_v34 = vadd.f32 %v4414_v5, %v12232_v35 }
 0xaf8   : > { %4453 = vmatmul.bf16.gmra.mxu1 %v14443_v21  ;;  %v4743_v12 = vpop.f32.mrf.mxu3 }
 0xaf9   : > { %v5396_v63 = vpop.f32.mrf.mxu2  ;;  %v4744_v19 = vadd.f32 %v4743_v12, %v4415_v34 }
 0xafa   : > { %v5397_v29 = vadd.f32 %v5396_v63, %v5068_v51 }
 0xafb   : > { %v5069_v45 = vpop.f32.mrf.mxu0 }
 0xafc   : > { %v7142_v61 = vpack.c.bf16 %v5397_v29, %v4739_v27  ;;  %v5070_v28 = vadd.f32 %v5069_v45, %v12234_v30  ;;  %v14445_v27 = vld [vmem:[#allocation63_spill] sm:$0xff] }
 0xafd   : > { %v4416_v36 = vpop.f32.mrf.mxu1 }
 0xafe   : > { %7654 = vst [vmem:[%s10018_s5 + $0x910] sm:$0xff] %v7142_v61 }
 0xb00   : > { %v4745_v22 = vpop.f32.mrf.mxu3 }
 0xb01   : > { %v5398_v11 = vpop.f32.mrf.mxu2 }
 0xb02   : > { %v5399_v41 = vadd.f32 %v5398_v11, %v5070_v28  ;;  %v4417_v28 = vadd.f32 %v4416_v36, %v12232_v35  ;;  %v14446_v36 = vld [vmem:[#allocation64_spill] sm:$0xff] }
 0xb03   : > { %v5072_v42 = vpop.f32.mrf.mxu0 }
 0xb04   : > { %v7146_v15 = vpack.c.bf16 %v5399_v41, %v4741_v2  ;;  %v5073_v51 = vadd.f32 %v5072_v42, %v12234_v30  ;;  %v4746_v41 = vadd.f32 %v4745_v22, %v4417_v28 }
 0xb05   : > { %v4419_v55 = vpop.f32.mrf.mxu1  ;;  %9097 = vmatmul.msk.bf16.gmra.mxu3 %vm1370_vm1, %v14444_v10 }
 0xb06   : > { %5111 = vmatmul.bf16.gmra.mxu0 %v14443_v21  ;;  %7658 = vst [vmem:[%s10018_s5 + $0x930] sm:$0xff] %v7146_v15  ;;  %9160 = vmatmul.msk.bf16.gmra.mxu2 %vm1370_vm1, %v14442_v54  ;;  %v4420_v54 = vadd.f32 %v4419_v55, %v12232_v35 }
 0xb08   : > { %4458 = vmatmul.bf16.gmra.mxu1 %v14445_v27  ;;  %v4748_v29 = vpop.f32.mrf.mxu3 }
 0xb09   : > { %v5401_v63 = vpop.f32.mrf.mxu2  ;;  %v4749_v22 = vadd.f32 %v4748_v29, %v4420_v54  ;;  %v9453_v54 = vld [vmem:[%s13848_s1 + $0x5c] sm:$0xf] }
 0xb0a   : > { %v5402_v5 = vadd.f32 %v5401_v63, %v5073_v51  ;;  %v8535_v29 = vld [vmem:[%s13848_s1 + $0x78] sm:$0xf0] }
 0xb0b   : > { %v5074_v45 = vpop.f32.mrf.mxu0 }
 0xb0c   : > { %v7150_v61 = vpack.c.bf16 %v5402_v5, %v4744_v19  ;;  %v5075_v42 = vadd.f32 %v5074_v45, %v12234_v30  ;;  %v14447_v19 = vld [vmem:[#allocation65_spill] sm:$0xff] }
 0xb0d   : > { %v4421_v6 = vpop.f32.mrf.mxu1 }
 0xb0e   : > { %7662 = vst [vmem:[%s10018_s5 + $0x950] sm:$0xff] %v7150_v61 }
 0xb10   : > { %v4750_v2 = vpop.f32.mrf.mxu3 }
 0xb11   : > { %v5403_v11 = vpop.f32.mrf.mxu2 }
 0xb12   : > { %v5404_v15 = vadd.f32 %v5403_v11, %v5075_v42  ;;  %v4422_v42 = vadd.f32 %v4421_v6, %v12232_v35  ;;  %v9457_v11 = vld [vmem:[%s13848_s1 + $0x74] sm:$0xf0] }
 0xb13   : > { %v5077_v21 = vpop.f32.mrf.mxu0 }
 0xb14   : > { %v7154_v34 = vpack.c.bf16 %v5404_v15, %v4746_v41  ;;  %v5078_v51 = vadd.f32 %v5077_v21, %v12234_v30  ;;  %v8533_v21 = vld [vmem:[%s13848_s1 + $0x58] sm:$0xf]  ;;  %v8538_v15 = vor.u32 %v9453_v54, %v8535_v29 }
 0xb15   : > { %v4424_v12 = vpop.f32.mrf.mxu1  ;;  %9098 = vmatmul.msk.bf16.gmra.mxu3 %vm1370_vm1, %v14446_v36  ;;  %v8534_v41 = vor.u32 %v9457_v11, %v8533_v21 }
 0xb16   : > { %5116 = vmatmul.bf16.gmra.mxu0 %v14445_v27  ;;  %7666 = vst [vmem:[%s10018_s5 + $0x970] sm:$0xff] %v7154_v34  ;;  %9161 = vmatmul.msk.bf16.gmra.mxu2 %vm1370_vm1, %v14444_v10 }
 0xb17   : > { %5542 = vmatpush.bf16.msrb.mxu1 %v8534_v41  ;;  %6200 = vmatpush.bf16.msrb.mxu0 %v8538_v15 }
 0xb18   : > { %4463 = vmatmul.bf16.gmra.mxu1 %v14447_v19  ;;  %v4753_v5 = vpop.f32.mrf.mxu3 }
 0xb19   : > { %v5406_v63 = vpop.f32.mrf.mxu2 }
 0xb1a   : > { %v5407_v55 = vadd.f32 %v5406_v63, %v5078_v51 }
 0xb1b   : > { %v5079_v45 = vpop.f32.mrf.mxu0 }
 0xb1c   : > { %v7158_v61 = vpack.c.bf16 %v5407_v55, %v4749_v22  ;;  %v5080_v6 = vadd.f32 %v5079_v45, %v12234_v30  ;;  %v4751_v22 = vadd.f32 %v4750_v2, %v4422_v42  ;;  %v14448_v45 = vld [vmem:[#allocation66_spill] sm:$0xff]  ;;  %v14449_v2 = vld [vmem:[#allocation67_spill] sm:$0xff] }
 0xb1d   : > { %v4426_v28 = vpop.f32.mrf.mxu1 }
 0xb1e   : > { %7670 = vst [vmem:[%s10018_s5 + $0x990] sm:$0xff] %v7158_v61  ;;  %v4425_v61 = vadd.f32 %v4424_v12, %v12232_v35 }
 0xb20   : > { %v4755_v51 = vpop.f32.mrf.mxu3  ;;  %v4754_v42 = vadd.f32 %v4753_v5, %v4425_v61 }
 0xb21   : > { %v5408_v34 = vpop.f32.mrf.mxu2 }
 0xb22   : > { %v5409_v63 = vadd.f32 %v5408_v34, %v5080_v6  ;;  %v4427_v34 = vadd.f32 %v4426_v28, %v12232_v35  ;;  %v14450_v28 = vld [vmem:[#allocation68_spill] sm:$0xff] }
 0xb23   : > { %v5082_v55 = vpop.f32.mrf.mxu0 }
 0xb24   : > { %v7162_v21 = vpack.c.bf16 %v5409_v63, %v4751_v22  ;;  %v5083_v27 = vadd.f32 %v5082_v55, %v12234_v30 }
 0xb25   : > { %v4429_v11 = vpop.f32.mrf.mxu1  ;;  %9099 = vmatmul.msk.bf16.gmra.mxu3 %vm1370_vm1, %v14448_v45 }
 0xb26   : > { %5121 = vmatmul.bf16.gmra.mxu0 %v14447_v19  ;;  %7674 = vst [vmem:[%s10018_s5 + $0x9b0] sm:$0xff] %v7162_v21  ;;  %9162 = vmatmul.msk.bf16.gmra.mxu2 %vm1370_vm1, %v14446_v36  ;;  %v4756_v21 = vadd.f32 %v4755_v51, %v4427_v34  ;;  %v4430_v10 = vadd.f32 %v4429_v11, %v12232_v35 }
 0xb28   : > { %4468 = vmatmul.bf16.gmra.mxu1 %v14449_v2  ;;  %v4758_v54 = vpop.f32.mrf.mxu3 }
 0xb29   : > { %v5411_v41 = vpop.f32.mrf.mxu2  ;;  %v4759_v51 = vadd.f32 %v4758_v54, %v4430_v10 }
 0xb2a   : > { %v5412_v12 = vadd.f32 %v5411_v41, %v5083_v27 }
 0xb2b   : > { %v5084_v29 = vpop.f32.mrf.mxu0 }
 0xb2c   : > { %v7166_v6 = vpack.c.bf16 %v5412_v12, %v4754_v42  ;;  %v5085_v22 = vadd.f32 %v5084_v29, %v12234_v30  ;;  %v14451_v42 = vld [vmem:[#allocation69_spill] sm:$0xff] }
 0xb2d   : > { %v4431_v15 = vpop.f32.mrf.mxu1 }
 0xb2e   : > { %7678 = vst [vmem:[%s10018_s5 + $0x9d0] sm:$0xff] %v7166_v6  ;;  %v4432_v34 = vadd.f32 %v4431_v15, %v12232_v35  ;;  %v14452_v15 = vld [vmem:[#allocation70_spill] sm:$0xff] }
 0xb30   : > { %v4760_v55 = vpop.f32.mrf.mxu3 }
 0xb31   : > { %v5413_v63 = vpop.f32.mrf.mxu2 }
 0xb32   : > { %v5414_v19 = vadd.f32 %v5413_v63, %v5085_v22 }
 0xb33   : > { %v5087_v36 = vpop.f32.mrf.mxu0 }
 0xb34   : > { %v7170_v5 = vpack.c.bf16 %v5414_v19, %v4756_v21  ;;  %v5088_v27 = vadd.f32 %v5087_v36, %v12234_v30  ;;  %v4761_v21 = vadd.f32 %v4760_v55, %v4432_v34 }
 0xb35   : > { %v4434_v61 = vpop.f32.mrf.mxu1  ;;  %9100 = vmatmul.msk.bf16.gmra.mxu3 %vm1370_vm1, %v14450_v28 }
 0xb36   : > { %5126 = vmatmul.bf16.gmra.mxu0 %v14449_v2  ;;  %7682 = vst [vmem:[%s10018_s5 + $0x9f0] sm:$0xff] %v7170_v5  ;;  %9163 = vmatmul.msk.bf16.gmra.mxu2 %vm1370_vm1, %v14448_v45  ;;  %v4435_v45 = vadd.f32 %v4434_v61, %v12232_v35 }
 0xb38   : > { %4473 = vmatmul.bf16.gmra.mxu1 %v14451_v42  ;;  %v4763_v12 = vpop.f32.mrf.mxu3 }
 0xb39   : > { %v5416_v41 = vpop.f32.mrf.mxu2  ;;  %v4764_v55 = vadd.f32 %v4763_v12, %v4435_v45 }
 0xb3a   : > { %v5417_v11 = vadd.f32 %v5416_v41, %v5088_v27 }
 0xb3b   : > { %v5089_v19 = vpop.f32.mrf.mxu0 }
 0xb3c   : > { %v7174_v29 = vpack.c.bf16 %v5417_v11, %v4759_v51  ;;  %v5090_v36 = vadd.f32 %v5089_v19, %v12234_v30  ;;  %v14453_v51 = vld [vmem:[#allocation71_spill] sm:$0xff] }
 0xb3d   : > { %v4436_v6 = vpop.f32.mrf.mxu1 }
 0xb3e   : > { %7686 = vst [vmem:[%s10018_s5 + $0xa10] sm:$0xff] %v7174_v29 }
 0xb40   : > { %v4765_v63 = vpop.f32.mrf.mxu3 }
 0xb41   : > { %v5418_v22 = vpop.f32.mrf.mxu2 }
 0xb42   : > { %v5419_v5 = vadd.f32 %v5418_v22, %v5090_v36  ;;  %v4437_v36 = vadd.f32 %v4436_v6, %v12232_v35  ;;  %v14454_v6 = vld [vmem:[#allocation72_spill] sm:$0xff] }
 0xb43   : > { %v5092_v2 = vpop.f32.mrf.mxu0 }
 0xb44   : > { %v7178_v10 = vpack.c.bf16 %v5419_v5, %v4761_v21  ;;  %v5093_v27 = vadd.f32 %v5092_v2, %v12234_v30  ;;  %v4766_v5 = vadd.f32 %v4765_v63, %v4437_v36 }
 0xb45   : > { %v4439_v54 = vpop.f32.mrf.mxu1  ;;  %9101 = vmatmul.msk.bf16.gmra.mxu3 %vm1370_vm1, %v14452_v15 }
 0xb46   : > { %5131 = vmatmul.bf16.gmra.mxu0 %v14451_v42  ;;  %7690 = vst [vmem:[%s10018_s5 + $0xa30] sm:$0xff] %v7178_v10  ;;  %9164 = vmatmul.msk.bf16.gmra.mxu2 %vm1370_vm1, %v14450_v28  ;;  %v4440_v28 = vadd.f32 %v4439_v54, %v12232_v35 }
 0xb48   : > { %4478 = vmatmul.bf16.gmra.mxu1 %v14453_v51  ;;  %v4768_v11 = vpop.f32.mrf.mxu3 }
 0xb49   : > { %v5421_v41 = vpop.f32.mrf.mxu2  ;;  %v4769_v63 = vadd.f32 %v4768_v11, %v4440_v28 }
 0xb4a   : > { %v5422_v61 = vadd.f32 %v5421_v41, %v5093_v27 }
 0xb4b   : > { %v5094_v19 = vpop.f32.mrf.mxu0 }
 0xb4c   : > { %v7182_v29 = vpack.c.bf16 %v5422_v61, %v4764_v55  ;;  %v5095_v2 = vadd.f32 %v5094_v19, %v12234_v30  ;;  %v14455_v55 = vld [vmem:[#allocation73_spill] sm:$0xff] }
 0xb4d   : > { %v4441_v34 = vpop.f32.mrf.mxu1 }
 0xb4e   : > { %7694 = vst [vmem:[%s10018_s5 + $0xa50] sm:$0xff] %v7182_v29 }
 0xb50   : > { %v4770_v21 = vpop.f32.mrf.mxu3 }
 0xb51   : > { %v5423_v22 = vpop.f32.mrf.mxu2 }
 0xb52   : > { %v5424_v10 = vadd.f32 %v5423_v22, %v5095_v2  ;;  %v4442_v2 = vadd.f32 %v4441_v34, %v12232_v35  ;;  %v14456_v34 = vld [vmem:[#allocation74_spill] sm:$0xff] }
 0xb53   : > { %v5097_v42 = vpop.f32.mrf.mxu0 }
 0xb54   : > { %v7186_v45 = vpack.c.bf16 %v5424_v10, %v4766_v5  ;;  %v5098_v27 = vadd.f32 %v5097_v42, %v12234_v30  ;;  %v4771_v10 = vadd.f32 %v4770_v21, %v4442_v2 }
 0xb55   : > { %v4444_v12 = vpop.f32.mrf.mxu1  ;;  %9102 = vmatmul.msk.bf16.gmra.mxu3 %vm1370_vm1, %v14454_v6 }
 0xb56   : > { %5136 = vmatmul.bf16.gmra.mxu0 %v14453_v51  ;;  %7698 = vst [vmem:[%s10018_s5 + $0xa70] sm:$0xff] %v7186_v45  ;;  %9165 = vmatmul.msk.bf16.gmra.mxu2 %vm1370_vm1, %v14452_v15  ;;  %v4445_v15 = vadd.f32 %v4444_v12, %v12232_v35 }
 0xb58   : > { %4483 = vmatmul.bf16.gmra.mxu1 %v14455_v55  ;;  %v4773_v61 = vpop.f32.mrf.mxu3 }
 0xb59   : > { %v5426_v41 = vpop.f32.mrf.mxu2  ;;  %v4774_v21 = vadd.f32 %v4773_v61, %v4445_v15 }
 0xb5a   : > { %v5427_v54 = vadd.f32 %v5426_v41, %v5098_v27 }
 0xb5b   : > { %v5099_v19 = vpop.f32.mrf.mxu0 }
 0xb5c   : > { %v7190_v29 = vpack.c.bf16 %v5427_v54, %v4769_v63  ;;  %v5100_v42 = vadd.f32 %v5099_v19, %v12234_v30  ;;  %v14457_v63 = vld [vmem:[#allocation75_spill] sm:$0xff] }
 0xb5d   : > { %v4446_v36 = vpop.f32.mrf.mxu1 }
 0xb5e   : > { %7702 = vst [vmem:[%s10018_s5 + $0xa90] sm:$0xff] %v7190_v29 }
 0xb60   : > { %v4775_v5 = vpop.f32.mrf.mxu3 }
 0xb61   : > { %v5428_v22 = vpop.f32.mrf.mxu2 }
 0xb62   : > { %v5429_v45 = vadd.f32 %v5428_v22, %v5100_v42  ;;  %v4447_v42 = vadd.f32 %v4446_v36, %v12232_v35  ;;  %v14458_v36 = vld [vmem:[#allocation76_spill] sm:$0xff] }
 0xb63   : > { %v5102_v51 = vpop.f32.mrf.mxu0 }
 0xb64   : > { %v7194_v28 = vpack.c.bf16 %v5429_v45, %v4771_v10  ;;  %v5103_v27 = vadd.f32 %v5102_v51, %v12234_v30  ;;  %v4776_v45 = vadd.f32 %v4775_v5, %v4447_v42 }
 0xb65   : > { %v4449_v11 = vpop.f32.mrf.mxu1  ;;  %9103 = vmatmul.msk.bf16.gmra.mxu3 %vm1370_vm1, %v14456_v34 }
 0xb66   : > { %5141 = vmatmul.bf16.gmra.mxu0 %v14455_v55  ;;  %7706 = vst [vmem:[%s10018_s5 + $0xab0] sm:$0xff] %v7194_v28  ;;  %9166 = vmatmul.msk.bf16.gmra.mxu2 %vm1370_vm1, %v14454_v6  ;;  %v4450_v6 = vadd.f32 %v4449_v11, %v12232_v35 }
 0xb68   : > { %4488 = vmatmul.bf16.gmra.mxu1 %v14457_v63  ;;  %v4778_v54 = vpop.f32.mrf.mxu3 }
 0xb69   : > { %v5431_v41 = vpop.f32.mrf.mxu2  ;;  %v4779_v5 = vadd.f32 %v4778_v54, %v4450_v6 }
 0xb6a   : > { %v5432_v12 = vadd.f32 %v5431_v41, %v5103_v27 }
 0xb6b   : > { %v5104_v19 = vpop.f32.mrf.mxu0 }
 0xb6c   : > { %v7198_v29 = vpack.c.bf16 %v5432_v12, %v4774_v21  ;;  %v5105_v51 = vadd.f32 %v5104_v19, %v12234_v30  ;;  %v14459_v21 = vld [vmem:[#allocation77_spill] sm:$0xff] }
 0xb6d   : > { %v4451_v2 = vpop.f32.mrf.mxu1 }
 0xb6e   : > { %7710 = vst [vmem:[%s10018_s5 + $0xad0] sm:$0xff] %v7198_v29 }
 0xb70   : > { %v4780_v10 = vpop.f32.mrf.mxu3 }
 0xb71   : > { %v5433_v22 = vpop.f32.mrf.mxu2 }
 0xb72   : > { %v5434_v28 = vadd.f32 %v5433_v22, %v5105_v51  ;;  %v4452_v51 = vadd.f32 %v4451_v2, %v12232_v35  ;;  %v14460_v2 = vld [vmem:[#allocation78_spill] sm:$0xff] }
 0xb73   : > { %v5107_v55 = vpop.f32.mrf.mxu0 }
 0xb74   : > { %v7202_v15 = vpack.c.bf16 %v5434_v28, %v4776_v45  ;;  %v5108_v27 = vadd.f32 %v5107_v55, %v12234_v30  ;;  %v4781_v28 = vadd.f32 %v4780_v10, %v4452_v51 }
 0xb75   : > { %v4454_v61 = vpop.f32.mrf.mxu1  ;;  %9104 = vmatmul.msk.bf16.gmra.mxu3 %vm1370_vm1, %v14458_v36 }
 0xb76   : > { %5146 = vmatmul.bf16.gmra.mxu0 %v14457_v63  ;;  %7714 = vst [vmem:[%s10018_s5 + $0xaf0] sm:$0xff] %v7202_v15  ;;  %9167 = vmatmul.msk.bf16.gmra.mxu2 %vm1370_vm1, %v14456_v34  ;;  %v4455_v34 = vadd.f32 %v4454_v61, %v12232_v35 }
 0xb78   : > { %4493 = vmatmul.bf16.gmra.mxu1 %v14459_v21  ;;  %v4783_v12 = vpop.f32.mrf.mxu3 }
 0xb79   : > { %v5436_v41 = vpop.f32.mrf.mxu2  ;;  %v4784_v10 = vadd.f32 %v4783_v12, %v4455_v34 }
 0xb7a   : > { %v5437_v11 = vadd.f32 %v5436_v41, %v5108_v27 }
 0xb7b   : > { %v5109_v19 = vpop.f32.mrf.mxu0 }
 0xb7c   : > { %v7206_v29 = vpack.c.bf16 %v5437_v11, %v4779_v5  ;;  %v5110_v55 = vadd.f32 %v5109_v19, %v12234_v30  ;;  %v14461_v5 = vld [vmem:[#allocation79_spill] sm:$0xff] }
 0xb7d   : > { %v4456_v42 = vpop.f32.mrf.mxu1 }
 0xb7e   : > { %7718 = vst [vmem:[%s10018_s5 + $0xb10] sm:$0xff] %v7206_v29 }
 0xb80   : > { %v4785_v45 = vpop.f32.mrf.mxu3 }
 0xb81   : > { %v5438_v22 = vpop.f32.mrf.mxu2 }
 0xb82   : > { %v5439_v15 = vadd.f32 %v5438_v22, %v5110_v55  ;;  %v4457_v55 = vadd.f32 %v4456_v42, %v12232_v35  ;;  %v14462_v42 = vld [vmem:[#allocation80_spill] sm:$0xff] }
 0xb83   : > { %v5112_v63 = vpop.f32.mrf.mxu0 }
 0xb84   : > { %v7210_v6 = vpack.c.bf16 %v5439_v15, %v4781_v28  ;;  %v5113_v27 = vadd.f32 %v5112_v63, %v12234_v30  ;;  %v4786_v15 = vadd.f32 %v4785_v45, %v4457_v55 }
 0xb85   : > { %v4459_v54 = vpop.f32.mrf.mxu1  ;;  %9105 = vmatmul.msk.bf16.gmra.mxu3 %vm1370_vm1, %v14460_v2 }
 0xb86   : > { %5151 = vmatmul.bf16.gmra.mxu0 %v14459_v21  ;;  %7722 = vst [vmem:[%s10018_s5 + $0xb30] sm:$0xff] %v7210_v6  ;;  %9168 = vmatmul.msk.bf16.gmra.mxu2 %vm1370_vm1, %v14458_v36  ;;  %v4460_v36 = vadd.f32 %v4459_v54, %v12232_v35 }
 0xb88   : > { %4498 = vmatmul.bf16.gmra.mxu1 %v14461_v5  ;;  %v4788_v11 = vpop.f32.mrf.mxu3 }
 0xb89   : > { %v5441_v41 = vpop.f32.mrf.mxu2  ;;  %v4789_v45 = vadd.f32 %v4788_v11, %v4460_v36  ;;  %v9445_v36 = vld [vmem:[%s13848_s1 + $0x1c] sm:$0xf] }
 0xb8a   : > { %v5442_v61 = vadd.f32 %v5441_v41, %v5113_v27  ;;  %v8503_v11 = vld [vmem:[%s13848_s1 + $0x38] sm:$0xf0] }
 0xb8b   : > { %v5114_v19 = vpop.f32.mrf.mxu0 }
 0xb8c   : > { %v7214_v29 = vpack.c.bf16 %v5442_v61, %v4784_v10  ;;  %v5115_v63 = vadd.f32 %v5114_v19, %v12234_v30  ;;  %v14463_v10 = vld [vmem:[#allocation81_spill] sm:$0xff] }
 0xb8d   : > { %v4461_v51 = vpop.f32.mrf.mxu1 }
 0xb8e   : > { %7726 = vst [vmem:[%s10018_s5 + $0xb50] sm:$0xff] %v7214_v29 }
 0xb90   : > { %v4790_v28 = vpop.f32.mrf.mxu3 }
 0xb91   : > { %v5443_v22 = vpop.f32.mrf.mxu2 }
 0xb92   : > { %v5444_v6 = vadd.f32 %v5443_v22, %v5115_v63  ;;  %v4462_v63 = vadd.f32 %v4461_v51, %v12232_v35  ;;  %v9449_v22 = vld [vmem:[%s13848_s1 + $0x34] sm:$0xf0] }
 0xb93   : > { %v5117_v21 = vpop.f32.mrf.mxu0 }
 0xb94   : > { %v7218_v34 = vpack.c.bf16 %v5444_v6, %v4786_v15  ;;  %v5118_v27 = vadd.f32 %v5117_v21, %v12234_v30  ;;  %v8501_v21 = vld [vmem:[%s13848_s1 + $0x18] sm:$0xf]  ;;  %v8506_v6 = vor.u32 %v9445_v36, %v8503_v11 }
 0xb95   : > { %v4464_v12 = vpop.f32.mrf.mxu1  ;;  %9106 = vmatmul.msk.bf16.gmra.mxu3 %vm1370_vm1, %v14462_v42  ;;  %v8502_v15 = vor.u32 %v9449_v22, %v8501_v21 }
 0xb96   : > { %5156 = vmatmul.bf16.gmra.mxu0 %v14461_v5  ;;  %7730 = vst [vmem:[%s10018_s5 + $0xb70] sm:$0xff] %v7218_v34  ;;  %9169 = vmatmul.msk.bf16.gmra.mxu2 %vm1370_vm1, %v14460_v2 }
 0xb97   : > { %5543 = vmatpush.bf16.msrb.mxu1 %v8502_v15  ;;  %6201 = vmatpush.bf16.msrb.mxu0 %v8506_v6 }
 0xb98   : > { %4503 = vmatmul.bf16.gmra.mxu1 %v14463_v10  ;;  %v4793_v61 = vpop.f32.mrf.mxu3 }
 0xb99   : > { %v5446_v41 = vpop.f32.mrf.mxu2 }
 0xb9a   : > { %v5447_v54 = vadd.f32 %v5446_v41, %v5118_v27 }
 0xb9b   : > { %v5119_v19 = vpop.f32.mrf.mxu0 }
 0xb9c   : > { %v7222_v29 = vpack.c.bf16 %v5447_v54, %v4789_v45  ;;  %v5120_v51 = vadd.f32 %v5119_v19, %v12234_v30  ;;  %v4791_v45 = vadd.f32 %v4790_v28, %v4462_v63  ;;  %v14464_v19 = vld [vmem:[#allocation82_spill] sm:$0xff]  ;;  %v14465_v28 = vld [vmem:[#allocation83_spill] sm:$0xff] }
 0xb9d   : > { %v4466_v55 = vpop.f32.mrf.mxu1 }
 0xb9e   : > { %7734 = vst [vmem:[%s10018_s5 + $0xb90] sm:$0xff] %v7222_v29  ;;  %v4465_v29 = vadd.f32 %v4464_v12, %v12232_v35 }
 0xba0   : > { %v4795_v27 = vpop.f32.mrf.mxu3  ;;  %v4794_v63 = vadd.f32 %v4793_v61, %v4465_v29 }
 0xba1   : > { %v5448_v34 = vpop.f32.mrf.mxu2 }
 0xba2   : > { %v5449_v41 = vadd.f32 %v5448_v34, %v5120_v51  ;;  %v4467_v34 = vadd.f32 %v4466_v55, %v12232_v35  ;;  %v14466_v55 = vld [vmem:[#allocation84_spill] sm:$0xff] }
 0xba3   : > { %v5122_v54 = vpop.f32.mrf.mxu0 }
 0xba4   : > { %v7226_v21 = vpack.c.bf16 %v5449_v41, %v4791_v45  ;;  %v5123_v5 = vadd.f32 %v5122_v54, %v12234_v30 }
 0xba5   : > { %v4469_v22 = vpop.f32.mrf.mxu1  ;;  %9107 = vmatmul.msk.bf16.gmra.mxu3 %vm1370_vm1, %v14464_v19 }
 0xba6   : > { %5161 = vmatmul.bf16.gmra.mxu0 %v14463_v10  ;;  %7738 = vst [vmem:[%s10018_s5 + $0xbb0] sm:$0xff] %v7226_v21  ;;  %9170 = vmatmul.msk.bf16.gmra.mxu2 %vm1370_vm1, %v14462_v42  ;;  %v4796_v21 = vadd.f32 %v4795_v27, %v4467_v34  ;;  %v4470_v2 = vadd.f32 %v4469_v22, %v12232_v35 }
 0xba8   : > { %4508 = vmatmul.bf16.gmra.mxu1 %v14465_v28  ;;  %v4798_v36 = vpop.f32.mrf.mxu3 }
 0xba9   : > { %v5451_v15 = vpop.f32.mrf.mxu2  ;;  %v4799_v27 = vadd.f32 %v4798_v36, %v4470_v2 }
 0xbaa   : > { %v5452_v12 = vadd.f32 %v5451_v15, %v5123_v5 }
 0xbab   : > { %v5124_v11 = vpop.f32.mrf.mxu0 }
 0xbac   : > { %v7230_v51 = vpack.c.bf16 %v5452_v12, %v4794_v63  ;;  %v5125_v45 = vadd.f32 %v5124_v11, %v12234_v30  ;;  %v14467_v63 = vld [vmem:[#allocation85_spill] sm:$0xff] }
 0xbad   : > { %v4471_v6 = vpop.f32.mrf.mxu1 }
 0xbae   : > { %7742 = vst [vmem:[%s10018_s5 + $0xbd0] sm:$0xff] %v7230_v51  ;;  %v4472_v34 = vadd.f32 %v4471_v6, %v12232_v35  ;;  %v14468_v6 = vld [vmem:[#allocation86_spill] sm:$0xff] }
 0xbb0   : > { %v4800_v54 = vpop.f32.mrf.mxu3 }
 0xbb1   : > { %v5453_v41 = vpop.f32.mrf.mxu2 }
 0xbb2   : > { %v5454_v10 = vadd.f32 %v5453_v41, %v5125_v45 }
 0xbb3   : > { %v5127_v42 = vpop.f32.mrf.mxu0 }
 0xbb4   : > { %v7234_v61 = vpack.c.bf16 %v5454_v10, %v4796_v21  ;;  %v5128_v5 = vadd.f32 %v5127_v42, %v12234_v30  ;;  %v4801_v21 = vadd.f32 %v4800_v54, %v4472_v34 }
 0xbb5   : > { %v4474_v29 = vpop.f32.mrf.mxu1  ;;  %9108 = vmatmul.msk.bf16.gmra.mxu3 %vm1370_vm1, %v14466_v55 }
 0xbb6   : > { %5166 = vmatmul.bf16.gmra.mxu0 %v14465_v28  ;;  %7746 = vst [vmem:[%s10018_s5 + $0xbf0] sm:$0xff] %v7234_v61  ;;  %9171 = vmatmul.msk.bf16.gmra.mxu2 %vm1370_vm1, %v14464_v19  ;;  %v4475_v19 = vadd.f32 %v4474_v29, %v12232_v35 }
 0xbb8   : > { %4513 = vmatmul.bf16.gmra.mxu1 %v14467_v63  ;;  %v4803_v12 = vpop.f32.mrf.mxu3 }
 0xbb9   : > { %v5456_v15 = vpop.f32.mrf.mxu2  ;;  %v4804_v54 = vadd.f32 %v4803_v12, %v4475_v19 }
 0xbba   : > { %v5457_v22 = vadd.f32 %v5456_v15, %v5128_v5 }
 0xbbb   : > { %v5129_v10 = vpop.f32.mrf.mxu0 }
 0xbbc   : > { %v7238_v11 = vpack.c.bf16 %v5457_v22, %v4799_v27  ;;  %v5130_v42 = vadd.f32 %v5129_v10, %v12234_v30  ;;  %v14469_v27 = vld [vmem:[#allocation87_spill] sm:$0xff] }
 0xbbd   : > { %v4476_v51 = vpop.f32.mrf.mxu1 }
 0xbbe   : > { %7750 = vst [vmem:[%s10018_s5 + $0xc10] sm:$0xff] %v7238_v11 }
 0xbc0   : > { %v4805_v41 = vpop.f32.mrf.mxu3 }
 0xbc1   : > { %v5458_v45 = vpop.f32.mrf.mxu2 }
 0xbc2   : > { %v5459_v61 = vadd.f32 %v5458_v45, %v5130_v42  ;;  %v4477_v42 = vadd.f32 %v4476_v51, %v12232_v35  ;;  %v14470_v51 = vld [vmem:[#allocation88_spill] sm:$0xff] }
 0xbc3   : > { %v5132_v28 = vpop.f32.mrf.mxu0 }
 0xbc4   : > { %v7242_v2 = vpack.c.bf16 %v5459_v61, %v4801_v21  ;;  %v5133_v5 = vadd.f32 %v5132_v28, %v12234_v30  ;;  %v4806_v61 = vadd.f32 %v4805_v41, %v4477_v42 }
 0xbc5   : > { %v4479_v36 = vpop.f32.mrf.mxu1  ;;  %9109 = vmatmul.msk.bf16.gmra.mxu3 %vm1370_vm1, %v14468_v6 }
 0xbc6   : > { %5171 = vmatmul.bf16.gmra.mxu0 %v14467_v63  ;;  %7754 = vst [vmem:[%s10018_s5 + $0xc30] sm:$0xff] %v7242_v2  ;;  %9172 = vmatmul.msk.bf16.gmra.mxu2 %vm1370_vm1, %v14466_v55  ;;  %v4480_v55 = vadd.f32 %v4479_v36, %v12232_v35 }
 0xbc8   : > { %4518 = vmatmul.bf16.gmra.mxu1 %v14469_v27  ;;  %v4808_v22 = vpop.f32.mrf.mxu3 }
 0xbc9   : > { %v5461_v15 = vpop.f32.mrf.mxu2  ;;  %v4809_v41 = vadd.f32 %v4808_v22, %v4480_v55 }
 0xbca   : > { %v5462_v29 = vadd.f32 %v5461_v15, %v5133_v5 }
 0xbcb   : > { %v5134_v10 = vpop.f32.mrf.mxu0 }
 0xbcc   : > { %v7246_v11 = vpack.c.bf16 %v5462_v29, %v4804_v54  ;;  %v5135_v28 = vadd.f32 %v5134_v10, %v12234_v30  ;;  %v14471_v54 = vld [vmem:[#allocation89_spill] sm:$0xff] }
 0xbcd   : > { %v4481_v34 = vpop.f32.mrf.mxu1 }
 0xbce   : > { %7758 = vst [vmem:[%s10018_s5 + $0xc50] sm:$0xff] %v7246_v11 }
 0xbd0   : > { %v4810_v21 = vpop.f32.mrf.mxu3 }
 0xbd1   : > { %v5463_v45 = vpop.f32.mrf.mxu2 }
 0xbd2   : > { %v5464_v2 = vadd.f32 %v5463_v45, %v5135_v28  ;;  %v4482_v28 = vadd.f32 %v4481_v34, %v12232_v35  ;;  %v14472_v34 = vld [vmem:[#allocation90_spill] sm:$0xff] }
 0xbd3   : > { %v5137_v63 = vpop.f32.mrf.mxu0 }
 0xbd4   : > { %v7250_v19 = vpack.c.bf16 %v5464_v2, %v4806_v61  ;;  %v5138_v5 = vadd.f32 %v5137_v63, %v12234_v30  ;;  %v4811_v2 = vadd.f32 %v4810_v21, %v4482_v28 }
 0xbd5   : > { %v4484_v12 = vpop.f32.mrf.mxu1  ;;  %9110 = vmatmul.msk.bf16.gmra.mxu3 %vm1370_vm1, %v14470_v51 }
 0xbd6   : > { %5176 = vmatmul.bf16.gmra.mxu0 %v14469_v27  ;;  %7762 = vst [vmem:[%s10018_s5 + $0xc70] sm:$0xff] %v7250_v19  ;;  %9173 = vmatmul.msk.bf16.gmra.mxu2 %vm1370_vm1, %v14468_v6  ;;  %v4485_v6 = vadd.f32 %v4484_v12, %v12232_v35 }
 0xbd8   : > { %4523 = vmatmul.bf16.gmra.mxu1 %v14471_v54  ;;  %v4813_v29 = vpop.f32.mrf.mxu3 }
 0xbd9   : > { %v5466_v15 = vpop.f32.mrf.mxu2  ;;  %v4814_v21 = vadd.f32 %v4813_v29, %v4485_v6 }
 0xbda   : > { %v5467_v36 = vadd.f32 %v5466_v15, %v5138_v5 }
 0xbdb   : > { %v5139_v10 = vpop.f32.mrf.mxu0 }
 0xbdc   : > { %v7254_v11 = vpack.c.bf16 %v5467_v36, %v4809_v41  ;;  %v5140_v63 = vadd.f32 %v5139_v10, %v12234_v30  ;;  %v14473_v41 = vld [vmem:[#allocation91_spill] sm:$0xff] }
 0xbdd   : > { %v4486_v42 = vpop.f32.mrf.mxu1 }
 0xbde   : > { %7766 = vst [vmem:[%s10018_s5 + $0xc90] sm:$0xff] %v7254_v11 }
 0xbe0   : > { %v4815_v61 = vpop.f32.mrf.mxu3 }
 0xbe1   : > { %v5468_v45 = vpop.f32.mrf.mxu2 }
 0xbe2   : > { %v5469_v19 = vadd.f32 %v5468_v45, %v5140_v63  ;;  %v4487_v63 = vadd.f32 %v4486_v42, %v12232_v35  ;;  %v14474_v42 = vld [vmem:[#allocation93_spill] sm:$0xff] }
 0xbe3   : > { %v5142_v27 = vpop.f32.mrf.mxu0 }
 0xbe4   : > { %v7258_v55 = vpack.c.bf16 %v5469_v19, %v4811_v2  ;;  %v5143_v5 = vadd.f32 %v5142_v27, %v12234_v30  ;;  %v4816_v19 = vadd.f32 %v4815_v61, %v4487_v63 }
 0xbe5   : > { %v4489_v22 = vpop.f32.mrf.mxu1  ;;  %9111 = vmatmul.msk.bf16.gmra.mxu3 %vm1370_vm1, %v14472_v34 }
 0xbe6   : > { %5181 = vmatmul.bf16.gmra.mxu0 %v14471_v54  ;;  %7770 = vst [vmem:[%s10018_s5 + $0xcb0] sm:$0xff] %v7258_v55  ;;  %9174 = vmatmul.msk.bf16.gmra.mxu2 %vm1370_vm1, %v14470_v51  ;;  %v4490_v51 = vadd.f32 %v4489_v22, %v12232_v35 }
 0xbe8   : > { %4528 = vmatmul.bf16.gmra.mxu1 %v14473_v41  ;;  %v4818_v36 = vpop.f32.mrf.mxu3 }
 0xbe9   : > { %v5471_v15 = vpop.f32.mrf.mxu2  ;;  %v4819_v61 = vadd.f32 %v4818_v36, %v4490_v51 }
 0xbea   : > { %v5472_v12 = vadd.f32 %v5471_v15, %v5143_v5 }
 0xbeb   : > { %v5144_v10 = vpop.f32.mrf.mxu0 }
 0xbec   : > { %v7262_v11 = vpack.c.bf16 %v5472_v12, %v4814_v21  ;;  %v5145_v27 = vadd.f32 %v5144_v10, %v12234_v30 }
 0xbed   : > { %v4491_v28 = vpop.f32.mrf.mxu1 }
 0xbee   : > { %7774 = vst [vmem:[%s10018_s5 + $0xcd0] sm:$0xff] %v7262_v11  ;;  %v4492_v63 = vadd.f32 %v4491_v28, %v12232_v35 }
 0xbf0   : > { %v4820_v2 = vpop.f32.mrf.mxu3 }
 0xbf1   : > { %v5473_v45 = vpop.f32.mrf.mxu2 }
 0xbf2   : > { %v5474_v55 = vadd.f32 %v5473_v45, %v5145_v27 }
 0xbf3   : > { %v5147_v54 = vpop.f32.mrf.mxu0 }
 0xbf4   : > { %v7266_v6 = vpack.c.bf16 %v5474_v55, %v4816_v19  ;;  %v5148_v5 = vadd.f32 %v5147_v54, %v12234_v30  ;;  %v4821_v19 = vadd.f32 %v4820_v2, %v4492_v63 }
 0xbf5   : > { %v4494_v29 = vpop.f32.mrf.mxu1  ;;  %9112 = vmatmul.msk.bf16.gmra.mxu3 %vm1370_vm1, %v14385_v39 }
 0xbf6   : > { %5186 = vmatmul.bf16.gmra.mxu0 %v14473_v41  ;;  %7778 = vst [vmem:[%s10018_s5 + $0xcf0] sm:$0xff] %v7266_v6  ;;  %9175 = vmatmul.msk.bf16.gmra.mxu2 %vm1370_vm1, %v14472_v34  ;;  %v4495_v41 = vadd.f32 %v4494_v29, %v12232_v35 }
 0xbf8   : > { %4533 = vmatmul.bf16.gmra.mxu1 %v14474_v42  ;;  %v4823_v15 = vpop.f32.mrf.mxu3 }
 0xbf9   : > { %v5476_v21 = vpop.f32.mrf.mxu2  ;;  %v4824_v28 = vadd.f32 %v4823_v15, %v4495_v41 }
 0xbfa   : > { %v5477_v22 = vadd.f32 %v5476_v21, %v5148_v5 }
 0xbfb   : > { %v5149_v12 = vpop.f32.mrf.mxu0 }
 0xbfc   : > { %v7270_v10 = vpack.c.bf16 %v5477_v22, %v4819_v61  ;;  %v5150_v54 = vadd.f32 %v5149_v12, %v12234_v30 }
 0xbfd   : > { %v4496_v11 = vpop.f32.mrf.mxu1 }
 0xbfe   : > { %7782 = vst [vmem:[%s10018_s5 + $0xd10] sm:$0xff] %v7270_v10  ;;  %v4497_v10 = vadd.f32 %v4496_v11, %v12232_v35  ;;  %v14475_v11 = vld [vmem:[#allocation97_spill] sm:$0xff] }
 0xc00   : > { %v4825_v45 = vpop.f32.mrf.mxu3 }
 0xc01   : > { %v5478_v27 = vpop.f32.mrf.mxu2 }
 0xc02   : > { %v5479_v55 = vadd.f32 %v5478_v27, %v5150_v54 }
 0xc03   : > { %v5152_v6 = vpop.f32.mrf.mxu0 }
 0xc04   : > { %v7274_v51 = vpack.c.bf16 %v5479_v55, %v4821_v19  ;;  %v5153_v5 = vadd.f32 %v5152_v6, %v12234_v30  ;;  %v4826_v19 = vadd.f32 %v4825_v45, %v4497_v10 }
 0xc05   : > { %v4499_v36 = vpop.f32.mrf.mxu1  ;;  %9113 = vmatmul.msk.bf16.gmra.mxu3 %vm1370_vm1, %v14387_v8 }
 0xc06   : > { %5191 = vmatmul.bf16.gmra.mxu0 %v14474_v42  ;;  %7786 = vst [vmem:[%s10018_s5 + $0xd30] sm:$0xff] %v7274_v51  ;;  %9176 = vmatmul.msk.bf16.gmra.mxu2 %vm1370_vm1, %v14385_v39  ;;  %v4500_v51 = vadd.f32 %v4499_v36, %v12232_v35 }
 0xc08   : > { %4538 = vmatmul.bf16.gmra.mxu1 %v11166_v7  ;;  %v4828_v61 = vpop.f32.mrf.mxu3 }
 0xc09   : > { %v5481_v2 = vpop.f32.mrf.mxu2  ;;  %v4829_v45 = vadd.f32 %v4828_v61, %v4500_v51 }
 0xc0a   : > { %v5482_v29 = vadd.f32 %v5481_v2, %v5153_v5 }
 0xc0b   : > { %v5154_v21 = vpop.f32.mrf.mxu0 }
 0xc0c   : > { %v7278_v22 = vpack.c.bf16 %v5482_v29, %v4824_v28  ;;  %v5155_v63 = vadd.f32 %v5154_v21, %v12234_v30 }
 0xc0d   : > { %v4501_v12 = vpop.f32.mrf.mxu1 }
 0xc0e   : > { %7790 = vst [vmem:[%s10018_s5 + $0xd50] sm:$0xff] %v7278_v22  ;;  %v4502_v10 = vadd.f32 %v4501_v12, %v12232_v35 }
 0xc10   : > { %v4830_v27 = vpop.f32.mrf.mxu3 }
 0xc11   : > { %v5483_v54 = vpop.f32.mrf.mxu2 }
 0xc12   : > { %v5484_v55 = vadd.f32 %v5483_v54, %v5155_v63 }
 0xc13   : > { %v5157_v6 = vpop.f32.mrf.mxu0 }
 0xc14   : > { %v7282_v41 = vpack.c.bf16 %v5484_v55, %v4826_v19  ;;  %v5158_v5 = vadd.f32 %v5157_v6, %v12234_v30  ;;  %v4831_v55 = vadd.f32 %v4830_v27, %v4502_v10 }
 0xc15   : > { %v4504_v15 = vpop.f32.mrf.mxu1  ;;  %9114 = vmatmul.msk.bf16.gmra.mxu3 %vm1370_vm1, %v14388_v48 }
 0xc16   : > { %5196 = vmatmul.bf16.gmra.mxu0 %v11166_v7  ;;  %7794 = vst [vmem:[%s10018_s5 + $0xd70] sm:$0xff] %v7282_v41  ;;  %9177 = vmatmul.msk.bf16.gmra.mxu2 %vm1370_vm1, %v14387_v8  ;;  %v4505_v7 = vadd.f32 %v4504_v15, %v12232_v35 }
 0xc18   : > { %4543 = vmatmul.bf16.gmra.mxu1 %v14475_v11  ;;  %v4833_v2 = vpop.f32.mrf.mxu3 }
 0xc19   : > { %v5486_v28 = vpop.f32.mrf.mxu2  ;;  %v4834_v12 = vadd.f32 %v4833_v2, %v4505_v7 }
 0xc1a   : > { %v5487_v36 = vadd.f32 %v5486_v28, %v5158_v5 }
 0xc1b   : > { %v5159_v29 = vpop.f32.mrf.mxu0 }
 0xc1c   : > { %v7286_v21 = vpack.c.bf16 %v5487_v36, %v4829_v45  ;;  %v5160_v63 = vadd.f32 %v5159_v29, %v12234_v30 }
 0xc1d   : > { %v4506_v22 = vpop.f32.mrf.mxu1 }
 0xc1e   : > { %7798 = vst [vmem:[%s10018_s5 + $0xd90] sm:$0xff] %v7286_v21  ;;  %v4507_v21 = vadd.f32 %v4506_v22, %v12232_v35 }
 0xc20   : > { %v4835_v19 = vpop.f32.mrf.mxu3 }
 0xc21   : > { %v5488_v54 = vpop.f32.mrf.mxu2 }
 0xc22   : > { %v5489_v6 = vadd.f32 %v5488_v54, %v5160_v63 }
 0xc23   : > { %v5162_v41 = vpop.f32.mrf.mxu0 }
 0xc24   : > { %v7290_v61 = vpack.c.bf16 %v5489_v6, %v4831_v55  ;;  %v5163_v5 = vadd.f32 %v5162_v41, %v12234_v30  ;;  %v4836_v55 = vadd.f32 %v4835_v19, %v4507_v21 }
 0xc25   : > { %v4509_v51 = vpop.f32.mrf.mxu1  ;;  %9179 = vmatmul.msk.bf16.vlgmr.msrb.gmra.mxu3 %vm1370_vm1, %v9814_v53 }
 0xc26   : > { %5201 = vmatmul.bf16.gmra.mxu0 %v14475_v11  ;;  %7802 = vst [vmem:[%s10018_s5 + $0xdb0] sm:$0xff] %v7290_v61  ;;  %9178 = vmatmul.msk.bf16.gmra.mxu2 %vm1370_vm1, %v14388_v48  ;;  %v4510_v61 = vadd.f32 %v4509_v51, %v12232_v35 }
 0xc28   : > { %5544 = vmatmul.bf16.vlgmr.msrb.gmra.mxu1 %v9867_v18  ;;  %v4838_v45 = vpop.f32.mrf.mxu3 }
 0xc29   : > { %v5491_v27 = vpop.f32.mrf.mxu2  ;;  %v4839_v22 = vadd.f32 %v4838_v45, %v4510_v61 }
 0xc2a   : > { %v5492_v15 = vadd.f32 %v5491_v27, %v5163_v5 }
 0xc2b   : > { %v5164_v28 = vpop.f32.mrf.mxu0 }
 0xc2c   : > { %v7294_v36 = vpack.c.bf16 %v5492_v15, %v4834_v12  ;;  %v5165_v10 = vadd.f32 %v5164_v28, %v12234_v30 }
 0xc2d   : > { %v4511_v29 = vpop.f32.mrf.mxu1 }
 0xc2e   : > { %7806 = vst [vmem:[%s10018_s5 + $0xdd0] sm:$0xff] %v7294_v36 }
 0xc30   : > { %v4840_v54 = vpop.f32.mrf.mxu3 }
 0xc31   : > { %v5493_v63 = vpop.f32.mrf.mxu2 }
 0xc32   : > { %v5494_v6 = vadd.f32 %v5493_v63, %v5165_v10 }
 0xc33   : > { %v5167_v41 = vpop.f32.mrf.mxu0 }
 0xc34   : > { %v7298_v7 = vpack.c.bf16 %v5494_v6, %v4836_v55  ;;  %v5168_v5 = vadd.f32 %v5167_v41, %v12234_v30 }
 0xc35   : > { %v4514_v2 = vpop.f32.mrf.mxu1  ;;  %9180 = vmatmul.msk.bf16.gmra.mxu3 %vm1370_vm1, %v9870_v20 }
 0xc36   : > { %6202 = vmatmul.bf16.vlgmr.msrb.gmra.mxu0 %v9867_v18  ;;  %7810 = vst [vmem:[%s10018_s5 + $0xdf0] sm:$0xff] %v7298_v7  ;;  %9243 = vmatmul.msk.bf16.vlgmr.msrb.gmra.mxu2 %vm1370_vm1, %v9814_v53  ;;  %v4512_v18 = vadd.f32 %v4511_v29, %v12232_v35  ;;  %v4515_v6 = vadd.f32 %v4514_v2, %v12232_v35 }
 0xc38   : > { %5549 = vmatmul.bf16.gmra.mxu1 %v9882_v25  ;;  %v4843_v12 = vpop.f32.mrf.mxu3  ;;  %v4841_v10 = vadd.f32 %v4840_v54, %v4512_v18 }
 0xc39   : > { %v5496_v19 = vpop.f32.mrf.mxu2  ;;  %v4844_v29 = vadd.f32 %v4843_v12, %v4515_v6 }
 0xc3a   : > { %v5497_v51 = vadd.f32 %v5496_v19, %v5168_v5 }
 0xc3b   : > { %v5169_v27 = vpop.f32.mrf.mxu0 }
 0xc3c   : > { %v7302_v15 = vpack.c.bf16 %v5497_v51, %v4839_v22  ;;  %v5170_v36 = vadd.f32 %v5169_v27, %v12234_v30 }
 0xc3d   : > { %v4516_v28 = vpop.f32.mrf.mxu1 }
 0xc3e   : > { %7814 = vst [vmem:[%s10018_s5 + $0xe10] sm:$0xff] %v7302_v15 }
 0xc40   : > { %v4845_v53 = vpop.f32.mrf.mxu3 }
 0xc41   : > { %v5498_v21 = vpop.f32.mrf.mxu2 }
 0xc42   : > { %v5499_v63 = vadd.f32 %v5498_v21, %v5170_v36 }
 0xc43   : > { %v5172_v55 = vpop.f32.mrf.mxu0 }
 0xc44   : > { %v7306_v45 = vpack.c.bf16 %v5499_v63, %v4841_v10  ;;  %v5173_v61 = vadd.f32 %v5172_v55, %v12234_v30 }
 0xc45   : > { %v4519_v41 = vpop.f32.mrf.mxu1  ;;  %9181 = vmatmul.msk.bf16.gmra.mxu3 %vm1370_vm1, %v9884_v26 }
 0xc46   : > { %6207 = vmatmul.bf16.gmra.mxu0 %v9882_v25  ;;  %7818 = vst [vmem:[%s10018_s5 + $0xe30] sm:$0xff] %v7306_v45  ;;  %9244 = vmatmul.msk.bf16.gmra.mxu2 %vm1370_vm1, %v9870_v20  ;;  %v4517_v25 = vadd.f32 %v4516_v28, %v12232_v35  ;;  %v4520_v21 = vadd.f32 %v4519_v41, %v12232_v35 }
 0xc48   : > { %5554 = vmatmul.bf16.gmra.mxu1 %v9896_v31  ;;  %v4848_v7 = vpop.f32.mrf.mxu3  ;;  %v4846_v15 = vadd.f32 %v4845_v53, %v4517_v25 }
 0xc49   : > { %v5501_v54 = vpop.f32.mrf.mxu2  ;;  %v4849_v28 = vadd.f32 %v4848_v7, %v4520_v21 }
 0xc4a   : > { %v5502_v2 = vadd.f32 %v5501_v54, %v5173_v61 }
 0xc4b   : > { %v5174_v5 = vpop.f32.mrf.mxu0 }
 0xc4c   : > { %v7310_v22 = vpack.c.bf16 %v5502_v2, %v4844_v29  ;;  %v5175_v51 = vadd.f32 %v5174_v5, %v12234_v30 }
 0xc4d   : > { %v4521_v19 = vpop.f32.mrf.mxu1 }
 0xc4e   : > { %7822 = vst [vmem:[%s10018_s5 + $0xe50] sm:$0xff] %v7310_v22 }
 0xc50   : > { %v4850_v20 = vpop.f32.mrf.mxu3 }
 0xc51   : > { %v5503_v27 = vpop.f32.mrf.mxu2 }
 0xc52   : > { %v5504_v18 = vadd.f32 %v5503_v27, %v5175_v51 }
 0xc53   : > { %v5177_v36 = vpop.f32.mrf.mxu0 }
 0xc54   : > { %v7314_v12 = vpack.c.bf16 %v5504_v18, %v4846_v15  ;;  %v5178_v63 = vadd.f32 %v5177_v36, %v12234_v30 }
 0xc55   : > { %v4524_v10 = vpop.f32.mrf.mxu1  ;;  %9182 = vmatmul.msk.bf16.gmra.mxu3 %vm1370_vm1, %v9898_v32 }
 0xc56   : > { %6212 = vmatmul.bf16.gmra.mxu0 %v9896_v31  ;;  %7826 = vst [vmem:[%s10018_s5 + $0xe70] sm:$0xff] %v7314_v12  ;;  %9245 = vmatmul.msk.bf16.gmra.mxu2 %vm1370_vm1, %v9884_v26  ;;  %v4522_v31 = vadd.f32 %v4521_v19, %v12232_v35  ;;  %v4525_v25 = vadd.f32 %v4524_v10, %v12232_v35 }
 0xc58   : > { %5559 = vmatmul.bf16.gmra.mxu1 %v9910_v37  ;;  %v4853_v55 = vpop.f32.mrf.mxu3  ;;  %v4851_v2 = vadd.f32 %v4850_v20, %v4522_v31 }
 0xc59   : > { %v5506_v53 = vpop.f32.mrf.mxu2  ;;  %v4854_v19 = vadd.f32 %v4853_v55, %v4525_v25 }
 0xc5a   : > { %v5507_v6 = vadd.f32 %v5506_v53, %v5178_v63 }
 0xc5b   : > { %v5179_v45 = vpop.f32.mrf.mxu0 }
 0xc5c   : > { %v7318_v41 = vpack.c.bf16 %v5507_v6, %v4849_v28  ;;  %v5180_v29 = vadd.f32 %v5179_v45, %v12234_v30 }
 0xc5d   : > { %v4526_v61 = vpop.f32.mrf.mxu1 }
 0xc5e   : > { %7830 = vst [vmem:[%s10018_s5 + $0xe90] sm:$0xff] %v7318_v41 }
 0xc60   : > { %v4855_v26 = vpop.f32.mrf.mxu3 }
 0xc61   : > { %v5508_v54 = vpop.f32.mrf.mxu2 }
 0xc62   : > { %v5509_v5 = vadd.f32 %v5508_v54, %v5180_v29 }
 0xc63   : > { %v5182_v22 = vpop.f32.mrf.mxu0 }
 0xc64   : > { %v7322_v7 = vpack.c.bf16 %v5509_v5, %v4851_v2  ;;  %v5183_v27 = vadd.f32 %v5182_v22, %v12234_v30 }
 0xc65   : > { %v4529_v51 = vpop.f32.mrf.mxu1  ;;  %9183 = vmatmul.msk.bf16.gmra.mxu3 %vm1370_vm1, %v9912_v38 }
 0xc66   : > { %6217 = vmatmul.bf16.gmra.mxu0 %v9910_v37  ;;  %7834 = vst [vmem:[%s10018_s5 + $0xeb0] sm:$0xff] %v7322_v7  ;;  %9246 = vmatmul.msk.bf16.gmra.mxu2 %vm1370_vm1, %v9898_v32  ;;  %v4527_v37 = vadd.f32 %v4526_v61, %v12232_v35  ;;  %v4530_v45 = vadd.f32 %v4529_v51, %v12232_v35 }
 0xc68   : > { %5564 = vmatmul.bf16.gmra.mxu1 %v9924_v43  ;;  %v4858_v15 = vpop.f32.mrf.mxu3  ;;  %v4856_v28 = vadd.f32 %v4855_v26, %v4527_v37 }
 0xc69   : > { %v5511_v20 = vpop.f32.mrf.mxu2  ;;  %v4859_v61 = vadd.f32 %v4858_v15, %v4530_v45 }
 0xc6a   : > { %v5512_v18 = vadd.f32 %v5511_v20, %v5183_v27 }
 0xc6b   : > { %v5184_v36 = vpop.f32.mrf.mxu0 }
 0xc6c   : > { %v7326_v21 = vpack.c.bf16 %v5512_v18, %v4854_v19  ;;  %v5185_v10 = vadd.f32 %v5184_v36, %v12234_v30 }
 0xc6d   : > { %v4531_v12 = vpop.f32.mrf.mxu1 }
 0xc6e   : > { %7838 = vst [vmem:[%s10018_s5 + $0xed0] sm:$0xff] %v7326_v21 }
 0xc70   : > { %v4860_v32 = vpop.f32.mrf.mxu3 }
 0xc71   : > { %v5513_v63 = vpop.f32.mrf.mxu2 }
 0xc72   : > { %v5514_v53 = vadd.f32 %v5513_v63, %v5185_v10 }
 0xc73   : > { %v5187_v6 = vpop.f32.mrf.mxu0 }
 0xc74   : > { %v7330_v55 = vpack.c.bf16 %v5514_v53, %v4856_v28  ;;  %v5188_v31 = vadd.f32 %v5187_v6, %v12234_v30 }
 0xc75   : > { %v4534_v41 = vpop.f32.mrf.mxu1  ;;  %9184 = vmatmul.msk.bf16.gmra.mxu3 %vm1370_vm1, %v9926_v44 }
 0xc76   : > { %6222 = vmatmul.bf16.gmra.mxu0 %v9924_v43  ;;  %7842 = vst [vmem:[%s10018_s5 + $0xef0] sm:$0xff] %v7330_v55  ;;  %9247 = vmatmul.msk.bf16.gmra.mxu2 %vm1370_vm1, %v9912_v38  ;;  %v4532_v43 = vadd.f32 %v4531_v12, %v12232_v35  ;;  %v4535_v20 = vadd.f32 %v4534_v41, %v12232_v35 }
 0xc78   : > { %5569 = vmatmul.bf16.gmra.mxu1 %v9938_v49  ;;  %v4863_v54 = vpop.f32.mrf.mxu3  ;;  %v4861_v51 = vadd.f32 %v4860_v32, %v4532_v43 }
 0xc79   : > { %v5516_v29 = vpop.f32.mrf.mxu2  ;;  %v4864_v21 = vadd.f32 %v4863_v54, %v4535_v20 }
 0xc7a   : > { %v5517_v26 = vadd.f32 %v5516_v29, %v5188_v31 }
 0xc7b   : > { %v5189_v2 = vpop.f32.mrf.mxu0 }
 0xc7c   : > { %v7334_v5 = vpack.c.bf16 %v5517_v26, %v4859_v61  ;;  %v5190_v25 = vadd.f32 %v5189_v2, %v12234_v30 }
 0xc7d   : > { %v4536_v22 = vpop.f32.mrf.mxu1 }
 0xc7e   : > { %7846 = vst [vmem:[%s10018_s5 + $0xf10] sm:$0xff] %v7334_v5 }
 0xc80   : > { %v4865_v38 = vpop.f32.mrf.mxu3 }
 0xc81   : > { %v5518_v7 = vpop.f32.mrf.mxu2 }
 0xc82   : > { %v5519_v27 = vadd.f32 %v5518_v7, %v5190_v25 }
 0xc83   : > { %v5192_v19 = vpop.f32.mrf.mxu0 }
 0xc84   : > { %v7338_v15 = vpack.c.bf16 %v5519_v27, %v4861_v51  ;;  %v5193_v36 = vadd.f32 %v5192_v19, %v12234_v30 }
 0xc85   : > { %v4539_v18 = vpop.f32.mrf.mxu1  ;;  %9185 = vmatmul.msk.bf16.gmra.mxu3 %vm1370_vm1, %v9940_v50 }
 0xc86   : > { %6227 = vmatmul.bf16.gmra.mxu0 %v9938_v49  ;;  %7850 = vst [vmem:[%s10018_s5 + $0xf30] sm:$0xff] %v7338_v15  ;;  %9248 = vmatmul.msk.bf16.gmra.mxu2 %vm1370_vm1, %v9926_v44  ;;  %v4537_v49 = vadd.f32 %v4536_v22, %v12232_v35  ;;  %v4540_v31 = vadd.f32 %v4539_v18, %v12232_v35 }
 0xc88   : > { %5574 = vmatmul.bf16.gmra.mxu1 %v9952_v56  ;;  %v4868_v37 = vpop.f32.mrf.mxu3  ;;  %v4866_v45 = vadd.f32 %v4865_v38, %v4537_v49 }
 0xc89   : > { %v5521_v12 = vpop.f32.mrf.mxu2  ;;  %v4869_v26 = vadd.f32 %v4868_v37, %v4540_v31 }
 0xc8a   : > { %v5522_v10 = vadd.f32 %v5521_v12, %v5193_v36 }
 0xc8b   : > { %v5194_v63 = vpop.f32.mrf.mxu0 }
 0xc8c   : > { %v7342_v32 = vpack.c.bf16 %v5522_v10, %v4864_v21  ;;  %v5195_v53 = vadd.f32 %v5194_v63, %v12234_v30 }
 0xc8d   : > { %v4541_v28 = vpop.f32.mrf.mxu1 }
 0xc8e   : > { %7854 = vst [vmem:[%s10018_s5 + $0xf50] sm:$0xff] %v7342_v32 }
 0xc90   : > { %v4870_v44 = vpop.f32.mrf.mxu3 }
 0xc91   : > { %v5523_v6 = vpop.f32.mrf.mxu2 }
 0xc92   : > { %v5524_v55 = vadd.f32 %v5523_v6, %v5195_v53 }
 0xc93   : > { %v5197_v41 = vpop.f32.mrf.mxu0 }
 0xc94   : > { %v7346_v61 = vpack.c.bf16 %v5524_v55, %v4866_v45  ;;  %v5198_v54 = vadd.f32 %v5197_v41, %v12234_v30 }
 0xc95   : > { %v4544_v29 = vpop.f32.mrf.mxu1  ;;  %9186 = vmatmul.msk.bf16.gmra.mxu3 %vm1370_vm1, %v9954_v57 }
 0xc96   : > { %6232 = vmatmul.bf16.gmra.mxu0 %v9952_v56  ;;  %7858 = vst [vmem:[%s10018_s5 + $0xf70] sm:$0xff] %v7346_v61  ;;  %9249 = vmatmul.msk.bf16.gmra.mxu2 %vm1370_vm1, %v9940_v50  ;;  %v4542_v56 = vadd.f32 %v4541_v28, %v12232_v35  ;;  %v4545_v15 = vadd.f32 %v4544_v29, %v12232_v35 }
 0xc98   : > { %5579 = vmatmul.bf16.gmra.mxu1 %v9975_v1  ;;  %v4873_v5 = vpop.f32.mrf.mxu3  ;;  %v4871_v27 = vadd.f32 %v4870_v44, %v4542_v56 }
 0xc99   : > { %v5526_v2 = vpop.f32.mrf.mxu2  ;;  %v4874_v12 = vadd.f32 %v4873_v5, %v4545_v15 }
 0xc9a   : > { %v5527_v22 = vadd.f32 %v5526_v2, %v5198_v54 }
 0xc9b   : > { %v5199_v43 = vpop.f32.mrf.mxu0 }
 0xc9c   : > { %v7350_v25 = vpack.c.bf16 %v5527_v22, %v4869_v26  ;;  %v5200_v38 = vadd.f32 %v5199_v43, %v12234_v30 }
 0xc9d   : > { %v4546_v7 = vpop.f32.mrf.mxu1 }
 0xc9e   : > { %7862 = vst [vmem:[%s10018_s5 + $0xf90] sm:$0xff] %v7350_v25 }
 0xca0   : > { %v4875_v50 = vpop.f32.mrf.mxu3 }
 0xca1   : > { %v5528_v51 = vpop.f32.mrf.mxu2 }
 0xca2   : > { %v5529_v19 = vadd.f32 %v5528_v51, %v5200_v38 }
 0xca3   : > { %v5202_v20 = vpop.f32.mrf.mxu0 }
 0xca4   : > { %v7354_v18 = vpack.c.bf16 %v5529_v19, %v4871_v27  ;;  %v5203_v21 = vadd.f32 %v5202_v20, %v12234_v30 }
 0xca5   : > { %v5545_v36 = vpop.f32.mrf.mxu1  ;;  %9187 = vmatmul.msk.bf16.gmra.mxu3 %vm1370_vm1, %v9980_v4 }
 0xca6   : > { %6237 = vmatmul.bf16.gmra.mxu0 %v9975_v1  ;;  %7866 = vst [vmem:[%s10018_s5 + $0xfb0] sm:$0xff] %v7354_v18  ;;  %9250 = vmatmul.msk.bf16.gmra.mxu2 %vm1370_vm1, %v9954_v57  ;;  %v4547_v1 = vadd.f32 %v4546_v7, %v12232_v35  ;;  %v9567_v57 = vld [vmem:[%s13849_s2] sm:$0xff] }
 0xca7   : > { %v13091_v6 = vperm.slane %v9567_v57, 6  ;;  %v13093_v31 = vperm.slane %v9567_v57, 7 }
 0xca8   : > { %5584 = vmatmul.bf16.gmra.mxu1 %v9995_v14  ;;  %v5874_v10 = vpop.f32.mrf.mxu3  ;;  %v4876_v55 = vadd.f32 %v4875_v50, %v4547_v1 }
 0xca9   : > { %v5531_v37 = vpop.f32.mrf.mxu2  ;;  %v5546_v29 = vadd.f32 %v5545_v36, %v13091_v6 }
 0xcaa   : > { %v5532_v63 = vadd.f32 %v5531_v37, %v5203_v21 }
 0xcab   : > { %v5204_v32 = vpop.f32.mrf.mxu0  ;;  %v5875_v26 = vadd.f32 %v5874_v10, %v5546_v29 }
 0xcac   : > { %v7358_v28 = vpack.c.bf16 %v5532_v63, %v4874_v12  ;;  %v5205_v53 = vadd.f32 %v5204_v32, %v12234_v30 }
 0xcad   : > { %v5547_v49 = vpop.f32.mrf.mxu1 }
 0xcae   : > { %7870 = vst [vmem:[%s10018_s5 + $0xfd0] sm:$0xff] %v7358_v28 }
 0xcb0   : > { %v5876_v45 = vpop.f32.mrf.mxu3 }
 0xcb1   : > { %v5533_v44 = vpop.f32.mrf.mxu2 }
 0xcb2   : > { %v5534_v41 = vadd.f32 %v5533_v44, %v5205_v53 }
 0xcb3   : > { %v6203_v61 = vpop.f32.mrf.mxu0 }
 0xcb4   : > { %v7362_v54 = vpack.c.bf16 %v5534_v41, %v4876_v55  ;;  %v6204_v30 = vadd.f32 %v6203_v61, %v13093_v31 }
 0xcb5   : > { %v5550_v35 = vpop.f32.mrf.mxu1  ;;  %9188 = vmatmul.msk.bf16.gmra.mxu3 %vm1370_vm1, %v9997_v17 }
 0xcb6   : > { %6242 = vmatmul.bf16.gmra.mxu0 %v9995_v14  ;;  %7874 = vst [vmem:[%s10018_s5 + $0xff0] sm:$0xff] %v7362_v54  ;;  %9251 = vmatmul.msk.bf16.gmra.mxu2 %vm1370_vm1, %v9980_v4  ;;  %v5548_v14 = vadd.f32 %v5547_v49, %v13091_v6  ;;  %v5551_v19 = vadd.f32 %v5550_v35, %v13091_v6 }
 0xcb8   : > { %5589 = vmatmul.bf16.gmra.mxu1 %v10022_v46  ;;  %v5879_v5 = vpop.f32.mrf.mxu3  ;;  %v5877_v51 = vadd.f32 %v5876_v45, %v5548_v14 }
 0xcb9   : > { %v6532_v2 = vpop.f32.mrf.mxu2  ;;  %v5880_v36 = vadd.f32 %v5879_v5, %v5551_v19 }
 0xcba   : > { %v6533_v22 = vadd.f32 %v6532_v2, %v6204_v30 }
 0xcbb   : > { %v6205_v43 = vpop.f32.mrf.mxu0 }
 0xcbc   : > { %v6855_v25 = vpack.c.bf16 %v6533_v22, %v5875_v26  ;;  %v6206_v56 = vadd.f32 %v6205_v43, %v13093_v31 }
 0xcbd   : > { %v5552_v7 = vpop.f32.mrf.mxu1 }
 0xcbe   : > { %7367 = vst [vmem:[%s10018_s5 + $0x18] sm:$0xff] %v6855_v25 }
 0xcc0   : > { %v5881_v4 = vpop.f32.mrf.mxu3 }
 0xcc1   : > { %v6534_v38 = vpop.f32.mrf.mxu2 }
 0xcc2   : > { %v6535_v50 = vadd.f32 %v6534_v38, %v6206_v56 }
 0xcc3   : > { %v6208_v27 = vpop.f32.mrf.mxu0 }
 0xcc4   : > { %v6859_v20 = vpack.c.bf16 %v6535_v50, %v5877_v51  ;;  %v6209_v18 = vadd.f32 %v6208_v27, %v13093_v31 }
 0xcc5   : > { %v5555_v15 = vpop.f32.mrf.mxu1  ;;  %9189 = vmatmul.msk.bf16.gmra.mxu3 %vm1370_vm1, %v10025_v52 }
 0xcc6   : > { %6247 = vmatmul.bf16.gmra.mxu0 %v10022_v46  ;;  %7371 = vst [vmem:[%s10018_s5 + $0x38] sm:$0xff] %v6859_v20  ;;  %9252 = vmatmul.msk.bf16.gmra.mxu2 %vm1370_vm1, %v9997_v17  ;;  %v5553_v46 = vadd.f32 %v5552_v7, %v13091_v6  ;;  %v5556_v44 = vadd.f32 %v5555_v15, %v13091_v6 }
 0xcc8   : > { %5594 = vmatmul.bf16.gmra.mxu1 %v10042_v13  ;;  %v5884_v12 = vpop.f32.mrf.mxu3  ;;  %v5882_v1 = vadd.f32 %v5881_v4, %v5553_v46 }
 0xcc9   : > { %v6537_v21 = vpop.f32.mrf.mxu2  ;;  %v5885_v61 = vadd.f32 %v5884_v12, %v5556_v44 }
 0xcca   : > { %v6538_v37 = vadd.f32 %v6537_v21, %v6209_v18 }
 0xccb   : > { %v6210_v10 = vpop.f32.mrf.mxu0 }
 0xccc   : > { %v6863_v63 = vpack.c.bf16 %v6538_v37, %v5880_v36  ;;  %v6211_v28 = vadd.f32 %v6210_v10, %v13093_v31 }
 0xccd   : > { %v5557_v32 = vpop.f32.mrf.mxu1 }
 0xcce   : > { %7375 = vst [vmem:[%s10018_s5 + $0x58] sm:$0xff] %v6863_v63 }
 0xcd0   : > { %v5886_v17 = vpop.f32.mrf.mxu3 }
 0xcd1   : > { %v6539_v49 = vpop.f32.mrf.mxu2 }
 0xcd2   : > { %v6540_v53 = vadd.f32 %v6539_v49, %v6211_v28 }
 0xcd3   : > { %v6213_v57 = vpop.f32.mrf.mxu0 }
 0xcd4   : > { %v6867_v45 = vpack.c.bf16 %v6540_v53, %v5882_v1  ;;  %v6214_v41 = vadd.f32 %v6213_v57, %v13093_v31 }
 0xcd5   : > { %v5560_v55 = vpop.f32.mrf.mxu1  ;;  %9190 = vmatmul.msk.bf16.gmra.mxu3 %vm1370_vm1, %v10045_v24 }
 0xcd6   : > { %6252 = vmatmul.bf16.gmra.mxu0 %v10042_v13  ;;  %7379 = vst [vmem:[%s10018_s5 + $0x78] sm:$0xff] %v6867_v45  ;;  %9253 = vmatmul.msk.bf16.gmra.mxu2 %vm1370_vm1, %v10025_v52  ;;  %v5558_v13 = vadd.f32 %v5557_v32, %v13091_v6  ;;  %v5561_v14 = vadd.f32 %v5560_v55, %v13091_v6 }
 0xcd8   : > { %5599 = vmatmul.bf16.gmra.mxu1 %v10062_v59  ;;  %v5889_v54 = vpop.f32.mrf.mxu3  ;;  %v5887_v43 = vadd.f32 %v5886_v17, %v5558_v13 }
 0xcd9   : > { %v6542_v29 = vpop.f32.mrf.mxu2  ;;  %v5890_v51 = vadd.f32 %v5889_v54, %v5561_v14 }
 0xcda   : > { %v6543_v35 = vadd.f32 %v6542_v29, %v6214_v41 }
 0xcdb   : > { %v6215_v30 = vpop.f32.mrf.mxu0 }
 0xcdc   : > { %v6871_v26 = vpack.c.bf16 %v6543_v35, %v5885_v61  ;;  %v6216_v5 = vadd.f32 %v6215_v30, %v13093_v31 }
 0xcdd   : > { %v5562_v2 = vpop.f32.mrf.mxu1 }
 0xcde   : > { %7383 = vst [vmem:[%s10018_s5 + $0x98] sm:$0xff] %v6871_v26 }
 0xce0   : > { %v5891_v52 = vpop.f32.mrf.mxu3 }
 0xce1   : > { %v6544_v22 = vpop.f32.mrf.mxu2 }
 0xce2   : > { %v6545_v25 = vadd.f32 %v6544_v22, %v6216_v5 }
 0xce3   : > { %v6218_v7 = vpop.f32.mrf.mxu0 }
 0xce4   : > { %v6875_v56 = vpack.c.bf16 %v6545_v25, %v5887_v43  ;;  %v6219_v4 = vadd.f32 %v6218_v7, %v13093_v31 }
 0xce5   : > { %v5565_v38 = vpop.f32.mrf.mxu1  ;;  %9191 = vmatmul.msk.bf16.gmra.mxu3 %vm1370_vm1, %v10065_v0 }
 0xce6   : > { %6257 = vmatmul.bf16.gmra.mxu0 %v10062_v59  ;;  %7387 = vst [vmem:[%s10018_s5 + $0xb8] sm:$0xff] %v6875_v56  ;;  %9254 = vmatmul.msk.bf16.gmra.mxu2 %vm1370_vm1, %v10045_v24  ;;  %v5563_v59 = vadd.f32 %v5562_v2, %v13091_v6  ;;  %v5566_v63 = vadd.f32 %v5565_v38, %v13091_v6 }
 0xce8   : > { %5604 = vmatmul.bf16.gmra.mxu1 %v10082_v33  ;;  %v5894_v27 = vpop.f32.mrf.mxu3  ;;  %v5892_v12 = vadd.f32 %v5891_v52, %v5563_v59 }
 0xce9   : > { %v6547_v50 = vpop.f32.mrf.mxu2  ;;  %v5895_v49 = vadd.f32 %v5894_v27, %v5566_v63 }
 0xcea   : > { %v6548_v19 = vadd.f32 %v6547_v50, %v6219_v4 }
 0xceb   : > { %v6220_v20 = vpop.f32.mrf.mxu0 }
 0xcec   : > { %v6879_v15 = vpack.c.bf16 %v6548_v19, %v5890_v51  ;;  %v6221_v36 = vadd.f32 %v6220_v20, %v13093_v31 }
 0xced   : > { %v5567_v18 = vpop.f32.mrf.mxu1 }
 0xcee   : > { %7391 = vst [vmem:[%s10018_s5 + $0xd8] sm:$0xff] %v6879_v15 }
 0xcf0   : > { %v5896_v24 = vpop.f32.mrf.mxu3 }
 0xcf1   : > { %v6549_v21 = vpop.f32.mrf.mxu2 }
 0xcf2   : > { %v6550_v37 = vadd.f32 %v6549_v21, %v6221_v36 }
 0xcf3   : > { %v6223_v10 = vpop.f32.mrf.mxu0 }
 0xcf4   : > { %v6883_v32 = vpack.c.bf16 %v6550_v37, %v5892_v12  ;;  %v6224_v28 = vadd.f32 %v6223_v10, %v13093_v31 }
 0xcf5   : > { %v5570_v46 = vpop.f32.mrf.mxu1  ;;  %9192 = vmatmul.msk.bf16.gmra.mxu3 %vm1370_vm1, %v10085_v40 }
 0xcf6   : > { %6262 = vmatmul.bf16.gmra.mxu0 %v10082_v33  ;;  %7395 = vst [vmem:[%s10018_s5 + $0xf8] sm:$0xff] %v6883_v32  ;;  %9255 = vmatmul.msk.bf16.gmra.mxu2 %vm1370_vm1, %v10065_v0  ;;  %v5568_v33 = vadd.f32 %v5567_v18, %v13091_v6  ;;  %v5571_v35 = vadd.f32 %v5570_v46, %v13091_v6 }
 0xcf8   : > { %5609 = vmatmul.bf16.gmra.mxu1 %v10102_v9  ;;  %v5899_v1 = vpop.f32.mrf.mxu3  ;;  %v5897_v61 = vadd.f32 %v5896_v24, %v5568_v33 }
 0xcf9   : > { %v6552_v17 = vpop.f32.mrf.mxu2  ;;  %v5900_v13 = vadd.f32 %v5899_v1, %v5571_v35 }
 0xcfa   : > { %v6553_v53 = vadd.f32 %v6552_v17, %v6224_v28 }
 0xcfb   : > { %v6225_v57 = vpop.f32.mrf.mxu0 }
 0xcfc   : > { %v6887_v44 = vpack.c.bf16 %v6553_v53, %v5895_v49  ;;  %v6226_v55 = vadd.f32 %v6225_v57, %v13093_v31 }
 0xcfd   : > { %v5572_v45 = vpop.f32.mrf.mxu1 }
 0xcfe   : > { %7399 = vst [vmem:[%s10018_s5 + $0x118] sm:$0xff] %v6887_v44 }
 0xd00   : > { %v5901_v0 = vpop.f32.mrf.mxu3 }
 0xd01   : > { %v6554_v41 = vpop.f32.mrf.mxu2 }
 0xd02   : > { %v6555_v29 = vadd.f32 %v6554_v41, %v6226_v55 }
 0xd03   : > { %v6228_v54 = vpop.f32.mrf.mxu0 }
 0xd04   : > { %v6891_v30 = vpack.c.bf16 %v6555_v29, %v5897_v61  ;;  %v6229_v2 = vadd.f32 %v6228_v54, %v13093_v31 }
 0xd05   : > { %v5575_v26 = vpop.f32.mrf.mxu1  ;;  %9193 = vmatmul.msk.bf16.gmra.mxu3 %vm1370_vm1, %v10105_v16 }
 0xd06   : > { %6267 = vmatmul.bf16.gmra.mxu0 %v10102_v9  ;;  %7403 = vst [vmem:[%s10018_s5 + $0x138] sm:$0xff] %v6891_v30  ;;  %9256 = vmatmul.msk.bf16.gmra.mxu2 %vm1370_vm1, %v10085_v40  ;;  %v5573_v9 = vadd.f32 %v5572_v45, %v13091_v6  ;;  %v5576_v50 = vadd.f32 %v5575_v26, %v13091_v6 }
 0xd08   : > { %5614 = vmatmul.bf16.gmra.mxu1 %v10122_v60  ;;  %v5904_v22 = vpop.f32.mrf.mxu3  ;;  %v5902_v38 = vadd.f32 %v5901_v0, %v5573_v9 }
 0xd09   : > { %v6557_v5 = vpop.f32.mrf.mxu2  ;;  %v5905_v15 = vadd.f32 %v5904_v22, %v5576_v50 }
 0xd0a   : > { %v6558_v52 = vadd.f32 %v6557_v5, %v6229_v2  ;;  %v14476_v5 = vld [vmem:[#allocation5_spill] sm:$0xff] }
 0xd0b   : > { %v6230_v43 = vpop.f32.mrf.mxu0 }
 0xd0c   : > { %v6895_v25 = vpack.c.bf16 %v6558_v52, %v5900_v13  ;;  %v6231_v14 = vadd.f32 %v6230_v43, %v13093_v31 }
 0xd0d   : > { %v5577_v7 = vpop.f32.mrf.mxu1 }
 0xd0e   : > { %7407 = vst [vmem:[%s10018_s5 + $0x158] sm:$0xff] %v6895_v25 }
 0xd10   : > { %v5906_v40 = vpop.f32.mrf.mxu3 }
 0xd11   : > { %v6559_v56 = vpop.f32.mrf.mxu2 }
 0xd12   : > { %v6560_v4 = vadd.f32 %v6559_v56, %v6231_v14 }
 0xd13   : > { %v6233_v51 = vpop.f32.mrf.mxu0 }
 0xd14   : > { %v6899_v27 = vpack.c.bf16 %v6560_v4, %v5902_v38  ;;  %v6234_v20 = vadd.f32 %v6233_v51, %v13093_v31 }
 0xd15   : > { %v5580_v19 = vpop.f32.mrf.mxu1  ;;  %9194 = vmatmul.msk.bf16.gmra.mxu3 %vm1370_vm1, %v10125_v3 }
 0xd16   : > { %6272 = vmatmul.bf16.gmra.mxu0 %v10122_v60  ;;  %7411 = vst [vmem:[%s10018_s5 + $0x178] sm:$0xff] %v6899_v27  ;;  %9257 = vmatmul.msk.bf16.gmra.mxu2 %vm1370_vm1, %v10105_v16  ;;  %v5578_v60 = vadd.f32 %v5577_v7, %v13091_v6  ;;  %v5581_v28 = vadd.f32 %v5580_v19, %v13091_v6 }
 0xd18   : > { %5619 = vmatmul.bf16.gmra.mxu1 %v10148_v23  ;;  %v5909_v59 = vpop.f32.mrf.mxu3  ;;  %v5907_v63 = vadd.f32 %v5906_v40, %v5578_v60 }
 0xd19   : > { %v6562_v18 = vpop.f32.mrf.mxu2  ;;  %v5910_v53 = vadd.f32 %v5909_v59, %v5581_v28 }
 0xd1a   : > { %v6563_v36 = vadd.f32 %v6562_v18, %v6234_v20  ;;  %v14478_v18 = vld [vmem:[#allocation7_spill] sm:$0xff] }
 0xd1b   : > { %v6235_v21 = vpop.f32.mrf.mxu0 }
 0xd1c   : > { %v6903_v24 = vpack.c.bf16 %v6563_v36, %v5905_v15  ;;  %v6236_v37 = vadd.f32 %v6235_v21, %v13093_v31  ;;  %v14477_v15 = vld [vmem:[#allocation6_spill] sm:$0xff] }
 0xd1d   : > { %v5582_v12 = vpop.f32.mrf.mxu1 }
 0xd1e   : > { %7415 = vst [vmem:[%s10018_s5 + $0x198] sm:$0xff] %v6903_v24 }
 0xd20   : > { %v5911_v16 = vpop.f32.mrf.mxu3 }
 0xd21   : > { %v6564_v10 = vpop.f32.mrf.mxu2 }
 0xd22   : > { %v6565_v32 = vadd.f32 %v6564_v10, %v6236_v37 }
 0xd23   : > { %v6238_v46 = vpop.f32.mrf.mxu0 }
 0xd24   : > { %v6907_v49 = vpack.c.bf16 %v6565_v32, %v5907_v63  ;;  %v6239_v1 = vadd.f32 %v6238_v46, %v13093_v31 }
 0xd25   : > { %v5585_v17 = vpop.f32.mrf.mxu1  ;;  %9195 = vmatmul.msk.bf16.gmra.mxu3 %vm1370_vm1, %v10157_v62 }
 0xd26   : > { %6277 = vmatmul.bf16.gmra.mxu0 %v10148_v23  ;;  %7419 = vst [vmem:[%s10018_s5 + $0x1b8] sm:$0xff] %v6907_v49  ;;  %9258 = vmatmul.msk.bf16.gmra.mxu2 %vm1370_vm1, %v10125_v3  ;;  %v5583_v23 = vadd.f32 %v5582_v12, %v13091_v6  ;;  %v5586_v30 = vadd.f32 %v5585_v17, %v13091_v6 }
 0xd28   : > { %5624 = vmatmul.bf16.gmra.mxu1 %v10174_v47  ;;  %v5914_v44 = vpop.f32.mrf.mxu3  ;;  %v5912_v29 = vadd.f32 %v5911_v16, %v5583_v23 }
 0xd29   : > { %v6567_v57 = vpop.f32.mrf.mxu2  ;;  %v5915_v22 = vadd.f32 %v5914_v44, %v5586_v30  ;;  %v14480_v44 = vld [vmem:[#allocation9_spill] sm:$0xff] }
 0xd2a   : > { %v6568_v45 = vadd.f32 %v6567_v57, %v6239_v1  ;;  %v14479_v57 = vld [vmem:[#allocation8_spill] sm:$0xff] }
 0xd2b   : > { %v6240_v33 = vpop.f32.mrf.mxu0 }
 0xd2c   : > { %v6911_v55 = vpack.c.bf16 %v6568_v45, %v5910_v53  ;;  %v6241_v0 = vadd.f32 %v6240_v33, %v13093_v31 }
 0xd2d   : > { %v5587_v41 = vpop.f32.mrf.mxu1 }
 0xd2e   : > { %7423 = vst [vmem:[%s10018_s5 + $0x1d8] sm:$0xff] %v6911_v55 }
 0xd30   : > { %v5916_v3 = vpop.f32.mrf.mxu3 }
 0xd31   : > { %v6569_v61 = vpop.f32.mrf.mxu2 }
 0xd32   : > { %v6570_v54 = vadd.f32 %v6569_v61, %v6241_v0 }
 0xd33   : > { %v6243_v35 = vpop.f32.mrf.mxu0 }
 0xd34   : > { %v6915_v26 = vpack.c.bf16 %v6570_v54, %v5912_v29  ;;  %v6244_v13 = vadd.f32 %v6243_v35, %v13093_v31 }
 0xd35   : > { %v5590_v2 = vpop.f32.mrf.mxu1  ;;  %9196 = vmatmul.msk.bf16.gmra.mxu3 %vm1370_vm1, %v10177_v58 }
 0xd36   : > { %6282 = vmatmul.bf16.gmra.mxu0 %v10174_v47  ;;  %7427 = vst [vmem:[%s10018_s5 + $0x1f8] sm:$0xff] %v6915_v26  ;;  %9259 = vmatmul.msk.bf16.gmra.mxu2 %vm1370_vm1, %v10157_v62  ;;  %v5588_v47 = vadd.f32 %v5587_v41, %v13091_v6  ;;  %v5591_v50 = vadd.f32 %v5590_v2, %v13091_v6 }
 0xd38   : > { %5629 = vmatmul.bf16.gmra.mxu1 %v14476_v5  ;;  %v5919_v43 = vpop.f32.mrf.mxu3  ;;  %v5917_v38 = vadd.f32 %v5916_v3, %v5588_v47 }
 0xd39   : > { %v6572_v52 = vpop.f32.mrf.mxu2  ;;  %v5920_v59 = vadd.f32 %v5919_v43, %v5591_v50  ;;  %v14481_v43 = vld [vmem:[#allocation10_spill] sm:$0xff] }
 0xd3a   : > { %v6573_v25 = vadd.f32 %v6572_v52, %v6244_v13 }
 0xd3b   : > { %v6245_v7 = vpop.f32.mrf.mxu0 }
 0xd3c   : > { %v6919_v9 = vpack.c.bf16 %v6573_v25, %v5915_v22  ;;  %v6246_v56 = vadd.f32 %v6245_v7, %v13093_v31  ;;  %v14482_v25 = vld [vmem:[#allocation11_spill] sm:$0xff] }
 0xd3d   : > { %v5592_v14 = vpop.f32.mrf.mxu1 }
 0xd3e   : > { %7431 = vst [vmem:[%s10018_s5 + $0x218] sm:$0xff] %v6919_v9  ;;  %v5593_v10 = vadd.f32 %v5592_v14, %v13091_v6 }
 0xd40   : > { %v5921_v62 = vpop.f32.mrf.mxu3 }
 0xd41   : > { %v6574_v40 = vpop.f32.mrf.mxu2  ;;  %v5922_v32 = vadd.f32 %v5921_v62, %v5593_v10 }
 0xd42   : > { %v6575_v4 = vadd.f32 %v6574_v40, %v6246_v56 }
 0xd43   : > { %v6248_v51 = vpop.f32.mrf.mxu0 }
 0xd44   : > { %v6923_v27 = vpack.c.bf16 %v6575_v4, %v5917_v38  ;;  %v6249_v20 = vadd.f32 %v6248_v51, %v13093_v31 }
 0xd45   : > { %v5595_v19 = vpop.f32.mrf.mxu1  ;;  %9197 = vmatmul.msk.bf16.gmra.mxu3 %vm1370_vm1, %v14477_v15 }
 0xd46   : > { %6287 = vmatmul.bf16.gmra.mxu0 %v14476_v5  ;;  %7435 = vst [vmem:[%s10018_s5 + $0x238] sm:$0xff] %v6923_v27  ;;  %9260 = vmatmul.msk.bf16.gmra.mxu2 %vm1370_vm1, %v10177_v58  ;;  %v5596_v49 = vadd.f32 %v5595_v19, %v13091_v6 }
 0xd48   : > { %5634 = vmatmul.bf16.gmra.mxu1 %v14478_v18  ;;  %v5924_v21 = vpop.f32.mrf.mxu3 }
 0xd49   : > { %v6577_v36 = vpop.f32.mrf.mxu2  ;;  %v5925_v45 = vadd.f32 %v5924_v21, %v5596_v49  ;;  %v14483_v21 = vld [vmem:[#allocation12_spill] sm:$0xff] }
 0xd4a   : > { %v6578_v24 = vadd.f32 %v6577_v36, %v6249_v20 }
 0xd4b   : > { %v6250_v12 = vpop.f32.mrf.mxu0 }
 0xd4c   : > { %v6927_v60 = vpack.c.bf16 %v6578_v24, %v5920_v59  ;;  %v6251_v16 = vadd.f32 %v6250_v12, %v13093_v31  ;;  %v14484_v24 = vld [vmem:[#allocation13_spill] sm:$0xff] }
 0xd4d   : > { %v5597_v37 = vpop.f32.mrf.mxu1 }
 0xd4e   : > { %7439 = vst [vmem:[%s10018_s5 + $0x258] sm:$0xff] %v6927_v60  ;;  %v5598_v3 = vadd.f32 %v5597_v37, %v13091_v6 }
 0xd50   : > { %v5926_v58 = vpop.f32.mrf.mxu3 }
 0xd51   : > { %v6579_v63 = vpop.f32.mrf.mxu2  ;;  %v5927_v30 = vadd.f32 %v5926_v58, %v5598_v3 }
 0xd52   : > { %v6580_v46 = vadd.f32 %v6579_v63, %v6251_v16 }
 0xd53   : > { %v6253_v28 = vpop.f32.mrf.mxu0 }
 0xd54   : > { %v6931_v17 = vpack.c.bf16 %v6580_v46, %v5922_v32  ;;  %v6254_v53 = vadd.f32 %v6253_v28, %v13093_v31 }
 0xd55   : > { %v5600_v1 = vpop.f32.mrf.mxu1  ;;  %9198 = vmatmul.msk.bf16.gmra.mxu3 %vm1370_vm1, %v14479_v57 }
 0xd56   : > { %6292 = vmatmul.bf16.gmra.mxu0 %v14478_v18  ;;  %7443 = vst [vmem:[%s10018_s5 + $0x278] sm:$0xff] %v6931_v17  ;;  %9261 = vmatmul.msk.bf16.gmra.mxu2 %vm1370_vm1, %v14477_v15  ;;  %v5601_v13 = vadd.f32 %v5600_v1, %v13091_v6 }
 0xd58   : > { %5639 = vmatmul.bf16.gmra.mxu1 %v14480_v44  ;;  %v5929_v55 = vpop.f32.mrf.mxu3 }
 0xd59   : > { %v6582_v33 = vpop.f32.mrf.mxu2  ;;  %v5930_v7 = vadd.f32 %v5929_v55, %v5601_v13  ;;  %v14485_v55 = vld [vmem:[#allocation14_spill] sm:$0xff] }
 0xd5a   : > { %v6583_v41 = vadd.f32 %v6582_v33, %v6254_v53 }
 0xd5b   : > { %v6255_v23 = vpop.f32.mrf.mxu0 }
 0xd5c   : > { %v6935_v0 = vpack.c.bf16 %v6583_v41, %v5925_v45  ;;  %v6256_v29 = vadd.f32 %v6255_v23, %v13093_v31  ;;  %v14486_v41 = vld [vmem:[#allocation15_spill] sm:$0xff] }
 0xd5d   : > { %v5602_v61 = vpop.f32.mrf.mxu1 }
 0xd5e   : > { %7447 = vst [vmem:[%s10018_s5 + $0x298] sm:$0xff] %v6935_v0  ;;  %v5603_v38 = vadd.f32 %v5602_v61, %v13091_v6 }
 0xd60   : > { %v5931_v35 = vpop.f32.mrf.mxu3 }
 0xd61   : > { %v6584_v54 = vpop.f32.mrf.mxu2  ;;  %v5932_v27 = vadd.f32 %v5931_v35, %v5603_v38 }
 0xd62   : > { %v6585_v26 = vadd.f32 %v6584_v54, %v6256_v29 }
 0xd63   : > { %v6258_v2 = vpop.f32.mrf.mxu0 }
 0xd64   : > { %v6939_v5 = vpack.c.bf16 %v6585_v26, %v5927_v30  ;;  %v6259_v52 = vadd.f32 %v6258_v2, %v13093_v31 }
 0xd65   : > { %v5605_v22 = vpop.f32.mrf.mxu1  ;;  %9199 = vmatmul.msk.bf16.gmra.mxu3 %vm1370_vm1, %v14481_v43 }
 0xd66   : > { %6297 = vmatmul.bf16.gmra.mxu0 %v14480_v44  ;;  %7451 = vst [vmem:[%s10018_s5 + $0x2b8] sm:$0xff] %v6939_v5  ;;  %9262 = vmatmul.msk.bf16.gmra.mxu2 %vm1370_vm1, %v14479_v57  ;;  %v5606_v15 = vadd.f32 %v5605_v22, %v13091_v6 }
 0xd68   : > { %5644 = vmatmul.bf16.gmra.mxu1 %v14482_v25  ;;  %v5934_v14 = vpop.f32.mrf.mxu3 }
 0xd69   : > { %v6587_v9 = vpop.f32.mrf.mxu2  ;;  %v5935_v12 = vadd.f32 %v5934_v14, %v5606_v15  ;;  %v14487_v14 = vld [vmem:[#allocation16_spill] sm:$0xff] }
 0xd6a   : > { %v6588_v47 = vadd.f32 %v6587_v9, %v6259_v52 }
 0xd6b   : > { %v6260_v56 = vpop.f32.mrf.mxu0 }
 0xd6c   : > { %v6943_v40 = vpack.c.bf16 %v6588_v47, %v5930_v7  ;;  %v6261_v4 = vadd.f32 %v6260_v56, %v13093_v31  ;;  %v14488_v47 = vld [vmem:[#allocation17_spill] sm:$0xff] }
 0xd6d   : > { %v5607_v62 = vpop.f32.mrf.mxu1 }
 0xd6e   : > { %7455 = vst [vmem:[%s10018_s5 + $0x2d8] sm:$0xff] %v6943_v40  ;;  %v5608_v32 = vadd.f32 %v5607_v62, %v13091_v6 }
 0xd70   : > { %v5936_v50 = vpop.f32.mrf.mxu3 }
 0xd71   : > { %v6589_v51 = vpop.f32.mrf.mxu2  ;;  %v5937_v17 = vadd.f32 %v5936_v50, %v5608_v32 }
 0xd72   : > { %v6590_v19 = vadd.f32 %v6589_v51, %v6261_v4 }
 0xd73   : > { %v6263_v20 = vpop.f32.mrf.mxu0 }
 0xd74   : > { %v6947_v18 = vpack.c.bf16 %v6590_v19, %v5932_v27  ;;  %v6264_v36 = vadd.f32 %v6263_v20, %v13093_v31 }
 0xd75   : > { %v5610_v59 = vpop.f32.mrf.mxu1  ;;  %9200 = vmatmul.msk.bf16.gmra.mxu3 %vm1370_vm1, %v14483_v21 }
 0xd76   : > { %6302 = vmatmul.bf16.gmra.mxu0 %v14482_v25  ;;  %7459 = vst [vmem:[%s10018_s5 + $0x2f8] sm:$0xff] %v6947_v18  ;;  %9263 = vmatmul.msk.bf16.gmra.mxu2 %vm1370_vm1, %v14481_v43  ;;  %v5611_v57 = vadd.f32 %v5610_v59, %v13091_v6 }
 0xd78   : > { %5649 = vmatmul.bf16.gmra.mxu1 %v14484_v24  ;;  %v5939_v37 = vpop.f32.mrf.mxu3 }
 0xd79   : > { %v6592_v60 = vpop.f32.mrf.mxu2  ;;  %v5940_v23 = vadd.f32 %v5939_v37, %v5611_v57  ;;  %v14489_v37 = vld [vmem:[#allocation18_spill] sm:$0xff] }
 0xd7a   : > { %v6593_v10 = vadd.f32 %v6592_v60, %v6264_v36 }
 0xd7b   : > { %v6265_v16 = vpop.f32.mrf.mxu0 }
 0xd7c   : > { %v6951_v63 = vpack.c.bf16 %v6593_v10, %v5935_v12  ;;  %v6266_v46 = vadd.f32 %v6265_v16, %v13093_v31  ;;  %v14490_v10 = vld [vmem:[#allocation19_spill] sm:$0xff] }
 0xd7d   : > { %v5612_v58 = vpop.f32.mrf.mxu1 }
 0xd7e   : > { %7463 = vst [vmem:[%s10018_s5 + $0x318] sm:$0xff] %v6951_v63  ;;  %v5613_v30 = vadd.f32 %v5612_v58, %v13091_v6 }
 0xd80   : > { %v5941_v49 = vpop.f32.mrf.mxu3 }
 0xd81   : > { %v6594_v28 = vpop.f32.mrf.mxu2  ;;  %v5942_v5 = vadd.f32 %v5941_v49, %v5613_v30 }
 0xd82   : > { %v6595_v1 = vadd.f32 %v6594_v28, %v6266_v46 }
 0xd83   : > { %v6268_v53 = vpop.f32.mrf.mxu0 }
 0xd84   : > { %v6955_v44 = vpack.c.bf16 %v6595_v1, %v5937_v17  ;;  %v6269_v33 = vadd.f32 %v6268_v53, %v13093_v31 }
 0xd85   : > { %v5615_v45 = vpop.f32.mrf.mxu1  ;;  %9201 = vmatmul.msk.bf16.gmra.mxu3 %vm1370_vm1, %v14485_v55 }
 0xd86   : > { %6307 = vmatmul.bf16.gmra.mxu0 %v14484_v24  ;;  %7467 = vst [vmem:[%s10018_s5 + $0x338] sm:$0xff] %v6955_v44  ;;  %9264 = vmatmul.msk.bf16.gmra.mxu2 %vm1370_vm1, %v14483_v21  ;;  %v5616_v43 = vadd.f32 %v5615_v45, %v13091_v6 }
 0xd88   : > { %5654 = vmatmul.bf16.gmra.mxu1 %v14486_v41  ;;  %v5944_v61 = vpop.f32.mrf.mxu3 }
 0xd89   : > { %v6597_v0 = vpop.f32.mrf.mxu2  ;;  %v5945_v56 = vadd.f32 %v5944_v61, %v5616_v43  ;;  %v14491_v61 = vld [vmem:[#allocation20_spill] sm:$0xff] }
 0xd8a   : > { %v6598_v3 = vadd.f32 %v6597_v0, %v6269_v33 }
 0xd8b   : > { %v6270_v29 = vpop.f32.mrf.mxu0 }
 0xd8c   : > { %v6959_v54 = vpack.c.bf16 %v6598_v3, %v5940_v23  ;;  %v6271_v26 = vadd.f32 %v6270_v29, %v13093_v31  ;;  %v14492_v3 = vld [vmem:[#allocation21_spill] sm:$0xff] }
 0xd8d   : > { %v5617_v35 = vpop.f32.mrf.mxu1 }
 0xd8e   : > { %7471 = vst [vmem:[%s10018_s5 + $0x358] sm:$0xff] %v6959_v54  ;;  %v5618_v27 = vadd.f32 %v5617_v35, %v13091_v6 }
 0xd90   : > { %v5946_v13 = vpop.f32.mrf.mxu3 }
 0xd91   : > { %v6599_v2 = vpop.f32.mrf.mxu2  ;;  %v5947_v18 = vadd.f32 %v5946_v13, %v5618_v27 }
 0xd92   : > { %v6600_v22 = vadd.f32 %v6599_v2, %v6271_v26 }
 0xd93   : > { %v6273_v52 = vpop.f32.mrf.mxu0 }
 0xd94   : > { %v6963_v25 = vpack.c.bf16 %v6600_v22, %v5942_v5  ;;  %v6274_v9 = vadd.f32 %v6273_v52, %v13093_v31 }
 0xd95   : > { %v5620_v7 = vpop.f32.mrf.mxu1  ;;  %9202 = vmatmul.msk.bf16.gmra.mxu3 %vm1370_vm1, %v14487_v14 }
 0xd96   : > { %6312 = vmatmul.bf16.gmra.mxu0 %v14486_v41  ;;  %7475 = vst [vmem:[%s10018_s5 + $0x378] sm:$0xff] %v6963_v25  ;;  %9265 = vmatmul.msk.bf16.gmra.mxu2 %vm1370_vm1, %v14485_v55  ;;  %v5621_v21 = vadd.f32 %v5620_v7, %v13091_v6 }
 0xd98   : > { %5659 = vmatmul.bf16.gmra.mxu1 %v14488_v47  ;;  %v5949_v62 = vpop.f32.mrf.mxu3 }
 0xd99   : > { %v6602_v40 = vpop.f32.mrf.mxu2  ;;  %v5950_v16 = vadd.f32 %v5949_v62, %v5621_v21  ;;  %v14493_v62 = vld [vmem:[#allocation22_spill] sm:$0xff] }
 0xd9a   : > { %v6603_v38 = vadd.f32 %v6602_v40, %v6274_v9 }
 0xd9b   : > { %v6275_v4 = vpop.f32.mrf.mxu0 }
 0xd9c   : > { %v6967_v51 = vpack.c.bf16 %v6603_v38, %v5945_v56  ;;  %v6276_v19 = vadd.f32 %v6275_v4, %v13093_v31  ;;  %v14494_v38 = vld [vmem:[#allocation23_spill] sm:$0xff] }
 0xd9d   : > { %v5622_v50 = vpop.f32.mrf.mxu1 }
 0xd9e   : > { %7479 = vst [vmem:[%s10018_s5 + $0x398] sm:$0xff] %v6967_v51  ;;  %v5623_v17 = vadd.f32 %v5622_v50, %v13091_v6 }
 0xda0   : > { %v5951_v15 = vpop.f32.mrf.mxu3 }
 0xda1   : > { %v6604_v20 = vpop.f32.mrf.mxu2  ;;  %v5952_v44 = vadd.f32 %v5951_v15, %v5623_v17 }
 0xda2   : > { %v6605_v59 = vadd.f32 %v6604_v20, %v6276_v19 }
 0xda3   : > { %v6278_v36 = vpop.f32.mrf.mxu0 }
 0xda4   : > { %v6971_v24 = vpack.c.bf16 %v6605_v59, %v5947_v18  ;;  %v6279_v60 = vadd.f32 %v6278_v36, %v13093_v31 }
 0xda5   : > { %v5625_v12 = vpop.f32.mrf.mxu1  ;;  %9203 = vmatmul.msk.bf16.gmra.mxu3 %vm1370_vm1, %v14489_v37 }
 0xda6   : > { %6317 = vmatmul.bf16.gmra.mxu0 %v14488_v47  ;;  %7483 = vst [vmem:[%s10018_s5 + $0x3b8] sm:$0xff] %v6971_v24  ;;  %9266 = vmatmul.msk.bf16.gmra.mxu2 %vm1370_vm1, %v14487_v14  ;;  %v5626_v55 = vadd.f32 %v5625_v12, %v13091_v6 }
 0xda8   : > { %5664 = vmatmul.bf16.gmra.mxu1 %v14490_v10  ;;  %v5954_v58 = vpop.f32.mrf.mxu3 }
 0xda9   : > { %v6607_v63 = vpop.f32.mrf.mxu2  ;;  %v5955_v29 = vadd.f32 %v5954_v58, %v5626_v55  ;;  %v14495_v58 = vld [vmem:[#allocation24_spill] sm:$0xff] }
 0xdaa   : > { %v6608_v32 = vadd.f32 %v6607_v63, %v6279_v60 }
 0xdab   : > { %v6280_v46 = vpop.f32.mrf.mxu0 }
 0xdac   : > { %v6975_v28 = vpack.c.bf16 %v6608_v32, %v5950_v16  ;;  %v6281_v1 = vadd.f32 %v6280_v46, %v13093_v31  ;;  %v14496_v32 = vld [vmem:[#allocation25_spill] sm:$0xff] }
 0xdad   : > { %v5627_v49 = vpop.f32.mrf.mxu1 }
 0xdae   : > { %7487 = vst [vmem:[%s10018_s5 + $0x3d8] sm:$0xff] %v6975_v28  ;;  %v5628_v5 = vadd.f32 %v5627_v49, %v13091_v6 }
 0xdb0   : > { %v5956_v57 = vpop.f32.mrf.mxu3 }
 0xdb1   : > { %v6609_v53 = vpop.f32.mrf.mxu2  ;;  %v5957_v25 = vadd.f32 %v5956_v57, %v5628_v5 }
 0xdb2   : > { %v6610_v45 = vadd.f32 %v6609_v53, %v6281_v1 }
 0xdb3   : > { %v6283_v33 = vpop.f32.mrf.mxu0 }
 0xdb4   : > { %v6979_v41 = vpack.c.bf16 %v6610_v45, %v5952_v44  ;;  %v6284_v0 = vadd.f32 %v6283_v33, %v13093_v31 }
 0xdb5   : > { %v5630_v23 = vpop.f32.mrf.mxu1  ;;  %9204 = vmatmul.msk.bf16.gmra.mxu3 %vm1370_vm1, %v14491_v61 }
 0xdb6   : > { %6322 = vmatmul.bf16.gmra.mxu0 %v14490_v10  ;;  %7491 = vst [vmem:[%s10018_s5 + $0x3f8] sm:$0xff] %v6979_v41  ;;  %9267 = vmatmul.msk.bf16.gmra.mxu2 %vm1370_vm1, %v14489_v37  ;;  %v5631_v14 = vadd.f32 %v5630_v23, %v13091_v6 }
 0xdb8   : > { %5669 = vmatmul.bf16.gmra.mxu1 %v14492_v3  ;;  %v5959_v35 = vpop.f32.mrf.mxu3 }
 0xdb9   : > { %v6612_v54 = vpop.f32.mrf.mxu2  ;;  %v5960_v4 = vadd.f32 %v5959_v35, %v5631_v14  ;;  %v14497_v35 = vld [vmem:[#allocation26_spill] sm:$0xff] }
 0xdba   : > { %v6613_v30 = vadd.f32 %v6612_v54, %v6284_v0 }
 0xdbb   : > { %v6285_v26 = vpop.f32.mrf.mxu0 }
 0xdbc   : > { %v6983_v2 = vpack.c.bf16 %v6613_v30, %v5955_v29  ;;  %v6286_v22 = vadd.f32 %v6285_v26, %v13093_v31  ;;  %v14498_v30 = vld [vmem:[#allocation27_spill] sm:$0xff] }
 0xdbd   : > { %v5632_v13 = vpop.f32.mrf.mxu1 }
 0xdbe   : > { %7495 = vst [vmem:[%s10018_s5 + $0x418] sm:$0xff] %v6983_v2  ;;  %v5633_v18 = vadd.f32 %v5632_v13, %v13091_v6 }
 0xdc0   : > { %v5961_v43 = vpop.f32.mrf.mxu3 }
 0xdc1   : > { %v6614_v52 = vpop.f32.mrf.mxu2  ;;  %v5962_v24 = vadd.f32 %v5961_v43, %v5633_v18 }
 0xdc2   : > { %v6615_v7 = vadd.f32 %v6614_v52, %v6286_v22 }
 0xdc3   : > { %v6288_v9 = vpop.f32.mrf.mxu0 }
 0xdc4   : > { %v6987_v47 = vpack.c.bf16 %v6615_v7, %v5957_v25  ;;  %v6289_v40 = vadd.f32 %v6288_v9, %v13093_v31 }
 0xdc5   : > { %v5635_v56 = vpop.f32.mrf.mxu1  ;;  %9205 = vmatmul.msk.bf16.gmra.mxu3 %vm1370_vm1, %v14493_v62 }
 0xdc6   : > { %6327 = vmatmul.bf16.gmra.mxu0 %v14492_v3  ;;  %7499 = vst [vmem:[%s10018_s5 + $0x438] sm:$0xff] %v6987_v47  ;;  %9268 = vmatmul.msk.bf16.gmra.mxu2 %vm1370_vm1, %v14491_v61  ;;  %v5636_v37 = vadd.f32 %v5635_v56, %v13091_v6 }
 0xdc8   : > { %5674 = vmatmul.bf16.gmra.mxu1 %v14494_v38  ;;  %v5964_v50 = vpop.f32.mrf.mxu3 }
 0xdc9   : > { %v6617_v51 = vpop.f32.mrf.mxu2  ;;  %v5965_v46 = vadd.f32 %v5964_v50, %v5636_v37  ;;  %v14499_v50 = vld [vmem:[#allocation28_spill] sm:$0xff] }
 0xdca   : > { %v6618_v27 = vadd.f32 %v6617_v51, %v6289_v40 }
 0xdcb   : > { %v6290_v19 = vpop.f32.mrf.mxu0 }
 0xdcc   : > { %v6991_v20 = vpack.c.bf16 %v6618_v27, %v5960_v4  ;;  %v6291_v59 = vadd.f32 %v6290_v19, %v13093_v31  ;;  %v14500_v27 = vld [vmem:[#allocation29_spill] sm:$0xff] }
 0xdcd   : > { %v5637_v15 = vpop.f32.mrf.mxu1 }
 0xdce   : > { %7503 = vst [vmem:[%s10018_s5 + $0x458] sm:$0xff] %v6991_v20  ;;  %v5638_v44 = vadd.f32 %v5637_v15, %v13091_v6 }
 0xdd0   : > { %v5966_v21 = vpop.f32.mrf.mxu3 }
 0xdd1   : > { %v6619_v36 = vpop.f32.mrf.mxu2  ;;  %v5967_v41 = vadd.f32 %v5966_v21, %v5638_v44 }
 0xdd2   : > { %v6620_v12 = vadd.f32 %v6619_v36, %v6291_v59 }
 0xdd3   : > { %v6293_v60 = vpop.f32.mrf.mxu0 }
 0xdd4   : > { %v6995_v10 = vpack.c.bf16 %v6620_v12, %v5962_v24  ;;  %v6294_v63 = vadd.f32 %v6293_v60, %v13093_v31 }
 0xdd5   : > { %v5640_v16 = vpop.f32.mrf.mxu1  ;;  %9206 = vmatmul.msk.bf16.gmra.mxu3 %vm1370_vm1, %v14495_v58 }
 0xdd6   : > { %6332 = vmatmul.bf16.gmra.mxu0 %v14494_v38  ;;  %7507 = vst [vmem:[%s10018_s5 + $0x478] sm:$0xff] %v6995_v10  ;;  %9269 = vmatmul.msk.bf16.gmra.mxu2 %vm1370_vm1, %v14493_v62  ;;  %v5641_v61 = vadd.f32 %v5640_v16, %v13091_v6 }
 0xdd8   : > { %5679 = vmatmul.bf16.gmra.mxu1 %v14496_v32  ;;  %v5969_v49 = vpop.f32.mrf.mxu3 }
 0xdd9   : > { %v6622_v28 = vpop.f32.mrf.mxu2  ;;  %v5970_v26 = vadd.f32 %v5969_v49, %v5641_v61  ;;  %v14501_v49 = vld [vmem:[#allocation30_spill] sm:$0xff] }
 0xdda   : > { %v6623_v17 = vadd.f32 %v6622_v28, %v6294_v63 }
 0xddb   : > { %v6295_v1 = vpop.f32.mrf.mxu0 }
 0xddc   : > { %v6999_v53 = vpack.c.bf16 %v6623_v17, %v5965_v46  ;;  %v6296_v45 = vadd.f32 %v6295_v1, %v13093_v31  ;;  %v14502_v17 = vld [vmem:[#allocation31_spill] sm:$0xff] }
 0xddd   : > { %v5642_v57 = vpop.f32.mrf.mxu1 }
 0xdde   : > { %7511 = vst [vmem:[%s10018_s5 + $0x498] sm:$0xff] %v6999_v53  ;;  %v5643_v25 = vadd.f32 %v5642_v57, %v13091_v6 }
 0xde0   : > { %v5971_v55 = vpop.f32.mrf.mxu3 }
 0xde1   : > { %v6624_v33 = vpop.f32.mrf.mxu2  ;;  %v5972_v47 = vadd.f32 %v5971_v55, %v5643_v25 }
 0xde2   : > { %v6625_v23 = vadd.f32 %v6624_v33, %v6296_v45 }
 0xde3   : > { %v6298_v0 = vpop.f32.mrf.mxu0 }
 0xde4   : > { %v7003_v3 = vpack.c.bf16 %v6625_v23, %v5967_v41  ;;  %v6299_v54 = vadd.f32 %v6298_v0, %v13093_v31 }
 0xde5   : > { %v5645_v29 = vpop.f32.mrf.mxu1  ;;  %9207 = vmatmul.msk.bf16.gmra.mxu3 %vm1370_vm1, %v14497_v35 }
 0xde6   : > { %6337 = vmatmul.bf16.gmra.mxu0 %v14496_v32  ;;  %7515 = vst [vmem:[%s10018_s5 + $0x4b8] sm:$0xff] %v7003_v3  ;;  %9270 = vmatmul.msk.bf16.gmra.mxu2 %vm1370_vm1, %v14495_v58  ;;  %v5646_v62 = vadd.f32 %v5645_v29, %v13091_v6 }
 0xde8   : > { %5684 = vmatmul.bf16.gmra.mxu1 %v14498_v30  ;;  %v5974_v13 = vpop.f32.mrf.mxu3 }
 0xde9   : > { %v6627_v2 = vpop.f32.mrf.mxu2  ;;  %v5975_v19 = vadd.f32 %v5974_v13, %v5646_v62  ;;  %v14503_v13 = vld [vmem:[#allocation32_spill] sm:$0xff] }
 0xdea   : > { %v6628_v5 = vadd.f32 %v6627_v2, %v6299_v54 }
 0xdeb   : > { %v6300_v22 = vpop.f32.mrf.mxu0 }
 0xdec   : > { %v7007_v52 = vpack.c.bf16 %v6628_v5, %v5970_v26  ;;  %v6301_v7 = vadd.f32 %v6300_v22, %v13093_v31  ;;  %v14504_v5 = vld [vmem:[#allocation33_spill] sm:$0xff] }
 0xded   : > { %v5647_v43 = vpop.f32.mrf.mxu1 }
 0xdee   : > { %7519 = vst [vmem:[%s10018_s5 + $0x4d8] sm:$0xff] %v7007_v52  ;;  %v5648_v24 = vadd.f32 %v5647_v43, %v13091_v6 }
 0xdf0   : > { %v5976_v14 = vpop.f32.mrf.mxu3 }
 0xdf1   : > { %v6629_v9 = vpop.f32.mrf.mxu2  ;;  %v5977_v10 = vadd.f32 %v5976_v14, %v5648_v24 }
 0xdf2   : > { %v6630_v56 = vadd.f32 %v6629_v9, %v6301_v7 }
 0xdf3   : > { %v6303_v40 = vpop.f32.mrf.mxu0 }
 0xdf4   : > { %v7011_v38 = vpack.c.bf16 %v6630_v56, %v5972_v47  ;;  %v6304_v51 = vadd.f32 %v6303_v40, %v13093_v31 }
 0xdf5   : > { %v5650_v4 = vpop.f32.mrf.mxu1  ;;  %9208 = vmatmul.msk.bf16.gmra.mxu3 %vm1370_vm1, %v14499_v50 }
 0xdf6   : > { %6342 = vmatmul.bf16.gmra.mxu0 %v14498_v30  ;;  %7523 = vst [vmem:[%s10018_s5 + $0x4f8] sm:$0xff] %v7011_v38  ;;  %9271 = vmatmul.msk.bf16.gmra.mxu2 %vm1370_vm1, %v14497_v35  ;;  %v5651_v58 = vadd.f32 %v5650_v4, %v13091_v6 }
 0xdf8   : > { %5689 = vmatmul.bf16.gmra.mxu1 %v14500_v27  ;;  %v5979_v15 = vpop.f32.mrf.mxu3 }
 0xdf9   : > { %v6632_v20 = vpop.f32.mrf.mxu2  ;;  %v5980_v1 = vadd.f32 %v5979_v15, %v5651_v58  ;;  %v14505_v15 = vld [vmem:[#allocation34_spill] sm:$0xff] }
 0xdfa   : > { %v6633_v18 = vadd.f32 %v6632_v20, %v6304_v51 }
 0xdfb   : > { %v6305_v59 = vpop.f32.mrf.mxu0 }
 0xdfc   : > { %v7015_v36 = vpack.c.bf16 %v6633_v18, %v5975_v19  ;;  %v6306_v12 = vadd.f32 %v6305_v59, %v13093_v31  ;;  %v14506_v18 = vld [vmem:[#allocation35_spill] sm:$0xff] }
 0xdfd   : > { %v5652_v21 = vpop.f32.mrf.mxu1 }
 0xdfe   : > { %7527 = vst [vmem:[%s10018_s5 + $0x518] sm:$0xff] %v7015_v36  ;;  %v5653_v41 = vadd.f32 %v5652_v21, %v13091_v6 }
 0xe00   : > { %v5981_v37 = vpop.f32.mrf.mxu3 }
 0xe01   : > { %v6634_v60 = vpop.f32.mrf.mxu2  ;;  %v5982_v3 = vadd.f32 %v5981_v37, %v5653_v41 }
 0xe02   : > { %v6635_v16 = vadd.f32 %v6634_v60, %v6306_v12 }
 0xe03   : > { %v6308_v63 = vpop.f32.mrf.mxu0 }
 0xe04   : > { %v7019_v32 = vpack.c.bf16 %v6635_v16, %v5977_v10  ;;  %v6309_v28 = vadd.f32 %v6308_v63, %v13093_v31 }
 0xe05   : > { %v5655_v46 = vpop.f32.mrf.mxu1  ;;  %9209 = vmatmul.msk.bf16.gmra.mxu3 %vm1370_vm1, %v14501_v49 }
 0xe06   : > { %6347 = vmatmul.bf16.gmra.mxu0 %v14500_v27  ;;  %7531 = vst [vmem:[%s10018_s5 + $0x538] sm:$0xff] %v7019_v32  ;;  %9272 = vmatmul.msk.bf16.gmra.mxu2 %vm1370_vm1, %v14499_v50  ;;  %v5656_v35 = vadd.f32 %v5655_v46, %v13091_v6 }
 0xe08   : > { %5694 = vmatmul.bf16.gmra.mxu1 %v14502_v17  ;;  %v5984_v57 = vpop.f32.mrf.mxu3 }
 0xe09   : > { %v6637_v53 = vpop.f32.mrf.mxu2  ;;  %v5985_v22 = vadd.f32 %v5984_v57, %v5656_v35  ;;  %v14507_v57 = vld [vmem:[#allocation36_spill] sm:$0xff] }
 0xe0a   : > { %v6638_v44 = vadd.f32 %v6637_v53, %v6309_v28 }
 0xe0b   : > { %v6310_v45 = vpop.f32.mrf.mxu0 }
 0xe0c   : > { %v7023_v33 = vpack.c.bf16 %v6638_v44, %v5980_v1  ;;  %v6311_v23 = vadd.f32 %v6310_v45, %v13093_v31  ;;  %v14508_v44 = vld [vmem:[#allocation37_spill] sm:$0xff] }
 0xe0d   : > { %v5657_v55 = vpop.f32.mrf.mxu1 }
 0xe0e   : > { %7535 = vst [vmem:[%s10018_s5 + $0x558] sm:$0xff] %v7023_v33  ;;  %v5658_v47 = vadd.f32 %v5657_v55, %v13091_v6 }
 0xe10   : > { %v5986_v61 = vpop.f32.mrf.mxu3 }
 0xe11   : > { %v6639_v0 = vpop.f32.mrf.mxu2  ;;  %v5987_v38 = vadd.f32 %v5986_v61, %v5658_v47 }
 0xe12   : > { %v6640_v29 = vadd.f32 %v6639_v0, %v6311_v23 }
 0xe13   : > { %v6313_v54 = vpop.f32.mrf.mxu0 }
 0xe14   : > { %v7027_v30 = vpack.c.bf16 %v6640_v29, %v5982_v3  ;;  %v6314_v2 = vadd.f32 %v6313_v54, %v13093_v31 }
 0xe15   : > { %v5660_v26 = vpop.f32.mrf.mxu1  ;;  %9210 = vmatmul.msk.bf16.gmra.mxu3 %vm1370_vm1, %v14503_v13 }
 0xe16   : > { %6352 = vmatmul.bf16.gmra.mxu0 %v14502_v17  ;;  %7539 = vst [vmem:[%s10018_s5 + $0x578] sm:$0xff] %v7027_v30  ;;  %9273 = vmatmul.msk.bf16.gmra.mxu2 %vm1370_vm1, %v14501_v49  ;;  %v5661_v50 = vadd.f32 %v5660_v26, %v13091_v6 }
 0xe18   : > { %5699 = vmatmul.bf16.gmra.mxu1 %v14504_v5  ;;  %v5989_v43 = vpop.f32.mrf.mxu3 }
 0xe19   : > { %v6642_v52 = vpop.f32.mrf.mxu2  ;;  %v5990_v59 = vadd.f32 %v5989_v43, %v5661_v50  ;;  %v14509_v43 = vld [vmem:[#allocation38_spill] sm:$0xff] }
 0xe1a   : > { %v6643_v25 = vadd.f32 %v6642_v52, %v6314_v2 }
 0xe1b   : > { %v6315_v7 = vpop.f32.mrf.mxu0 }
 0xe1c   : > { %v7031_v9 = vpack.c.bf16 %v6643_v25, %v5985_v22  ;;  %v6316_v56 = vadd.f32 %v6315_v7, %v13093_v31  ;;  %v14510_v25 = vld [vmem:[#allocation39_spill] sm:$0xff] }
 0xe1d   : > { %v5662_v14 = vpop.f32.mrf.mxu1 }
 0xe1e   : > { %7543 = vst [vmem:[%s10018_s5 + $0x598] sm:$0xff] %v7031_v9  ;;  %v5663_v10 = vadd.f32 %v5662_v14, %v13091_v6 }
 0xe20   : > { %v5991_v62 = vpop.f32.mrf.mxu3 }
 0xe21   : > { %v6644_v40 = vpop.f32.mrf.mxu2  ;;  %v5992_v32 = vadd.f32 %v5991_v62, %v5663_v10 }
 0xe22   : > { %v6645_v4 = vadd.f32 %v6644_v40, %v6316_v56 }
 0xe23   : > { %v6318_v51 = vpop.f32.mrf.mxu0 }
 0xe24   : > { %v7035_v27 = vpack.c.bf16 %v6645_v4, %v5987_v38  ;;  %v6319_v20 = vadd.f32 %v6318_v51, %v13093_v31 }
 0xe25   : > { %v5665_v19 = vpop.f32.mrf.mxu1  ;;  %9211 = vmatmul.msk.bf16.gmra.mxu3 %vm1370_vm1, %v14505_v15 }
 0xe26   : > { %6357 = vmatmul.bf16.gmra.mxu0 %v14504_v5  ;;  %7547 = vst [vmem:[%s10018_s5 + $0x5b8] sm:$0xff] %v7035_v27  ;;  %9274 = vmatmul.msk.bf16.gmra.mxu2 %vm1370_vm1, %v14503_v13  ;;  %v5666_v49 = vadd.f32 %v5665_v19, %v13091_v6 }
 0xe28   : > { %5704 = vmatmul.bf16.gmra.mxu1 %v14506_v18  ;;  %v5994_v21 = vpop.f32.mrf.mxu3 }
 0xe29   : > { %v6647_v36 = vpop.f32.mrf.mxu2  ;;  %v5995_v45 = vadd.f32 %v5994_v21, %v5666_v49  ;;  %v14511_v21 = vld [vmem:[#allocation40_spill] sm:$0xff] }
 0xe2a   : > { %v6648_v24 = vadd.f32 %v6647_v36, %v6319_v20 }
 0xe2b   : > { %v6320_v12 = vpop.f32.mrf.mxu0 }
 0xe2c   : > { %v7039_v60 = vpack.c.bf16 %v6648_v24, %v5990_v59  ;;  %v6321_v16 = vadd.f32 %v6320_v12, %v13093_v31  ;;  %v14512_v24 = vld [vmem:[#allocation41_spill] sm:$0xff] }
 0xe2d   : > { %v5667_v37 = vpop.f32.mrf.mxu1 }
 0xe2e   : > { %7551 = vst [vmem:[%s10018_s5 + $0x5d8] sm:$0xff] %v7039_v60  ;;  %v5668_v3 = vadd.f32 %v5667_v37, %v13091_v6 }
 0xe30   : > { %v5996_v58 = vpop.f32.mrf.mxu3 }
 0xe31   : > { %v6649_v63 = vpop.f32.mrf.mxu2  ;;  %v5997_v30 = vadd.f32 %v5996_v58, %v5668_v3 }
 0xe32   : > { %v6650_v46 = vadd.f32 %v6649_v63, %v6321_v16 }
 0xe33   : > { %v6323_v28 = vpop.f32.mrf.mxu0 }
 0xe34   : > { %v7043_v17 = vpack.c.bf16 %v6650_v46, %v5992_v32  ;;  %v6324_v53 = vadd.f32 %v6323_v28, %v13093_v31 }
 0xe35   : > { %v5670_v1 = vpop.f32.mrf.mxu1  ;;  %9212 = vmatmul.msk.bf16.gmra.mxu3 %vm1370_vm1, %v14507_v57 }
 0xe36   : > { %6362 = vmatmul.bf16.gmra.mxu0 %v14506_v18  ;;  %7555 = vst [vmem:[%s10018_s5 + $0x5f8] sm:$0xff] %v7043_v17  ;;  %9275 = vmatmul.msk.bf16.gmra.mxu2 %vm1370_vm1, %v14505_v15  ;;  %v5671_v13 = vadd.f32 %v5670_v1, %v13091_v6 }
 0xe38   : > { %5709 = vmatmul.bf16.gmra.mxu1 %v14508_v44  ;;  %v5999_v55 = vpop.f32.mrf.mxu3 }
 0xe39   : > { %v6652_v33 = vpop.f32.mrf.mxu2  ;;  %v6000_v7 = vadd.f32 %v5999_v55, %v5671_v13  ;;  %v14513_v55 = vld [vmem:[#allocation42_spill] sm:$0xff] }
 0xe3a   : > { %v6653_v41 = vadd.f32 %v6652_v33, %v6324_v53 }
 0xe3b   : > { %v6325_v23 = vpop.f32.mrf.mxu0 }
 0xe3c   : > { %v7047_v0 = vpack.c.bf16 %v6653_v41, %v5995_v45  ;;  %v6326_v29 = vadd.f32 %v6325_v23, %v13093_v31  ;;  %v14514_v41 = vld [vmem:[#allocation43_spill] sm:$0xff] }
 0xe3d   : > { %v5672_v61 = vpop.f32.mrf.mxu1 }
 0xe3e   : > { %7559 = vst [vmem:[%s10018_s5 + $0x618] sm:$0xff] %v7047_v0  ;;  %v5673_v38 = vadd.f32 %v5672_v61, %v13091_v6 }
 0xe40   : > { %v6001_v35 = vpop.f32.mrf.mxu3 }
 0xe41   : > { %v6654_v54 = vpop.f32.mrf.mxu2  ;;  %v6002_v27 = vadd.f32 %v6001_v35, %v5673_v38 }
 0xe42   : > { %v6655_v26 = vadd.f32 %v6654_v54, %v6326_v29 }
 0xe43   : > { %v6328_v2 = vpop.f32.mrf.mxu0 }
 0xe44   : > { %v7051_v5 = vpack.c.bf16 %v6655_v26, %v5997_v30  ;;  %v6329_v52 = vadd.f32 %v6328_v2, %v13093_v31 }
 0xe45   : > { %v5675_v22 = vpop.f32.mrf.mxu1  ;;  %9213 = vmatmul.msk.bf16.gmra.mxu3 %vm1370_vm1, %v14509_v43 }
 0xe46   : > { %6367 = vmatmul.bf16.gmra.mxu0 %v14508_v44  ;;  %7563 = vst [vmem:[%s10018_s5 + $0x638] sm:$0xff] %v7051_v5  ;;  %9276 = vmatmul.msk.bf16.gmra.mxu2 %vm1370_vm1, %v14507_v57  ;;  %v5676_v15 = vadd.f32 %v5675_v22, %v13091_v6 }
 0xe48   : > { %5714 = vmatmul.bf16.gmra.mxu1 %v14510_v25  ;;  %v6004_v14 = vpop.f32.mrf.mxu3 }
 0xe49   : > { %v6657_v9 = vpop.f32.mrf.mxu2  ;;  %v6005_v12 = vadd.f32 %v6004_v14, %v5676_v15  ;;  %v14515_v14 = vld [vmem:[#allocation44_spill] sm:$0xff] }
 0xe4a   : > { %v6658_v47 = vadd.f32 %v6657_v9, %v6329_v52 }
 0xe4b   : > { %v6330_v56 = vpop.f32.mrf.mxu0 }
 0xe4c   : > { %v7055_v40 = vpack.c.bf16 %v6658_v47, %v6000_v7  ;;  %v6331_v4 = vadd.f32 %v6330_v56, %v13093_v31  ;;  %v14516_v47 = vld [vmem:[#allocation45_spill] sm:$0xff] }
 0xe4d   : > { %v5677_v62 = vpop.f32.mrf.mxu1 }
 0xe4e   : > { %7567 = vst [vmem:[%s10018_s5 + $0x658] sm:$0xff] %v7055_v40  ;;  %v5678_v32 = vadd.f32 %v5677_v62, %v13091_v6 }
 0xe50   : > { %v6006_v50 = vpop.f32.mrf.mxu3 }
 0xe51   : > { %v6659_v51 = vpop.f32.mrf.mxu2  ;;  %v6007_v17 = vadd.f32 %v6006_v50, %v5678_v32 }
 0xe52   : > { %v6660_v19 = vadd.f32 %v6659_v51, %v6331_v4 }
 0xe53   : > { %v6333_v20 = vpop.f32.mrf.mxu0 }
 0xe54   : > { %v7059_v18 = vpack.c.bf16 %v6660_v19, %v6002_v27  ;;  %v6334_v36 = vadd.f32 %v6333_v20, %v13093_v31 }
 0xe55   : > { %v5680_v59 = vpop.f32.mrf.mxu1  ;;  %9214 = vmatmul.msk.bf16.gmra.mxu3 %vm1370_vm1, %v14511_v21 }
 0xe56   : > { %6372 = vmatmul.bf16.gmra.mxu0 %v14510_v25  ;;  %7571 = vst [vmem:[%s10018_s5 + $0x678] sm:$0xff] %v7059_v18  ;;  %9277 = vmatmul.msk.bf16.gmra.mxu2 %vm1370_vm1, %v14509_v43  ;;  %v5681_v57 = vadd.f32 %v5680_v59, %v13091_v6 }
 0xe58   : > { %5719 = vmatmul.bf16.gmra.mxu1 %v14512_v24  ;;  %v6009_v37 = vpop.f32.mrf.mxu3 }
 0xe59   : > { %v6662_v60 = vpop.f32.mrf.mxu2  ;;  %v6010_v23 = vadd.f32 %v6009_v37, %v5681_v57  ;;  %v14517_v37 = vld [vmem:[#allocation46_spill] sm:$0xff] }
 0xe5a   : > { %v6663_v10 = vadd.f32 %v6662_v60, %v6334_v36 }
 0xe5b   : > { %v6335_v16 = vpop.f32.mrf.mxu0 }
 0xe5c   : > { %v7063_v63 = vpack.c.bf16 %v6663_v10, %v6005_v12  ;;  %v6336_v46 = vadd.f32 %v6335_v16, %v13093_v31  ;;  %v14518_v10 = vld [vmem:[#allocation47_spill] sm:$0xff] }
 0xe5d   : > { %v5682_v58 = vpop.f32.mrf.mxu1 }
 0xe5e   : > { %7575 = vst [vmem:[%s10018_s5 + $0x698] sm:$0xff] %v7063_v63  ;;  %v5683_v30 = vadd.f32 %v5682_v58, %v13091_v6 }
 0xe60   : > { %v6011_v49 = vpop.f32.mrf.mxu3 }
 0xe61   : > { %v6664_v28 = vpop.f32.mrf.mxu2  ;;  %v6012_v5 = vadd.f32 %v6011_v49, %v5683_v30 }
 0xe62   : > { %v6665_v1 = vadd.f32 %v6664_v28, %v6336_v46 }
 0xe63   : > { %v6338_v53 = vpop.f32.mrf.mxu0 }
 0xe64   : > { %v7067_v44 = vpack.c.bf16 %v6665_v1, %v6007_v17  ;;  %v6339_v33 = vadd.f32 %v6338_v53, %v13093_v31 }
 0xe65   : > { %v5685_v45 = vpop.f32.mrf.mxu1  ;;  %9215 = vmatmul.msk.bf16.gmra.mxu3 %vm1370_vm1, %v14513_v55 }
 0xe66   : > { %6377 = vmatmul.bf16.gmra.mxu0 %v14512_v24  ;;  %7579 = vst [vmem:[%s10018_s5 + $0x6b8] sm:$0xff] %v7067_v44  ;;  %9278 = vmatmul.msk.bf16.gmra.mxu2 %vm1370_vm1, %v14511_v21  ;;  %v5686_v43 = vadd.f32 %v5685_v45, %v13091_v6 }
 0xe68   : > { %5724 = vmatmul.bf16.gmra.mxu1 %v14514_v41  ;;  %v6014_v61 = vpop.f32.mrf.mxu3 }
 0xe69   : > { %v6667_v0 = vpop.f32.mrf.mxu2  ;;  %v6015_v56 = vadd.f32 %v6014_v61, %v5686_v43  ;;  %v14519_v61 = vld [vmem:[#allocation48_spill] sm:$0xff] }
 0xe6a   : > { %v6668_v3 = vadd.f32 %v6667_v0, %v6339_v33 }
 0xe6b   : > { %v6340_v29 = vpop.f32.mrf.mxu0 }
 0xe6c   : > { %v7071_v54 = vpack.c.bf16 %v6668_v3, %v6010_v23  ;;  %v6341_v26 = vadd.f32 %v6340_v29, %v13093_v31  ;;  %v14520_v3 = vld [vmem:[#allocation49_spill] sm:$0xff] }
 0xe6d   : > { %v5687_v35 = vpop.f32.mrf.mxu1 }
 0xe6e   : > { %7583 = vst [vmem:[%s10018_s5 + $0x6d8] sm:$0xff] %v7071_v54  ;;  %v5688_v27 = vadd.f32 %v5687_v35, %v13091_v6 }
 0xe70   : > { %v6016_v13 = vpop.f32.mrf.mxu3 }
 0xe71   : > { %v6669_v2 = vpop.f32.mrf.mxu2  ;;  %v6017_v18 = vadd.f32 %v6016_v13, %v5688_v27 }
 0xe72   : > { %v6670_v22 = vadd.f32 %v6669_v2, %v6341_v26 }
 0xe73   : > { %v6343_v52 = vpop.f32.mrf.mxu0 }
 0xe74   : > { %v7075_v25 = vpack.c.bf16 %v6670_v22, %v6012_v5  ;;  %v6344_v9 = vadd.f32 %v6343_v52, %v13093_v31 }
 0xe75   : > { %v5690_v7 = vpop.f32.mrf.mxu1  ;;  %9216 = vmatmul.msk.bf16.gmra.mxu3 %vm1370_vm1, %v14515_v14 }
 0xe76   : > { %6382 = vmatmul.bf16.gmra.mxu0 %v14514_v41  ;;  %7587 = vst [vmem:[%s10018_s5 + $0x6f8] sm:$0xff] %v7075_v25  ;;  %9279 = vmatmul.msk.bf16.gmra.mxu2 %vm1370_vm1, %v14513_v55  ;;  %v5691_v21 = vadd.f32 %v5690_v7, %v13091_v6 }
 0xe78   : > { %5729 = vmatmul.bf16.gmra.mxu1 %v14516_v47  ;;  %v6019_v62 = vpop.f32.mrf.mxu3 }
 0xe79   : > { %v6672_v40 = vpop.f32.mrf.mxu2  ;;  %v6020_v16 = vadd.f32 %v6019_v62, %v5691_v21  ;;  %v14521_v62 = vld [vmem:[#allocation50_spill] sm:$0xff] }
 0xe7a   : > { %v6673_v38 = vadd.f32 %v6672_v40, %v6344_v9 }
 0xe7b   : > { %v6345_v4 = vpop.f32.mrf.mxu0 }
 0xe7c   : > { %v7079_v51 = vpack.c.bf16 %v6673_v38, %v6015_v56  ;;  %v6346_v19 = vadd.f32 %v6345_v4, %v13093_v31  ;;  %v14522_v38 = vld [vmem:[#allocation51_spill] sm:$0xff] }
 0xe7d   : > { %v5692_v50 = vpop.f32.mrf.mxu1 }
 0xe7e   : > { %7591 = vst [vmem:[%s10018_s5 + $0x718] sm:$0xff] %v7079_v51  ;;  %v5693_v17 = vadd.f32 %v5692_v50, %v13091_v6 }
 0xe80   : > { %v6021_v15 = vpop.f32.mrf.mxu3 }
 0xe81   : > { %v6674_v20 = vpop.f32.mrf.mxu2  ;;  %v6022_v44 = vadd.f32 %v6021_v15, %v5693_v17 }
 0xe82   : > { %v6675_v59 = vadd.f32 %v6674_v20, %v6346_v19 }
 0xe83   : > { %v6348_v36 = vpop.f32.mrf.mxu0 }
 0xe84   : > { %v7083_v24 = vpack.c.bf16 %v6675_v59, %v6017_v18  ;;  %v6349_v60 = vadd.f32 %v6348_v36, %v13093_v31 }
 0xe85   : > { %v5695_v12 = vpop.f32.mrf.mxu1  ;;  %9217 = vmatmul.msk.bf16.gmra.mxu3 %vm1370_vm1, %v14517_v37 }
 0xe86   : > { %6387 = vmatmul.bf16.gmra.mxu0 %v14516_v47  ;;  %7595 = vst [vmem:[%s10018_s5 + $0x738] sm:$0xff] %v7083_v24  ;;  %9280 = vmatmul.msk.bf16.gmra.mxu2 %vm1370_vm1, %v14515_v14  ;;  %v5696_v55 = vadd.f32 %v5695_v12, %v13091_v6 }
 0xe88   : > { %5734 = vmatmul.bf16.gmra.mxu1 %v14518_v10  ;;  %v6024_v58 = vpop.f32.mrf.mxu3 }
 0xe89   : > { %v6677_v63 = vpop.f32.mrf.mxu2  ;;  %v6025_v29 = vadd.f32 %v6024_v58, %v5696_v55  ;;  %v14523_v58 = vld [vmem:[#allocation52_spill] sm:$0xff] }
 0xe8a   : > { %v6678_v32 = vadd.f32 %v6677_v63, %v6349_v60 }
 0xe8b   : > { %v6350_v46 = vpop.f32.mrf.mxu0 }
 0xe8c   : > { %v7087_v28 = vpack.c.bf16 %v6678_v32, %v6020_v16  ;;  %v6351_v1 = vadd.f32 %v6350_v46, %v13093_v31  ;;  %v14524_v32 = vld [vmem:[#allocation53_spill] sm:$0xff] }
 0xe8d   : > { %v5697_v49 = vpop.f32.mrf.mxu1 }
 0xe8e   : > { %7599 = vst [vmem:[%s10018_s5 + $0x758] sm:$0xff] %v7087_v28  ;;  %v5698_v5 = vadd.f32 %v5697_v49, %v13091_v6 }
 0xe90   : > { %v6026_v57 = vpop.f32.mrf.mxu3 }
 0xe91   : > { %v6679_v53 = vpop.f32.mrf.mxu2  ;;  %v6027_v25 = vadd.f32 %v6026_v57, %v5698_v5 }
 0xe92   : > { %v6680_v45 = vadd.f32 %v6679_v53, %v6351_v1 }
 0xe93   : > { %v6353_v33 = vpop.f32.mrf.mxu0 }
 0xe94   : > { %v7091_v41 = vpack.c.bf16 %v6680_v45, %v6022_v44  ;;  %v6354_v0 = vadd.f32 %v6353_v33, %v13093_v31 }
 0xe95   : > { %v5700_v23 = vpop.f32.mrf.mxu1  ;;  %9218 = vmatmul.msk.bf16.gmra.mxu3 %vm1370_vm1, %v14519_v61 }
 0xe96   : > { %6392 = vmatmul.bf16.gmra.mxu0 %v14518_v10  ;;  %7603 = vst [vmem:[%s10018_s5 + $0x778] sm:$0xff] %v7091_v41  ;;  %9281 = vmatmul.msk.bf16.gmra.mxu2 %vm1370_vm1, %v14517_v37  ;;  %v5701_v14 = vadd.f32 %v5700_v23, %v13091_v6 }
 0xe98   : > { %5739 = vmatmul.bf16.gmra.mxu1 %v14520_v3  ;;  %v6029_v35 = vpop.f32.mrf.mxu3 }
 0xe99   : > { %v6682_v54 = vpop.f32.mrf.mxu2  ;;  %v6030_v4 = vadd.f32 %v6029_v35, %v5701_v14  ;;  %v14525_v35 = vld [vmem:[#allocation54_spill] sm:$0xff] }
 0xe9a   : > { %v6683_v30 = vadd.f32 %v6682_v54, %v6354_v0 }
 0xe9b   : > { %v6355_v26 = vpop.f32.mrf.mxu0 }
 0xe9c   : > { %v7095_v2 = vpack.c.bf16 %v6683_v30, %v6025_v29  ;;  %v6356_v22 = vadd.f32 %v6355_v26, %v13093_v31  ;;  %v14526_v30 = vld [vmem:[#allocation55_spill] sm:$0xff] }
 0xe9d   : > { %v5702_v13 = vpop.f32.mrf.mxu1 }
 0xe9e   : > { %7607 = vst [vmem:[%s10018_s5 + $0x798] sm:$0xff] %v7095_v2  ;;  %v5703_v18 = vadd.f32 %v5702_v13, %v13091_v6 }
 0xea0   : > { %v6031_v43 = vpop.f32.mrf.mxu3 }
 0xea1   : > { %v6684_v52 = vpop.f32.mrf.mxu2  ;;  %v6032_v24 = vadd.f32 %v6031_v43, %v5703_v18 }
 0xea2   : > { %v6685_v7 = vadd.f32 %v6684_v52, %v6356_v22 }
 0xea3   : > { %v6358_v9 = vpop.f32.mrf.mxu0 }
 0xea4   : > { %v7099_v47 = vpack.c.bf16 %v6685_v7, %v6027_v25  ;;  %v6359_v40 = vadd.f32 %v6358_v9, %v13093_v31 }
 0xea5   : > { %v5705_v56 = vpop.f32.mrf.mxu1  ;;  %9219 = vmatmul.msk.bf16.gmra.mxu3 %vm1370_vm1, %v14521_v62 }
 0xea6   : > { %6397 = vmatmul.bf16.gmra.mxu0 %v14520_v3  ;;  %7611 = vst [vmem:[%s10018_s5 + $0x7b8] sm:$0xff] %v7099_v47  ;;  %9282 = vmatmul.msk.bf16.gmra.mxu2 %vm1370_vm1, %v14519_v61  ;;  %v5706_v37 = vadd.f32 %v5705_v56, %v13091_v6 }
 0xea8   : > { %5744 = vmatmul.bf16.gmra.mxu1 %v14522_v38  ;;  %v6034_v50 = vpop.f32.mrf.mxu3 }
 0xea9   : > { %v6687_v51 = vpop.f32.mrf.mxu2  ;;  %v6035_v46 = vadd.f32 %v6034_v50, %v5706_v37  ;;  %v14527_v50 = vld [vmem:[#allocation56_spill] sm:$0xff] }
 0xeaa   : > { %v6688_v27 = vadd.f32 %v6687_v51, %v6359_v40 }
 0xeab   : > { %v6360_v19 = vpop.f32.mrf.mxu0 }
 0xeac   : > { %v7103_v20 = vpack.c.bf16 %v6688_v27, %v6030_v4  ;;  %v6361_v59 = vadd.f32 %v6360_v19, %v13093_v31  ;;  %v14528_v27 = vld [vmem:[#allocation57_spill] sm:$0xff] }
 0xead   : > { %v5707_v15 = vpop.f32.mrf.mxu1 }
 0xeae   : > { %7615 = vst [vmem:[%s10018_s5 + $0x7d8] sm:$0xff] %v7103_v20  ;;  %v5708_v44 = vadd.f32 %v5707_v15, %v13091_v6 }
 0xeb0   : > { %v6036_v21 = vpop.f32.mrf.mxu3 }
 0xeb1   : > { %v6689_v36 = vpop.f32.mrf.mxu2  ;;  %v6037_v41 = vadd.f32 %v6036_v21, %v5708_v44 }
 0xeb2   : > { %v6690_v12 = vadd.f32 %v6689_v36, %v6361_v59 }
 0xeb3   : > { %v6363_v60 = vpop.f32.mrf.mxu0 }
 0xeb4   : > { %v7107_v10 = vpack.c.bf16 %v6690_v12, %v6032_v24  ;;  %v6364_v63 = vadd.f32 %v6363_v60, %v13093_v31 }
 0xeb5   : > { %v5710_v16 = vpop.f32.mrf.mxu1  ;;  %9220 = vmatmul.msk.bf16.gmra.mxu3 %vm1370_vm1, %v14523_v58 }
 0xeb6   : > { %6402 = vmatmul.bf16.gmra.mxu0 %v14522_v38  ;;  %7619 = vst [vmem:[%s10018_s5 + $0x7f8] sm:$0xff] %v7107_v10  ;;  %9283 = vmatmul.msk.bf16.gmra.mxu2 %vm1370_vm1, %v14521_v62  ;;  %v5711_v61 = vadd.f32 %v5710_v16, %v13091_v6 }
 0xeb8   : > { %5749 = vmatmul.bf16.gmra.mxu1 %v14524_v32  ;;  %v6039_v49 = vpop.f32.mrf.mxu3 }
 0xeb9   : > { %v6692_v28 = vpop.f32.mrf.mxu2  ;;  %v6040_v26 = vadd.f32 %v6039_v49, %v5711_v61  ;;  %v14529_v49 = vld [vmem:[#allocation58_spill] sm:$0xff] }
 0xeba   : > { %v6693_v17 = vadd.f32 %v6692_v28, %v6364_v63 }
 0xebb   : > { %v6365_v1 = vpop.f32.mrf.mxu0 }
 0xebc   : > { %v7111_v53 = vpack.c.bf16 %v6693_v17, %v6035_v46  ;;  %v6366_v45 = vadd.f32 %v6365_v1, %v13093_v31  ;;  %v14530_v17 = vld [vmem:[#allocation59_spill] sm:$0xff] }
 0xebd   : > { %v5712_v57 = vpop.f32.mrf.mxu1 }
 0xebe   : > { %7623 = vst [vmem:[%s10018_s5 + $0x818] sm:$0xff] %v7111_v53  ;;  %v5713_v25 = vadd.f32 %v5712_v57, %v13091_v6 }
 0xec0   : > { %v6041_v55 = vpop.f32.mrf.mxu3 }
 0xec1   : > { %v6694_v33 = vpop.f32.mrf.mxu2  ;;  %v6042_v47 = vadd.f32 %v6041_v55, %v5713_v25 }
 0xec2   : > { %v6695_v23 = vadd.f32 %v6694_v33, %v6366_v45 }
 0xec3   : > { %v6368_v0 = vpop.f32.mrf.mxu0 }
 0xec4   : > { %v7115_v3 = vpack.c.bf16 %v6695_v23, %v6037_v41  ;;  %v6369_v54 = vadd.f32 %v6368_v0, %v13093_v31 }
 0xec5   : > { %v5715_v29 = vpop.f32.mrf.mxu1  ;;  %9221 = vmatmul.msk.bf16.gmra.mxu3 %vm1370_vm1, %v14525_v35 }
 0xec6   : > { %6407 = vmatmul.bf16.gmra.mxu0 %v14524_v32  ;;  %7627 = vst [vmem:[%s10018_s5 + $0x838] sm:$0xff] %v7115_v3  ;;  %9284 = vmatmul.msk.bf16.gmra.mxu2 %vm1370_vm1, %v14523_v58  ;;  %v5716_v62 = vadd.f32 %v5715_v29, %v13091_v6 }
 0xec8   : > { %5754 = vmatmul.bf16.gmra.mxu1 %v14526_v30  ;;  %v6044_v13 = vpop.f32.mrf.mxu3 }
 0xec9   : > { %v6697_v2 = vpop.f32.mrf.mxu2  ;;  %v6045_v19 = vadd.f32 %v6044_v13, %v5716_v62  ;;  %v14531_v13 = vld [vmem:[#allocation60_spill] sm:$0xff] }
 0xeca   : > { %v6698_v5 = vadd.f32 %v6697_v2, %v6369_v54 }
 0xecb   : > { %v6370_v22 = vpop.f32.mrf.mxu0 }
 0xecc   : > { %v7119_v52 = vpack.c.bf16 %v6698_v5, %v6040_v26  ;;  %v6371_v7 = vadd.f32 %v6370_v22, %v13093_v31  ;;  %v14532_v5 = vld [vmem:[#allocation61_spill] sm:$0xff] }
 0xecd   : > { %v5717_v43 = vpop.f32.mrf.mxu1 }
 0xece   : > { %7631 = vst [vmem:[%s10018_s5 + $0x858] sm:$0xff] %v7119_v52  ;;  %v5718_v24 = vadd.f32 %v5717_v43, %v13091_v6 }
 0xed0   : > { %v6046_v14 = vpop.f32.mrf.mxu3 }
 0xed1   : > { %v6699_v9 = vpop.f32.mrf.mxu2  ;;  %v6047_v10 = vadd.f32 %v6046_v14, %v5718_v24 }
 0xed2   : > { %v6700_v56 = vadd.f32 %v6699_v9, %v6371_v7 }
 0xed3   : > { %v6373_v40 = vpop.f32.mrf.mxu0 }
 0xed4   : > { %v7123_v38 = vpack.c.bf16 %v6700_v56, %v6042_v47  ;;  %v6374_v51 = vadd.f32 %v6373_v40, %v13093_v31 }
 0xed5   : > { %v5720_v4 = vpop.f32.mrf.mxu1  ;;  %9222 = vmatmul.msk.bf16.gmra.mxu3 %vm1370_vm1, %v14527_v50 }
 0xed6   : > { %6412 = vmatmul.bf16.gmra.mxu0 %v14526_v30  ;;  %7635 = vst [vmem:[%s10018_s5 + $0x878] sm:$0xff] %v7123_v38  ;;  %9285 = vmatmul.msk.bf16.gmra.mxu2 %vm1370_vm1, %v14525_v35  ;;  %v5721_v58 = vadd.f32 %v5720_v4, %v13091_v6 }
 0xed8   : > { %5759 = vmatmul.bf16.gmra.mxu1 %v14528_v27  ;;  %v6049_v15 = vpop.f32.mrf.mxu3 }
 0xed9   : > { %v6702_v20 = vpop.f32.mrf.mxu2  ;;  %v6050_v1 = vadd.f32 %v6049_v15, %v5721_v58  ;;  %v14533_v15 = vld [vmem:[#allocation62_spill] sm:$0xff] }
 0xeda   : > { %v6703_v18 = vadd.f32 %v6702_v20, %v6374_v51 }
 0xedb   : > { %v6375_v59 = vpop.f32.mrf.mxu0 }
 0xedc   : > { %v7127_v36 = vpack.c.bf16 %v6703_v18, %v6045_v19  ;;  %v6376_v12 = vadd.f32 %v6375_v59, %v13093_v31  ;;  %v14534_v18 = vld [vmem:[#allocation63_spill] sm:$0xff] }
 0xedd   : > { %v5722_v21 = vpop.f32.mrf.mxu1 }
 0xede   : > { %7639 = vst [vmem:[%s10018_s5 + $0x898] sm:$0xff] %v7127_v36  ;;  %v5723_v41 = vadd.f32 %v5722_v21, %v13091_v6 }
 0xee0   : > { %v6051_v37 = vpop.f32.mrf.mxu3 }
 0xee1   : > { %v6704_v60 = vpop.f32.mrf.mxu2  ;;  %v6052_v3 = vadd.f32 %v6051_v37, %v5723_v41 }
 0xee2   : > { %v6705_v16 = vadd.f32 %v6704_v60, %v6376_v12 }
 0xee3   : > { %v6378_v63 = vpop.f32.mrf.mxu0 }
 0xee4   : > { %v7131_v32 = vpack.c.bf16 %v6705_v16, %v6047_v10  ;;  %v6379_v28 = vadd.f32 %v6378_v63, %v13093_v31 }
 0xee5   : > { %v5725_v46 = vpop.f32.mrf.mxu1  ;;  %9223 = vmatmul.msk.bf16.gmra.mxu3 %vm1370_vm1, %v14529_v49 }
 0xee6   : > { %6417 = vmatmul.bf16.gmra.mxu0 %v14528_v27  ;;  %7643 = vst [vmem:[%s10018_s5 + $0x8b8] sm:$0xff] %v7131_v32  ;;  %9286 = vmatmul.msk.bf16.gmra.mxu2 %vm1370_vm1, %v14527_v50  ;;  %v5726_v35 = vadd.f32 %v5725_v46, %v13091_v6 }
 0xee8   : > { %5764 = vmatmul.bf16.gmra.mxu1 %v14530_v17  ;;  %v6054_v57 = vpop.f32.mrf.mxu3 }
 0xee9   : > { %v6707_v53 = vpop.f32.mrf.mxu2  ;;  %v6055_v22 = vadd.f32 %v6054_v57, %v5726_v35  ;;  %v14535_v57 = vld [vmem:[#allocation64_spill] sm:$0xff] }
 0xeea   : > { %v6708_v44 = vadd.f32 %v6707_v53, %v6379_v28 }
 0xeeb   : > { %v6380_v45 = vpop.f32.mrf.mxu0 }
 0xeec   : > { %v7135_v33 = vpack.c.bf16 %v6708_v44, %v6050_v1  ;;  %v6381_v23 = vadd.f32 %v6380_v45, %v13093_v31  ;;  %v14536_v44 = vld [vmem:[#allocation65_spill] sm:$0xff] }
 0xeed   : > { %v5727_v55 = vpop.f32.mrf.mxu1 }
 0xeee   : > { %7647 = vst [vmem:[%s10018_s5 + $0x8d8] sm:$0xff] %v7135_v33  ;;  %v5728_v47 = vadd.f32 %v5727_v55, %v13091_v6 }
 0xef0   : > { %v6056_v61 = vpop.f32.mrf.mxu3 }
 0xef1   : > { %v6709_v0 = vpop.f32.mrf.mxu2  ;;  %v6057_v38 = vadd.f32 %v6056_v61, %v5728_v47 }
 0xef2   : > { %v6710_v29 = vadd.f32 %v6709_v0, %v6381_v23 }
 0xef3   : > { %v6383_v54 = vpop.f32.mrf.mxu0 }
 0xef4   : > { %v7139_v30 = vpack.c.bf16 %v6710_v29, %v6052_v3  ;;  %v6384_v2 = vadd.f32 %v6383_v54, %v13093_v31 }
 0xef5   : > { %v5730_v26 = vpop.f32.mrf.mxu1  ;;  %9224 = vmatmul.msk.bf16.gmra.mxu3 %vm1370_vm1, %v14531_v13 }
 0xef6   : > { %6422 = vmatmul.bf16.gmra.mxu0 %v14530_v17  ;;  %7651 = vst [vmem:[%s10018_s5 + $0x8f8] sm:$0xff] %v7139_v30  ;;  %9287 = vmatmul.msk.bf16.gmra.mxu2 %vm1370_vm1, %v14529_v49  ;;  %v5731_v50 = vadd.f32 %v5730_v26, %v13091_v6 }
 0xef8   : > { %5769 = vmatmul.bf16.gmra.mxu1 %v14532_v5  ;;  %v6059_v43 = vpop.f32.mrf.mxu3 }
 0xef9   : > { %v6712_v52 = vpop.f32.mrf.mxu2  ;;  %v6060_v59 = vadd.f32 %v6059_v43, %v5731_v50  ;;  %v14537_v43 = vld [vmem:[#allocation66_spill] sm:$0xff] }
 0xefa   : > { %v6713_v25 = vadd.f32 %v6712_v52, %v6384_v2 }
 0xefb   : > { %v6385_v7 = vpop.f32.mrf.mxu0 }
 0xefc   : > { %v7143_v9 = vpack.c.bf16 %v6713_v25, %v6055_v22  ;;  %v6386_v56 = vadd.f32 %v6385_v7, %v13093_v31  ;;  %v14538_v25 = vld [vmem:[#allocation67_spill] sm:$0xff] }
 0xefd   : > { %v5732_v14 = vpop.f32.mrf.mxu1 }
 0xefe   : > { %7655 = vst [vmem:[%s10018_s5 + $0x918] sm:$0xff] %v7143_v9  ;;  %v5733_v10 = vadd.f32 %v5732_v14, %v13091_v6 }
 0xf00   : > { %v6061_v62 = vpop.f32.mrf.mxu3 }
 0xf01   : > { %v6714_v40 = vpop.f32.mrf.mxu2  ;;  %v6062_v32 = vadd.f32 %v6061_v62, %v5733_v10 }
 0xf02   : > { %v6715_v4 = vadd.f32 %v6714_v40, %v6386_v56 }
 0xf03   : > { %v6388_v51 = vpop.f32.mrf.mxu0 }
 0xf04   : > { %v7147_v27 = vpack.c.bf16 %v6715_v4, %v6057_v38  ;;  %v6389_v20 = vadd.f32 %v6388_v51, %v13093_v31 }
 0xf05   : > { %v5735_v19 = vpop.f32.mrf.mxu1  ;;  %9225 = vmatmul.msk.bf16.gmra.mxu3 %vm1370_vm1, %v14533_v15 }
 0xf06   : > { %6427 = vmatmul.bf16.gmra.mxu0 %v14532_v5  ;;  %7659 = vst [vmem:[%s10018_s5 + $0x938] sm:$0xff] %v7147_v27  ;;  %9288 = vmatmul.msk.bf16.gmra.mxu2 %vm1370_vm1, %v14531_v13  ;;  %v5736_v49 = vadd.f32 %v5735_v19, %v13091_v6 }
 0xf08   : > { %5774 = vmatmul.bf16.gmra.mxu1 %v14534_v18  ;;  %v6064_v21 = vpop.f32.mrf.mxu3 }
 0xf09   : > { %v6717_v36 = vpop.f32.mrf.mxu2  ;;  %v6065_v45 = vadd.f32 %v6064_v21, %v5736_v49  ;;  %v14539_v21 = vld [vmem:[#allocation68_spill] sm:$0xff] }
 0xf0a   : > { %v6718_v24 = vadd.f32 %v6717_v36, %v6389_v20 }
 0xf0b   : > { %v6390_v12 = vpop.f32.mrf.mxu0 }
 0xf0c   : > { %v7151_v60 = vpack.c.bf16 %v6718_v24, %v6060_v59  ;;  %v6391_v16 = vadd.f32 %v6390_v12, %v13093_v31  ;;  %v14540_v24 = vld [vmem:[#allocation69_spill] sm:$0xff] }
 0xf0d   : > { %v5737_v37 = vpop.f32.mrf.mxu1 }
 0xf0e   : > { %7663 = vst [vmem:[%s10018_s5 + $0x958] sm:$0xff] %v7151_v60  ;;  %v5738_v3 = vadd.f32 %v5737_v37, %v13091_v6 }
 0xf10   : > { %v6066_v58 = vpop.f32.mrf.mxu3 }
 0xf11   : > { %v6719_v63 = vpop.f32.mrf.mxu2  ;;  %v6067_v30 = vadd.f32 %v6066_v58, %v5738_v3 }
 0xf12   : > { %v6720_v46 = vadd.f32 %v6719_v63, %v6391_v16 }
 0xf13   : > { %v6393_v28 = vpop.f32.mrf.mxu0 }
 0xf14   : > { %v7155_v17 = vpack.c.bf16 %v6720_v46, %v6062_v32  ;;  %v6394_v53 = vadd.f32 %v6393_v28, %v13093_v31 }
 0xf15   : > { %v5740_v1 = vpop.f32.mrf.mxu1  ;;  %9226 = vmatmul.msk.bf16.gmra.mxu3 %vm1370_vm1, %v14535_v57 }
 0xf16   : > { %6432 = vmatmul.bf16.gmra.mxu0 %v14534_v18  ;;  %7667 = vst [vmem:[%s10018_s5 + $0x978] sm:$0xff] %v7155_v17  ;;  %9289 = vmatmul.msk.bf16.gmra.mxu2 %vm1370_vm1, %v14533_v15  ;;  %v5741_v13 = vadd.f32 %v5740_v1, %v13091_v6 }
 0xf18   : > { %5779 = vmatmul.bf16.gmra.mxu1 %v14536_v44  ;;  %v6069_v55 = vpop.f32.mrf.mxu3 }
 0xf19   : > { %v6722_v33 = vpop.f32.mrf.mxu2  ;;  %v6070_v7 = vadd.f32 %v6069_v55, %v5741_v13  ;;  %v14541_v55 = vld [vmem:[#allocation70_spill] sm:$0xff] }
 0xf1a   : > { %v6723_v41 = vadd.f32 %v6722_v33, %v6394_v53 }
 0xf1b   : > { %v6395_v23 = vpop.f32.mrf.mxu0 }
 0xf1c   : > { %v7159_v0 = vpack.c.bf16 %v6723_v41, %v6065_v45  ;;  %v6396_v29 = vadd.f32 %v6395_v23, %v13093_v31  ;;  %v14542_v41 = vld [vmem:[#allocation71_spill] sm:$0xff] }
 0xf1d   : > { %v5742_v61 = vpop.f32.mrf.mxu1 }
 0xf1e   : > { %7671 = vst [vmem:[%s10018_s5 + $0x998] sm:$0xff] %v7159_v0  ;;  %v5743_v38 = vadd.f32 %v5742_v61, %v13091_v6 }
 0xf20   : > { %v6071_v35 = vpop.f32.mrf.mxu3 }
 0xf21   : > { %v6724_v54 = vpop.f32.mrf.mxu2  ;;  %v6072_v27 = vadd.f32 %v6071_v35, %v5743_v38 }
 0xf22   : > { %v6725_v26 = vadd.f32 %v6724_v54, %v6396_v29 }
 0xf23   : > { %v6398_v2 = vpop.f32.mrf.mxu0 }
 0xf24   : > { %v7163_v5 = vpack.c.bf16 %v6725_v26, %v6067_v30  ;;  %v6399_v52 = vadd.f32 %v6398_v2, %v13093_v31 }
 0xf25   : > { %v5745_v22 = vpop.f32.mrf.mxu1  ;;  %9227 = vmatmul.msk.bf16.gmra.mxu3 %vm1370_vm1, %v14537_v43 }
 0xf26   : > { %6437 = vmatmul.bf16.gmra.mxu0 %v14536_v44  ;;  %7675 = vst [vmem:[%s10018_s5 + $0x9b8] sm:$0xff] %v7163_v5  ;;  %9290 = vmatmul.msk.bf16.gmra.mxu2 %vm1370_vm1, %v14535_v57  ;;  %v5746_v15 = vadd.f32 %v5745_v22, %v13091_v6 }
 0xf28   : > { %5784 = vmatmul.bf16.gmra.mxu1 %v14538_v25  ;;  %v6074_v14 = vpop.f32.mrf.mxu3 }
 0xf29   : > { %v6727_v9 = vpop.f32.mrf.mxu2  ;;  %v6075_v12 = vadd.f32 %v6074_v14, %v5746_v15  ;;  %v14543_v14 = vld [vmem:[#allocation72_spill] sm:$0xff] }
 0xf2a   : > { %v6728_v47 = vadd.f32 %v6727_v9, %v6399_v52 }
 0xf2b   : > { %v6400_v56 = vpop.f32.mrf.mxu0 }
 0xf2c   : > { %v7167_v40 = vpack.c.bf16 %v6728_v47, %v6070_v7  ;;  %v6401_v4 = vadd.f32 %v6400_v56, %v13093_v31  ;;  %v14544_v47 = vld [vmem:[#allocation73_spill] sm:$0xff] }
 0xf2d   : > { %v5747_v62 = vpop.f32.mrf.mxu1 }
 0xf2e   : > { %7679 = vst [vmem:[%s10018_s5 + $0x9d8] sm:$0xff] %v7167_v40  ;;  %v5748_v32 = vadd.f32 %v5747_v62, %v13091_v6 }
 0xf30   : > { %v6076_v50 = vpop.f32.mrf.mxu3 }
 0xf31   : > { %v6729_v51 = vpop.f32.mrf.mxu2  ;;  %v6077_v17 = vadd.f32 %v6076_v50, %v5748_v32 }
 0xf32   : > { %v6730_v19 = vadd.f32 %v6729_v51, %v6401_v4 }
 0xf33   : > { %v6403_v20 = vpop.f32.mrf.mxu0 }
 0xf34   : > { %v7171_v18 = vpack.c.bf16 %v6730_v19, %v6072_v27  ;;  %v6404_v36 = vadd.f32 %v6403_v20, %v13093_v31 }
 0xf35   : > { %v5750_v59 = vpop.f32.mrf.mxu1  ;;  %9228 = vmatmul.msk.bf16.gmra.mxu3 %vm1370_vm1, %v14539_v21 }
 0xf36   : > { %6442 = vmatmul.bf16.gmra.mxu0 %v14538_v25  ;;  %7683 = vst [vmem:[%s10018_s5 + $0x9f8] sm:$0xff] %v7171_v18  ;;  %9291 = vmatmul.msk.bf16.gmra.mxu2 %vm1370_vm1, %v14537_v43  ;;  %v5751_v57 = vadd.f32 %v5750_v59, %v13091_v6 }
 0xf38   : > { %5789 = vmatmul.bf16.gmra.mxu1 %v14540_v24  ;;  %v6079_v37 = vpop.f32.mrf.mxu3 }
 0xf39   : > { %v6732_v60 = vpop.f32.mrf.mxu2  ;;  %v6080_v23 = vadd.f32 %v6079_v37, %v5751_v57  ;;  %v14545_v37 = vld [vmem:[#allocation74_spill] sm:$0xff] }
 0xf3a   : > { %v6733_v10 = vadd.f32 %v6732_v60, %v6404_v36 }
 0xf3b   : > { %v6405_v16 = vpop.f32.mrf.mxu0 }
 0xf3c   : > { %v7175_v63 = vpack.c.bf16 %v6733_v10, %v6075_v12  ;;  %v6406_v46 = vadd.f32 %v6405_v16, %v13093_v31  ;;  %v14546_v10 = vld [vmem:[#allocation75_spill] sm:$0xff] }
 0xf3d   : > { %v5752_v58 = vpop.f32.mrf.mxu1 }
 0xf3e   : > { %7687 = vst [vmem:[%s10018_s5 + $0xa18] sm:$0xff] %v7175_v63  ;;  %v5753_v30 = vadd.f32 %v5752_v58, %v13091_v6 }
 0xf40   : > { %v6081_v49 = vpop.f32.mrf.mxu3 }
 0xf41   : > { %v6734_v28 = vpop.f32.mrf.mxu2  ;;  %v6082_v5 = vadd.f32 %v6081_v49, %v5753_v30 }
 0xf42   : > { %v6735_v1 = vadd.f32 %v6734_v28, %v6406_v46 }
 0xf43   : > { %v6408_v53 = vpop.f32.mrf.mxu0 }
 0xf44   : > { %v7179_v44 = vpack.c.bf16 %v6735_v1, %v6077_v17  ;;  %v6409_v33 = vadd.f32 %v6408_v53, %v13093_v31 }
 0xf45   : > { %v5755_v45 = vpop.f32.mrf.mxu1  ;;  %9229 = vmatmul.msk.bf16.gmra.mxu3 %vm1370_vm1, %v14541_v55 }
 0xf46   : > { %6447 = vmatmul.bf16.gmra.mxu0 %v14540_v24  ;;  %7691 = vst [vmem:[%s10018_s5 + $0xa38] sm:$0xff] %v7179_v44  ;;  %9292 = vmatmul.msk.bf16.gmra.mxu2 %vm1370_vm1, %v14539_v21  ;;  %v5756_v43 = vadd.f32 %v5755_v45, %v13091_v6 }
 0xf48   : > { %5794 = vmatmul.bf16.gmra.mxu1 %v14542_v41  ;;  %v6084_v61 = vpop.f32.mrf.mxu3 }
 0xf49   : > { %v6737_v0 = vpop.f32.mrf.mxu2  ;;  %v6085_v56 = vadd.f32 %v6084_v61, %v5756_v43  ;;  %v14547_v61 = vld [vmem:[#allocation76_spill] sm:$0xff] }
 0xf4a   : > { %v6738_v3 = vadd.f32 %v6737_v0, %v6409_v33 }
 0xf4b   : > { %v6410_v29 = vpop.f32.mrf.mxu0 }
 0xf4c   : > { %v7183_v54 = vpack.c.bf16 %v6738_v3, %v6080_v23  ;;  %v6411_v26 = vadd.f32 %v6410_v29, %v13093_v31  ;;  %v14548_v3 = vld [vmem:[#allocation77_spill] sm:$0xff] }
 0xf4d   : > { %v5757_v35 = vpop.f32.mrf.mxu1 }
 0xf4e   : > { %7695 = vst [vmem:[%s10018_s5 + $0xa58] sm:$0xff] %v7183_v54  ;;  %v5758_v27 = vadd.f32 %v5757_v35, %v13091_v6 }
 0xf50   : > { %v6086_v13 = vpop.f32.mrf.mxu3 }
 0xf51   : > { %v6739_v2 = vpop.f32.mrf.mxu2  ;;  %v6087_v18 = vadd.f32 %v6086_v13, %v5758_v27 }
 0xf52   : > { %v6740_v22 = vadd.f32 %v6739_v2, %v6411_v26 }
 0xf53   : > { %v6413_v52 = vpop.f32.mrf.mxu0 }
 0xf54   : > { %v7187_v25 = vpack.c.bf16 %v6740_v22, %v6082_v5  ;;  %v6414_v9 = vadd.f32 %v6413_v52, %v13093_v31 }
 0xf55   : > { %v5760_v7 = vpop.f32.mrf.mxu1  ;;  %9230 = vmatmul.msk.bf16.gmra.mxu3 %vm1370_vm1, %v14543_v14 }
 0xf56   : > { %6452 = vmatmul.bf16.gmra.mxu0 %v14542_v41  ;;  %7699 = vst [vmem:[%s10018_s5 + $0xa78] sm:$0xff] %v7187_v25  ;;  %9293 = vmatmul.msk.bf16.gmra.mxu2 %vm1370_vm1, %v14541_v55  ;;  %v5761_v21 = vadd.f32 %v5760_v7, %v13091_v6 }
 0xf58   : > { %5799 = vmatmul.bf16.gmra.mxu1 %v14544_v47  ;;  %v6089_v62 = vpop.f32.mrf.mxu3 }
 0xf59   : > { %v6742_v40 = vpop.f32.mrf.mxu2  ;;  %v6090_v16 = vadd.f32 %v6089_v62, %v5761_v21  ;;  %v14549_v62 = vld [vmem:[#allocation78_spill] sm:$0xff] }
 0xf5a   : > { %v6743_v38 = vadd.f32 %v6742_v40, %v6414_v9 }
 0xf5b   : > { %v6415_v4 = vpop.f32.mrf.mxu0 }
 0xf5c   : > { %v7191_v51 = vpack.c.bf16 %v6743_v38, %v6085_v56  ;;  %v6416_v19 = vadd.f32 %v6415_v4, %v13093_v31  ;;  %v14550_v38 = vld [vmem:[#allocation79_spill] sm:$0xff] }
 0xf5d   : > { %v5762_v50 = vpop.f32.mrf.mxu1 }
 0xf5e   : > { %7703 = vst [vmem:[%s10018_s5 + $0xa98] sm:$0xff] %v7191_v51  ;;  %v5763_v17 = vadd.f32 %v5762_v50, %v13091_v6 }
 0xf60   : > { %v6091_v15 = vpop.f32.mrf.mxu3 }
 0xf61   : > { %v6744_v20 = vpop.f32.mrf.mxu2  ;;  %v6092_v44 = vadd.f32 %v6091_v15, %v5763_v17 }
 0xf62   : > { %v6745_v59 = vadd.f32 %v6744_v20, %v6416_v19 }
 0xf63   : > { %v6418_v36 = vpop.f32.mrf.mxu0 }
 0xf64   : > { %v7195_v24 = vpack.c.bf16 %v6745_v59, %v6087_v18  ;;  %v6419_v60 = vadd.f32 %v6418_v36, %v13093_v31 }
 0xf65   : > { %v5765_v12 = vpop.f32.mrf.mxu1  ;;  %9231 = vmatmul.msk.bf16.gmra.mxu3 %vm1370_vm1, %v14545_v37 }
 0xf66   : > { %6457 = vmatmul.bf16.gmra.mxu0 %v14544_v47  ;;  %7707 = vst [vmem:[%s10018_s5 + $0xab8] sm:$0xff] %v7195_v24  ;;  %9294 = vmatmul.msk.bf16.gmra.mxu2 %vm1370_vm1, %v14543_v14  ;;  %v5766_v55 = vadd.f32 %v5765_v12, %v13091_v6 }
 0xf68   : > { %5804 = vmatmul.bf16.gmra.mxu1 %v14546_v10  ;;  %v6094_v58 = vpop.f32.mrf.mxu3 }
 0xf69   : > { %v6747_v63 = vpop.f32.mrf.mxu2  ;;  %v6095_v29 = vadd.f32 %v6094_v58, %v5766_v55  ;;  %v14551_v58 = vld [vmem:[#allocation80_spill] sm:$0xff] }
 0xf6a   : > { %v6748_v32 = vadd.f32 %v6747_v63, %v6419_v60 }
 0xf6b   : > { %v6420_v46 = vpop.f32.mrf.mxu0 }
 0xf6c   : > { %v7199_v28 = vpack.c.bf16 %v6748_v32, %v6090_v16  ;;  %v6421_v1 = vadd.f32 %v6420_v46, %v13093_v31  ;;  %v14552_v32 = vld [vmem:[#allocation81_spill] sm:$0xff] }
 0xf6d   : > { %v5767_v49 = vpop.f32.mrf.mxu1 }
 0xf6e   : > { %7711 = vst [vmem:[%s10018_s5 + $0xad8] sm:$0xff] %v7199_v28  ;;  %v5768_v5 = vadd.f32 %v5767_v49, %v13091_v6 }
 0xf70   : > { %v6096_v57 = vpop.f32.mrf.mxu3 }
 0xf71   : > { %v6749_v53 = vpop.f32.mrf.mxu2  ;;  %v6097_v25 = vadd.f32 %v6096_v57, %v5768_v5 }
 0xf72   : > { %v6750_v45 = vadd.f32 %v6749_v53, %v6421_v1 }
 0xf73   : > { %v6423_v33 = vpop.f32.mrf.mxu0 }
 0xf74   : > { %v7203_v41 = vpack.c.bf16 %v6750_v45, %v6092_v44  ;;  %v6424_v0 = vadd.f32 %v6423_v33, %v13093_v31 }
 0xf75   : > { %v5770_v23 = vpop.f32.mrf.mxu1  ;;  %9232 = vmatmul.msk.bf16.gmra.mxu3 %vm1370_vm1, %v14547_v61 }
 0xf76   : > { %6462 = vmatmul.bf16.gmra.mxu0 %v14546_v10  ;;  %7715 = vst [vmem:[%s10018_s5 + $0xaf8] sm:$0xff] %v7203_v41  ;;  %9295 = vmatmul.msk.bf16.gmra.mxu2 %vm1370_vm1, %v14545_v37  ;;  %v5771_v14 = vadd.f32 %v5770_v23, %v13091_v6 }
 0xf78   : > { %5809 = vmatmul.bf16.gmra.mxu1 %v14548_v3  ;;  %v6099_v35 = vpop.f32.mrf.mxu3 }
 0xf79   : > { %v6752_v54 = vpop.f32.mrf.mxu2  ;;  %v6100_v4 = vadd.f32 %v6099_v35, %v5771_v14  ;;  %v14553_v35 = vld [vmem:[#allocation82_spill] sm:$0xff] }
 0xf7a   : > { %v6753_v30 = vadd.f32 %v6752_v54, %v6424_v0 }
 0xf7b   : > { %v6425_v26 = vpop.f32.mrf.mxu0 }
 0xf7c   : > { %v7207_v2 = vpack.c.bf16 %v6753_v30, %v6095_v29  ;;  %v6426_v22 = vadd.f32 %v6425_v26, %v13093_v31  ;;  %v14554_v30 = vld [vmem:[#allocation83_spill] sm:$0xff] }
 0xf7d   : > { %v5772_v13 = vpop.f32.mrf.mxu1 }
 0xf7e   : > { %7719 = vst [vmem:[%s10018_s5 + $0xb18] sm:$0xff] %v7207_v2  ;;  %v5773_v18 = vadd.f32 %v5772_v13, %v13091_v6 }
 0xf80   : > { %v6101_v43 = vpop.f32.mrf.mxu3 }
 0xf81   : > { %v6754_v52 = vpop.f32.mrf.mxu2  ;;  %v6102_v24 = vadd.f32 %v6101_v43, %v5773_v18 }
 0xf82   : > { %v6755_v7 = vadd.f32 %v6754_v52, %v6426_v22 }
 0xf83   : > { %v6428_v9 = vpop.f32.mrf.mxu0 }
 0xf84   : > { %v7211_v47 = vpack.c.bf16 %v6755_v7, %v6097_v25  ;;  %v6429_v40 = vadd.f32 %v6428_v9, %v13093_v31 }
 0xf85   : > { %v5775_v56 = vpop.f32.mrf.mxu1  ;;  %9233 = vmatmul.msk.bf16.gmra.mxu3 %vm1370_vm1, %v14549_v62 }
 0xf86   : > { %6467 = vmatmul.bf16.gmra.mxu0 %v14548_v3  ;;  %7723 = vst [vmem:[%s10018_s5 + $0xb38] sm:$0xff] %v7211_v47  ;;  %9296 = vmatmul.msk.bf16.gmra.mxu2 %vm1370_vm1, %v14547_v61  ;;  %v5776_v37 = vadd.f32 %v5775_v56, %v13091_v6 }
 0xf88   : > { %5814 = vmatmul.bf16.gmra.mxu1 %v14550_v38  ;;  %v6104_v50 = vpop.f32.mrf.mxu3 }
 0xf89   : > { %v6757_v51 = vpop.f32.mrf.mxu2  ;;  %v6105_v46 = vadd.f32 %v6104_v50, %v5776_v37  ;;  %v14555_v50 = vld [vmem:[#allocation84_spill] sm:$0xff] }
 0xf8a   : > { %v6758_v27 = vadd.f32 %v6757_v51, %v6429_v40 }
 0xf8b   : > { %v6430_v19 = vpop.f32.mrf.mxu0 }
 0xf8c   : > { %v7215_v20 = vpack.c.bf16 %v6758_v27, %v6100_v4  ;;  %v6431_v59 = vadd.f32 %v6430_v19, %v13093_v31  ;;  %v14556_v27 = vld [vmem:[#allocation85_spill] sm:$0xff] }
 0xf8d   : > { %v5777_v15 = vpop.f32.mrf.mxu1 }
 0xf8e   : > { %7727 = vst [vmem:[%s10018_s5 + $0xb58] sm:$0xff] %v7215_v20  ;;  %v5778_v44 = vadd.f32 %v5777_v15, %v13091_v6 }
 0xf90   : > { %v6106_v21 = vpop.f32.mrf.mxu3 }
 0xf91   : > { %v6759_v36 = vpop.f32.mrf.mxu2  ;;  %v6107_v41 = vadd.f32 %v6106_v21, %v5778_v44 }
 0xf92   : > { %v6760_v12 = vadd.f32 %v6759_v36, %v6431_v59 }
 0xf93   : > { %v6433_v60 = vpop.f32.mrf.mxu0 }
 0xf94   : > { %v7219_v10 = vpack.c.bf16 %v6760_v12, %v6102_v24  ;;  %v6434_v63 = vadd.f32 %v6433_v60, %v13093_v31 }
 0xf95   : > { %v5780_v16 = vpop.f32.mrf.mxu1  ;;  %9234 = vmatmul.msk.bf16.gmra.mxu3 %vm1370_vm1, %v14551_v58 }
 0xf96   : > { %6472 = vmatmul.bf16.gmra.mxu0 %v14550_v38  ;;  %7731 = vst [vmem:[%s10018_s5 + $0xb78] sm:$0xff] %v7219_v10  ;;  %9297 = vmatmul.msk.bf16.gmra.mxu2 %vm1370_vm1, %v14549_v62  ;;  %v5781_v61 = vadd.f32 %v5780_v16, %v13091_v6 }
 0xf98   : > { %5819 = vmatmul.bf16.gmra.mxu1 %v14552_v32  ;;  %v6109_v49 = vpop.f32.mrf.mxu3 }
 0xf99   : > { %v6762_v28 = vpop.f32.mrf.mxu2  ;;  %v6110_v26 = vadd.f32 %v6109_v49, %v5781_v61  ;;  %v14557_v49 = vld [vmem:[#allocation86_spill] sm:$0xff] }
 0xf9a   : > { %v6763_v17 = vadd.f32 %v6762_v28, %v6434_v63 }
 0xf9b   : > { %v6435_v1 = vpop.f32.mrf.mxu0 }
 0xf9c   : > { %v7223_v53 = vpack.c.bf16 %v6763_v17, %v6105_v46  ;;  %v6436_v45 = vadd.f32 %v6435_v1, %v13093_v31  ;;  %v14558_v17 = vld [vmem:[#allocation87_spill] sm:$0xff] }
 0xf9d   : > { %v5782_v57 = vpop.f32.mrf.mxu1 }
 0xf9e   : > { %7735 = vst [vmem:[%s10018_s5 + $0xb98] sm:$0xff] %v7223_v53  ;;  %v5783_v25 = vadd.f32 %v5782_v57, %v13091_v6 }
 0xfa0   : > { %v6111_v55 = vpop.f32.mrf.mxu3 }
 0xfa1   : > { %v6764_v33 = vpop.f32.mrf.mxu2  ;;  %v6112_v47 = vadd.f32 %v6111_v55, %v5783_v25 }
 0xfa2   : > { %v6765_v23 = vadd.f32 %v6764_v33, %v6436_v45 }
 0xfa3   : > { %v6438_v0 = vpop.f32.mrf.mxu0 }
 0xfa4   : > { %v7227_v3 = vpack.c.bf16 %v6765_v23, %v6107_v41  ;;  %v6439_v54 = vadd.f32 %v6438_v0, %v13093_v31 }
 0xfa5   : > { %v5785_v29 = vpop.f32.mrf.mxu1  ;;  %9235 = vmatmul.msk.bf16.gmra.mxu3 %vm1370_vm1, %v14553_v35 }
 0xfa6   : > { %6477 = vmatmul.bf16.gmra.mxu0 %v14552_v32  ;;  %7739 = vst [vmem:[%s10018_s5 + $0xbb8] sm:$0xff] %v7227_v3  ;;  %9298 = vmatmul.msk.bf16.gmra.mxu2 %vm1370_vm1, %v14551_v58  ;;  %v5786_v62 = vadd.f32 %v5785_v29, %v13091_v6 }
 0xfa8   : > { %5824 = vmatmul.bf16.gmra.mxu1 %v14554_v30  ;;  %v6114_v13 = vpop.f32.mrf.mxu3 }
 0xfa9   : > { %v6767_v2 = vpop.f32.mrf.mxu2  ;;  %v6115_v19 = vadd.f32 %v6114_v13, %v5786_v62  ;;  %v14559_v13 = vld [vmem:[#allocation88_spill] sm:$0xff] }
 0xfaa   : > { %v6768_v5 = vadd.f32 %v6767_v2, %v6439_v54 }
 0xfab   : > { %v6440_v22 = vpop.f32.mrf.mxu0 }
 0xfac   : > { %v7231_v52 = vpack.c.bf16 %v6768_v5, %v6110_v26  ;;  %v6441_v7 = vadd.f32 %v6440_v22, %v13093_v31  ;;  %v14560_v5 = vld [vmem:[#allocation89_spill] sm:$0xff] }
 0xfad   : > { %v5787_v43 = vpop.f32.mrf.mxu1 }
 0xfae   : > { %7743 = vst [vmem:[%s10018_s5 + $0xbd8] sm:$0xff] %v7231_v52  ;;  %v5788_v24 = vadd.f32 %v5787_v43, %v13091_v6 }
 0xfb0   : > { %v6116_v14 = vpop.f32.mrf.mxu3 }
 0xfb1   : > { %v6769_v9 = vpop.f32.mrf.mxu2  ;;  %v6117_v10 = vadd.f32 %v6116_v14, %v5788_v24 }
 0xfb2   : > { %v6770_v56 = vadd.f32 %v6769_v9, %v6441_v7 }
 0xfb3   : > { %v6443_v40 = vpop.f32.mrf.mxu0 }
 0xfb4   : > { %v7235_v38 = vpack.c.bf16 %v6770_v56, %v6112_v47  ;;  %v6444_v51 = vadd.f32 %v6443_v40, %v13093_v31 }
 0xfb5   : > { %v5790_v4 = vpop.f32.mrf.mxu1  ;;  %9236 = vmatmul.msk.bf16.gmra.mxu3 %vm1370_vm1, %v14555_v50 }
 0xfb6   : > { %6482 = vmatmul.bf16.gmra.mxu0 %v14554_v30  ;;  %7747 = vst [vmem:[%s10018_s5 + $0xbf8] sm:$0xff] %v7235_v38  ;;  %9299 = vmatmul.msk.bf16.gmra.mxu2 %vm1370_vm1, %v14553_v35  ;;  %v5791_v58 = vadd.f32 %v5790_v4, %v13091_v6 }
 0xfb8   : > { %5829 = vmatmul.bf16.gmra.mxu1 %v14556_v27  ;;  %v6119_v15 = vpop.f32.mrf.mxu3 }
 0xfb9   : > { %v6772_v20 = vpop.f32.mrf.mxu2  ;;  %v6120_v1 = vadd.f32 %v6119_v15, %v5791_v58  ;;  %v14561_v15 = vld [vmem:[#allocation91_spill] sm:$0xff] }
 0xfba   : > { %v6773_v18 = vadd.f32 %v6772_v20, %v6444_v51 }
 0xfbb   : > { %v6445_v59 = vpop.f32.mrf.mxu0 }
 0xfbc   : > { %v7239_v36 = vpack.c.bf16 %v6773_v18, %v6115_v19  ;;  %v6446_v12 = vadd.f32 %v6445_v59, %v13093_v31 }
 0xfbd   : > { %v5792_v21 = vpop.f32.mrf.mxu1 }
 0xfbe   : > { %7751 = vst [vmem:[%s10018_s5 + $0xc18] sm:$0xff] %v7239_v36  ;;  %v5793_v41 = vadd.f32 %v5792_v21, %v13091_v6 }
 0xfc0   : > { %v6121_v37 = vpop.f32.mrf.mxu3 }
 0xfc1   : > { %v6774_v60 = vpop.f32.mrf.mxu2  ;;  %v6122_v3 = vadd.f32 %v6121_v37, %v5793_v41 }
 0xfc2   : > { %v6775_v16 = vadd.f32 %v6774_v60, %v6446_v12 }
 0xfc3   : > { %v6448_v63 = vpop.f32.mrf.mxu0 }
 0xfc4   : > { %v7243_v32 = vpack.c.bf16 %v6775_v16, %v6117_v10  ;;  %v6449_v28 = vadd.f32 %v6448_v63, %v13093_v31 }
 0xfc5   : > { %v5795_v46 = vpop.f32.mrf.mxu1  ;;  %9237 = vmatmul.msk.bf16.gmra.mxu3 %vm1370_vm1, %v14557_v49 }
 0xfc6   : > { %6487 = vmatmul.bf16.gmra.mxu0 %v14556_v27  ;;  %7755 = vst [vmem:[%s10018_s5 + $0xc38] sm:$0xff] %v7243_v32  ;;  %9300 = vmatmul.msk.bf16.gmra.mxu2 %vm1370_vm1, %v14555_v50  ;;  %v5796_v35 = vadd.f32 %v5795_v46, %v13091_v6 }
 0xfc8   : > { %5834 = vmatmul.bf16.gmra.mxu1 %v14558_v17  ;;  %v6124_v57 = vpop.f32.mrf.mxu3 }
 0xfc9   : > { %v6777_v53 = vpop.f32.mrf.mxu2  ;;  %v6125_v22 = vadd.f32 %v6124_v57, %v5796_v35 }
 0xfca   : > { %v6778_v44 = vadd.f32 %v6777_v53, %v6449_v28 }
 0xfcb   : > { %v6450_v45 = vpop.f32.mrf.mxu0 }
 0xfcc   : > { %v7247_v33 = vpack.c.bf16 %v6778_v44, %v6120_v1  ;;  %v6451_v23 = vadd.f32 %v6450_v45, %v13093_v31 }
 0xfcd   : > { %v5797_v55 = vpop.f32.mrf.mxu1 }
 0xfce   : > { %7759 = vst [vmem:[%s10018_s5 + $0xc58] sm:$0xff] %v7247_v33  ;;  %v5798_v47 = vadd.f32 %v5797_v55, %v13091_v6 }
 0xfd0   : > { %v6126_v61 = vpop.f32.mrf.mxu3 }
 0xfd1   : > { %v6779_v0 = vpop.f32.mrf.mxu2  ;;  %v6127_v38 = vadd.f32 %v6126_v61, %v5798_v47 }
 0xfd2   : > { %v6780_v29 = vadd.f32 %v6779_v0, %v6451_v23 }
 0xfd3   : > { %v6453_v54 = vpop.f32.mrf.mxu0 }
 0xfd4   : > { %v7251_v30 = vpack.c.bf16 %v6780_v29, %v6122_v3  ;;  %v6454_v2 = vadd.f32 %v6453_v54, %v13093_v31 }
 0xfd5   : > { %v5800_v26 = vpop.f32.mrf.mxu1  ;;  %9238 = vmatmul.msk.bf16.gmra.mxu3 %vm1370_vm1, %v14559_v13 }
 0xfd6   : > { %6492 = vmatmul.bf16.gmra.mxu0 %v14558_v17  ;;  %7763 = vst [vmem:[%s10018_s5 + $0xc78] sm:$0xff] %v7251_v30  ;;  %9301 = vmatmul.msk.bf16.gmra.mxu2 %vm1370_vm1, %v14557_v49  ;;  %v5801_v50 = vadd.f32 %v5800_v26, %v13091_v6 }
 0xfd8   : > { %5839 = vmatmul.bf16.gmra.mxu1 %v14560_v5  ;;  %v6129_v43 = vpop.f32.mrf.mxu3 }
 0xfd9   : > { %v6782_v52 = vpop.f32.mrf.mxu2  ;;  %v6130_v18 = vadd.f32 %v6129_v43, %v5801_v50 }
 0xfda   : > { %v6783_v25 = vadd.f32 %v6782_v52, %v6454_v2 }
 0xfdb   : > { %v6455_v7 = vpop.f32.mrf.mxu0 }
 0xfdc   : > { %v7255_v9 = vpack.c.bf16 %v6783_v25, %v6125_v22  ;;  %v6456_v56 = vadd.f32 %v6455_v7, %v13093_v31 }
 0xfdd   : > { %v5802_v14 = vpop.f32.mrf.mxu1 }
 0xfde   : > { %7767 = vst [vmem:[%s10018_s5 + $0xc98] sm:$0xff] %v7255_v9  ;;  %v5803_v37 = vadd.f32 %v5802_v14, %v13091_v6 }
 0xfe0   : > { %v6131_v62 = vpop.f32.mrf.mxu3 }
 0xfe1   : > { %v6784_v40 = vpop.f32.mrf.mxu2  ;;  %v6132_v58 = vadd.f32 %v6131_v62, %v5803_v37 }
 0xfe2   : > { %v6785_v4 = vadd.f32 %v6784_v40, %v6456_v56 }
 0xfe3   : > { %v6458_v51 = vpop.f32.mrf.mxu0 }
 0xfe4   : > { %v7259_v27 = vpack.c.bf16 %v6785_v4, %v6127_v38  ;;  %v6459_v20 = vadd.f32 %v6458_v51, %v13093_v31 }
 0xfe5   : > { %v5805_v19 = vpop.f32.mrf.mxu1  ;;  %9239 = vmatmul.msk.bf16.gmra.mxu3 %vm1370_vm1, %v14472_v34 }
 0xfe6   : > { %6497 = vmatmul.bf16.gmra.mxu0 %v14560_v5  ;;  %7771 = vst [vmem:[%s10018_s5 + $0xcb8] sm:$0xff] %v7259_v27  ;;  %9302 = vmatmul.msk.bf16.gmra.mxu2 %vm1370_vm1, %v14559_v13  ;;  %v5806_v28 = vadd.f32 %v5805_v19, %v13091_v6  ;;  %v14562_v13 = vld [vmem:[#allocation95_spill] sm:$0xff] }
 0xfe8   : > { %5844 = vmatmul.bf16.gmra.mxu1 %v14561_v15  ;;  %v6134_v36 = vpop.f32.mrf.mxu3 }
 0xfe9   : > { %v6787_v59 = vpop.f32.mrf.mxu2  ;;  %v6135_v53 = vadd.f32 %v6134_v36, %v5806_v28 }
 0xfea   : > { %v6788_v21 = vadd.f32 %v6787_v59, %v6459_v20 }
 0xfeb   : > { %v6460_v24 = vpop.f32.mrf.mxu0 }
 0xfec   : > { %v7263_v12 = vpack.c.bf16 %v6788_v21, %v6130_v18  ;;  %v6461_v10 = vadd.f32 %v6460_v24, %v13093_v31 }
 0xfed   : > { %v5807_v60 = vpop.f32.mrf.mxu1 }
 0xfee   : > { %7775 = vst [vmem:[%s10018_s5 + $0xcd8] sm:$0xff] %v7263_v12  ;;  %v5808_v23 = vadd.f32 %v5807_v60, %v13091_v6 }
 0xff0   : > { %v6136_v63 = vpop.f32.mrf.mxu3 }
 0xff1   : > { %v6789_v16 = vpop.f32.mrf.mxu2  ;;  %v6137_v3 = vadd.f32 %v6136_v63, %v5808_v23 }
 0xff2   : > { %v6790_v32 = vadd.f32 %v6789_v16, %v6461_v10 }
 0xff3   : > { %v6463_v46 = vpop.f32.mrf.mxu0 }
 0xff4   : > { %v7267_v49 = vpack.c.bf16 %v6790_v32, %v6132_v58  ;;  %v6464_v1 = vadd.f32 %v6463_v46, %v13093_v31 }
 0xff5   : > { %v5810_v17 = vpop.f32.mrf.mxu1  ;;  %9240 = vmatmul.msk.bf16.gmra.mxu3 %vm1370_vm1, %v14385_v39 }
 0xff6   : > { %6502 = vmatmul.bf16.gmra.mxu0 %v14561_v15  ;;  %7779 = vst [vmem:[%s10018_s5 + $0xcf8] sm:$0xff] %v7267_v49  ;;  %9303 = vmatmul.msk.bf16.gmra.mxu2 %vm1370_vm1, %v14472_v34  ;;  %v5811_v35 = vadd.f32 %v5810_v17, %v13091_v6 }
 0xff8   : > { %5849 = vmatmul.bf16.gmra.mxu1 %v14474_v42  ;;  %v6139_v44 = vpop.f32.mrf.mxu3 }
 0xff9   : > { %v6792_v57 = vpop.f32.mrf.mxu2  ;;  %v6140_v5 = vadd.f32 %v6139_v44, %v5811_v35 }
 0xffa   : > { %v6793_v45 = vadd.f32 %v6792_v57, %v6464_v1 }
 0xffb   : > { %v6465_v33 = vpop.f32.mrf.mxu0 }
 0xffc   : > { %v7271_v55 = vpack.c.bf16 %v6793_v45, %v6135_v53  ;;  %v6466_v0 = vadd.f32 %v6465_v33, %v13093_v31 }
 0xffd   : > { %v5812_v41 = vpop.f32.mrf.mxu1 }
 0xffe   : > { %7783 = vst [vmem:[%s10018_s5 + $0xd18] sm:$0xff] %v7271_v55 }
0x1000   : > { %v6141_v34 = vpop.f32.mrf.mxu3 }
0x1001   : > { %v6794_v61 = vpop.f32.mrf.mxu2 }
0x1002   : > { %v6795_v29 = vadd.f32 %v6794_v61, %v6466_v0 }
0x1003   : > { %v6468_v54 = vpop.f32.mrf.mxu0 }
0x1004   : > { %v7275_v30 = vpack.c.bf16 %v6795_v29, %v6137_v3  ;;  %v6469_v2 = vadd.f32 %v6468_v54, %v13093_v31 }
0x1005   : > { %v5815_v26 = vpop.f32.mrf.mxu1  ;;  %9241 = vmatmul.msk.bf16.gmra.mxu3 %vm1370_vm1, %v14387_v8 }
0x1006   : > { %6507 = vmatmul.bf16.gmra.mxu0 %v14474_v42  ;;  %7787 = vst [vmem:[%s10018_s5 + $0xd38] sm:$0xff] %v7275_v30  ;;  %9304 = vmatmul.msk.bf16.gmra.mxu2 %vm1370_vm1, %v14385_v39  ;;  %v5813_v42 = vadd.f32 %v5812_v41, %v13091_v6  ;;  %v5816_v38 = vadd.f32 %v5815_v26, %v13091_v6 }
0x1008   : > { %5854 = vmatmul.bf16.gmra.mxu1 %v14562_v13  ;;  %v6144_v52 = vpop.f32.mrf.mxu3  ;;  %v6142_v56 = vadd.f32 %v6141_v34, %v5813_v42 }
0x1009   : > { %v6797_v22 = vpop.f32.mrf.mxu2  ;;  %v6145_v27 = vadd.f32 %v6144_v52, %v5816_v38 }
0x100a   : > { %v6798_v43 = vadd.f32 %v6797_v22, %v6469_v2 }
0x100b   : > { %v6470_v25 = vpop.f32.mrf.mxu0 }
0x100c   : > { %v7279_v7 = vpack.c.bf16 %v6798_v43, %v6140_v5  ;;  %v6471_v14 = vadd.f32 %v6470_v25, %v13093_v31 }
0x100d   : > { %v5817_v9 = vpop.f32.mrf.mxu1 }
0x100e   : > { %7791 = vst [vmem:[%s10018_s5 + $0xd58] sm:$0xff] %v7279_v7  ;;  %v5818_v21 = vadd.f32 %v5817_v9, %v13091_v6 }
0x1010   : > { %v6146_v39 = vpop.f32.mrf.mxu3 }
0x1011   : > { %v6799_v47 = vpop.f32.mrf.mxu2  ;;  %v6147_v60 = vadd.f32 %v6146_v39, %v5818_v21 }
0x1012   : > { %v6800_v40 = vadd.f32 %v6799_v47, %v6471_v14 }
0x1013   : > { %v6473_v62 = vpop.f32.mrf.mxu0 }
0x1014   : > { %v7283_v4 = vpack.c.bf16 %v6800_v40, %v6142_v56  ;;  %v6474_v50 = vadd.f32 %v6473_v62, %v13093_v31 }
0x1015   : > { %v5820_v51 = vpop.f32.mrf.mxu1  ;;  %9242 = vmatmul.msk.bf16.gmra.mxu3 %vm1370_vm1, %v14388_v48 }
0x1016   : > { %6512 = vmatmul.bf16.gmra.mxu0 %v14562_v13  ;;  %7795 = vst [vmem:[%s10018_s5 + $0xd78] sm:$0xff] %v7283_v4  ;;  %9305 = vmatmul.msk.bf16.gmra.mxu2 %vm1370_vm1, %v14387_v8  ;;  %v5821_v16 = vadd.f32 %v5820_v51, %v13091_v6 }
0x1018   : > { %5859 = vmatmul.bf16.gmra.mxu1 %v14475_v11  ;;  %v6149_v20 = vpop.f32.mrf.mxu3 }
0x1019   : > { %v6802_v19 = vpop.f32.mrf.mxu2  ;;  %v6150_v46 = vadd.f32 %v6149_v20, %v5821_v16 }
0x101a   : > { %v6803_v15 = vadd.f32 %v6802_v19, %v6474_v50 }
0x101b   : > { %v6475_v18 = vpop.f32.mrf.mxu0 }
0x101c   : > { %v7287_v59 = vpack.c.bf16 %v6803_v15, %v6145_v27  ;;  %v6476_v24 = vadd.f32 %v6475_v18, %v13093_v31 }
0x101d   : > { %v5822_v36 = vpop.f32.mrf.mxu1 }
0x101e   : > { %7799 = vst [vmem:[%s10018_s5 + $0xd98] sm:$0xff] %v7287_v59  ;;  %v5823_v44 = vadd.f32 %v5822_v36, %v13091_v6 }
0x1020   : > { %v6151_v8 = vpop.f32.mrf.mxu3 }
0x1021   : > { %v6804_v12 = vpop.f32.mrf.mxu2  ;;  %v6152_v55 = vadd.f32 %v6151_v8, %v5823_v44 }
0x1022   : > { %v6805_v37 = vadd.f32 %v6804_v12, %v6476_v24 }
0x1023   : > { %v6478_v10 = vpop.f32.mrf.mxu0 }
0x1024   : > { %v7291_v63 = vpack.c.bf16 %v6805_v37, %v6147_v60  ;;  %v6479_v32 = vadd.f32 %v6478_v10, %v13093_v31 }
0x1025   : > { %v5825_v58 = vpop.f32.mrf.mxu1 }
0x1026   : > { %6517 = vmatmul.bf16.gmra.mxu0 %v14475_v11  ;;  %7803 = vst [vmem:[%s10018_s5 + $0xdb8] sm:$0xff] %v7291_v63  ;;  %9306 = vmatmul.msk.bf16.gmra.mxu2 %vm1370_vm1, %v14388_v48  ;;  %v5826_v48 = vadd.f32 %v5825_v58, %v13091_v6 }
0x1028   : > { %v6154_v49 = vpop.f32.mrf.mxu3 }
0x1029   : > { %v6807_v28 = vpop.f32.mrf.mxu2  ;;  %v6155_v3 = vadd.f32 %v6154_v49, %v5826_v48 }
0x102a   : > { %v6808_v17 = vadd.f32 %v6807_v28, %v6479_v32 }
0x102b   : > { %v6480_v1 = vpop.f32.mrf.mxu0 }
0x102c   : > { %v7295_v53 = vpack.c.bf16 %v6808_v17, %v6150_v46  ;;  %v6481_v45 = vadd.f32 %v6480_v1, %v13093_v31 }
0x102d   : > { %v5827_v57 = vpop.f32.mrf.mxu1 }
0x102e   : > { %7807 = vst [vmem:[%s10018_s5 + $0xdd8] sm:$0xff] %v7295_v53  ;;  %v5828_v13 = vadd.f32 %v5827_v57, %v13091_v6 }
0x1030   : > { %v6156_v33 = vpop.f32.mrf.mxu3 }
0x1031   : > { %v6809_v11 = vpop.f32.mrf.mxu2  ;;  %v6157_v43 = vadd.f32 %v6156_v33, %v5828_v13 }
0x1032   : > { %v6810_v41 = vadd.f32 %v6809_v11, %v6481_v45 }
0x1033   : > { %v6483_v23 = vpop.f32.mrf.mxu0 }
0x1034   : > { %v7299_v0 = vpack.c.bf16 %v6810_v41, %v6152_v55  ;;  %v6484_v34 = vadd.f32 %v6483_v23, %v13093_v31 }
0x1035   : > { %v5830_v61 = vpop.f32.mrf.mxu1 }
0x1036   : > { %7811 = vst [vmem:[%s10018_s5 + $0xdf8] sm:$0xff] %v7299_v0  ;;  %v5831_v9 = vadd.f32 %v5830_v61, %v13091_v6 }
0x1038   : > { %v6159_v54 = vpop.f32.mrf.mxu3 }
0x1039   : > { %v6812_v29 = vpop.f32.mrf.mxu2  ;;  %v6160_v39 = vadd.f32 %v6159_v54, %v5831_v9 }
0x103a   : > { %v6813_v35 = vadd.f32 %v6812_v29, %v6484_v34 }
0x103b   : > { %v6485_v30 = vpop.f32.mrf.mxu0 }
0x103c   : > { %v7303_v26 = vpack.c.bf16 %v6813_v35, %v6155_v3  ;;  %v6486_v5 = vadd.f32 %v6485_v30, %v13093_v31 }
0x103d   : > { %v5832_v2 = vpop.f32.mrf.mxu1 }
0x103e   : > { %7815 = vst [vmem:[%s10018_s5 + $0xe18] sm:$0xff] %v7303_v26  ;;  %v5833_v50 = vadd.f32 %v5832_v2, %v13091_v6 }
0x1040   : > { %v6161_v52 = vpop.f32.mrf.mxu3 }
0x1041   : > { %v6814_v22 = vpop.f32.mrf.mxu2  ;;  %v6162_v15 = vadd.f32 %v6161_v52, %v5833_v50 }
0x1042   : > { %v6815_v25 = vadd.f32 %v6814_v22, %v6486_v5 }
0x1043   : > { %v6488_v7 = vpop.f32.mrf.mxu0 }
0x1044   : > { %v7307_v42 = vpack.c.bf16 %v6815_v25, %v6157_v43  ;;  %v6489_v47 = vadd.f32 %v6488_v7, %v13093_v31 }
0x1045   : > { %v5835_v14 = vpop.f32.mrf.mxu1 }
0x1046   : > { %7819 = vst [vmem:[%s10018_s5 + $0xe38] sm:$0xff] %v7307_v42  ;;  %v5836_v36 = vadd.f32 %v5835_v14, %v13091_v6 }
0x1048   : > { %v6164_v40 = vpop.f32.mrf.mxu3 }
0x1049   : > { %v6817_v56 = vpop.f32.mrf.mxu2  ;;  %v6165_v8 = vadd.f32 %v6164_v40, %v5836_v36 }
0x104a   : > { %v6818_v62 = vadd.f32 %v6817_v56, %v6489_v47 }
0x104b   : > { %v6490_v38 = vpop.f32.mrf.mxu0 }
0x104c   : > { %v7311_v4 = vpack.c.bf16 %v6818_v62, %v6160_v39  ;;  %v6491_v27 = vadd.f32 %v6490_v38, %v13093_v31 }
0x104d   : > { %v5837_v51 = vpop.f32.mrf.mxu1 }
0x104e   : > { %7823 = vst [vmem:[%s10018_s5 + $0xe58] sm:$0xff] %v7311_v4  ;;  %v5838_v32 = vadd.f32 %v5837_v51, %v13091_v6 }
0x1050   : > { %v6166_v20 = vpop.f32.mrf.mxu3 }
0x1051   : > { %v6819_v19 = vpop.f32.mrf.mxu2  ;;  %v6167_v17 = vadd.f32 %v6166_v20, %v5838_v32 }
0x1052   : > { %v6820_v18 = vadd.f32 %v6819_v19, %v6491_v27 }
0x1053   : > { %v6493_v59 = vpop.f32.mrf.mxu0 }
0x1054   : > { %v7315_v21 = vpack.c.bf16 %v6820_v18, %v6162_v15  ;;  %v6494_v12 = vadd.f32 %v6493_v59, %v13093_v31 }
0x1055   : > { %v5840_v24 = vpop.f32.mrf.mxu1 }
0x1056   : > { %7827 = vst [vmem:[%s10018_s5 + $0xe78] sm:$0xff] %v7315_v21  ;;  %v5841_v57 = vadd.f32 %v5840_v24, %v13091_v6 }
0x1058   : > { %v6169_v37 = vpop.f32.mrf.mxu3 }
0x1059   : > { %v6822_v60 = vpop.f32.mrf.mxu2  ;;  %v6170_v33 = vadd.f32 %v6169_v37, %v5841_v57 }
0x105a   : > { %v6823_v10 = vadd.f32 %v6822_v60, %v6494_v12 }
0x105b   : > { %v6495_v16 = vpop.f32.mrf.mxu0 }
0x105c   : > { %v7319_v63 = vpack.c.bf16 %v6823_v10, %v6165_v8  ;;  %v6496_v46 = vadd.f32 %v6495_v16, %v13093_v31 }
0x105d   : > { %v5842_v58 = vpop.f32.mrf.mxu1 }
0x105e   : > { %7831 = vst [vmem:[%s10018_s5 + $0xe98] sm:$0xff] %v7319_v63  ;;  %v5843_v61 = vadd.f32 %v5842_v58, %v13091_v6 }
0x1060   : > { %v6171_v49 = vpop.f32.mrf.mxu3 }
0x1061   : > { %v6824_v28 = vpop.f32.mrf.mxu2  ;;  %v6172_v54 = vadd.f32 %v6171_v49, %v5843_v61 }
0x1062   : > { %v6825_v1 = vadd.f32 %v6824_v28, %v6496_v46 }
0x1063   : > { %v6498_v53 = vpop.f32.mrf.mxu0 }
0x1064   : > { %v7323_v44 = vpack.c.bf16 %v6825_v1, %v6167_v17  ;;  %v6499_v11 = vadd.f32 %v6498_v53, %v13093_v31 }
0x1065   : > { %v5845_v45 = vpop.f32.mrf.mxu1 }
0x1066   : > { %7835 = vst [vmem:[%s10018_s5 + $0xeb8] sm:$0xff] %v7323_v44  ;;  %v5846_v2 = vadd.f32 %v5845_v45, %v13091_v6 }
0x1068   : > { %v6174_v41 = vpop.f32.mrf.mxu3 }
0x1069   : > { %v6827_v55 = vpop.f32.mrf.mxu2  ;;  %v6175_v22 = vadd.f32 %v6174_v41, %v5846_v2 }
0x106a   : > { %v6828_v23 = vadd.f32 %v6827_v55, %v6499_v11 }
0x106b   : > { %v6500_v48 = vpop.f32.mrf.mxu0 }
0x106c   : > { %v7327_v0 = vpack.c.bf16 %v6828_v23, %v6170_v33  ;;  %v6501_v3 = vadd.f32 %v6500_v48, %v13093_v31 }
0x106d   : > { %v5847_v34 = vpop.f32.mrf.mxu1 }
0x106e   : > { %7839 = vst [vmem:[%s10018_s5 + $0xed8] sm:$0xff] %v7327_v0  ;;  %v5848_v14 = vadd.f32 %v5847_v34, %v13091_v6 }
0x1070   : > { %v6176_v26 = vpop.f32.mrf.mxu3 }
0x1071   : > { %v6829_v29 = vpop.f32.mrf.mxu2  ;;  %v6177_v56 = vadd.f32 %v6176_v26, %v5848_v14 }
0x1072   : > { %v6830_v35 = vadd.f32 %v6829_v29, %v6501_v3 }
0x1073   : > { %v6503_v30 = vpop.f32.mrf.mxu0 }
0x1074   : > { %v7331_v13 = vpack.c.bf16 %v6830_v35, %v6172_v54  ;;  %v6504_v5 = vadd.f32 %v6503_v30, %v13093_v31 }
0x1075   : > { %v5850_v43 = vpop.f32.mrf.mxu1 }
0x1076   : > { %7843 = vst [vmem:[%s10018_s5 + $0xef8] sm:$0xff] %v7331_v13  ;;  %v5851_v4 = vadd.f32 %v5850_v43, %v13091_v6 }
0x1078   : > { %v6179_v42 = vpop.f32.mrf.mxu3 }
0x1079   : > { %v6832_v52 = vpop.f32.mrf.mxu2  ;;  %v6180_v19 = vadd.f32 %v6179_v42, %v5851_v4 }
0x107a   : > { %v6833_v25 = vadd.f32 %v6832_v52, %v6504_v5 }
0x107b   : > { %v6505_v7 = vpop.f32.mrf.mxu0 }
0x107c   : > { %v7335_v9 = vpack.c.bf16 %v6833_v25, %v6175_v22  ;;  %v6506_v47 = vadd.f32 %v6505_v7, %v13093_v31 }
0x107d   : > { %v5852_v38 = vpop.f32.mrf.mxu1 }
0x107e   : > { %7847 = vst [vmem:[%s10018_s5 + $0xf18] sm:$0xff] %v7335_v9  ;;  %v5853_v21 = vadd.f32 %v5852_v38, %v13091_v6 }
0x1080   : > { %v6181_v27 = vpop.f32.mrf.mxu3 }
0x1081   : > { %v6834_v39 = vpop.f32.mrf.mxu2  ;;  %v6182_v60 = vadd.f32 %v6181_v27, %v5853_v21 }
0x1082   : > { %v6835_v40 = vadd.f32 %v6834_v39, %v6506_v47 }
0x1083   : > { %v6508_v62 = vpop.f32.mrf.mxu0 }
0x1084   : > { %v7339_v51 = vpack.c.bf16 %v6835_v40, %v6177_v56  ;;  %v6509_v50 = vadd.f32 %v6508_v62, %v13093_v31 }
0x1085   : > { %v5855_v36 = vpop.f32.mrf.mxu1 }
0x1086   : > { %7851 = vst [vmem:[%s10018_s5 + $0xf38] sm:$0xff] %v7339_v51  ;;  %v5856_v16 = vadd.f32 %v5855_v36, %v13091_v6 }
0x1088   : > { %v6184_v12 = vpop.f32.mrf.mxu3 }
0x1089   : > { %v6837_v20 = vpop.f32.mrf.mxu2  ;;  %v6185_v46 = vadd.f32 %v6184_v12, %v5856_v16 }
0x108a   : > { %v6838_v15 = vadd.f32 %v6837_v20, %v6509_v50 }
0x108b   : > { %v6510_v18 = vpop.f32.mrf.mxu0 }
0x108c   : > { %v7343_v59 = vpack.c.bf16 %v6838_v15, %v6180_v19  ;;  %v6511_v24 = vadd.f32 %v6510_v18, %v13093_v31 }
0x108d   : > { %v5857_v32 = vpop.f32.mrf.mxu1 }
0x108e   : > { %7855 = vst [vmem:[%s10018_s5 + $0xf58] sm:$0xff] %v7343_v59  ;;  %v5858_v57 = vadd.f32 %v5857_v32, %v13091_v6 }
0x1090   : > { %v6186_v1 = vpop.f32.mrf.mxu3 }
0x1091   : > { %v6839_v8 = vpop.f32.mrf.mxu2  ;;  %v6187_v33 = vadd.f32 %v6186_v1, %v5858_v57 }
0x1092   : > { %v6840_v37 = vadd.f32 %v6839_v8, %v6511_v24 }
0x1093   : > { %v6513_v10 = vpop.f32.mrf.mxu0 }
0x1094   : > { %v7347_v63 = vpack.c.bf16 %v6840_v37, %v6182_v60  ;;  %v6514_v58 = vadd.f32 %v6513_v10, %v13093_v31 }
0x1095   : > { %v5860_v45 = vpop.f32.mrf.mxu1 }
0x1096   : > { %7859 = vst [vmem:[%s10018_s5 + $0xf78] sm:$0xff] %v7347_v63  ;;  %v5861_v23 = vadd.f32 %v5860_v45, %v13091_v6 }
0x1098   : > { %v6189_v0 = vpop.f32.mrf.mxu3 }
0x1099   : > { %v6842_v28 = vpop.f32.mrf.mxu2  ;;  %v6190_v34 = vadd.f32 %v6189_v0, %v5861_v23 }
0x109a   : > { %v6843_v49 = vadd.f32 %v6842_v28, %v6514_v58 }
0x109b   : > { %v6515_v17 = vpop.f32.mrf.mxu0 }
0x109c   : > { %v7351_v53 = vpack.c.bf16 %v6843_v49, %v6185_v46  ;;  %v6516_v44 = vadd.f32 %v6515_v17, %v13093_v31 }
0x109d   : > { %v5862_v54 = vpop.f32.mrf.mxu1 }
0x109e   : > { %7863 = vst [vmem:[%s10018_s5 + $0xf98] sm:$0xff] %v7351_v53  ;;  %v5863_v26 = vadd.f32 %v5862_v54, %v13091_v6 }
0x10a0   : > { %v6191_v2 = vpop.f32.mrf.mxu3 }
0x10a1   : > { %v6844_v11 = vpop.f32.mrf.mxu2  ;;  %v6192_v22 = vadd.f32 %v6191_v2, %v5863_v26 }
0x10a2   : > { %v6845_v55 = vadd.f32 %v6844_v11, %v6516_v44 }
0x10a3   : > { %v6518_v41 = vpop.f32.mrf.mxu0 }
0x10a4   : > { %v7355_v48 = vpack.c.bf16 %v6845_v55, %v6187_v33  ;;  %v6519_v61 = vadd.f32 %v6518_v41, %v13093_v31 }
0x10a6   : > { %7867 = vst [vmem:[%s10018_s5 + $0xfb8] sm:$0xff] %v7355_v48 }
0x10a9   : > { %v6847_v3 = vpop.f32.mrf.mxu2 }
0x10aa   : > { %v6848_v29 = vadd.f32 %v6847_v3, %v6519_v61 }
0x10ab   : > { %v6520_v30 = vpop.f32.mrf.mxu0 }
0x10ac   : > { %v7359_v35 = vpack.c.bf16 %v6848_v29, %v6190_v34  ;;  %v6521_v13 = vadd.f32 %v6520_v30, %v13093_v31 }
0x10ae   : > { %7871 = vst [vmem:[%s10018_s5 + $0xfd8] sm:$0xff] %v7359_v35 }
0x10b1   : > { %v6849_v5 = vpop.f32.mrf.mxu2 }
0x10b2   : > { %v6850_v52 = vadd.f32 %v6849_v5, %v6521_v13 }
0x10b4   : > { %v7363_v43 = vpack.c.bf16 %v6850_v52, %v6192_v22 }
0x10b6   : > { %7875 = vst [vmem:[%s10018_s5 + $0xff8] sm:$0xff] %v7363_v43 }
0x10b7   : > { %9595 = shalt.err (!%p9592_p3)
}
0x10b8   : > { %s9632_s30 = smov 512   ;;  %s9633_s5 = smov 32  }
0x10b9   : > { %9524 = dma.vmem_to_hbm [thread:$0]  (%p9692_p5), %s7891_s19, 65536, %s7893_s20, %s7877_s16, %s9632_s30, %s9632_s30, %s9633_s5  }
0x10ba PF: > { %p9530_p4 = scmp.ge.s32.totalorder %s9630_s15, 2  ;;  %s7907_s4 = sand.u32 1, %s9618_s12  }
0x10bb   : > { %s7908_s6 = scalar_lea.sflag [#allocation3], %s7907_s4 }
0x10bc   : > { %p9527_p7 = pnand %p9530_p4, %p9696_p6 }
0x10be   : > { %p9528_p8 = pneg %p9527_p7 }
0x10c0   : > { %9613 = dma.done.wait (%p9528_p8), %s7908_s6, 65536  }
0x10c1   : > { %9615 = vsyncadd (%p9528_p8), %s7908_s6, 4294901760  ;;  %p13_p9 = scmp.ge.s32.totalorder %s9679_s18, 11   ;;  %s14563_s12 = smov %s9622_s13 }
0x10c2   : > { %s14564_s13 = smov %s9626_s14  ;;  %s14565_s14 = smov %s9690_s21 }
0x10c3   : > { %s14566_s15 = smov %s9679_s18  ;;  %15 = sbr.rel (!%p13_p9) target bundleno = 3 (0x3), region = 67 }
0x10c8   :  { %7914 = vsyncpa [#allocation3], 1 }
0x10c9   :  { %7916 = vsyncpa [#allocation3 + $0x1], 1 }

</bundles_post_ra>
